<compile_context>
chip_gen: v7x
topology: tpu7x:2x2x1
jax: 0.10.0
libtpu: 0.0.40
codegen_flags: <defaults>
</compile_context>

<pallas_src>
import functools

import jax
import jax.numpy as jnp
from jax.experimental import pallas as pl
from jax.experimental.pallas import tpu as pltpu


# ---------------------------------------------------------------------------
# Pallas kernel: hoisted projection + fused bidirectional LSTM + head linears.
# ---------------------------------------------------------------------------
def _asmiles_kernel(x_ref,       # [TB*S, H]        bf16, pre-sigmoid hidden states
                    w_ih_ref,    # [H, 8*HDP]       bf16, padded [W_ih_f | W_ih_b]
                    b_all_ref,   # [1, 8*HDP]       f32,  padded (b_ih + b_hh) both dirs
                    w_hh_ref,    # [2*HDP, 8*HDP]   f32,  block-diag padded recurrent W
                    w_lin_ref,   # [1, HDP]         f32,  padded Linear(10,1) weight row
                    head_ref,    # [1, 4]           f32:  b_lin, w1_fwd, w1_bwd, b_lin1
                    pred_ref,    # [TB, 1]          f32 out: predictions
                    gates_ref,   # scratch [TB*S, 8*HDP] f32
                    *, seq_len, tb, hdp):
    GDIR = 4 * hdp            # one direction's gate width (i|f|g|o, 128 lanes each)

    # ---- hoisted: sigmoid + input projection for ALL timesteps, one matmul ----
    xs = jax.nn.sigmoid(x_ref[...].astype(jnp.float32))              # [TB*S, H] f32
    gx = jnp.dot(xs.astype(jnp.bfloat16), w_ih_ref[...],
                 preferred_element_type=jnp.float32)                 # [TB*S, 8*HDP]
    gates_ref[...] = gx + b_all_ref[...]                             # bias folded once

    w_hh = w_hh_ref[...]                                             # [2*HDP, 8*HDP]

    def lstm_update(pre, c):
        # gate slots are 128-lane aligned -> free vreg views
        i_g = jax.nn.sigmoid(pre[:, 0 * hdp:1 * hdp])
        f_g = jax.nn.sigmoid(pre[:, 1 * hdp:2 * hdp])
        g_g = jnp.tanh(pre[:, 2 * hdp:3 * hdp])
        o_g = jax.nn.sigmoid(pre[:, 3 * hdp:4 * hdp])
        c_new = f_g * c + i_g * g_g
        return o_g * jnp.tanh(c_new), c_new

    def step(t, carry):
        h_f, c_f, h_b, c_b = carry
        # both directions' recurrent matmul in ONE MXU call (block-diagonal W_hh)
        h_all = jnp.concatenate([h_f, h_b], axis=1)                  # [TB, 2*HDP]
        gh = jnp.dot(h_all, w_hh, preferred_element_type=jnp.float32)  # [TB, 8*HDP]

        t_rev = seq_len - 1 - t
        # precomputed gate rows: row b*S + time  (batch-major flat layout)
        rows_f = jnp.concatenate(
            [gates_ref[pl.ds(b * seq_len + t, 1), :] for b in range(tb)], axis=0)
        rows_b = jnp.concatenate(
            [gates_ref[pl.ds(b * seq_len + t_rev, 1), :] for b in range(tb)], axis=0)

        h_f, c_f = lstm_update(rows_f[:, :GDIR] + gh[:, :GDIR], c_f)
        h_b, c_b = lstm_update(rows_b[:, GDIR:] + gh[:, GDIR:], c_b)
        return (h_f, c_f, h_b, c_b)

    z = jnp.zeros((tb, hdp), jnp.float32)
    h_f, _, h_b, _ = jax.lax.fori_loop(0, seq_len, step, (z, z, z, z), unroll=True)

    # ---- head: Linear(10,1) on h_n[0], h_n[1]; then Linear(2,1) on the pair ----
    w_lin = w_lin_ref[...]                                           # [1, HDP]
    hv = head_ref[...]                                               # [1, 4]
    b_lin, w1_f, w1_b, b1 = hv[:, 0:1], hv[:, 1:2], hv[:, 2:3], hv[:, 3:4]
    y_f = jnp.sum(h_f * w_lin, axis=1, keepdims=True) + b_lin        # [TB, 1]
    y_b = jnp.sum(h_b * w_lin, axis=1, keepdims=True) + b_lin        # [TB, 1]
    pred_ref[...] = y_f * w1_f + y_b * w1_b + b1                     # [TB, 1]


# ---------------------------------------------------------------------------
# Wrapper: layout/pack glue + pallas_call (+ mean-L1 loss from pred).
# ---------------------------------------------------------------------------
def asmiles_forward(bert_out0, batch_label, packed, *, hdp=128, block_b=None):
    B, S, H = bert_out0.shape
    GALL = 8 * hdp
    if block_b is None:
        block_b = B if B <= 8 or B % 8 != 0 else 8
    assert B % block_b == 0
    grid = (B // block_b,)

    # free row-major reshape (NO transpose of the big activation), bf16 halves DMA
    x2d = bert_out0.astype(jnp.bfloat16).reshape(B * S, H)

    kernel = functools.partial(_asmiles_kernel, seq_len=S, tb=block_b, hdp=hdp)

    pred = pl.pallas_call(
        kernel,
        out_shape=jax.ShapeDtypeStruct((B, 1), jnp.float32),
        grid=grid,
        in_specs=[
            pl.BlockSpec((block_b * S, H), lambda i: (i, 0)),      # x  (batch block)
            pl.BlockSpec((H, GALL), lambda i: (0, 0)),             # W_ih (both dirs)
            pl.BlockSpec((1, GALL), lambda i: (0, 0)),             # biases
            pl.BlockSpec((2 * hdp, GALL), lambda i: (0, 0)),       # W_hh block-diag
            pl.BlockSpec((1, hdp), lambda i: (0, 0)),              # Linear(10,1) row
            pl.BlockSpec((1, 4), lambda i: (0, 0)),                # head scalars
        ],
        out_specs=pl.BlockSpec((block_b, 1), lambda i: (i, 0)),
        scratch_shapes=[pltpu.VMEM((block_b * S, GALL), jnp.float32)],
        compiler_params=pltpu.CompilerParams(
            dimension_semantics=("parallel",),          # v7x: shard batch blocks over TCs
            vmem_limit_bytes=32 * 1024 * 1024,
        ),
    )(x2d, packed["w_ih_all"], packed["b_all"], packed["w_hh_all"],
      packed["w_lin_row"], packed["head"])

    preds = pred[:, 0]
    # L1Loss (mean) computed from pred in the wrapper (keeps the scalar reduction
    # off the kernel's vector-store critical path).
    loss = jnp.mean(jnp.abs(preds - batch_label))
    return loss, preds


# ---------------------------------------------------------------------------
# Parameter init (natural math layout) + packing into padded kernel operands.
# ---------------------------------------------------------------------------
def init_params(key, H=768, HD=10):
    ks = jax.random.split(key, 14)

    def u(k, shape, bound):
        return jax.random.uniform(k, shape, jnp.float32, -bound, bound)

    k_lstm = 1.0 / (HD ** 0.5)
    return {
        # nn.LSTM(768, 10, bidirectional=True) — forward direction (gate order i,f,g,o)
        "w_ih_f": u(ks[0], (H, 4 * HD), k_lstm),
        "w_hh_f": u(ks[1], (HD, 4 * HD), k_lstm),
        "b_f":    u(ks[2], (1, 4 * HD), k_lstm) + u(ks[3], (1, 4 * HD), k_lstm),
        # reverse direction
        "w_ih_b": u(ks[4], (H, 4 * HD), k_lstm),
        "w_hh_b": u(ks[5], (HD, 4 * HD), k_lstm),
        "b_b":    u(ks[6], (1, 4 * HD), k_lstm) + u(ks[7], (1, 4 * HD), k_lstm),
        # nn.Linear(10, 1)
        "w_lin":  u(ks[8], (HD, 1), 1.0 / (HD ** 0.5)),
        "b_lin":  u(ks[9], (1, 1), 1.0 / (HD ** 0.5)),
        # nn.Linear(2, 1)
        "w_lin1": u(ks[10], (2, 1), 1.0 / (2.0 ** 0.5)),
        "b_lin1": u(ks[11], (1, 1), 1.0 / (2.0 ** 0.5)),
        # nn.Linear(768, 10): self.classifier — defined in __init__ but never
        # used in forward(); initialized only for structural fidelity.
        "w_cls":  u(ks[12], (H, 10), 1.0 / (H ** 0.5)),
        "b_cls":  u(ks[13], (1, 10), 1.0 / (H ** 0.5)),
    }


def pack_params(p, *, H=768, HD=10, HDP=128):
    """Pad each LSTM gate into its own 128-lane slot (zeros elsewhere) and build
    the fused/padded operands the kernel consumes. Zero padding is exact: padded
    lanes of h/c provably stay zero through the recurrence."""
    GDIR = 4 * HDP

    def pad_gate_cols(w):                     # [rows, 4*HD] -> [rows, 4*HDP]
        out = jnp.zeros((w.shape[0], GDIR), w.dtype)
        for g in range(4):
            out = out.at[:, g * HDP:g * HDP + HD].set(w[:, g * HD:(g + 1) * HD])
        return out

    def pad_hh(w):                            # [HD, 4*HD] -> [HDP, 4*HDP]
        return jnp.zeros((HDP, GDIR), w.dtype).at[:HD, :].set(pad_gate_cols(w))

    w_ih_all = jnp.concatenate(
        [pad_gate_cols(p["w_ih_f"]), pad_gate_cols(p["w_ih_b"])], axis=1
    ).astype(jnp.bfloat16)                                            # [H, 8*HDP]
    b_all = jnp.concatenate(
        [pad_gate_cols(p["b_f"]), pad_gate_cols(p["b_b"])], axis=1
    ).astype(jnp.float32)                                             # [1, 8*HDP]

    w_hh_all = jnp.zeros((2 * HDP, 2 * GDIR), jnp.float32)
    w_hh_all = w_hh_all.at[:HDP, :GDIR].set(pad_hh(p["w_hh_f"]))
    w_hh_all = w_hh_all.at[HDP:, GDIR:].set(pad_hh(p["w_hh_b"]))      # block-diag

    w_lin_row = jnp.zeros((1, HDP), jnp.float32).at[0, :HD].set(p["w_lin"][:, 0])
    head = jnp.array([[p["b_lin"][0, 0], p["w_lin1"][0, 0],
                       p["w_lin1"][1, 0], p["b_lin1"][0, 0]]], jnp.float32)

    return {"w_ih_all": w_ih_all, "b_all": b_all, "w_hh_all": w_hh_all,
            "w_lin_row": w_lin_row, "head": head}


def bert_standin(token_ids, attention_mask, tok_emb, pos_emb):
    # TODO(synk): external HF BERT encoder replaced by deterministic embedding
    # stand-in (token emb + position emb, masked) producing [B, S, 768].
    h = tok_emb[token_ids] + pos_emb[None, :, :]
    return h * attention_mask[..., None].astype(h.dtype)


# ---------------------------------------------------------------------------
# Pure-JAX reference (mirrors the kernel's bf16 input-projection precision).
# ---------------------------------------------------------------------------
def reference_forward(bert_out0, label, p):
    B, S, H = bert_out0.shape
    HD = p["w_hh_f"].shape[0]
    hi = jax.lax.Precision.HIGHEST
    xs = jax.nn.sigmoid(bert_out0.astype(jnp.bfloat16).astype(jnp.float32))
    xs_bf = xs.astype(jnp.bfloat16).reshape(B * S, H)

    def gates_for(w_ih, b):
        g = jnp.dot(xs_bf, w_ih.astype(jnp.bfloat16),
                    preferred_element_type=jnp.float32) + b
        return g.reshape(B, S, 4 * HD)

    gx_f = gates_for(p["w_ih_f"], p["b_f"])
    gx_b = gates_for(p["w_ih_b"], p["b_b"])

    def run(gx, w_hh, reverse):
        h = jnp.zeros((B, HD), jnp.float32)
        c = jnp.zeros((B, HD), jnp.float32)
        ts = range(S - 1, -1, -1) if reverse else range(S)
        for t in ts:
            gates = gx[:, t, :] + jnp.dot(h, w_hh, precision=hi)
            i_g = jax.nn.sigmoid(gates[:, :HD])
            f_g = jax.nn.sigmoid(gates[:, HD:2 * HD])
            g_g = jnp.tanh(gates[:, 2 * HD:3 * HD])
            o_g = jax.nn.sigmoid(gates[:, 3 * HD:])
            c = f_g * c + i_g * g_g
            h = o_g * jnp.tanh(c)
        return h

    h_f = run(gx_f, p["w_hh_f"], False)
    h_b = run(gx_b, p["w_hh_b"], True)
    y_f = jnp.dot(h_f, p["w_lin"], precision=hi) + p["b_lin"]
    y_b = jnp.dot(h_b, p["w_lin"], precision=hi) + p["b_lin"]
    pred = (jnp.dot(jnp.concatenate([y_f, y_b], axis=1), p["w_lin1"], precision=hi)
            + p["b_lin1"])[:, 0]
    loss = jnp.mean(jnp.abs(pred - label))
    return loss, pred


if __name__ == "__main__":
    B, S, H, V, HD, HDP = 2, 8, 768, 32, 10, 128

    key = jax.random.PRNGKey(0)
    k_tok, k_lab, k_emb, k_pos, k_par = jax.random.split(key, 5)

    batch_text = jax.random.randint(k_tok, (B, S), 0, V, dtype=jnp.int32)
    batch_attention_mask = jnp.ones((B, S), jnp.int32)
    batch_label = jax.random.normal(k_lab, (B,), jnp.float32)

    tok_emb = 0.02 * jax.random.normal(k_emb, (V, H), jnp.float32)
    pos_emb = 0.02 * jax.random.normal(k_pos, (S, H), jnp.float32)
    params = init_params(k_par, H=H, HD=HD)
    packed = pack_params(params, H=H, HD=HD, HDP=HDP)

    bert_out0 = bert_standin(batch_text, batch_attention_mask, tok_emb, pos_emb)

    loss, preds = asmiles_forward(bert_out0, batch_label, packed, hdp=HDP)
    jax.block_until_ready((loss, preds))

    ref_loss, ref_preds = reference_forward(bert_out0, batch_label, params)
    assert preds.shape == (B,)
    assert jnp.allclose(preds, ref_preds, atol=2e-2, rtol=2e-2), (preds, ref_preds)
    assert jnp.allclose(loss, ref_loss, atol=2e-2, rtol=2e-2), (loss, ref_loss)

    print("KERNEL_OK")
</pallas_src>

<mosaic_0001>
module attributes {stable_mosaic.version = 11 : i64} {
  func.func @_asmiles_kernel(%arg0: i32, %arg1: memref<16x768xbf16, #tpu.memory_space<vmem>>, %arg2: memref<768x1024xbf16, #tpu.memory_space<vmem>>, %arg3: memref<1x1024xf32, #tpu.memory_space<vmem>>, %arg4: memref<256x1024xf32, #tpu.memory_space<vmem>>, %arg5: memref<1x128xf32, #tpu.memory_space<vmem>>, %arg6: memref<1x4xf32, #tpu.memory_space<vmem>>, %arg7: memref<2x1xf32, #tpu.memory_space<vmem>>, %arg8: memref<16x1024xf32, #tpu.memory_space<vmem>>) attributes {dimension_semantics = [#tpu.dimension_semantics<parallel>], iteration_bounds = array<i64: 1>, scalar_prefetch = 0 : i64, scratch_operands = 1 : i64, tpu.core_type = #tpu.core_type<tc>, window_params = [{transform_indices = @transform_0, window_bounds = array<i64: 16, 768>}, {pipeline_mode = #tpu.pipeline_mode<synchronous>, transform_indices = @transform_1, window_bounds = array<i64: 768, 1024>}, {pipeline_mode = #tpu.pipeline_mode<synchronous>, transform_indices = @transform_2, window_bounds = array<i64: 1, 1024>}, {pipeline_mode = #tpu.pipeline_mode<synchronous>, transform_indices = @transform_3, window_bounds = array<i64: 256, 1024>}, {pipeline_mode = #tpu.pipeline_mode<synchronous>, transform_indices = @transform_4, window_bounds = array<i64: 1, 128>}, {pipeline_mode = #tpu.pipeline_mode<synchronous>, transform_indices = @transform_5, window_bounds = array<i64: 1, 4>}, {transform_indices = @transform_6, window_bounds = array<i64: 2, 1>}]} {
    %c0 = arith.constant 0 : index
    %c0_0 = arith.constant 0 : index
    %0 = vector.load %arg1[%c0, %c0_0] : memref<16x768xbf16, #tpu.memory_space<vmem>>, vector<16x768xbf16>
    %1 = arith.extf %0 : vector<16x768xbf16> to vector<16x768xf32>
    %2 = arith.negf %1 : vector<16x768xf32>
    %3 = math.exp %2 : vector<16x768xf32>
    %cst = arith.constant 1.000000e+00 : f32
    %4 = vector.broadcast %cst : f32 to vector<16x768xf32>
    %5 = arith.addf %4, %3 : vector<16x768xf32>
    %6 = arith.divf %4, %5 : vector<16x768xf32>
    %7 = arith.truncf %6 : vector<16x768xf32> to vector<16x768xbf16>
    %c0_1 = arith.constant 0 : index
    %c0_2 = arith.constant 0 : index
    %8 = vector.load %arg2[%c0_1, %c0_2] : memref<768x1024xbf16, #tpu.memory_space<vmem>>, vector<768x1024xbf16>
    %cst_3 = arith.constant dense<0.000000e+00> : vector<16x1024xf32>
    %9 = tpu.matmul %7, %8, %cst_3 {dimension_numbers = #tpu.dot_dimension_numbers<[1], [0], [0], [1], [0, 0, 1, 1], [], []>} : vector<16x768xbf16>, vector<768x1024xbf16>, vector<16x1024xf32> -> vector<16x1024xf32>
    %c0_4 = arith.constant 0 : index
    %c0_5 = arith.constant 0 : index
    %10 = vector.load %arg3[%c0_4, %c0_5] : memref<1x1024xf32, #tpu.memory_space<vmem>>, vector<1x1024xf32>
    %11 = vector.broadcast %10 : vector<1x1024xf32> to vector<16x1024xf32>
    %12 = arith.addf %9, %11 : vector<16x1024xf32>
    %c0_6 = arith.constant 0 : index
    %c0_7 = arith.constant 0 : index
    %13 = vector.load %arg8[%c0_6, %c0_7] : memref<16x1024xf32, #tpu.memory_space<vmem>>, vector<16x1024xf32>
    tpu.vector_store %arg8[%c0_6, %c0_7], %12 {strides = array<i32>} : memref<16x1024xf32, #tpu.memory_space<vmem>>, vector<16x1024xf32>,
    %c0_8 = arith.constant 0 : index
    %c0_9 = arith.constant 0 : index
    %14 = vector.load %arg4[%c0_8, %c0_9] : memref<256x1024xf32, #tpu.memory_space<vmem>>, vector<256x1024xf32>
    %cst_10 = arith.constant 0.000000e+00 : f32
    %15 = vector.broadcast %cst_10 : f32 to vector<2x128xf32>
    %c0_i32 = arith.constant 0 : i32
    %16 = tpu.concatenate %15, %15 in 1 : vector<2x128xf32>, vector<2x128xf32> -> vector<2x256xf32>
    %cst_11 = arith.constant dense<0.000000e+00> : vector<2x1024xf32>
    %17 = tpu.matmul %16, %14, %cst_11 {dimension_numbers = #tpu.dot_dimension_numbers<[1], [0], [0], [1], [0, 0, 1, 1], [], []>} : vector<2x256xf32>, vector<256x1024xf32>, vector<2x1024xf32> -> vector<2x1024xf32>
    %c7_i32 = arith.constant 7 : i32
    %18 = arith.subi %c7_i32, %c0_i32 : i32
    %c0_i32_12 = arith.constant 0 : i32
    %19 = arith.addi %c0_i32_12, %c0_i32 : i32
    %20 = arith.index_cast %19 : i32 to index
    %c0_13 = arith.constant 0 : index
    %21 = vector.load %arg8[%20, %c0_13] : memref<16x1024xf32, #tpu.memory_space<vmem>>, vector<1x1024xf32>
    %c8_i32 = arith.constant 8 : i32
    %22 = arith.addi %c8_i32, %c0_i32 : i32
    %23 = arith.index_cast %22 : i32 to index
    %c0_14 = arith.constant 0 : index
    %24 = vector.load %arg8[%23, %c0_14] : memref<16x1024xf32, #tpu.memory_space<vmem>>, vector<1x1024xf32>
    %25 = tpu.concatenate %21, %24 in 0 : vector<1x1024xf32>, vector<1x1024xf32> -> vector<2x1024xf32>
    %c0_i32_15 = arith.constant 0 : i32
    %26 = arith.addi %c0_i32_15, %18 : i32
    %27 = arith.index_cast %26 : i32 to index
    %c0_16 = arith.constant 0 : index
    %28 = vector.load %arg8[%27, %c0_16] : memref<16x1024xf32, #tpu.memory_space<vmem>>, vector<1x1024xf32>
    %c8_i32_17 = arith.constant 8 : i32
    %29 = arith.addi %c8_i32_17, %18 : i32
    %30 = arith.index_cast %29 : i32 to index
    %c0_18 = arith.constant 0 : index
    %31 = vector.load %arg8[%30, %c0_18] : memref<16x1024xf32, #tpu.memory_space<vmem>>, vector<1x1024xf32>
    %32 = tpu.concatenate %28, %31 in 0 : vector<1x1024xf32>, vector<1x1024xf32> -> vector<2x1024xf32>
    %33 = vector.extract_strided_slice %25 {offsets = [0, 0], sizes = [2, 512], strides = [1, 1]} : vector<2x1024xf32> to vector<2x512xf32>
    %34 = vector.extract_strided_slice %17 {offsets = [0, 0], sizes = [2, 512], strides = [1, 1]} : vector<2x1024xf32> to vector<2x512xf32>
    %35 = arith.addf %33, %34 : vector<2x512xf32>
    %36 = vector.extract_strided_slice %35 {offsets = [0, 0], sizes = [2, 128], strides = [1, 1]} : vector<2x512xf32> to vector<2x128xf32>
    %37 = arith.negf %36 : vector<2x128xf32>
    %38 = math.exp %37 : vector<2x128xf32>
    %cst_19 = arith.constant 1.000000e+00 : f32
    %39 = vector.broadcast %cst_19 : f32 to vector<2x128xf32>
    %40 = arith.addf %39, %38 : vector<2x128xf32>
    %41 = arith.divf %39, %40 : vector<2x128xf32>
    %42 = vector.extract_strided_slice %35 {offsets = [0, 128], sizes = [2, 128], strides = [1, 1]} : vector<2x512xf32> to vector<2x128xf32>
    %43 = arith.negf %42 : vector<2x128xf32>
    %44 = math.exp %43 : vector<2x128xf32>
    %cst_20 = arith.constant 1.000000e+00 : f32
    %45 = vector.broadcast %cst_20 : f32 to vector<2x128xf32>
    %46 = arith.addf %45, %44 : vector<2x128xf32>
    %47 = arith.divf %45, %46 : vector<2x128xf32>
    %48 = vector.extract_strided_slice %35 {offsets = [0, 256], sizes = [2, 128], strides = [1, 1]} : vector<2x512xf32> to vector<2x128xf32>
    %49 = math.tanh %48 : vector<2x128xf32>
    %50 = vector.extract_strided_slice %35 {offsets = [0, 384], sizes = [2, 128], strides = [1, 1]} : vector<2x512xf32> to vector<2x128xf32>
    %51 = arith.negf %50 : vector<2x128xf32>
    %52 = math.exp %51 : vector<2x128xf32>
    %cst_21 = arith.constant 1.000000e+00 : f32
    %53 = vector.broadcast %cst_21 : f32 to vector<2x128xf32>
    %54 = arith.addf %53, %52 : vector<2x128xf32>
    %55 = arith.divf %53, %54 : vector<2x128xf32>
    %56 = arith.mulf %47, %15 : vector<2x128xf32>
    %57 = arith.mulf %41, %49 : vector<2x128xf32>
    %58 = arith.addf %56, %57 : vector<2x128xf32>
    %59 = math.tanh %58 : vector<2x128xf32>
    %60 = arith.mulf %55, %59 : vector<2x128xf32>
    %61 = vector.extract_strided_slice %32 {offsets = [0, 512], sizes = [2, 512], strides = [1, 1]} : vector<2x1024xf32> to vector<2x512xf32>
    %62 = vector.extract_strided_slice %17 {offsets = [0, 512], sizes = [2, 512], strides = [1, 1]} : vector<2x1024xf32> to vector<2x512xf32>
    %63 = arith.addf %61, %62 : vector<2x512xf32>
    %64 = vector.extract_strided_slice %63 {offsets = [0, 0], sizes = [2, 128], strides = [1, 1]} : vector<2x512xf32> to vector<2x128xf32>
    %65 = arith.negf %64 : vector<2x128xf32>
    %66 = math.exp %65 : vector<2x128xf32>
    %cst_22 = arith.constant 1.000000e+00 : f32
    %67 = vector.broadcast %cst_22 : f32 to vector<2x128xf32>
    %68 = arith.addf %67, %66 : vector<2x128xf32>
    %69 = arith.divf %67, %68 : vector<2x128xf32>
    %70 = vector.extract_strided_slice %63 {offsets = [0, 128], sizes = [2, 128], strides = [1, 1]} : vector<2x512xf32> to vector<2x128xf32>
    %71 = arith.negf %70 : vector<2x128xf32>
    %72 = math.exp %71 : vector<2x128xf32>
    %cst_23 = arith.constant 1.000000e+00 : f32
    %73 = vector.broadcast %cst_23 : f32 to vector<2x128xf32>
    %74 = arith.addf %73, %72 : vector<2x128xf32>
    %75 = arith.divf %73, %74 : vector<2x128xf32>
    %76 = vector.extract_strided_slice %63 {offsets = [0, 256], sizes = [2, 128], strides = [1, 1]} : vector<2x512xf32> to vector<2x128xf32>
    %77 = math.tanh %76 : vector<2x128xf32>
    %78 = vector.extract_strided_slice %63 {offsets = [0, 384], sizes = [2, 128], strides = [1, 1]} : vector<2x512xf32> to vector<2x128xf32>
    %79 = arith.negf %78 : vector<2x128xf32>
    %80 = math.exp %79 : vector<2x128xf32>
    %cst_24 = arith.constant 1.000000e+00 : f32
    %81 = vector.broadcast %cst_24 : f32 to vector<2x128xf32>
    %82 = arith.addf %81, %80 : vector<2x128xf32>
    %83 = arith.divf %81, %82 : vector<2x128xf32>
    %84 = arith.mulf %75, %15 : vector<2x128xf32>
    %85 = arith.mulf %69, %77 : vector<2x128xf32>
    %86 = arith.addf %84, %85 : vector<2x128xf32>
    %87 = math.tanh %86 : vector<2x128xf32>
    %88 = arith.mulf %83, %87 : vector<2x128xf32>
    %c1_i32 = arith.constant 1 : i32
    %89 = tpu.concatenate %60, %88 in 1 : vector<2x128xf32>, vector<2x128xf32> -> vector<2x256xf32>
    %cst_25 = arith.constant dense<0.000000e+00> : vector<2x1024xf32>
    %90 = tpu.matmul %89, %14, %cst_25 {dimension_numbers = #tpu.dot_dimension_numbers<[1], [0], [0], [1], [0, 0, 1, 1], [], []>} : vector<2x256xf32>, vector<256x1024xf32>, vector<2x1024xf32> -> vector<2x1024xf32>
    %c7_i32_26 = arith.constant 7 : i32
    %91 = arith.subi %c7_i32_26, %c1_i32 : i32
    %c0_i32_27 = arith.constant 0 : i32
    %92 = arith.addi %c0_i32_27, %c1_i32 : i32
    %93 = arith.index_cast %92 : i32 to index
    %c0_28 = arith.constant 0 : index
    %94 = vector.load %arg8[%93, %c0_28] : memref<16x1024xf32, #tpu.memory_space<vmem>>, vector<1x1024xf32>
    %c8_i32_29 = arith.constant 8 : i32
    %95 = arith.addi %c8_i32_29, %c1_i32 : i32
    %96 = arith.index_cast %95 : i32 to index
    %c0_30 = arith.constant 0 : index
    %97 = vector.load %arg8[%96, %c0_30] : memref<16x1024xf32, #tpu.memory_space<vmem>>, vector<1x1024xf32>
    %98 = tpu.concatenate %94, %97 in 0 : vector<1x1024xf32>, vector<1x1024xf32> -> vector<2x1024xf32>
    %c0_i32_31 = arith.constant 0 : i32
    %99 = arith.addi %c0_i32_31, %91 : i32
    %100 = arith.index_cast %99 : i32 to index
    %c0_32 = arith.constant 0 : index
    %101 = vector.load %arg8[%100, %c0_32] : memref<16x1024xf32, #tpu.memory_space<vmem>>, vector<1x1024xf32>
    %c8_i32_33 = arith.constant 8 : i32
    %102 = arith.addi %c8_i32_33, %91 : i32
    %103 = arith.index_cast %102 : i32 to index
    %c0_34 = arith.constant 0 : index
    %104 = vector.load %arg8[%103, %c0_34] : memref<16x1024xf32, #tpu.memory_space<vmem>>, vector<1x1024xf32>
    %105 = tpu.concatenate %101, %104 in 0 : vector<1x1024xf32>, vector<1x1024xf32> -> vector<2x1024xf32>
    %106 = vector.extract_strided_slice %98 {offsets = [0, 0], sizes = [2, 512], strides = [1, 1]} : vector<2x1024xf32> to vector<2x512xf32>
    %107 = vector.extract_strided_slice %90 {offsets = [0, 0], sizes = [2, 512], strides = [1, 1]} : vector<2x1024xf32> to vector<2x512xf32>
    %108 = arith.addf %106, %107 : vector<2x512xf32>
    %109 = vector.extract_strided_slice %108 {offsets = [0, 0], sizes = [2, 128], strides = [1, 1]} : vector<2x512xf32> to vector<2x128xf32>
    %110 = arith.negf %109 : vector<2x128xf32>
    %111 = math.exp %110 : vector<2x128xf32>
    %cst_35 = arith.constant 1.000000e+00 : f32
    %112 = vector.broadcast %cst_35 : f32 to vector<2x128xf32>
    %113 = arith.addf %112, %111 : vector<2x128xf32>
    %114 = arith.divf %112, %113 : vector<2x128xf32>
    %115 = vector.extract_strided_slice %108 {offsets = [0, 128], sizes = [2, 128], strides = [1, 1]} : vector<2x512xf32> to vector<2x128xf32>
    %116 = arith.negf %115 : vector<2x128xf32>
    %117 = math.exp %116 : vector<2x128xf32>
    %cst_36 = arith.constant 1.000000e+00 : f32
    %118 = vector.broadcast %cst_36 : f32 to vector<2x128xf32>
    %119 = arith.addf %118, %117 : vector<2x128xf32>
    %120 = arith.divf %118, %119 : vector<2x128xf32>
    %121 = vector.extract_strided_slice %108 {offsets = [0, 256], sizes = [2, 128], strides = [1, 1]} : vector<2x512xf32> to vector<2x128xf32>
    %122 = math.tanh %121 : vector<2x128xf32>
    %123 = vector.extract_strided_slice %108 {offsets = [0, 384], sizes = [2, 128], strides = [1, 1]} : vector<2x512xf32> to vector<2x128xf32>
    %124 = arith.negf %123 : vector<2x128xf32>
    %125 = math.exp %124 : vector<2x128xf32>
    %cst_37 = arith.constant 1.000000e+00 : f32
    %126 = vector.broadcast %cst_37 : f32 to vector<2x128xf32>
    %127 = arith.addf %126, %125 : vector<2x128xf32>
    %128 = arith.divf %126, %127 : vector<2x128xf32>
    %129 = arith.mulf %120, %58 : vector<2x128xf32>
    %130 = arith.mulf %114, %122 : vector<2x128xf32>
    %131 = arith.addf %129, %130 : vector<2x128xf32>
    %132 = math.tanh %131 : vector<2x128xf32>
    %133 = arith.mulf %128, %132 : vector<2x128xf32>
    %134 = vector.extract_strided_slice %105 {offsets = [0, 512], sizes = [2, 512], strides = [1, 1]} : vector<2x1024xf32> to vector<2x512xf32>
    %135 = vector.extract_strided_slice %90 {offsets = [0, 512], sizes = [2, 512], strides = [1, 1]} : vector<2x1024xf32> to vector<2x512xf32>
    %136 = arith.addf %134, %135 : vector<2x512xf32>
    %137 = vector.extract_strided_slice %136 {offsets = [0, 0], sizes = [2, 128], strides = [1, 1]} : vector<2x512xf32> to vector<2x128xf32>
    %138 = arith.negf %137 : vector<2x128xf32>
    %139 = math.exp %138 : vector<2x128xf32>
    %cst_38 = arith.constant 1.000000e+00 : f32
    %140 = vector.broadcast %cst_38 : f32 to vector<2x128xf32>
    %141 = arith.addf %140, %139 : vector<2x128xf32>
    %142 = arith.divf %140, %141 : vector<2x128xf32>
    %143 = vector.extract_strided_slice %136 {offsets = [0, 128], sizes = [2, 128], strides = [1, 1]} : vector<2x512xf32> to vector<2x128xf32>
    %144 = arith.negf %143 : vector<2x128xf32>
    %145 = math.exp %144 : vector<2x128xf32>
    %cst_39 = arith.constant 1.000000e+00 : f32
    %146 = vector.broadcast %cst_39 : f32 to vector<2x128xf32>
    %147 = arith.addf %146, %145 : vector<2x128xf32>
    %148 = arith.divf %146, %147 : vector<2x128xf32>
    %149 = vector.extract_strided_slice %136 {offsets = [0, 256], sizes = [2, 128], strides = [1, 1]} : vector<2x512xf32> to vector<2x128xf32>
    %150 = math.tanh %149 : vector<2x128xf32>
    %151 = vector.extract_strided_slice %136 {offsets = [0, 384], sizes = [2, 128], strides = [1, 1]} : vector<2x512xf32> to vector<2x128xf32>
    %152 = arith.negf %151 : vector<2x128xf32>
    %153 = math.exp %152 : vector<2x128xf32>
    %cst_40 = arith.constant 1.000000e+00 : f32
    %154 = vector.broadcast %cst_40 : f32 to vector<2x128xf32>
    %155 = arith.addf %154, %153 : vector<2x128xf32>
    %156 = arith.divf %154, %155 : vector<2x128xf32>
    %157 = arith.mulf %148, %86 : vector<2x128xf32>
    %158 = arith.mulf %142, %150 : vector<2x128xf32>
    %159 = arith.addf %157, %158 : vector<2x128xf32>
    %160 = math.tanh %159 : vector<2x128xf32>
    %161 = arith.mulf %156, %160 : vector<2x128xf32>
    %c2_i32 = arith.constant 2 : i32
    %162 = tpu.concatenate %133, %161 in 1 : vector<2x128xf32>, vector<2x128xf32> -> vector<2x256xf32>
    %cst_41 = arith.constant dense<0.000000e+00> : vector<2x1024xf32>
    %163 = tpu.matmul %162, %14, %cst_41 {dimension_numbers = #tpu.dot_dimension_numbers<[1], [0], [0], [1], [0, 0, 1, 1], [], []>} : vector<2x256xf32>, vector<256x1024xf32>, vector<2x1024xf32> -> vector<2x1024xf32>
    %c7_i32_42 = arith.constant 7 : i32
    %164 = arith.subi %c7_i32_42, %c2_i32 : i32
    %c0_i32_43 = arith.constant 0 : i32
    %165 = arith.addi %c0_i32_43, %c2_i32 : i32
    %166 = arith.index_cast %165 : i32 to index
    %c0_44 = arith.constant 0 : index
    %167 = vector.load %arg8[%166, %c0_44] : memref<16x1024xf32, #tpu.memory_space<vmem>>, vector<1x1024xf32>
    %c8_i32_45 = arith.constant 8 : i32
    %168 = arith.addi %c8_i32_45, %c2_i32 : i32
    %169 = arith.index_cast %168 : i32 to index
    %c0_46 = arith.constant 0 : index
    %170 = vector.load %arg8[%169, %c0_46] : memref<16x1024xf32, #tpu.memory_space<vmem>>, vector<1x1024xf32>
    %171 = tpu.concatenate %167, %170 in 0 : vector<1x1024xf32>, vector<1x1024xf32> -> vector<2x1024xf32>
    %c0_i32_47 = arith.constant 0 : i32
    %172 = arith.addi %c0_i32_47, %164 : i32
    %173 = arith.index_cast %172 : i32 to index
    %c0_48 = arith.constant 0 : index
    %174 = vector.load %arg8[%173, %c0_48] : memref<16x1024xf32, #tpu.memory_space<vmem>>, vector<1x1024xf32>
    %c8_i32_49 = arith.constant 8 : i32
    %175 = arith.addi %c8_i32_49, %164 : i32
    %176 = arith.index_cast %175 : i32 to index
    %c0_50 = arith.constant 0 : index
    %177 = vector.load %arg8[%176, %c0_50] : memref<16x1024xf32, #tpu.memory_space<vmem>>, vector<1x1024xf32>
    %178 = tpu.concatenate %174, %177 in 0 : vector<1x1024xf32>, vector<1x1024xf32> -> vector<2x1024xf32>
    %179 = vector.extract_strided_slice %171 {offsets = [0, 0], sizes = [2, 512], strides = [1, 1]} : vector<2x1024xf32> to vector<2x512xf32>
    %180 = vector.extract_strided_slice %163 {offsets = [0, 0], sizes = [2, 512], strides = [1, 1]} : vector<2x1024xf32> to vector<2x512xf32>
    %181 = arith.addf %179, %180 : vector<2x512xf32>
    %182 = vector.extract_strided_slice %181 {offsets = [0, 0], sizes = [2, 128], strides = [1, 1]} : vector<2x512xf32> to vector<2x128xf32>
    %183 = arith.negf %182 : vector<2x128xf32>
    %184 = math.exp %183 : vector<2x128xf32>
    %cst_51 = arith.constant 1.000000e+00 : f32
    %185 = vector.broadcast %cst_51 : f32 to vector<2x128xf32>
    %186 = arith.addf %185, %184 : vector<2x128xf32>
    %187 = arith.divf %185, %186 : vector<2x128xf32>
    %188 = vector.extract_strided_slice %181 {offsets = [0, 128], sizes = [2, 128], strides = [1, 1]} : vector<2x512xf32> to vector<2x128xf32>
    %189 = arith.negf %188 : vector<2x128xf32>
    %190 = math.exp %189 : vector<2x128xf32>
    %cst_52 = arith.constant 1.000000e+00 : f32
    %191 = vector.broadcast %cst_52 : f32 to vector<2x128xf32>
    %192 = arith.addf %191, %190 : vector<2x128xf32>
    %193 = arith.divf %191, %192 : vector<2x128xf32>
    %194 = vector.extract_strided_slice %181 {offsets = [0, 256], sizes = [2, 128], strides = [1, 1]} : vector<2x512xf32> to vector<2x128xf32>
    %195 = math.tanh %194 : vector<2x128xf32>
    %196 = vector.extract_strided_slice %181 {offsets = [0, 384], sizes = [2, 128], strides = [1, 1]} : vector<2x512xf32> to vector<2x128xf32>
    %197 = arith.negf %196 : vector<2x128xf32>
    %198 = math.exp %197 : vector<2x128xf32>
    %cst_53 = arith.constant 1.000000e+00 : f32
    %199 = vector.broadcast %cst_53 : f32 to vector<2x128xf32>
    %200 = arith.addf %199, %198 : vector<2x128xf32>
    %201 = arith.divf %199, %200 : vector<2x128xf32>
    %202 = arith.mulf %193, %131 : vector<2x128xf32>
    %203 = arith.mulf %187, %195 : vector<2x128xf32>
    %204 = arith.addf %202, %203 : vector<2x128xf32>
    %205 = math.tanh %204 : vector<2x128xf32>
    %206 = arith.mulf %201, %205 : vector<2x128xf32>
    %207 = vector.extract_strided_slice %178 {offsets = [0, 512], sizes = [2, 512], strides = [1, 1]} : vector<2x1024xf32> to vector<2x512xf32>
    %208 = vector.extract_strided_slice %163 {offsets = [0, 512], sizes = [2, 512], strides = [1, 1]} : vector<2x1024xf32> to vector<2x512xf32>
    %209 = arith.addf %207, %208 : vector<2x512xf32>
    %210 = vector.extract_strided_slice %209 {offsets = [0, 0], sizes = [2, 128], strides = [1, 1]} : vector<2x512xf32> to vector<2x128xf32>
    %211 = arith.negf %210 : vector<2x128xf32>
    %212 = math.exp %211 : vector<2x128xf32>
    %cst_54 = arith.constant 1.000000e+00 : f32
    %213 = vector.broadcast %cst_54 : f32 to vector<2x128xf32>
    %214 = arith.addf %213, %212 : vector<2x128xf32>
    %215 = arith.divf %213, %214 : vector<2x128xf32>
    %216 = vector.extract_strided_slice %209 {offsets = [0, 128], sizes = [2, 128], strides = [1, 1]} : vector<2x512xf32> to vector<2x128xf32>
    %217 = arith.negf %216 : vector<2x128xf32>
    %218 = math.exp %217 : vector<2x128xf32>
    %cst_55 = arith.constant 1.000000e+00 : f32
    %219 = vector.broadcast %cst_55 : f32 to vector<2x128xf32>
    %220 = arith.addf %219, %218 : vector<2x128xf32>
    %221 = arith.divf %219, %220 : vector<2x128xf32>
    %222 = vector.extract_strided_slice %209 {offsets = [0, 256], sizes = [2, 128], strides = [1, 1]} : vector<2x512xf32> to vector<2x128xf32>
    %223 = math.tanh %222 : vector<2x128xf32>
    %224 = vector.extract_strided_slice %209 {offsets = [0, 384], sizes = [2, 128], strides = [1, 1]} : vector<2x512xf32> to vector<2x128xf32>
    %225 = arith.negf %224 : vector<2x128xf32>
    %226 = math.exp %225 : vector<2x128xf32>
    %cst_56 = arith.constant 1.000000e+00 : f32
    %227 = vector.broadcast %cst_56 : f32 to vector<2x128xf32>
    %228 = arith.addf %227, %226 : vector<2x128xf32>
    %229 = arith.divf %227, %228 : vector<2x128xf32>
    %230 = arith.mulf %221, %159 : vector<2x128xf32>
    %231 = arith.mulf %215, %223 : vector<2x128xf32>
    %232 = arith.addf %230, %231 : vector<2x128xf32>
    %233 = math.tanh %232 : vector<2x128xf32>
    %234 = arith.mulf %229, %233 : vector<2x128xf32>
    %c3_i32 = arith.constant 3 : i32
    %235 = tpu.concatenate %206, %234 in 1 : vector<2x128xf32>, vector<2x128xf32> -> vector<2x256xf32>
    %cst_57 = arith.constant dense<0.000000e+00> : vector<2x1024xf32>
    %236 = tpu.matmul %235, %14, %cst_57 {dimension_numbers = #tpu.dot_dimension_numbers<[1], [0], [0], [1], [0, 0, 1, 1], [], []>} : vector<2x256xf32>, vector<256x1024xf32>, vector<2x1024xf32> -> vector<2x1024xf32>
    %c7_i32_58 = arith.constant 7 : i32
    %237 = arith.subi %c7_i32_58, %c3_i32 : i32
    %c0_i32_59 = arith.constant 0 : i32
    %238 = arith.addi %c0_i32_59, %c3_i32 : i32
    %239 = arith.index_cast %238 : i32 to index
    %c0_60 = arith.constant 0 : index
    %240 = vector.load %arg8[%239, %c0_60] : memref<16x1024xf32, #tpu.memory_space<vmem>>, vector<1x1024xf32>
    %c8_i32_61 = arith.constant 8 : i32
    %241 = arith.addi %c8_i32_61, %c3_i32 : i32
    %242 = arith.index_cast %241 : i32 to index
    %c0_62 = arith.constant 0 : index
    %243 = vector.load %arg8[%242, %c0_62] : memref<16x1024xf32, #tpu.memory_space<vmem>>, vector<1x1024xf32>
    %244 = tpu.concatenate %240, %243 in 0 : vector<1x1024xf32>, vector<1x1024xf32> -> vector<2x1024xf32>
    %c0_i32_63 = arith.constant 0 : i32
    %245 = arith.addi %c0_i32_63, %237 : i32
    %246 = arith.index_cast %245 : i32 to index
    %c0_64 = arith.constant 0 : index
    %247 = vector.load %arg8[%246, %c0_64] : memref<16x1024xf32, #tpu.memory_space<vmem>>, vector<1x1024xf32>
    %c8_i32_65 = arith.constant 8 : i32
    %248 = arith.addi %c8_i32_65, %237 : i32
    %249 = arith.index_cast %248 : i32 to index
    %c0_66 = arith.constant 0 : index
    %250 = vector.load %arg8[%249, %c0_66] : memref<16x1024xf32, #tpu.memory_space<vmem>>, vector<1x1024xf32>
    %251 = tpu.concatenate %247, %250 in 0 : vector<1x1024xf32>, vector<1x1024xf32> -> vector<2x1024xf32>
    %252 = vector.extract_strided_slice %244 {offsets = [0, 0], sizes = [2, 512], strides = [1, 1]} : vector<2x1024xf32> to vector<2x512xf32>
    %253 = vector.extract_strided_slice %236 {offsets = [0, 0], sizes = [2, 512], strides = [1, 1]} : vector<2x1024xf32> to vector<2x512xf32>
    %254 = arith.addf %252, %253 : vector<2x512xf32>
    %255 = vector.extract_strided_slice %254 {offsets = [0, 0], sizes = [2, 128], strides = [1, 1]} : vector<2x512xf32> to vector<2x128xf32>
    %256 = arith.negf %255 : vector<2x128xf32>
    %257 = math.exp %256 : vector<2x128xf32>
    %cst_67 = arith.constant 1.000000e+00 : f32
    %258 = vector.broadcast %cst_67 : f32 to vector<2x128xf32>
    %259 = arith.addf %258, %257 : vector<2x128xf32>
    %260 = arith.divf %258, %259 : vector<2x128xf32>
    %261 = vector.extract_strided_slice %254 {offsets = [0, 128], sizes = [2, 128], strides = [1, 1]} : vector<2x512xf32> to vector<2x128xf32>
    %262 = arith.negf %261 : vector<2x128xf32>
    %263 = math.exp %262 : vector<2x128xf32>
    %cst_68 = arith.constant 1.000000e+00 : f32
    %264 = vector.broadcast %cst_68 : f32 to vector<2x128xf32>
    %265 = arith.addf %264, %263 : vector<2x128xf32>
    %266 = arith.divf %264, %265 : vector<2x128xf32>
    %267 = vector.extract_strided_slice %254 {offsets = [0, 256], sizes = [2, 128], strides = [1, 1]} : vector<2x512xf32> to vector<2x128xf32>
    %268 = math.tanh %267 : vector<2x128xf32>
    %269 = vector.extract_strided_slice %254 {offsets = [0, 384], sizes = [2, 128], strides = [1, 1]} : vector<2x512xf32> to vector<2x128xf32>
    %270 = arith.negf %269 : vector<2x128xf32>
    %271 = math.exp %270 : vector<2x128xf32>
    %cst_69 = arith.constant 1.000000e+00 : f32
    %272 = vector.broadcast %cst_69 : f32 to vector<2x128xf32>
    %273 = arith.addf %272, %271 : vector<2x128xf32>
    %274 = arith.divf %272, %273 : vector<2x128xf32>
    %275 = arith.mulf %266, %204 : vector<2x128xf32>
    %276 = arith.mulf %260, %268 : vector<2x128xf32>
    %277 = arith.addf %275, %276 : vector<2x128xf32>
    %278 = math.tanh %277 : vector<2x128xf32>
    %279 = arith.mulf %274, %278 : vector<2x128xf32>
    %280 = vector.extract_strided_slice %251 {offsets = [0, 512], sizes = [2, 512], strides = [1, 1]} : vector<2x1024xf32> to vector<2x512xf32>
    %281 = vector.extract_strided_slice %236 {offsets = [0, 512], sizes = [2, 512], strides = [1, 1]} : vector<2x1024xf32> to vector<2x512xf32>
    %282 = arith.addf %280, %281 : vector<2x512xf32>
    %283 = vector.extract_strided_slice %282 {offsets = [0, 0], sizes = [2, 128], strides = [1, 1]} : vector<2x512xf32> to vector<2x128xf32>
    %284 = arith.negf %283 : vector<2x128xf32>
    %285 = math.exp %284 : vector<2x128xf32>
    %cst_70 = arith.constant 1.000000e+00 : f32
    %286 = vector.broadcast %cst_70 : f32 to vector<2x128xf32>
    %287 = arith.addf %286, %285 : vector<2x128xf32>
    %288 = arith.divf %286, %287 : vector<2x128xf32>
    %289 = vector.extract_strided_slice %282 {offsets = [0, 128], sizes = [2, 128], strides = [1, 1]} : vector<2x512xf32> to vector<2x128xf32>
    %290 = arith.negf %289 : vector<2x128xf32>
    %291 = math.exp %290 : vector<2x128xf32>
    %cst_71 = arith.constant 1.000000e+00 : f32
    %292 = vector.broadcast %cst_71 : f32 to vector<2x128xf32>
    %293 = arith.addf %292, %291 : vector<2x128xf32>
    %294 = arith.divf %292, %293 : vector<2x128xf32>
    %295 = vector.extract_strided_slice %282 {offsets = [0, 256], sizes = [2, 128], strides = [1, 1]} : vector<2x512xf32> to vector<2x128xf32>
    %296 = math.tanh %295 : vector<2x128xf32>
    %297 = vector.extract_strided_slice %282 {offsets = [0, 384], sizes = [2, 128], strides = [1, 1]} : vector<2x512xf32> to vector<2x128xf32>
    %298 = arith.negf %297 : vector<2x128xf32>
    %299 = math.exp %298 : vector<2x128xf32>
    %cst_72 = arith.constant 1.000000e+00 : f32
    %300 = vector.broadcast %cst_72 : f32 to vector<2x128xf32>
    %301 = arith.addf %300, %299 : vector<2x128xf32>
    %302 = arith.divf %300, %301 : vector<2x128xf32>
    %303 = arith.mulf %294, %232 : vector<2x128xf32>
    %304 = arith.mulf %288, %296 : vector<2x128xf32>
    %305 = arith.addf %303, %304 : vector<2x128xf32>
    %306 = math.tanh %305 : vector<2x128xf32>
    %307 = arith.mulf %302, %306 : vector<2x128xf32>
    %c4_i32 = arith.constant 4 : i32
    %308 = tpu.concatenate %279, %307 in 1 : vector<2x128xf32>, vector<2x128xf32> -> vector<2x256xf32>
    %cst_73 = arith.constant dense<0.000000e+00> : vector<2x1024xf32>
    %309 = tpu.matmul %308, %14, %cst_73 {dimension_numbers = #tpu.dot_dimension_numbers<[1], [0], [0], [1], [0, 0, 1, 1], [], []>} : vector<2x256xf32>, vector<256x1024xf32>, vector<2x1024xf32> -> vector<2x1024xf32>
    %c7_i32_74 = arith.constant 7 : i32
    %310 = arith.subi %c7_i32_74, %c4_i32 : i32
    %c0_i32_75 = arith.constant 0 : i32
    %311 = arith.addi %c0_i32_75, %c4_i32 : i32
    %312 = arith.index_cast %311 : i32 to index
    %c0_76 = arith.constant 0 : index
    %313 = vector.load %arg8[%312, %c0_76] : memref<16x1024xf32, #tpu.memory_space<vmem>>, vector<1x1024xf32>
    %c8_i32_77 = arith.constant 8 : i32
    %314 = arith.addi %c8_i32_77, %c4_i32 : i32
    %315 = arith.index_cast %314 : i32 to index
    %c0_78 = arith.constant 0 : index
    %316 = vector.load %arg8[%315, %c0_78] : memref<16x1024xf32, #tpu.memory_space<vmem>>, vector<1x1024xf32>
    %317 = tpu.concatenate %313, %316 in 0 : vector<1x1024xf32>, vector<1x1024xf32> -> vector<2x1024xf32>
    %c0_i32_79 = arith.constant 0 : i32
    %318 = arith.addi %c0_i32_79, %310 : i32
    %319 = arith.index_cast %318 : i32 to index
    %c0_80 = arith.constant 0 : index
    %320 = vector.load %arg8[%319, %c0_80] : memref<16x1024xf32, #tpu.memory_space<vmem>>, vector<1x1024xf32>
    %c8_i32_81 = arith.constant 8 : i32
    %321 = arith.addi %c8_i32_81, %310 : i32
    %322 = arith.index_cast %321 : i32 to index
    %c0_82 = arith.constant 0 : index
    %323 = vector.load %arg8[%322, %c0_82] : memref<16x1024xf32, #tpu.memory_space<vmem>>, vector<1x1024xf32>
    %324 = tpu.concatenate %320, %323 in 0 : vector<1x1024xf32>, vector<1x1024xf32> -> vector<2x1024xf32>
    %325 = vector.extract_strided_slice %317 {offsets = [0, 0], sizes = [2, 512], strides = [1, 1]} : vector<2x1024xf32> to vector<2x512xf32>
    %326 = vector.extract_strided_slice %309 {offsets = [0, 0], sizes = [2, 512], strides = [1, 1]} : vector<2x1024xf32> to vector<2x512xf32>
    %327 = arith.addf %325, %326 : vector<2x512xf32>
    %328 = vector.extract_strided_slice %327 {offsets = [0, 0], sizes = [2, 128], strides = [1, 1]} : vector<2x512xf32> to vector<2x128xf32>
    %329 = arith.negf %328 : vector<2x128xf32>
    %330 = math.exp %329 : vector<2x128xf32>
    %cst_83 = arith.constant 1.000000e+00 : f32
    %331 = vector.broadcast %cst_83 : f32 to vector<2x128xf32>
    %332 = arith.addf %331, %330 : vector<2x128xf32>
    %333 = arith.divf %331, %332 : vector<2x128xf32>
    %334 = vector.extract_strided_slice %327 {offsets = [0, 128], sizes = [2, 128], strides = [1, 1]} : vector<2x512xf32> to vector<2x128xf32>
    %335 = arith.negf %334 : vector<2x128xf32>
    %336 = math.exp %335 : vector<2x128xf32>
    %cst_84 = arith.constant 1.000000e+00 : f32
    %337 = vector.broadcast %cst_84 : f32 to vector<2x128xf32>
    %338 = arith.addf %337, %336 : vector<2x128xf32>
    %339 = arith.divf %337, %338 : vector<2x128xf32>
    %340 = vector.extract_strided_slice %327 {offsets = [0, 256], sizes = [2, 128], strides = [1, 1]} : vector<2x512xf32> to vector<2x128xf32>
    %341 = math.tanh %340 : vector<2x128xf32>
    %342 = vector.extract_strided_slice %327 {offsets = [0, 384], sizes = [2, 128], strides = [1, 1]} : vector<2x512xf32> to vector<2x128xf32>
    %343 = arith.negf %342 : vector<2x128xf32>
    %344 = math.exp %343 : vector<2x128xf32>
    %cst_85 = arith.constant 1.000000e+00 : f32
    %345 = vector.broadcast %cst_85 : f32 to vector<2x128xf32>
    %346 = arith.addf %345, %344 : vector<2x128xf32>
    %347 = arith.divf %345, %346 : vector<2x128xf32>
    %348 = arith.mulf %339, %277 : vector<2x128xf32>
    %349 = arith.mulf %333, %341 : vector<2x128xf32>
    %350 = arith.addf %348, %349 : vector<2x128xf32>
    %351 = math.tanh %350 : vector<2x128xf32>
    %352 = arith.mulf %347, %351 : vector<2x128xf32>
    %353 = vector.extract_strided_slice %324 {offsets = [0, 512], sizes = [2, 512], strides = [1, 1]} : vector<2x1024xf32> to vector<2x512xf32>
    %354 = vector.extract_strided_slice %309 {offsets = [0, 512], sizes = [2, 512], strides = [1, 1]} : vector<2x1024xf32> to vector<2x512xf32>
    %355 = arith.addf %353, %354 : vector<2x512xf32>
    %356 = vector.extract_strided_slice %355 {offsets = [0, 0], sizes = [2, 128], strides = [1, 1]} : vector<2x512xf32> to vector<2x128xf32>
    %357 = arith.negf %356 : vector<2x128xf32>
    %358 = math.exp %357 : vector<2x128xf32>
    %cst_86 = arith.constant 1.000000e+00 : f32
    %359 = vector.broadcast %cst_86 : f32 to vector<2x128xf32>
    %360 = arith.addf %359, %358 : vector<2x128xf32>
    %361 = arith.divf %359, %360 : vector<2x128xf32>
    %362 = vector.extract_strided_slice %355 {offsets = [0, 128], sizes = [2, 128], strides = [1, 1]} : vector<2x512xf32> to vector<2x128xf32>
    %363 = arith.negf %362 : vector<2x128xf32>
    %364 = math.exp %363 : vector<2x128xf32>
    %cst_87 = arith.constant 1.000000e+00 : f32
    %365 = vector.broadcast %cst_87 : f32 to vector<2x128xf32>
    %366 = arith.addf %365, %364 : vector<2x128xf32>
    %367 = arith.divf %365, %366 : vector<2x128xf32>
    %368 = vector.extract_strided_slice %355 {offsets = [0, 256], sizes = [2, 128], strides = [1, 1]} : vector<2x512xf32> to vector<2x128xf32>
    %369 = math.tanh %368 : vector<2x128xf32>
    %370 = vector.extract_strided_slice %355 {offsets = [0, 384], sizes = [2, 128], strides = [1, 1]} : vector<2x512xf32> to vector<2x128xf32>
    %371 = arith.negf %370 : vector<2x128xf32>
    %372 = math.exp %371 : vector<2x128xf32>
    %cst_88 = arith.constant 1.000000e+00 : f32
    %373 = vector.broadcast %cst_88 : f32 to vector<2x128xf32>
    %374 = arith.addf %373, %372 : vector<2x128xf32>
    %375 = arith.divf %373, %374 : vector<2x128xf32>
    %376 = arith.mulf %367, %305 : vector<2x128xf32>
    %377 = arith.mulf %361, %369 : vector<2x128xf32>
    %378 = arith.addf %376, %377 : vector<2x128xf32>
    %379 = math.tanh %378 : vector<2x128xf32>
    %380 = arith.mulf %375, %379 : vector<2x128xf32>
    %c5_i32 = arith.constant 5 : i32
    %381 = tpu.concatenate %352, %380 in 1 : vector<2x128xf32>, vector<2x128xf32> -> vector<2x256xf32>
    %cst_89 = arith.constant dense<0.000000e+00> : vector<2x1024xf32>
    %382 = tpu.matmul %381, %14, %cst_89 {dimension_numbers = #tpu.dot_dimension_numbers<[1], [0], [0], [1], [0, 0, 1, 1], [], []>} : vector<2x256xf32>, vector<256x1024xf32>, vector<2x1024xf32> -> vector<2x1024xf32>
    %c7_i32_90 = arith.constant 7 : i32
    %383 = arith.subi %c7_i32_90, %c5_i32 : i32
    %c0_i32_91 = arith.constant 0 : i32
    %384 = arith.addi %c0_i32_91, %c5_i32 : i32
    %385 = arith.index_cast %384 : i32 to index
    %c0_92 = arith.constant 0 : index
    %386 = vector.load %arg8[%385, %c0_92] : memref<16x1024xf32, #tpu.memory_space<vmem>>, vector<1x1024xf32>
    %c8_i32_93 = arith.constant 8 : i32
    %387 = arith.addi %c8_i32_93, %c5_i32 : i32
    %388 = arith.index_cast %387 : i32 to index
    %c0_94 = arith.constant 0 : index
    %389 = vector.load %arg8[%388, %c0_94] : memref<16x1024xf32, #tpu.memory_space<vmem>>, vector<1x1024xf32>
    %390 = tpu.concatenate %386, %389 in 0 : vector<1x1024xf32>, vector<1x1024xf32> -> vector<2x1024xf32>
    %c0_i32_95 = arith.constant 0 : i32
    %391 = arith.addi %c0_i32_95, %383 : i32
    %392 = arith.index_cast %391 : i32 to index
    %c0_96 = arith.constant 0 : index
    %393 = vector.load %arg8[%392, %c0_96] : memref<16x1024xf32, #tpu.memory_space<vmem>>, vector<1x1024xf32>
    %c8_i32_97 = arith.constant 8 : i32
    %394 = arith.addi %c8_i32_97, %383 : i32
    %395 = arith.index_cast %394 : i32 to index
    %c0_98 = arith.constant 0 : index
    %396 = vector.load %arg8[%395, %c0_98] : memref<16x1024xf32, #tpu.memory_space<vmem>>, vector<1x1024xf32>
    %397 = tpu.concatenate %393, %396 in 0 : vector<1x1024xf32>, vector<1x1024xf32> -> vector<2x1024xf32>
    %398 = vector.extract_strided_slice %390 {offsets = [0, 0], sizes = [2, 512], strides = [1, 1]} : vector<2x1024xf32> to vector<2x512xf32>
    %399 = vector.extract_strided_slice %382 {offsets = [0, 0], sizes = [2, 512], strides = [1, 1]} : vector<2x1024xf32> to vector<2x512xf32>
    %400 = arith.addf %398, %399 : vector<2x512xf32>
    %401 = vector.extract_strided_slice %400 {offsets = [0, 0], sizes = [2, 128], strides = [1, 1]} : vector<2x512xf32> to vector<2x128xf32>
    %402 = arith.negf %401 : vector<2x128xf32>
    %403 = math.exp %402 : vector<2x128xf32>
    %cst_99 = arith.constant 1.000000e+00 : f32
    %404 = vector.broadcast %cst_99 : f32 to vector<2x128xf32>
    %405 = arith.addf %404, %403 : vector<2x128xf32>
    %406 = arith.divf %404, %405 : vector<2x128xf32>
    %407 = vector.extract_strided_slice %400 {offsets = [0, 128], sizes = [2, 128], strides = [1, 1]} : vector<2x512xf32> to vector<2x128xf32>
    %408 = arith.negf %407 : vector<2x128xf32>
    %409 = math.exp %408 : vector<2x128xf32>
    %cst_100 = arith.constant 1.000000e+00 : f32
    %410 = vector.broadcast %cst_100 : f32 to vector<2x128xf32>
    %411 = arith.addf %410, %409 : vector<2x128xf32>
    %412 = arith.divf %410, %411 : vector<2x128xf32>
    %413 = vector.extract_strided_slice %400 {offsets = [0, 256], sizes = [2, 128], strides = [1, 1]} : vector<2x512xf32> to vector<2x128xf32>
    %414 = math.tanh %413 : vector<2x128xf32>
    %415 = vector.extract_strided_slice %400 {offsets = [0, 384], sizes = [2, 128], strides = [1, 1]} : vector<2x512xf32> to vector<2x128xf32>
    %416 = arith.negf %415 : vector<2x128xf32>
    %417 = math.exp %416 : vector<2x128xf32>
    %cst_101 = arith.constant 1.000000e+00 : f32
    %418 = vector.broadcast %cst_101 : f32 to vector<2x128xf32>
    %419 = arith.addf %418, %417 : vector<2x128xf32>
    %420 = arith.divf %418, %419 : vector<2x128xf32>
    %421 = arith.mulf %412, %350 : vector<2x128xf32>
    %422 = arith.mulf %406, %414 : vector<2x128xf32>
    %423 = arith.addf %421, %422 : vector<2x128xf32>
    %424 = math.tanh %423 : vector<2x128xf32>
    %425 = arith.mulf %420, %424 : vector<2x128xf32>
    %426 = vector.extract_strided_slice %397 {offsets = [0, 512], sizes = [2, 512], strides = [1, 1]} : vector<2x1024xf32> to vector<2x512xf32>
    %427 = vector.extract_strided_slice %382 {offsets = [0, 512], sizes = [2, 512], strides = [1, 1]} : vector<2x1024xf32> to vector<2x512xf32>
    %428 = arith.addf %426, %427 : vector<2x512xf32>
    %429 = vector.extract_strided_slice %428 {offsets = [0, 0], sizes = [2, 128], strides = [1, 1]} : vector<2x512xf32> to vector<2x128xf32>
    %430 = arith.negf %429 : vector<2x128xf32>
    %431 = math.exp %430 : vector<2x128xf32>
    %cst_102 = arith.constant 1.000000e+00 : f32
    %432 = vector.broadcast %cst_102 : f32 to vector<2x128xf32>
    %433 = arith.addf %432, %431 : vector<2x128xf32>
    %434 = arith.divf %432, %433 : vector<2x128xf32>
    %435 = vector.extract_strided_slice %428 {offsets = [0, 128], sizes = [2, 128], strides = [1, 1]} : vector<2x512xf32> to vector<2x128xf32>
    %436 = arith.negf %435 : vector<2x128xf32>
    %437 = math.exp %436 : vector<2x128xf32>
    %cst_103 = arith.constant 1.000000e+00 : f32
    %438 = vector.broadcast %cst_103 : f32 to vector<2x128xf32>
    %439 = arith.addf %438, %437 : vector<2x128xf32>
    %440 = arith.divf %438, %439 : vector<2x128xf32>
    %441 = vector.extract_strided_slice %428 {offsets = [0, 256], sizes = [2, 128], strides = [1, 1]} : vector<2x512xf32> to vector<2x128xf32>
    %442 = math.tanh %441 : vector<2x128xf32>
    %443 = vector.extract_strided_slice %428 {offsets = [0, 384], sizes = [2, 128], strides = [1, 1]} : vector<2x512xf32> to vector<2x128xf32>
    %444 = arith.negf %443 : vector<2x128xf32>
    %445 = math.exp %444 : vector<2x128xf32>
    %cst_104 = arith.constant 1.000000e+00 : f32
    %446 = vector.broadcast %cst_104 : f32 to vector<2x128xf32>
    %447 = arith.addf %446, %445 : vector<2x128xf32>
    %448 = arith.divf %446, %447 : vector<2x128xf32>
    %449 = arith.mulf %440, %378 : vector<2x128xf32>
    %450 = arith.mulf %434, %442 : vector<2x128xf32>
    %451 = arith.addf %449, %450 : vector<2x128xf32>
    %452 = math.tanh %451 : vector<2x128xf32>
    %453 = arith.mulf %448, %452 : vector<2x128xf32>
    %c6_i32 = arith.constant 6 : i32
    %454 = tpu.concatenate %425, %453 in 1 : vector<2x128xf32>, vector<2x128xf32> -> vector<2x256xf32>
    %cst_105 = arith.constant dense<0.000000e+00> : vector<2x1024xf32>
    %455 = tpu.matmul %454, %14, %cst_105 {dimension_numbers = #tpu.dot_dimension_numbers<[1], [0], [0], [1], [0, 0, 1, 1], [], []>} : vector<2x256xf32>, vector<256x1024xf32>, vector<2x1024xf32> -> vector<2x1024xf32>
    %c7_i32_106 = arith.constant 7 : i32
    %456 = arith.subi %c7_i32_106, %c6_i32 : i32
    %c0_i32_107 = arith.constant 0 : i32
    %457 = arith.addi %c0_i32_107, %c6_i32 : i32
    %458 = arith.index_cast %457 : i32 to index
    %c0_108 = arith.constant 0 : index
    %459 = vector.load %arg8[%458, %c0_108] : memref<16x1024xf32, #tpu.memory_space<vmem>>, vector<1x1024xf32>
    %c8_i32_109 = arith.constant 8 : i32
    %460 = arith.addi %c8_i32_109, %c6_i32 : i32
    %461 = arith.index_cast %460 : i32 to index
    %c0_110 = arith.constant 0 : index
    %462 = vector.load %arg8[%461, %c0_110] : memref<16x1024xf32, #tpu.memory_space<vmem>>, vector<1x1024xf32>
    %463 = tpu.concatenate %459, %462 in 0 : vector<1x1024xf32>, vector<1x1024xf32> -> vector<2x1024xf32>
    %c0_i32_111 = arith.constant 0 : i32
    %464 = arith.addi %c0_i32_111, %456 : i32
    %465 = arith.index_cast %464 : i32 to index
    %c0_112 = arith.constant 0 : index
    %466 = vector.load %arg8[%465, %c0_112] : memref<16x1024xf32, #tpu.memory_space<vmem>>, vector<1x1024xf32>
    %c8_i32_113 = arith.constant 8 : i32
    %467 = arith.addi %c8_i32_113, %456 : i32
    %468 = arith.index_cast %467 : i32 to index
    %c0_114 = arith.constant 0 : index
    %469 = vector.load %arg8[%468, %c0_114] : memref<16x1024xf32, #tpu.memory_space<vmem>>, vector<1x1024xf32>
    %470 = tpu.concatenate %466, %469 in 0 : vector<1x1024xf32>, vector<1x1024xf32> -> vector<2x1024xf32>
    %471 = vector.extract_strided_slice %463 {offsets = [0, 0], sizes = [2, 512], strides = [1, 1]} : vector<2x1024xf32> to vector<2x512xf32>
    %472 = vector.extract_strided_slice %455 {offsets = [0, 0], sizes = [2, 512], strides = [1, 1]} : vector<2x1024xf32> to vector<2x512xf32>
    %473 = arith.addf %471, %472 : vector<2x512xf32>
    %474 = vector.extract_strided_slice %473 {offsets = [0, 0], sizes = [2, 128], strides = [1, 1]} : vector<2x512xf32> to vector<2x128xf32>
    %475 = arith.negf %474 : vector<2x128xf32>
    %476 = math.exp %475 : vector<2x128xf32>
    %cst_115 = arith.constant 1.000000e+00 : f32
    %477 = vector.broadcast %cst_115 : f32 to vector<2x128xf32>
    %478 = arith.addf %477, %476 : vector<2x128xf32>
    %479 = arith.divf %477, %478 : vector<2x128xf32>
    %480 = vector.extract_strided_slice %473 {offsets = [0, 128], sizes = [2, 128], strides = [1, 1]} : vector<2x512xf32> to vector<2x128xf32>
    %481 = arith.negf %480 : vector<2x128xf32>
    %482 = math.exp %481 : vector<2x128xf32>
    %cst_116 = arith.constant 1.000000e+00 : f32
    %483 = vector.broadcast %cst_116 : f32 to vector<2x128xf32>
    %484 = arith.addf %483, %482 : vector<2x128xf32>
    %485 = arith.divf %483, %484 : vector<2x128xf32>
    %486 = vector.extract_strided_slice %473 {offsets = [0, 256], sizes = [2, 128], strides = [1, 1]} : vector<2x512xf32> to vector<2x128xf32>
    %487 = math.tanh %486 : vector<2x128xf32>
    %488 = vector.extract_strided_slice %473 {offsets = [0, 384], sizes = [2, 128], strides = [1, 1]} : vector<2x512xf32> to vector<2x128xf32>
    %489 = arith.negf %488 : vector<2x128xf32>
    %490 = math.exp %489 : vector<2x128xf32>
    %cst_117 = arith.constant 1.000000e+00 : f32
    %491 = vector.broadcast %cst_117 : f32 to vector<2x128xf32>
    %492 = arith.addf %491, %490 : vector<2x128xf32>
    %493 = arith.divf %491, %492 : vector<2x128xf32>
    %494 = arith.mulf %485, %423 : vector<2x128xf32>
    %495 = arith.mulf %479, %487 : vector<2x128xf32>
    %496 = arith.addf %494, %495 : vector<2x128xf32>
    %497 = math.tanh %496 : vector<2x128xf32>
    %498 = arith.mulf %493, %497 : vector<2x128xf32>
    %499 = vector.extract_strided_slice %470 {offsets = [0, 512], sizes = [2, 512], strides = [1, 1]} : vector<2x1024xf32> to vector<2x512xf32>
    %500 = vector.extract_strided_slice %455 {offsets = [0, 512], sizes = [2, 512], strides = [1, 1]} : vector<2x1024xf32> to vector<2x512xf32>
    %501 = arith.addf %499, %500 : vector<2x512xf32>
    %502 = vector.extract_strided_slice %501 {offsets = [0, 0], sizes = [2, 128], strides = [1, 1]} : vector<2x512xf32> to vector<2x128xf32>
    %503 = arith.negf %502 : vector<2x128xf32>
    %504 = math.exp %503 : vector<2x128xf32>
    %cst_118 = arith.constant 1.000000e+00 : f32
    %505 = vector.broadcast %cst_118 : f32 to vector<2x128xf32>
    %506 = arith.addf %505, %504 : vector<2x128xf32>
    %507 = arith.divf %505, %506 : vector<2x128xf32>
    %508 = vector.extract_strided_slice %501 {offsets = [0, 128], sizes = [2, 128], strides = [1, 1]} : vector<2x512xf32> to vector<2x128xf32>
    %509 = arith.negf %508 : vector<2x128xf32>
    %510 = math.exp %509 : vector<2x128xf32>
    %cst_119 = arith.constant 1.000000e+00 : f32
    %511 = vector.broadcast %cst_119 : f32 to vector<2x128xf32>
    %512 = arith.addf %511, %510 : vector<2x128xf32>
    %513 = arith.divf %511, %512 : vector<2x128xf32>
    %514 = vector.extract_strided_slice %501 {offsets = [0, 256], sizes = [2, 128], strides = [1, 1]} : vector<2x512xf32> to vector<2x128xf32>
    %515 = math.tanh %514 : vector<2x128xf32>
    %516 = vector.extract_strided_slice %501 {offsets = [0, 384], sizes = [2, 128], strides = [1, 1]} : vector<2x512xf32> to vector<2x128xf32>
    %517 = arith.negf %516 : vector<2x128xf32>
    %518 = math.exp %517 : vector<2x128xf32>
    %cst_120 = arith.constant 1.000000e+00 : f32
    %519 = vector.broadcast %cst_120 : f32 to vector<2x128xf32>
    %520 = arith.addf %519, %518 : vector<2x128xf32>
    %521 = arith.divf %519, %520 : vector<2x128xf32>
    %522 = arith.mulf %513, %451 : vector<2x128xf32>
    %523 = arith.mulf %507, %515 : vector<2x128xf32>
    %524 = arith.addf %522, %523 : vector<2x128xf32>
    %525 = math.tanh %524 : vector<2x128xf32>
    %526 = arith.mulf %521, %525 : vector<2x128xf32>
    %c7_i32_121 = arith.constant 7 : i32
    %527 = tpu.concatenate %498, %526 in 1 : vector<2x128xf32>, vector<2x128xf32> -> vector<2x256xf32>
    %cst_122 = arith.constant dense<0.000000e+00> : vector<2x1024xf32>
    %528 = tpu.matmul %527, %14, %cst_122 {dimension_numbers = #tpu.dot_dimension_numbers<[1], [0], [0], [1], [0, 0, 1, 1], [], []>} : vector<2x256xf32>, vector<256x1024xf32>, vector<2x1024xf32> -> vector<2x1024xf32>
    %c7_i32_123 = arith.constant 7 : i32
    %529 = arith.subi %c7_i32_123, %c7_i32_121 : i32
    %c0_i32_124 = arith.constant 0 : i32
    %530 = arith.addi %c0_i32_124, %c7_i32_121 : i32
    %531 = arith.index_cast %530 : i32 to index
    %c0_125 = arith.constant 0 : index
    %532 = vector.load %arg8[%531, %c0_125] : memref<16x1024xf32, #tpu.memory_space<vmem>>, vector<1x1024xf32>
    %c8_i32_126 = arith.constant 8 : i32
    %533 = arith.addi %c8_i32_126, %c7_i32_121 : i32
    %534 = arith.index_cast %533 : i32 to index
    %c0_127 = arith.constant 0 : index
    %535 = vector.load %arg8[%534, %c0_127] : memref<16x1024xf32, #tpu.memory_space<vmem>>, vector<1x1024xf32>
    %536 = tpu.concatenate %532, %535 in 0 : vector<1x1024xf32>, vector<1x1024xf32> -> vector<2x1024xf32>
    %c0_i32_128 = arith.constant 0 : i32
    %537 = arith.addi %c0_i32_128, %529 : i32
    %538 = arith.index_cast %537 : i32 to index
    %c0_129 = arith.constant 0 : index
    %539 = vector.load %arg8[%538, %c0_129] : memref<16x1024xf32, #tpu.memory_space<vmem>>, vector<1x1024xf32>
    %c8_i32_130 = arith.constant 8 : i32
    %540 = arith.addi %c8_i32_130, %529 : i32
    %541 = arith.index_cast %540 : i32 to index
    %c0_131 = arith.constant 0 : index
    %542 = vector.load %arg8[%541, %c0_131] : memref<16x1024xf32, #tpu.memory_space<vmem>>, vector<1x1024xf32>
    %543 = tpu.concatenate %539, %542 in 0 : vector<1x1024xf32>, vector<1x1024xf32> -> vector<2x1024xf32>
    %544 = vector.extract_strided_slice %536 {offsets = [0, 0], sizes = [2, 512], strides = [1, 1]} : vector<2x1024xf32> to vector<2x512xf32>
    %545 = vector.extract_strided_slice %528 {offsets = [0, 0], sizes = [2, 512], strides = [1, 1]} : vector<2x1024xf32> to vector<2x512xf32>
    %546 = arith.addf %544, %545 : vector<2x512xf32>
    %547 = vector.extract_strided_slice %546 {offsets = [0, 0], sizes = [2, 128], strides = [1, 1]} : vector<2x512xf32> to vector<2x128xf32>
    %548 = arith.negf %547 : vector<2x128xf32>
    %549 = math.exp %548 : vector<2x128xf32>
    %cst_132 = arith.constant 1.000000e+00 : f32
    %550 = vector.broadcast %cst_132 : f32 to vector<2x128xf32>
    %551 = arith.addf %550, %549 : vector<2x128xf32>
    %552 = arith.divf %550, %551 : vector<2x128xf32>
    %553 = vector.extract_strided_slice %546 {offsets = [0, 128], sizes = [2, 128], strides = [1, 1]} : vector<2x512xf32> to vector<2x128xf32>
    %554 = arith.negf %553 : vector<2x128xf32>
    %555 = math.exp %554 : vector<2x128xf32>
    %cst_133 = arith.constant 1.000000e+00 : f32
    %556 = vector.broadcast %cst_133 : f32 to vector<2x128xf32>
    %557 = arith.addf %556, %555 : vector<2x128xf32>
    %558 = arith.divf %556, %557 : vector<2x128xf32>
    %559 = vector.extract_strided_slice %546 {offsets = [0, 256], sizes = [2, 128], strides = [1, 1]} : vector<2x512xf32> to vector<2x128xf32>
    %560 = math.tanh %559 : vector<2x128xf32>
    %561 = vector.extract_strided_slice %546 {offsets = [0, 384], sizes = [2, 128], strides = [1, 1]} : vector<2x512xf32> to vector<2x128xf32>
    %562 = arith.negf %561 : vector<2x128xf32>
    %563 = math.exp %562 : vector<2x128xf32>
    %cst_134 = arith.constant 1.000000e+00 : f32
    %564 = vector.broadcast %cst_134 : f32 to vector<2x128xf32>
    %565 = arith.addf %564, %563 : vector<2x128xf32>
    %566 = arith.divf %564, %565 : vector<2x128xf32>
    %567 = arith.mulf %558, %496 : vector<2x128xf32>
    %568 = arith.mulf %552, %560 : vector<2x128xf32>
    %569 = arith.addf %567, %568 : vector<2x128xf32>
    %570 = math.tanh %569 : vector<2x128xf32>
    %571 = arith.mulf %566, %570 : vector<2x128xf32>
    %572 = vector.extract_strided_slice %543 {offsets = [0, 512], sizes = [2, 512], strides = [1, 1]} : vector<2x1024xf32> to vector<2x512xf32>
    %573 = vector.extract_strided_slice %528 {offsets = [0, 512], sizes = [2, 512], strides = [1, 1]} : vector<2x1024xf32> to vector<2x512xf32>
    %574 = arith.addf %572, %573 : vector<2x512xf32>
    %575 = vector.extract_strided_slice %574 {offsets = [0, 0], sizes = [2, 128], strides = [1, 1]} : vector<2x512xf32> to vector<2x128xf32>
    %576 = arith.negf %575 : vector<2x128xf32>
    %577 = math.exp %576 : vector<2x128xf32>
    %cst_135 = arith.constant 1.000000e+00 : f32
    %578 = vector.broadcast %cst_135 : f32 to vector<2x128xf32>
    %579 = arith.addf %578, %577 : vector<2x128xf32>
    %580 = arith.divf %578, %579 : vector<2x128xf32>
    %581 = vector.extract_strided_slice %574 {offsets = [0, 128], sizes = [2, 128], strides = [1, 1]} : vector<2x512xf32> to vector<2x128xf32>
    %582 = arith.negf %581 : vector<2x128xf32>
    %583 = math.exp %582 : vector<2x128xf32>
    %cst_136 = arith.constant 1.000000e+00 : f32
    %584 = vector.broadcast %cst_136 : f32 to vector<2x128xf32>
    %585 = arith.addf %584, %583 : vector<2x128xf32>
    %586 = arith.divf %584, %585 : vector<2x128xf32>
    %587 = vector.extract_strided_slice %574 {offsets = [0, 256], sizes = [2, 128], strides = [1, 1]} : vector<2x512xf32> to vector<2x128xf32>
    %588 = math.tanh %587 : vector<2x128xf32>
    %589 = vector.extract_strided_slice %574 {offsets = [0, 384], sizes = [2, 128], strides = [1, 1]} : vector<2x512xf32> to vector<2x128xf32>
    %590 = arith.negf %589 : vector<2x128xf32>
    %591 = math.exp %590 : vector<2x128xf32>
    %cst_137 = arith.constant 1.000000e+00 : f32
    %592 = vector.broadcast %cst_137 : f32 to vector<2x128xf32>
    %593 = arith.addf %592, %591 : vector<2x128xf32>
    %594 = arith.divf %592, %593 : vector<2x128xf32>
    %595 = arith.mulf %586, %524 : vector<2x128xf32>
    %596 = arith.mulf %580, %588 : vector<2x128xf32>
    %597 = arith.addf %595, %596 : vector<2x128xf32>
    %598 = math.tanh %597 : vector<2x128xf32>
    %599 = arith.mulf %594, %598 : vector<2x128xf32>
    %c8_i32_138 = arith.constant 8 : i32
    %c0_139 = arith.constant 0 : index
    %c0_140 = arith.constant 0 : index
    %600 = vector.load %arg5[%c0_139, %c0_140] : memref<1x128xf32, #tpu.memory_space<vmem>>, vector<1x128xf32>
    %c0_141 = arith.constant 0 : index
    %c0_142 = arith.constant 0 : index
    %601 = vector.load %arg6[%c0_141, %c0_142] : memref<1x4xf32, #tpu.memory_space<vmem>>, vector<1x4xf32>
    %602 = vector.extract_strided_slice %601 {offsets = [0, 0], sizes = [1, 1], strides = [1, 1]} : vector<1x4xf32> to vector<1x1xf32>
    %603 = vector.extract_strided_slice %601 {offsets = [0, 1], sizes = [1, 1], strides = [1, 1]} : vector<1x4xf32> to vector<1x1xf32>
    %604 = vector.extract_strided_slice %601 {offsets = [0, 2], sizes = [1, 1], strides = [1, 1]} : vector<1x4xf32> to vector<1x1xf32>
    %605 = vector.extract_strided_slice %601 {offsets = [0, 3], sizes = [1, 1], strides = [1, 1]} : vector<1x4xf32> to vector<1x1xf32>
    %606 = vector.broadcast %600 : vector<1x128xf32> to vector<2x128xf32>
    %607 = arith.mulf %571, %606 : vector<2x128xf32>
    %cst_143 = arith.constant dense<0.000000e+00> : vector<2xf32>
    %608 = vector.multi_reduction <add>, %607, %cst_143 [1] : vector<2x128xf32> to vector<2xf32>
    %609 = vector.shape_cast %608 : vector<2xf32> to vector<2x1xf32>
    %610 = vector.broadcast %602 : vector<1x1xf32> to vector<2x1xf32>
    %611 = arith.addf %609, %610 : vector<2x1xf32>
    %612 = vector.broadcast %600 : vector<1x128xf32> to vector<2x128xf32>
    %613 = arith.mulf %599, %612 : vector<2x128xf32>
    %cst_144 = arith.constant dense<0.000000e+00> : vector<2xf32>
    %614 = vector.multi_reduction <add>, %613, %cst_144 [1] : vector<2x128xf32> to vector<2xf32>
    %615 = vector.shape_cast %614 : vector<2xf32> to vector<2x1xf32>
    %616 = vector.broadcast %602 : vector<1x1xf32> to vector<2x1xf32>
    %617 = arith.addf %615, %616 : vector<2x1xf32>
    %618 = vector.broadcast %603 : vector<1x1xf32> to vector<2x1xf32>
    %619 = arith.mulf %611, %618 : vector<2x1xf32>
    %620 = vector.broadcast %604 : vector<1x1xf32> to vector<2x1xf32>
    %621 = arith.mulf %617, %620 : vector<2x1xf32>
    %622 = arith.addf %619, %621 : vector<2x1xf32>
    %623 = vector.broadcast %605 : vector<1x1xf32> to vector<2x1xf32>
    %624 = arith.addf %622, %623 : vector<2x1xf32>
    %c0_145 = arith.constant 0 : index
    %c0_146 = arith.constant 0 : index
    %625 = vector.load %arg7[%c0_145, %c0_146] : memref<2x1xf32, #tpu.memory_space<vmem>>, vector<2x1xf32>
    tpu.vector_store %arg7[%c0_145, %c0_146], %624 {strides = array<i32>} : memref<2x1xf32, #tpu.memory_space<vmem>>, vector<2x1xf32>,
    return
  }
  func.func @transform_0(%arg0: i32) -> (i32, i32) {
    %c0_i32 = arith.constant 0 : i32
    %c0_i32_0 = arith.constant 0 : i32
    return %arg0, %c0_i32 : i32, i32
  }
  func.func @transform_1(%arg0: i32) -> (i32, i32) {
    %c0_i32 = arith.constant 0 : i32
    %c0_i32_0 = arith.constant 0 : i32
    %c0_i32_1 = arith.constant 0 : i32
    return %c0_i32, %c0_i32_0 : i32, i32
  }
  func.func @transform_2(%arg0: i32) -> (i32, i32) {
    %c0_i32 = arith.constant 0 : i32
    %c0_i32_0 = arith.constant 0 : i32
    %c0_i32_1 = arith.constant 0 : i32
    return %c0_i32, %c0_i32_0 : i32, i32
  }
  func.func @transform_3(%arg0: i32) -> (i32, i32) {
    %c0_i32 = arith.constant 0 : i32
    %c0_i32_0 = arith.constant 0 : i32
    %c0_i32_1 = arith.constant 0 : i32
    return %c0_i32, %c0_i32_0 : i32, i32
  }
  func.func @transform_4(%arg0: i32) -> (i32, i32) {
    %c0_i32 = arith.constant 0 : i32
    %c0_i32_0 = arith.constant 0 : i32
    %c0_i32_1 = arith.constant 0 : i32
    return %c0_i32, %c0_i32_0 : i32, i32
  }
  func.func @transform_5(%arg0: i32) -> (i32, i32) {
    %c0_i32 = arith.constant 0 : i32
    %c0_i32_0 = arith.constant 0 : i32
    %c0_i32_1 = arith.constant 0 : i32
    return %c0_i32, %c0_i32_0 : i32, i32
  }
  func.func @transform_6(%arg0: i32) -> (i32, i32) {
    %c0_i32 = arith.constant 0 : i32
    %c0_i32_0 = arith.constant 0 : i32
    return %arg0, %c0_i32 : i32, i32
  }
}

</mosaic_0001>

<bundles_post_ra>
// kernel: tpu_custom_call.1
= control target key start
LH: loop header
LB: loop body
LE: loop exit
PB: predicated region body
PF: predicated region fallthrough
CT: control target
= control target key end

     0   :  { %11 = vsyncpa [#allocation4], 0  ;;  %s11948_s0 = inlined_call_operand.hbm [shape: bf16[16,768], index: 0, kind: input, shape index: {}]   ;;  %s11949_s1 = inlined_call_operand.hbm [shape: bf16[768,1024], index: 1, kind: input, shape index: {}]   ;;  %s11950_s2 = inlined_call_operand.hbm [shape: f32[1,1024], index: 2, kind: input, shape index: {}]   ;;  %s11951_s3 = inlined_call_operand.hbm [shape: f32[256,1024], index: 3, kind: input, shape index: {}]   ;;  %s11952_s4 = inlined_call_operand.hbm [shape: f32[1,128], index: 4, kind: input, shape index: {}]   ;;  %s11953_s5 = inlined_call_operand.hbm [shape: f32[1,4], index: 5, kind: input, shape index: {}]   ;;  %s11954_s6 = inlined_call_operand.vmem [shape: f32[2,1], index: 6, kind: output, shape index: {}]  }
   0x1   :  { %12 = vsyncpa [#allocation6], 0 }
   0x2   :  { %13 = vsyncpa [#allocation9], 0 }
   0x3   :  { %14 = vsyncpa [#allocation12], 0  ;;  %s9884_s21 = smov [#allocation5]   ;;  %s9744_s25 = scalar_lea.hbm %s11949_s1, 49152 }
   0x4   :  { %s32_s22 = sshll.u32 %s9884_s21, 4  ;;  %p9745_p0 = scmp.ne.s32.totalorder %s11949_s1, %s9744_s25  ;;  %s33_s22 = int_to_ptr.vmem [resolvable:$true] %s32_s22 }
   0x5   :  { %p9748_p1 = scmp.lt.u32.totalorder %s9744_s25, %s11949_s1 }
   0x7   :  { %p9750_p2 = pnand %p9748_p1, %p9745_p0 }
   0x9   :  { %9753 = shalt.err (!%p9750_p2)
}
   0xa   :  { %s9754_s30 = scalar_lea.vmem %s33_s22, 49152  ;;  %p9759_p4 = scmp.lt.s32.totalorder %s33_s22, %s33_s22 }
   0xb   :  { %p9755_p3 = scmp.ne.s32.totalorder %s33_s22, %s9754_s30  ;;  %p9760_p5 = scmp.lt.s32.totalorder %s9754_s30, %s9754_s30 }
   0xd   :  { %p9761_p6 = por %p9760_p5, %p9759_p4 }
   0xf   :  { %p9762_p7 = pnand %p9761_p6, %p9755_p3 }
  0x11   :  { %9765 = shalt.err (!%p9762_p7)
}
  0x12   :  { %s9885_s7 = smov 512   ;;  %s9886_s8 = smov 32  }
  0x13   :  { %38 = dma.hbm_to_vmem [thread:$0]  %s11949_s1, 49152, %s33_s22, [#allocation6], %s9885_s7, %s9885_s7, %s9886_s8  }
  0x14   :  { %s9887_s11 = smov [#allocation8]   ;;  %s9766_s15 = scalar_lea.hbm %s11951_s3, 32768 }
  0x15   :  { %s54_s12 = sshll.u32 %s9887_s11, 4  ;;  %p9767_p8 = scmp.ne.s32.totalorder %s11951_s3, %s9766_s15  ;;  %s55_s12 = int_to_ptr.vmem [resolvable:$true] %s54_s12 }
  0x16   :  { %p9770_p9 = scmp.lt.u32.totalorder %s9766_s15, %s11951_s3 }
  0x18   :  { %p9772_p10 = pnand %p9770_p9, %p9767_p8 }
  0x1a   :  { %9775 = shalt.err (!%p9772_p10)
}
  0x1b   :  { %s9776_s20 = scalar_lea.vmem %s55_s12, 32768  ;;  %p9781_p12 = scmp.lt.s32.totalorder %s55_s12, %s55_s12 }
  0x1c   :  { %p9777_p11 = scmp.ne.s32.totalorder %s55_s12, %s9776_s20  ;;  %p9782_p13 = scmp.lt.s32.totalorder %s9776_s20, %s9776_s20 }
  0x1e   :  { %p9783_p0 = por %p9782_p13, %p9781_p12 }
  0x20   :  { %p9784_p1 = pnand %p9783_p0, %p9777_p11 }
  0x22   :  { %9787 = shalt.err (!%p9784_p1)
}
  0x23   :  { %s9888_s1 = smov 1024   ;;  %s9889_s21 = smov 64  }
  0x24   :  { %60 = dma.hbm_to_vmem [thread:$0]  %s11951_s3, 32768, %s55_s12, [#allocation9], %s9888_s1, %s9888_s1, %s9889_s21  }
  0x25   :  { %s9890_s24 = smov [#allocation3]   ;;  %s9788_s28 = scalar_lea.hbm %s11948_s0, 768 }
  0x26   :  { %s20_s25 = sshll.u32 %s9890_s24, 4  ;;  %p9789_p2 = scmp.ne.s32.totalorder %s11948_s0, %s9788_s28  ;;  %s21_s25 = int_to_ptr.vmem [resolvable:$true] %s20_s25 }
  0x27   :  { %p9792_p3 = scmp.lt.u32.totalorder %s9788_s28, %s11948_s0 }
  0x29   :  { %p9794_p4 = pnand %p9792_p3, %p9789_p2 }
  0x2b   :  { %9797 = shalt.err (!%p9794_p4)
}
  0x2c   :  { %s9798_s9 = scalar_lea.vmem %s21_s25, 768  ;;  %p9803_p6 = scmp.lt.s32.totalorder %s21_s25, %s21_s25 }
  0x2d   :  { %p9799_p5 = scmp.ne.s32.totalorder %s21_s25, %s9798_s9  ;;  %p9804_p7 = scmp.lt.s32.totalorder %s9798_s9, %s9798_s9 }
  0x2f   :  { %p9805_p8 = por %p9804_p7, %p9803_p6 }
  0x31   :  { %p9806_p9 = pnand %p9805_p8, %p9799_p5 }
  0x33   :  { %9809 = shalt.err (!%p9806_p9)
}
  0x34   :  { %s9891_s3 = smov 384   ;;  %s9892_s10 = smov 24  }
  0x35   :  { %26 = dma.hbm_to_vmem [thread:$0]  %s11948_s0, 768, %s21_s25, [#allocation4], %s9891_s3, %s9891_s3, %s9892_s10  }
  0x36   :  { %s9893_s13 = smov [#allocation7]   ;;  %s9894_s15 = smov [#allocation10]  }
  0x37   :  { %s45_s14 = sshll.u32 %s9893_s13, 4  ;;  %s67_s16 = sshll.u32 %s9894_s15, 4  ;;  %s46_s14 = int_to_ptr.vmem [resolvable:$true] %s45_s14  ;;  %s68_s16 = int_to_ptr.vmem [resolvable:$true] %s67_s16 }
  0x38   :  { %s9810_s19 = scalar_lea.hbm %s11950_s2, 128 }
  0x39   :  { %p9811_p10 = scmp.ne.s32.totalorder %s11950_s2, %s9810_s19  ;;  %p9814_p11 = scmp.lt.u32.totalorder %s9810_s19, %s11950_s2 }
  0x3b   :  { %p9816_p12 = pnand %p9814_p11, %p9811_p10 }
  0x3d   :  { %9819 = shalt.err (!%p9816_p12)
}
  0x3e   :  { %s9820_s0 = scalar_lea.vmem %s46_s14, 128  ;;  %p9825_p0 = scmp.lt.s32.totalorder %s46_s14, %s46_s14 }
  0x3f   :  { %p9821_p13 = scmp.ne.s32.totalorder %s46_s14, %s9820_s0  ;;  %p9826_p1 = scmp.lt.s32.totalorder %s9820_s0, %s9820_s0 }
  0x41   :  { %p9827_p2 = por %p9826_p1, %p9825_p0 }
  0x43   :  { %p9828_p3 = pnand %p9827_p2, %p9821_p13 }
  0x45   :  { %9831 = shalt.err (!%p9828_p3)
}
  0x46   :  { %48 = dma.hbm_to_vmem [thread:$0]  %s11950_s2, 128, %s46_s14, [#allocation6]  }
  0x47   :  { %s9832_s27 = scalar_lea.hbm %s11952_s4, 16 }
  0x48   :  { %p9833_p4 = scmp.ne.s32.totalorder %s11952_s4, %s9832_s27  ;;  %p9836_p5 = scmp.lt.u32.totalorder %s9832_s27, %s11952_s4 }
  0x4a   :  { %p9838_p6 = pnand %p9836_p5, %p9833_p4 }
  0x4c   :  { %9841 = shalt.err (!%p9838_p6)
}
  0x4d   :  { %s9842_s8 = scalar_lea.vmem %s68_s16, 16  ;;  %s9846_s9 = scalar_lea.vmem %s68_s16, 32 }
  0x4e   :  { %p9843_p7 = scmp.ne.s32.totalorder %s68_s16, %s9842_s8  ;;  %p9847_p8 = scmp.lt.s32.totalorder %s68_s16, %s68_s16 }
  0x4f   :  { %p9848_p9 = scmp.lt.s32.totalorder %s9846_s9, %s9842_s8 }
  0x51   :  { %p9849_p10 = por %p9848_p9, %p9847_p8 }
  0x53   :  { %p9850_p11 = pnand %p9849_p10, %p9843_p7 }
  0x55   :  { %9853 = shalt.err (!%p9850_p11)
}
  0x56   :  { %70 = dma.hbm_to_vmem [thread:$0]  %s11952_s4, 16, %s68_s16, [#allocation9]  }
  0x57   :  { %s9895_s10 = smov [#allocation11]   ;;  %s9854_s14 = scalar_lea.hbm %s11953_s5, 16 }
  0x58   :  { %s77_s11 = sshll.u32 %s9895_s10, 4  ;;  %p9855_p12 = scmp.ne.s32.totalorder %s11953_s5, %s9854_s14  ;;  %s78_s11 = int_to_ptr.vmem [resolvable:$true] %s77_s11 }
  0x59   :  { %p9858_p13 = scmp.lt.u32.totalorder %s9854_s14, %s11953_s5 }
  0x5b   :  { %p9860_p0 = pnand %p9858_p13, %p9855_p12 }
  0x5d   :  { %9863 = shalt.err (!%p9860_p0)
}
  0x5e   :  { %s9864_s20 = scalar_lea.vmem %s78_s11, 16  ;;  %s9868_s4 = scalar_lea.vmem %s78_s11, 32 }
  0x5f   :  { %p9865_p1 = scmp.ne.s32.totalorder %s78_s11, %s9864_s20  ;;  %p9869_p2 = scmp.lt.s32.totalorder %s78_s11, %s78_s11 }
  0x60   :  { %p9870_p3 = scmp.lt.s32.totalorder %s9868_s4, %s9864_s20 }
  0x62   :  { %p9871_p4 = por %p9870_p3, %p9869_p2 }
  0x64   :  { %p9872_p5 = pnand %p9871_p4, %p9865_p1 }
  0x66   :  { %9875 = shalt.err (!%p9872_p5)
}
  0x67   :  { %80 = dma.hbm_to_vmem [thread:$0]  %s11953_s5, 16, %s78_s11, [#allocation12]  }
  0x68   :  { %9876 = dma.done.wait [#allocation4], 768  }
  0x69   :  { %9877 = vsyncadd [#allocation4], 4294966528 }
  0x6a   :  { %9878 = dma.done.wait [#allocation6], 49280  }
  0x6b   :  { %9879 = vsyncadd [#allocation6], 4294918016 }
  0x6c   :  { %9880 = dma.done.wait [#allocation9], 32784  }
  0x6d   :  { %9881 = vsyncadd [#allocation9], 4294934512 }
  0x6e   :  { %9882 = dma.done.wait [#allocation12], 16  }
  0x6f   :  { %9883 = vsyncadd [#allocation12], 4294967280  ;;  %v195_v0 = vld [vmem:[#allocation5] sm:$0xff]  ;;  %v196_v2 = vld [vmem:[#allocation5 + $0x8] sm:$0xff]  ;;  %vm3702_vm0 = vcmask 1040384   ;;  %s9897_s5 = smov 127  }
  0x70   :  { %v199_v1 = vld [vmem:[#allocation5 + $0x20] sm:$0xff]  ;;  %v200_v4 = vld [vmem:[#allocation5 + $0x28] sm:$0xff]  ;;  %v99_v53 = vld [vmem:[#allocation3] sm:$0xff]  ;;  %s9898_s21 = smov 126   ;;  %vm6842_vm1 = vcmask 1041408   ;;  %s9899_s22 = smov 125  }
  0x71   :  { %v6894_v3 = vcombine.high %v195_v0, %v199_v1  ;;  %v6893_v5 = vcombine.low %v195_v0, %v199_v1  ;;  %v203_v6 = vld [vmem:[#allocation5 + $0x40] sm:$0xff]  ;;  %v6896_v8 = vcombine.high %v196_v2, %v200_v4  ;;  %v6895_v9 = vcombine.low %v196_v2, %v200_v4  ;;  %v204_v11 = vld [vmem:[#allocation5 + $0x48] sm:$0xff] }
  0x72   :  { %v207_v7 = vld [vmem:[#allocation5 + $0x60] sm:$0xff]  ;;  %v208_v12 = vld [vmem:[#allocation5 + $0x68] sm:$0xff]  ;;  %v106_v58 = vunpack.c.h.bf16 %v99_v53  ;;  %v105_v62 = vunpack.c.l.bf16 %v99_v53  ;;  %v10007_v53 = vld [vmem:[#allocation3 + $0x8] sm:$0xff]  ;;  %vm6871_vm2 = vcmask 1024  }
  0x73   :  { %v6902_v10 = vcombine.high %v203_v6, %v207_v7  ;;  %v211_v13 = vld [vmem:[#allocation5 + $0x80] sm:$0xff]  ;;  %2541 = vmatprep.subr.bf16.mxu0 %v6894_v3  ;;  %v6904_v14 = vcombine.high %v204_v11, %v208_v12  ;;  %v212_v16 = vld [vmem:[#allocation5 + $0x88] sm:$0xff]  ;;  %2670 = vmatprep.subr.bf16.mxu1 %v6896_v8  ;;  %v6901_v18 = vcombine.low %v203_v6, %v207_v7 }
  0x74   :  { %v215_v15 = vld [vmem:[#allocation5 + $0xa0] sm:$0xff]  ;;  %v216_v17 = vld [vmem:[#allocation5 + $0xa8] sm:$0xff]  ;;  %2542 = vmatpush1.bf16.msra.mxu0 %v6893_v5  ;;  %2671 = vmatpush1.bf16.msra.mxu1 %v6895_v9  ;;  %v6903_v19 = vcombine.low %v204_v11, %v208_v12  ;;  %v6882_v1 = vmul.f32 -1.442695, %v106_v58  ;;  %v6881_v8 = vmul.f32 -1.442695, %v105_v62 }
  0x75   :  { %2543 = vmatprep.subr.bf16.mxu0 %v6902_v10  ;;  %v6910_v20 = vcombine.high %v211_v13, %v215_v15  ;;  %2672 = vmatprep.subr.bf16.mxu1 %v6904_v14  ;;  %v6912_v21 = vcombine.high %v212_v16, %v216_v17  ;;  %v219_v22 = vld [vmem:[#allocation5 + $0xc0] sm:$0xff]  ;;  %v220_v24 = vld [vmem:[#allocation5 + $0xc8] sm:$0xff]  ;;  %v6909_v26 = vcombine.low %v211_v13, %v215_v15 }
  0x76   :  { %v223_v23 = vld [vmem:[#allocation5 + $0xe0] sm:$0xff]  ;;  %v224_v25 = vld [vmem:[#allocation5 + $0xe8] sm:$0xff]  ;;  %v6911_v27 = vcombine.low %v212_v16, %v216_v17  ;;  %9439 = vpow2.f32 %v6882_v1 }
  0x77   :  { %v6918_v28 = vcombine.high %v219_v22, %v223_v23  ;;  %v6920_v29 = vcombine.high %v220_v24, %v224_v25  ;;  %v227_v30 = vld [vmem:[#allocation5 + $0x100] sm:$0xff]  ;;  %v228_v32 = vld [vmem:[#allocation5 + $0x108] sm:$0xff]  ;;  %v6917_v34 = vcombine.low %v219_v22, %v223_v23  ;;  %v6919_v35 = vcombine.low %v220_v24, %v224_v25 }
  0x78   :  { %2544 = vmatpush1.bf16.msra.mxu0 %v6901_v18  ;;  %2673 = vmatpush1.bf16.msra.mxu1 %v6903_v19  ;;  %v231_v31 = vld [vmem:[#allocation5 + $0x120] sm:$0xff]  ;;  %v232_v33 = vld [vmem:[#allocation5 + $0x128] sm:$0xff] }
  0x79   :  { %2545 = vmatprep.subr.bf16.mxu0 %v6910_v20  ;;  %2674 = vmatprep.subr.bf16.mxu1 %v6912_v21  ;;  %v6926_v36 = vcombine.high %v227_v30, %v231_v31  ;;  %v6928_v37 = vcombine.high %v228_v32, %v232_v33  ;;  %v235_v38 = vld [vmem:[#allocation5 + $0x140] sm:$0xff]  ;;  %v236_v40 = vld [vmem:[#allocation5 + $0x148] sm:$0xff]  ;;  %v6925_v42 = vcombine.low %v227_v30, %v231_v31 }
  0x7a   :  { %v239_v39 = vld [vmem:[#allocation5 + $0x160] sm:$0xff]  ;;  %v240_v41 = vld [vmem:[#allocation5 + $0x168] sm:$0xff]  ;;  %v6927_v43 = vcombine.low %v228_v32, %v232_v33 }
  0x7b   :  { %v6934_v44 = vcombine.high %v235_v38, %v239_v39  ;;  %v6936_v45 = vcombine.high %v236_v40, %v240_v41  ;;  %v243_v46 = vld [vmem:[#allocation5 + $0x180] sm:$0xff]  ;;  %v244_v48 = vld [vmem:[#allocation5 + $0x188] sm:$0xff]  ;;  %v6933_v50 = vcombine.low %v235_v38, %v239_v39  ;;  %v6935_v51 = vcombine.low %v236_v40, %v240_v41 }
  0x7c   :  { %2546 = vmatpush1.bf16.msra.mxu0 %v6909_v26  ;;  %2675 = vmatpush1.bf16.msra.mxu1 %v6911_v27  ;;  %v247_v47 = vld [vmem:[#allocation5 + $0x1a0] sm:$0xff]  ;;  %v248_v49 = vld [vmem:[#allocation5 + $0x1a8] sm:$0xff] }
  0x7d   :  { %2547 = vmatprep.subr.bf16.mxu0 %v6918_v28  ;;  %2676 = vmatprep.subr.bf16.mxu1 %v6920_v29  ;;  %v6942_v52 = vcombine.high %v243_v46, %v247_v47  ;;  %v102_v54 = vld [vmem:[#allocation3 + $0x18] sm:$0xff]  ;;  %v6944_v55 = vcombine.high %v244_v48, %v248_v49  ;;  %v251_v56 = vld [vmem:[#allocation5 + $0x1c0] sm:$0xff]  ;;  %v6941_v0 = vcombine.low %v243_v46, %v247_v47 }
  0x7e   :  { %v255_v57 = vld [vmem:[#allocation5 + $0x1e0] sm:$0xff]  ;;  %v112_v59 = vunpack.c.h.bf16 %v102_v54  ;;  %v252_v60 = vld [vmem:[#allocation5 + $0x1c8] sm:$0xff]  ;;  %v111_v63 = vunpack.c.l.bf16 %v102_v54  ;;  %v6943_v3 = vcombine.low %v244_v48, %v248_v49  ;;  %v10009_v54 = vld [vmem:[#allocation3 + $0x20] sm:$0xff] }
  0x7f   :  { %v256_v61 = vld [vmem:[#allocation5 + $0x1e8] sm:$0xff]  ;;  %v6950_v4 = vcombine.high %v251_v56, %v255_v57  ;;  %v259_v6 = vld [vmem:[#allocation5 + $0x200] sm:$0xff]  ;;  %v6949_v12 = vcombine.low %v251_v56, %v255_v57  ;;  %v108_v57 = vunpack.c.h.bf16 %v10007_v53  ;;  %v114_v58 = vunpack.c.h.bf16 %v10009_v54 }
  0x80   :  { %2548 = vmatpush1.bf16.msra.mxu0 %v6917_v34  ;;  %2677 = vmatpush1.bf16.msra.mxu1 %v6919_v35  ;;  %v6888_v2 = vmul.f32 -1.442695, %v112_v59  ;;  %v6952_v5 = vcombine.high %v252_v60, %v256_v61  ;;  %v263_v7 = vld [vmem:[#allocation5 + $0x220] sm:$0xff]  ;;  %v260_v9 = vld [vmem:[#allocation5 + $0x208] sm:$0xff]  ;;  %v6887_v11 = vmul.f32 -1.442695, %v111_v63  ;;  %v6951_v13 = vcombine.low %v252_v60, %v256_v61  ;;  %v9440_v28 = vpop.eup %9439 }
  0x81   :  { %2549 = vmatprep.subr.bf16.mxu0 %v6926_v36  ;;  %2678 = vmatprep.subr.bf16.mxu1 %v6928_v37  ;;  %v264_v10 = vld [vmem:[#allocation5 + $0x228] sm:$0xff]  ;;  %v6958_v14 = vcombine.high %v259_v6, %v263_v7  ;;  %v267_v16 = vld [vmem:[#allocation5 + $0x240] sm:$0xff]  ;;  %v6957_v20 = vcombine.low %v259_v6, %v263_v7  ;;  %v154_v33 = vadd.f32 1.0, %v9440_v28  ;;  %v6890_v1 = vmul.f32 -1.442695, %v114_v58 }
  0x82   :  { %9441 = vpow2.f32 %v6888_v2  ;;  %v6960_v15 = vcombine.high %v260_v9, %v264_v10  ;;  %v271_v17 = vld [vmem:[#allocation5 + $0x260] sm:$0xff]  ;;  %v268_v18 = vld [vmem:[#allocation5 + $0x248] sm:$0xff]  ;;  %v6959_v21 = vcombine.low %v260_v9, %v264_v10 }
  0x83   :  { %9443 = vpow2.f32 %v6881_v8  ;;  %v272_v19 = vld [vmem:[#allocation5 + $0x268] sm:$0xff]  ;;  %v6966_v22 = vcombine.high %v267_v16, %v271_v17  ;;  %v275_v24 = vld [vmem:[#allocation5 + $0x280] sm:$0xff]  ;;  %v6965_v29 = vcombine.low %v267_v16, %v271_v17 }
  0x84   :  { %2550 = vmatpush1.bf16.msra.mxu0 %v6925_v42  ;;  %2679 = vmatpush1.bf16.msra.mxu1 %v6927_v43  ;;  %9445 = vpow2.f32 %v6887_v11  ;;  %v6968_v23 = vcombine.high %v268_v18, %v272_v19  ;;  %v279_v25 = vld [vmem:[#allocation5 + $0x2a0] sm:$0xff]  ;;  %v276_v26 = vld [vmem:[#allocation5 + $0x288] sm:$0xff]  ;;  %v6967_v31 = vcombine.low %v268_v18, %v272_v19 }
  0x85   :  { %2551 = vmatprep.subr.bf16.mxu0 %v6934_v44  ;;  %2680 = vmatprep.subr.bf16.mxu1 %v6936_v45  ;;  %v280_v27 = vld [vmem:[#allocation5 + $0x2a8] sm:$0xff]  ;;  %v6974_v32 = vcombine.high %v275_v24, %v279_v25  ;;  %v283_v35 = vld [vmem:[#allocation5 + $0x2c0] sm:$0xff]  ;;  %9447 = vrcp.f32 %v154_v33  ;;  %v6973_v41 = vcombine.low %v275_v24, %v279_v25 }
  0x86   :  { %v6976_v34 = vcombine.high %v276_v26, %v280_v27  ;;  %v287_v36 = vld [vmem:[#allocation5 + $0x2e0] sm:$0xff]  ;;  %v284_v38 = vld [vmem:[#allocation5 + $0x2c8] sm:$0xff]  ;;  %v6975_v43 = vcombine.low %v276_v26, %v280_v27 }
  0x87   :  { %v288_v39 = vld [vmem:[#allocation5 + $0x2e8] sm:$0xff]  ;;  %v6982_v44 = vcombine.high %v283_v35, %v287_v36  ;;  %v291_v46 = vld [vmem:[#allocation5 + $0x300] sm:$0xff] }
  0x88   :  { %2552 = vmatpush1.bf16.msra.mxu0 %v6933_v50  ;;  %2681 = vmatpush1.bf16.msra.mxu1 %v6935_v51  ;;  %v6984_v45 = vcombine.high %v284_v38, %v288_v39  ;;  %v295_v47 = vld [vmem:[#allocation5 + $0x320] sm:$0xff]  ;;  %v292_v48 = vld [vmem:[#allocation5 + $0x308] sm:$0xff]  ;;  %v6981_v51 = vcombine.low %v283_v35, %v287_v36 }
  0x89   :  { %2553 = vmatprep.subr.bf16.mxu0 %v6942_v52  ;;  %2682 = vmatprep.subr.bf16.mxu1 %v6944_v55  ;;  %v296_v49 = vld [vmem:[#allocation5 + $0x328] sm:$0xff]  ;;  %v6983_v55 = vcombine.low %v284_v38, %v288_v39  ;;  %v6990_v56 = vcombine.high %v291_v46, %v295_v47  ;;  %v299_v60 = vld [vmem:[#allocation5 + $0x340] sm:$0xff]  ;;  %v6989_v2 = vcombine.low %v291_v46, %v295_v47 }
  0x8a   :  { %v6992_v59 = vcombine.high %v292_v48, %v296_v49  ;;  %v303_v61 = vld [vmem:[#allocation5 + $0x360] sm:$0xff]  ;;  %v300_v62 = vld [vmem:[#allocation5 + $0x348] sm:$0xff] }
  0x8b   :  { %v304_v63 = vld [vmem:[#allocation5 + $0x368] sm:$0xff]  ;;  %v307_v8 = vld [vmem:[#allocation5 + $0x380] sm:$0xff] }
  0x8c   :  { %2554 = vmatpush1.bf16.msra.mxu0 %v6941_v0  ;;  %2683 = vmatpush1.bf16.msra.mxu1 %v6943_v3  ;;  %v9442_v30 = vpop.eup %9441  ;;  %v6884_v0 = vmul.f32 -1.442695, %v108_v57  ;;  %v7000_v7 = vcombine.high %v300_v62, %v304_v63  ;;  %v311_v9 = vld [vmem:[#allocation5 + $0x3a0] sm:$0xff]  ;;  %v308_v10 = vld [vmem:[#allocation5 + $0x388] sm:$0xff] }
  0x8d   :  { %2555 = vmatprep.subr.bf16.mxu0 %v6950_v4  ;;  %2684 = vmatprep.subr.bf16.mxu1 %v6952_v5  ;;  %v160_v37 = vadd.f32 1.0, %v9442_v30  ;;  %v9444_v40 = vpop.eup %9443  ;;  %v6991_v4 = vcombine.low %v292_v48, %v296_v49  ;;  %v6998_v5 = vcombine.high %v299_v60, %v303_v61  ;;  %v312_v11 = vld [vmem:[#allocation5 + $0x3a8] sm:$0xff]  ;;  %v315_v17 = vld [vmem:[#allocation5 + $0x3c0] sm:$0xff] }
  0x8e   :  { %v9446_v42 = vpop.eup %9445  ;;  %v153_v50 = vadd.f32 1.0, %v9444_v40  ;;  %v7008_v16 = vcombine.high %v308_v10, %v312_v11  ;;  %v319_v18 = vld [vmem:[#allocation5 + $0x3e0] sm:$0xff]  ;;  %v316_v19 = vld [vmem:[#allocation5 + $0x3c8] sm:$0xff] }
  0x8f   :  { %9449 = vrcp.f32 %v160_v37  ;;  %v159_v52 = vadd.f32 1.0, %v9446_v42  ;;  %v9448_v3 = vpop.eup %9447  ;;  %v7014_v24 = vcombine.high %v315_v17, %v319_v18  ;;  %v323_v27 = vld [vmem:[#allocation5 + $0x400] sm:$0xff]  ;;  %v324_v30 = vld [vmem:[#allocation5 + $0x408] sm:$0xff]  ;;  %v7013_v33 = vcombine.low %v315_v17, %v319_v18 }
  0x90   :  { %2556 = vmatpush1.bf16.msra.mxu0 %v6949_v12  ;;  %2685 = vmatpush1.bf16.msra.mxu1 %v6951_v13  ;;  %9451 = vrcp.f32 %v153_v50  ;;  %v6997_v13 = vcombine.low %v299_v60, %v303_v61  ;;  %v327_v28 = vld [vmem:[#allocation5 + $0x420] sm:$0xff]  ;;  %v332_v42 = vld [vmem:[#allocation5 + $0x448] sm:$0xff] }
  0x91   :  { %2557 = vmatprep.subr.bf16.mxu0 %v6958_v14  ;;  %2686 = vmatprep.subr.bf16.mxu1 %v6960_v15  ;;  %9453 = vrcp.f32 %v159_v52  ;;  %v6999_v14 = vcombine.low %v300_v62, %v304_v63  ;;  %v7006_v15 = vcombine.high %v307_v8, %v311_v9  ;;  %v7022_v36 = vcombine.high %v323_v27, %v327_v28  ;;  %v331_v39 = vld [vmem:[#allocation5 + $0x440] sm:$0xff]  ;;  %v340_v50 = vld [vmem:[#allocation5 + $0x488] sm:$0xff] }
  0x92   :  { %9455 = vpow2.f32 %v6884_v0  ;;  %v335_v40 = vld [vmem:[#allocation5 + $0x460] sm:$0xff]  ;;  %v348_v60 = vld [vmem:[#allocation5 + $0x4c8] sm:$0xff] }
  0x93   :  { %9457 = vpow2.f32 %v6890_v1  ;;  %v7030_v46 = vcombine.high %v331_v39, %v335_v40  ;;  %v339_v48 = vld [vmem:[#allocation5 + $0x480] sm:$0xff]  ;;  %v7029_v52 = vcombine.low %v331_v39, %v335_v40  ;;  %v352_v61 = vld [vmem:[#allocation5 + $0x4e8] sm:$0xff]  ;;  %v113_v39 = vunpack.c.l.bf16 %v10009_v54  ;;  %v10029_v40 = vld [vmem:[#allocation3 + $0x28] sm:$0xff] }
  0x94   :  { %2558 = vmatpush1.bf16.msra.mxu0 %v6957_v20  ;;  %2687 = vmatpush1.bf16.msra.mxu1 %v6959_v21  ;;  %v320_v20 = vld [vmem:[#allocation5 + $0x3e8] sm:$0xff]  ;;  %v7005_v21 = vcombine.low %v307_v8, %v311_v9  ;;  %v343_v49 = vld [vmem:[#allocation5 + $0x4a0] sm:$0xff] }
  0x95   :  { %2559 = vmatprep.subr.bf16.mxu0 %v6966_v22  ;;  %2688 = vmatprep.subr.bf16.mxu1 %v6968_v23  ;;  %v7007_v23 = vcombine.low %v308_v10, %v312_v11  ;;  %v7016_v26 = vcombine.high %v316_v19, %v320_v20  ;;  %v7015_v35 = vcombine.low %v316_v19, %v320_v20  ;;  %v347_v58 = vld [vmem:[#allocation5 + $0x4c0] sm:$0xff]  ;;  %v360_v8 = vld [vmem:[#allocation5 + $0x528] sm:$0xff]  ;;  %v6889_v54 = vmul.f32 -1.442695, %v113_v39 }
  0x96   :  { %v7037_v63 = vcombine.low %v339_v48, %v343_v49  ;;  %v7047_v10 = vcombine.low %v348_v60, %v352_v61  ;;  %v368_v17 = vld [vmem:[#allocation5 + $0x568] sm:$0xff] }
  0x98   :  { %2560 = vmatpush1.bf16.msra.mxu0 %v6965_v29  ;;  %2689 = vmatpush1.bf16.msra.mxu1 %v6967_v31  ;;  %v328_v31 = vld [vmem:[#allocation5 + $0x428] sm:$0xff] }
  0x99   :  { %2561 = vmatprep.subr.bf16.mxu0 %v6974_v32  ;;  %2690 = vmatprep.subr.bf16.mxu1 %v6976_v34  ;;  %v9450_v6 = vpop.eup %9449  ;;  %v7024_v38 = vcombine.high %v324_v30, %v328_v31 }
  0x9a   :  { %v10013_v12 = vpack.c.bf16 %v9450_v6, %v9448_v3  ;;  %v9452_v22 = vpop.eup %9451  ;;  %v7048_v3 = vcombine.high %v348_v60, %v352_v61 }
  0x9b   :  { %v9454_v25 = vpop.eup %9453 }
  0x9c   :  { %2562 = vmatpush1.bf16.msra.mxu0 %v6973_v41  ;;  %2691 = vmatpush1.bf16.msra.mxu1 %v6975_v43  ;;  %v9456_v29 = vpop.eup %9455  ;;  %v10017_v41 = vpack.c.bf16 %v9454_v25, %v9452_v22  ;;  %v336_v43 = vld [vmem:[#allocation5 + $0x468] sm:$0xff]  ;;  %v371_v22 = vld [vmem:[#allocation5 + $0x580] sm:$0xff] }
  0x9d   :  { %2563 = vmatprep.subr.bf16.mxu0 %v6982_v44  ;;  %2692 = vmatprep.subr.bf16.mxu1 %v6984_v45  ;;  %v9458_v32 = vpop.eup %9457  ;;  %v156_v34 = vadd.f32 1.0, %v9456_v29  ;;  %v7021_v44 = vcombine.low %v323_v27, %v327_v28  ;;  %v7023_v45 = vcombine.low %v324_v30, %v328_v31  ;;  %v7032_v47 = vcombine.high %v332_v42, %v336_v43  ;;  %v376_v25 = vld [vmem:[#allocation5 + $0x5a8] sm:$0xff]  ;;  %v379_v30 = vld [vmem:[#allocation5 + $0x5c0] sm:$0xff] }
  0x9e   :  { %2573 = vmatprep.mubr.bf16.mxu0 %v10013_v12  ;;  %2702 = vmatprep.mubr.bf16.mxu1 %v10013_v12  ;;  %v162_v37 = vadd.f32 1.0, %v9458_v32  ;;  %v383_v31 = vld [vmem:[#allocation5 + $0x5e0] sm:$0xff]  ;;  %v380_v32 = vld [vmem:[#allocation5 + $0x5c8] sm:$0xff] }
  0x9f   :  { %9459 = vrcp.f32 %v156_v34 }
  0xa0   :  { %2564 = vmatpush1.bf16.msra.mxu0 %v6981_v51  ;;  %2693 = vmatpush1.bf16.msra.mxu1 %v6983_v55  ;;  %9461 = vrcp.f32 %v162_v37  ;;  %v344_v51 = vld [vmem:[#allocation5 + $0x4a8] sm:$0xff]  ;;  %v7031_v55 = vcombine.low %v332_v42, %v336_v43  ;;  %v387_v43 = vld [vmem:[#allocation5 + $0x600] sm:$0xff] }
  0xa1   :  { %2565 = vmatprep.subr.bf16.mxu0 %v6990_v56  ;;  %2694 = vmatprep.subr.bf16.mxu1 %v6992_v59  ;;  %v7038_v56 = vcombine.high %v339_v48, %v343_v49  ;;  %v7040_v57 = vcombine.high %v340_v50, %v344_v51  ;;  %v351_v59 = vld [vmem:[#allocation5 + $0x4e0] sm:$0xff]  ;;  %v7039_v1 = vcombine.low %v340_v50, %v344_v51  ;;  %v116_v49 = vunpack.c.h.bf16 %v10029_v40 }
  0xa2   :  { %v7045_v9 = vcombine.low %v347_v58, %v351_v59 }
  0xa3   :  { %v6892_v61 = vmul.f32 -1.442695, %v116_v49 }
  0xa4   :  { %2566 = vmatpush1.bf16.msra.mxu0 %v6989_v2  ;;  %2695 = vmatpush1.bf16.msra.mxu1 %v6991_v4  ;;  %v7046_v2 = vcombine.high %v347_v58, %v351_v59  ;;  %v355_v4 = vld [vmem:[#allocation5 + $0x500] sm:$0xff]  ;;  %v400_v58 = vld [vmem:[#allocation5 + $0x668] sm:$0xff] }
  0xa5   :  { %2567 = vmatprep.subr.bf16.mxu0 %v6998_v5  ;;  %2696 = vmatprep.subr.bf16.mxu1 %v7000_v7  ;;  %v359_v5 = vld [vmem:[#allocation5 + $0x520] sm:$0xff]  ;;  %v356_v7 = vld [vmem:[#allocation5 + $0x508] sm:$0xff] }
  0xa6   :  { %v7054_v11 = vcombine.high %v355_v4, %v359_v5  ;;  %v7053_v18 = vcombine.low %v355_v4, %v359_v5  ;;  %v7055_v19 = vcombine.low %v356_v7, %v360_v8  ;;  %v408_v4 = vld [vmem:[#allocation5 + $0x6a8] sm:$0xff] }
  0xa8   :  { %2568 = vmatpush1.bf16.msra.mxu0 %v6997_v13  ;;  %2697 = vmatpush1.bf16.msra.mxu1 %v6999_v14  ;;  %v7056_v13 = vcombine.high %v356_v7, %v360_v8  ;;  %v363_v14 = vld [vmem:[#allocation5 + $0x540] sm:$0xff] }
  0xa9   :  { %2569 = vmatprep.subr.bf16.mxu0 %v7006_v15  ;;  %2698 = vmatprep.subr.bf16.mxu1 %v7008_v16  ;;  %v9460_v62 = vpop.eup %9459  ;;  %v367_v15 = vld [vmem:[#allocation5 + $0x560] sm:$0xff]  ;;  %v364_v16 = vld [vmem:[#allocation5 + $0x548] sm:$0xff] }
  0xaa   :  { %v9462_v0 = vpop.eup %9461  ;;  %v7062_v20 = vcombine.high %v363_v14, %v367_v15  ;;  %v7063_v27 = vcombine.low %v364_v16, %v368_v17 }
  0xab   :  { %v10021_v6 = vpack.c.bf16 %v9462_v0, %v9460_v62 }
  0xac   :  { %2570 = vmatpush1.bf16.msra.mxu0 %v7005_v21  ;;  %2699 = vmatpush1.bf16.msra.mxu1 %v7007_v23  ;;  %v7064_v21 = vcombine.high %v364_v16, %v368_v17  ;;  %v375_v23 = vld [vmem:[#allocation5 + $0x5a0] sm:$0xff] }
  0xad   :  { %2571 = vmatprep.subr.bf16.mxu0 %v7014_v24  ;;  %2700 = vmatprep.subr.bf16.mxu1 %v7016_v26  ;;  %v372_v24 = vld [vmem:[#allocation5 + $0x588] sm:$0xff]  ;;  %v7061_v26 = vcombine.low %v363_v14, %v367_v15  ;;  %v7070_v28 = vcombine.high %v371_v22, %v375_v23  ;;  %v7069_v34 = vcombine.low %v371_v22, %v375_v23 }
  0xae   :  { %v7072_v29 = vcombine.high %v372_v24, %v376_v25  ;;  %v7071_v37 = vcombine.low %v372_v24, %v376_v25  ;;  %v416_v14 = vld [vmem:[#allocation5 + $0x6e8] sm:$0xff] }
  0xaf   :  { %v420_v23 = vld [vmem:[#allocation5 + $0x708] sm:$0xff] }
  0xb0   :  { %2572 = vmatpush1.bf16.msra.mxu0 %v7013_v33  ;;  %2701 = vmatpush1.bf16.msra.mxu1 %v7015_v35  ;;  %v384_v33 = vld [vmem:[#allocation5 + $0x5e8] sm:$0xff]  ;;  %v107_v35 = vunpack.c.l.bf16 %v10007_v53  ;;  %v7077_v53 = vcombine.low %v379_v30, %v383_v31 }
  0xb1   :  { %2584 = vmatprep.subr.bf16.mxu0 %v7022_v36  ;;  %2713 = vmatprep.subr.bf16.mxu1 %v7024_v38  ;;  %v10026_v36 = vld [vmem:[#allocation3 + $0x10] sm:$0xff]  ;;  %v7078_v38 = vcombine.high %v379_v30, %v383_v31  ;;  %v7080_v42 = vcombine.high %v380_v32, %v384_v33  ;;  %v7079_v50 = vcombine.low %v380_v32, %v384_v33  ;;  %v424_v24 = vld [vmem:[#allocation5 + $0x728] sm:$0xff] }
  0xb2   :  { %v6883_v48 = vmul.f32 -1.442695, %v107_v35  ;;  %v7120_v31 = vcombine.high %v420_v23, %v424_v24  ;;  %v427_v32 = vld [vmem:[#allocation5 + $0x740] sm:$0xff]  ;;  %v428_v35 = vld [vmem:[#allocation5 + $0x748] sm:$0xff] }
  0xb3   :  { %2574 = vmatmul.mubr.bf16.vlgmr.msra.gmra.mrb[0].mxu0 %v10017_v41  ;;  %2703 = vmatmul.mubr.bf16.vlgmr.msra.gmra.mrb[0].mxu1 %v10017_v41  ;;  %v431_v33 = vld [vmem:[#allocation5 + $0x760] sm:$0xff] }
  0xb4   :  { %2585 = vmatpush1.bf16.msra.mxu0 %v7021_v44  ;;  %2714 = vmatpush1.bf16.msra.mxu1 %v7023_v45  ;;  %v391_v44 = vld [vmem:[#allocation5 + $0x620] sm:$0xff]  ;;  %v388_v45 = vld [vmem:[#allocation5 + $0x608] sm:$0xff]  ;;  %9463 = vpow2.f32 %v6883_v48  ;;  %v7125_v49 = vcombine.low %v427_v32, %v431_v33 }
  0xb5   :  { %2586 = vmatprep.subr.bf16.mxu0 %v7030_v46  ;;  %2715 = vmatprep.subr.bf16.mxu1 %v7032_v47  ;;  %v392_v46 = vld [vmem:[#allocation5 + $0x628] sm:$0xff]  ;;  %v110_v47 = vunpack.c.h.bf16 %v10026_v36  ;;  %v7086_v51 = vcombine.high %v387_v43, %v391_v44  ;;  %v7085_v60 = vcombine.low %v387_v43, %v391_v44  ;;  %9465 = vpow2.f32 %v6889_v54 }
  0xb6   :  { %2616 = vmatprep.mubr.bf16.mxu0 %v10021_v6  ;;  %2745 = vmatprep.mubr.bf16.mxu1 %v10021_v6  ;;  %v7087_v62 = vcombine.low %v388_v45, %v392_v46  ;;  %v7126_v43 = vcombine.high %v427_v32, %v431_v33  ;;  %v440_v48 = vld [vmem:[#allocation5 + $0x7a8] sm:$0xff] }
  0xb7   :  { %v6886_v59 = vmul.f32 -1.442695, %v110_v47  ;;  %v439_v47 = vld [vmem:[#allocation5 + $0x7a0] sm:$0xff]  ;;  %v476_v32 = vld [vmem:[#allocation5 + $0x8c8] sm:$0xff] }
  0xb8   :  { %2587 = vmatpush1.bf16.msra.mxu0 %v7029_v52  ;;  %2716 = vmatpush1.bf16.msra.mxu1 %v7031_v55  ;;  %v7088_v52 = vcombine.high %v388_v45, %v392_v46  ;;  %v395_v55 = vld [vmem:[#allocation5 + $0x640] sm:$0xff]  ;;  %v480_v33 = vld [vmem:[#allocation5 + $0x8e8] sm:$0xff] }
  0xb9   :  { %2588 = vmatprep.subr.bf16.mxu0 %v7038_v56  ;;  %2717 = vmatprep.subr.bf16.mxu1 %v7040_v57  ;;  %v399_v56 = vld [vmem:[#allocation5 + $0x660] sm:$0xff]  ;;  %v396_v57 = vld [vmem:[#allocation5 + $0x648] sm:$0xff]  ;;  %9467 = vpow2.f32 %v6886_v59 }
  0xba   :  { %v7096_v0 = vcombine.high %v396_v57, %v400_v58  ;;  %v7093_v5 = vcombine.low %v395_v55, %v399_v56  ;;  %9469 = vpow2.f32 %v6892_v61  ;;  %v7095_v7 = vcombine.low %v396_v57, %v400_v58  ;;  %v435_v46 = vld [vmem:[#allocation5 + $0x780] sm:$0xff]  ;;  %v448_v57 = vld [vmem:[#allocation5 + $0x7e8] sm:$0xff] }
  0xbb   :  { %v7133_v58 = vcombine.low %v435_v46, %v439_v47 }
  0xbc   :  { %2589 = vmatpush1.bf16.msra.mxu0 %v7037_v63  ;;  %2718 = vmatpush1.bf16.msra.mxu1 %v7039_v1  ;;  %v7094_v63 = vcombine.high %v395_v55, %v399_v56  ;;  %v403_v1 = vld [vmem:[#allocation5 + $0x680] sm:$0xff]  ;;  %v444_v56 = vld [vmem:[#allocation5 + $0x7c8] sm:$0xff] }
  0xbd   :  { %2590 = vmatprep.subr.bf16.mxu0 %v7046_v2  ;;  %2719 = vmatprep.subr.bf16.mxu1 %v7048_v3  ;;  %v407_v2 = vld [vmem:[#allocation5 + $0x6a0] sm:$0xff]  ;;  %v404_v3 = vld [vmem:[#allocation5 + $0x688] sm:$0xff]  ;;  %v7144_v61 = vcombine.high %v444_v56, %v448_v57 }
  0xbe   :  { %v7102_v8 = vcombine.high %v403_v1, %v407_v2  ;;  %v7101_v15 = vcombine.low %v403_v1, %v407_v2  ;;  %v7103_v16 = vcombine.low %v404_v3, %v408_v4  ;;  %v447_v55 = vld [vmem:[#allocation5 + $0x7e0] sm:$0xff]  ;;  %v452_v1 = vld [vmem:[#allocation5 + $0x808] sm:$0xff] }
  0xbf   :  { %v456_v2 = vld [vmem:[#allocation5 + $0x828] sm:$0xff] }
  0xc0   :  { %2591 = vmatpush1.bf16.msra.mxu0 %v7045_v9  ;;  %2720 = vmatpush1.bf16.msra.mxu1 %v7047_v10  ;;  %v7104_v9 = vcombine.high %v404_v3, %v408_v4  ;;  %v411_v10 = vld [vmem:[#allocation5 + $0x6c0] sm:$0xff] }
  0xc1   :  { %2592 = vmatprep.subr.bf16.mxu0 %v7054_v11  ;;  %2721 = vmatprep.subr.bf16.mxu1 %v7056_v13  ;;  %v415_v11 = vld [vmem:[#allocation5 + $0x6e0] sm:$0xff]  ;;  %v412_v13 = vld [vmem:[#allocation5 + $0x6c8] sm:$0xff] }
  0xc2   :  { %v7110_v17 = vcombine.high %v411_v10, %v415_v11  ;;  %v7109_v25 = vcombine.low %v411_v10, %v415_v11  ;;  %v459_v10 = vld [vmem:[#allocation5 + $0x840] sm:$0xff] }
  0xc3   :  { %v463_v11 = vld [vmem:[#allocation5 + $0x860] sm:$0xff] }
  0xc4   :  { %2593 = vmatpush1.bf16.msra.mxu0 %v7053_v18  ;;  %2722 = vmatpush1.bf16.msra.mxu1 %v7055_v19  ;;  %v9464_v18 = vpop.eup %9463  ;;  %v7112_v19 = vcombine.high %v412_v13, %v416_v14 }
  0xc5   :  { %2594 = vmatprep.subr.bf16.mxu0 %v7062_v20  ;;  %2723 = vmatprep.subr.bf16.mxu1 %v7064_v21  ;;  %v419_v20 = vld [vmem:[#allocation5 + $0x700] sm:$0xff]  ;;  %v9466_v22 = vpop.eup %9465 }
  0xc6   :  { %v423_v21 = vld [vmem:[#allocation5 + $0x720] sm:$0xff] }
  0xc8   :  { %2595 = vmatpush1.bf16.msra.mxu0 %v7061_v26  ;;  %2724 = vmatpush1.bf16.msra.mxu1 %v7063_v27  ;;  %v9468_v26 = vpop.eup %9467  ;;  %v7111_v27 = vcombine.low %v412_v13, %v416_v14 }
  0xc9   :  { %2596 = vmatprep.subr.bf16.mxu0 %v7070_v28  ;;  %2725 = vmatprep.subr.bf16.mxu1 %v7072_v29  ;;  %v7118_v28 = vcombine.high %v419_v20, %v423_v21  ;;  %v155_v29 = vadd.f32 1.0, %v9464_v18  ;;  %v9470_v30 = vpop.eup %9469  ;;  %v158_v39 = vadd.f32 1.0, %v9468_v26  ;;  %v7151_v18 = vcombine.low %v452_v1, %v456_v2 }
  0xca   :  { %v164_v44 = vadd.f32 1.0, %v9470_v30  ;;  %v7157_v26 = vcombine.low %v459_v10, %v463_v11  ;;  %v475_v30 = vld [vmem:[#allocation5 + $0x8c0] sm:$0xff] }
  0xcb   :  { %9471 = vrcp.f32 %v155_v29 }
  0xcc   :  { %2597 = vmatpush1.bf16.msra.mxu0 %v7069_v34  ;;  %2726 = vmatpush1.bf16.msra.mxu1 %v7071_v37  ;;  %v161_v34 = vadd.f32 1.0, %v9466_v22  ;;  %v432_v37 = vld [vmem:[#allocation5 + $0x768] sm:$0xff]  ;;  %v471_v22 = vld [vmem:[#allocation5 + $0x8a0] sm:$0xff] }
  0xcd   :  { %2598 = vmatprep.subr.bf16.mxu0 %v7078_v38  ;;  %2727 = vmatprep.subr.bf16.mxu1 %v7080_v42  ;;  %v7117_v38 = vcombine.low %v419_v20, %v423_v21  ;;  %v7119_v42 = vcombine.low %v420_v23, %v424_v24  ;;  %v7128_v45 = vcombine.high %v428_v35, %v432_v37  ;;  %v467_v21 = vld [vmem:[#allocation5 + $0x880] sm:$0xff]  ;;  %v468_v24 = vld [vmem:[#allocation5 + $0x888] sm:$0xff] }
  0xce   :  { %9473 = vrcp.f32 %v161_v34  ;;  %v7165_v34 = vcombine.low %v467_v21, %v471_v22 }
  0xcf   :  { %9475 = vrcp.f32 %v158_v39  ;;  %v483_v39 = vld [vmem:[#allocation5 + $0x900] sm:$0xff] }
  0xd0   :  { %2599 = vmatpush1.bf16.msra.mxu0 %v7077_v53  ;;  %2728 = vmatpush1.bf16.msra.mxu1 %v7079_v50  ;;  %v436_v53 = vld [vmem:[#allocation5 + $0x788] sm:$0xff]  ;;  %v7127_v50 = vcombine.low %v428_v35, %v432_v37  ;;  %9477 = vrcp.f32 %v164_v44 }
  0xd1   :  { %2600 = vmatprep.subr.bf16.mxu0 %v7086_v51  ;;  %2729 = vmatprep.subr.bf16.mxu1 %v7088_v52  ;;  %v7134_v51 = vcombine.high %v435_v46, %v439_v47  ;;  %v7136_v54 = vcombine.high %v436_v53, %v440_v48  ;;  %v443_v52 = vld [vmem:[#allocation5 + $0x7c0] sm:$0xff]  ;;  %v7135_v59 = vcombine.low %v436_v53, %v440_v48  ;;  %v488_v44 = vld [vmem:[#allocation5 + $0x928] sm:$0xff] }
  0xd2   :  { %v7141_v4 = vcombine.low %v443_v52, %v447_v55  ;;  %v7175_v46 = vcombine.low %v476_v32, %v480_v33  ;;  %v491_v48 = vld [vmem:[#allocation5 + $0x940] sm:$0xff] }
  0xd4   :  { %2601 = vmatpush1.bf16.msra.mxu0 %v7085_v60  ;;  %2730 = vmatpush1.bf16.msra.mxu1 %v7087_v62  ;;  %v7142_v60 = vcombine.high %v443_v52, %v447_v55  ;;  %v451_v62 = vld [vmem:[#allocation5 + $0x800] sm:$0xff] }
  0xd5   :  { %2602 = vmatprep.subr.bf16.mxu0 %v7094_v63  ;;  %2731 = vmatprep.subr.bf16.mxu1 %v7096_v0  ;;  %v455_v63 = vld [vmem:[#allocation5 + $0x820] sm:$0xff]  ;;  %v9472_v0 = vpop.eup %9471 }
  0xd8   :  { %2603 = vmatpush1.bf16.msra.mxu0 %v7093_v5  ;;  %2732 = vmatpush1.bf16.msra.mxu1 %v7095_v7  ;;  %v9474_v3 = vpop.eup %9473  ;;  %v7143_v5 = vcombine.low %v444_v56, %v448_v57  ;;  %v7150_v7 = vcombine.high %v451_v62, %v455_v63  ;;  %v499_v57 = vld [vmem:[#allocation5 + $0x980] sm:$0xff] }
  0xd9   :  { %2604 = vmatprep.subr.bf16.mxu0 %v7102_v8  ;;  %2733 = vmatprep.subr.bf16.mxu1 %v7104_v9  ;;  %v9476_v8 = vpop.eup %9475  ;;  %v7152_v9 = vcombine.high %v452_v1, %v456_v2  ;;  %v10033_v14 = vpack.c.bf16 %v9474_v3, %v9472_v0  ;;  %v507_v1 = vld [vmem:[#allocation5 + $0x9c0] sm:$0xff]  ;;  %v508_v3 = vld [vmem:[#allocation5 + $0x9c8] sm:$0xff] }
  0xda   :  { %v9478_v13 = vpop.eup %9477  ;;  %v511_v2 = vld [vmem:[#allocation5 + $0x9e0] sm:$0xff] }
  0xdb   :  { %v10035_v23 = vpack.c.bf16 %v9478_v13, %v9476_v8  ;;  %v515_v13 = vld [vmem:[#allocation5 + $0xa00] sm:$0xff] }
  0xdc   :  { %2605 = vmatpush1.bf16.msra.mxu0 %v7101_v15  ;;  %2734 = vmatpush1.bf16.msra.mxu1 %v7103_v16  ;;  %v460_v15 = vld [vmem:[#allocation5 + $0x848] sm:$0xff] }
  0xdd   :  { %2606 = vmatprep.subr.bf16.mxu0 %v7110_v17  ;;  %2735 = vmatprep.subr.bf16.mxu1 %v7112_v19  ;;  %v464_v16 = vld [vmem:[#allocation5 + $0x868] sm:$0xff]  ;;  %v7149_v17 = vcombine.low %v451_v62, %v455_v63  ;;  %v7158_v19 = vcombine.high %v459_v10, %v463_v11  ;;  %v115_v10 = vunpack.c.l.bf16 %v10029_v40 }
  0xde   :  { %v7160_v20 = vcombine.high %v460_v15, %v464_v16  ;;  %v528_v40 = vld [vmem:[#allocation5 + $0xa68] sm:$0xff] }
  0xe0   :  { %2607 = vmatpush1.bf16.msra.mxu0 %v7109_v25  ;;  %2736 = vmatpush1.bf16.msra.mxu1 %v7111_v27  ;;  %v472_v25 = vld [vmem:[#allocation5 + $0x8a8] sm:$0xff]  ;;  %v7159_v27 = vcombine.low %v460_v15, %v464_v16  ;;  %v519_v15 = vld [vmem:[#allocation5 + $0xa20] sm:$0xff] }
  0xe1   :  { %2608 = vmatprep.subr.bf16.mxu0 %v7118_v28  ;;  %2737 = vmatprep.subr.bf16.mxu1 %v7120_v31  ;;  %v7166_v28 = vcombine.high %v467_v21, %v471_v22  ;;  %v7168_v29 = vcombine.high %v468_v24, %v472_v25  ;;  %v479_v31 = vld [vmem:[#allocation5 + $0x8e0] sm:$0xff]  ;;  %v7167_v35 = vcombine.low %v468_v24, %v472_v25  ;;  %v516_v16 = vld [vmem:[#allocation5 + $0xa08] sm:$0xff] }
  0xe2   :  { %v7174_v37 = vcombine.high %v475_v30, %v479_v31  ;;  %v7214_v21 = vcombine.high %v515_v13, %v519_v15  ;;  %v523_v24 = vld [vmem:[#allocation5 + $0xa40] sm:$0xff] }
  0xe3   :  { %v527_v25 = vld [vmem:[#allocation5 + $0xa60] sm:$0xff] }
  0xe4   :  { %2609 = vmatpush1.bf16.msra.mxu0 %v7117_v38  ;;  %2738 = vmatpush1.bf16.msra.mxu1 %v7119_v42  ;;  %v7176_v38 = vcombine.high %v476_v32, %v480_v33  ;;  %v487_v42 = vld [vmem:[#allocation5 + $0x920] sm:$0xff]  ;;  %v532_v33 = vld [vmem:[#allocation5 + $0xa88] sm:$0xff] }
  0xe5   :  { %2610 = vmatprep.subr.bf16.mxu0 %v7126_v43  ;;  %2739 = vmatprep.subr.bf16.mxu1 %v7128_v45  ;;  %v484_v43 = vld [vmem:[#allocation5 + $0x908] sm:$0xff]  ;;  %v7173_v45 = vcombine.low %v475_v30, %v479_v31  ;;  %v7182_v47 = vcombine.high %v483_v39, %v487_v42  ;;  %v531_v31 = vld [vmem:[#allocation5 + $0xa80] sm:$0xff] }
  0xe6   :  { %v7184_v53 = vcombine.high %v484_v43, %v488_v44  ;;  %v7183_v52 = vcombine.low %v484_v43, %v488_v44  ;;  %v535_v32 = vld [vmem:[#allocation5 + $0xaa0] sm:$0xff]  ;;  %v540_v44 = vld [vmem:[#allocation5 + $0xac8] sm:$0xff] }
  0xe7   :  { %v543_v43 = vld [vmem:[#allocation5 + $0xae0] sm:$0xff] }
  0xe8   :  { %2611 = vmatpush1.bf16.msra.mxu0 %v7125_v49  ;;  %2740 = vmatpush1.bf16.msra.mxu1 %v7127_v50  ;;  %v495_v49 = vld [vmem:[#allocation5 + $0x960] sm:$0xff]  ;;  %v492_v50 = vld [vmem:[#allocation5 + $0x948] sm:$0xff] }
  0xe9   :  { %2612 = vmatprep.subr.bf16.mxu0 %v7134_v51  ;;  %2741 = vmatprep.subr.bf16.mxu1 %v7136_v54  ;;  %v496_v51 = vld [vmem:[#allocation5 + $0x968] sm:$0xff]  ;;  %v7181_v54 = vcombine.low %v483_v39, %v487_v42  ;;  %v7190_v55 = vcombine.high %v491_v48, %v495_v49  ;;  %v539_v42 = vld [vmem:[#allocation5 + $0xac0] sm:$0xff] }
  0xea   :  { %v7192_v56 = vcombine.high %v492_v50, %v496_v51  ;;  %v7191_v62 = vcombine.low %v492_v50, %v496_v51  ;;  %v547_v50 = vld [vmem:[#allocation5 + $0xb00] sm:$0xff] }
  0xeb   :  { %v551_v51 = vld [vmem:[#allocation5 + $0xb20] sm:$0xff] }
  0xec   :  { %2613 = vmatpush1.bf16.msra.mxu0 %v7133_v58  ;;  %2742 = vmatpush1.bf16.msra.mxu1 %v7135_v59  ;;  %v503_v58 = vld [vmem:[#allocation5 + $0x9a0] sm:$0xff]  ;;  %v500_v59 = vld [vmem:[#allocation5 + $0x988] sm:$0xff] }
  0xed   :  { %2614 = vmatprep.subr.bf16.mxu0 %v7142_v60  ;;  %2743 = vmatprep.subr.bf16.mxu1 %v7144_v61  ;;  %v504_v60 = vld [vmem:[#allocation5 + $0x9a8] sm:$0xff]  ;;  %v7189_v61 = vcombine.low %v491_v48, %v495_v49  ;;  %v7198_v63 = vcombine.high %v499_v57, %v503_v58 }
  0xee   :  { %v7200_v0 = vcombine.high %v500_v59, %v504_v60  ;;  %v7199_v8 = vcombine.low %v500_v59, %v504_v60 }
  0xf0   :  { %2615 = vmatpush1.bf16.msra.mxu0 %v7141_v4  ;;  %2744 = vmatpush1.bf16.msra.mxu1 %v7143_v5  ;;  %v512_v4 = vld [vmem:[#allocation5 + $0x9e8] sm:$0xff]  ;;  %v7197_v5 = vcombine.low %v499_v57, %v503_v58  ;;  %v7246_v58 = vcombine.high %v547_v50, %v551_v51 }
  0xf1   :  { %2627 = vmatprep.subr.bf16.mxu0 %v7150_v7  ;;  %2756 = vmatprep.subr.bf16.mxu1 %v7152_v9  ;;  %v109_v7 = vunpack.c.l.bf16 %v10026_v36  ;;  %v7206_v9 = vcombine.high %v507_v1, %v511_v2  ;;  %v7208_v11 = vcombine.high %v508_v3, %v512_v4  ;;  %v6891_v36 = vmul.f32 -1.442695, %v115_v10  ;;  %v568_v10 = vld [vmem:[#allocation5 + $0xba8] sm:$0xff] }
  0xf3   :  { %2617 = vmatmul.mubr.bf16.vlgmr.msra.gmra.mrb[0].mxu0 %v10033_v14  ;;  %2746 = vmatmul.mubr.bf16.vlgmr.msra.gmra.mrb[0].mxu1 %v10033_v14 }
  0xf4   :  { %2628 = vmatpush1.bf16.msra.mxu0 %v7149_v17  ;;  %2757 = vmatpush1.bf16.msra.mxu1 %v7151_v18  ;;  %v520_v17 = vld [vmem:[#allocation5 + $0xa28] sm:$0xff]  ;;  %v7205_v18 = vcombine.low %v507_v1, %v511_v2  ;;  %v7245_v2 = vcombine.low %v547_v50, %v551_v51 }
  0xf5   :  { %2629 = vmatprep.subr.bf16.mxu0 %v7158_v19  ;;  %2758 = vmatprep.subr.bf16.mxu1 %v7160_v20  ;;  %v6885_v19 = vmul.f32 -1.442695, %v109_v7  ;;  %v7207_v20 = vcombine.low %v508_v3, %v512_v4  ;;  %v7216_v22 = vcombine.high %v516_v16, %v520_v17  ;;  %v560_v1 = vld [vmem:[#allocation5 + $0xb68] sm:$0xff]  ;;  %v563_v7 = vld [vmem:[#allocation5 + $0xb80] sm:$0xff] }
  0xf6   :  { %2659 = vmatprep.mubr.bf16.mxu0 %v10035_v23  ;;  %2788 = vmatprep.mubr.bf16.mxu1 %v10035_v23 }
  0xf7   :  { %9479 = vpow2.f32 %v6885_v19  ;;  %v572_v19 = vld [vmem:[#allocation5 + $0xbc8] sm:$0xff] }
  0xf8   :  { %2630 = vmatpush1.bf16.msra.mxu0 %v7157_v26  ;;  %2759 = vmatpush1.bf16.msra.mxu1 %v7159_v27  ;;  %v524_v26 = vld [vmem:[#allocation5 + $0xa48] sm:$0xff]  ;;  %v7213_v27 = vcombine.low %v515_v13, %v519_v15  ;;  %9481 = vpow2.f32 %v6891_v36 }
  0xf9   :  { %2631 = vmatprep.subr.bf16.mxu0 %v7166_v28  ;;  %2760 = vmatprep.subr.bf16.mxu1 %v7168_v29  ;;  %v7215_v28 = vcombine.low %v516_v16, %v520_v17  ;;  %v7222_v29 = vcombine.high %v523_v24, %v527_v25  ;;  %v7224_v30 = vcombine.high %v524_v26, %v528_v40  ;;  %v571_v17 = vld [vmem:[#allocation5 + $0xbc0] sm:$0xff] }
  0xfc   :  { %2632 = vmatpush1.bf16.msra.mxu0 %v7165_v34  ;;  %2761 = vmatpush1.bf16.msra.mxu1 %v7167_v35  ;;  %v536_v34 = vld [vmem:[#allocation5 + $0xaa8] sm:$0xff]  ;;  %v7221_v35 = vcombine.low %v523_v24, %v527_v25  ;;  %v197_v25 = vld [vmem:[#allocation5 + $0x10] sm:$0xff] }
  0xfd   :  { %2633 = vmatprep.subr.bf16.mxu0 %v7174_v37  ;;  %2762 = vmatprep.subr.bf16.mxu1 %v7176_v38  ;;  %v7223_v37 = vcombine.low %v524_v26, %v528_v40  ;;  %v7230_v38 = vcombine.high %v531_v31, %v535_v32  ;;  %v7232_v39 = vcombine.high %v532_v33, %v536_v34  ;;  %v201_v26 = vld [vmem:[#allocation5 + $0x30] sm:$0xff] }
 0x100   :  { %2634 = vmatpush1.bf16.msra.mxu0 %v7173_v45  ;;  %2763 = vmatpush1.bf16.msra.mxu1 %v7175_v46  ;;  %v544_v45 = vld [vmem:[#allocation5 + $0xae8] sm:$0xff]  ;;  %v7229_v46 = vcombine.low %v531_v31, %v535_v32  ;;  %v6898_v32 = vcombine.high %v197_v25, %v201_v26 }
 0x101   :  { %2635 = vmatprep.subr.bf16.mxu0 %v7182_v47  ;;  %2764 = vmatprep.subr.bf16.mxu1 %v7184_v53  ;;  %v7231_v47 = vcombine.low %v532_v33, %v536_v34  ;;  %v7238_v53 = vcombine.high %v539_v42, %v543_v43  ;;  %v9480_v48 = vpop.eup %9479  ;;  %v7240_v49 = vcombine.high %v540_v44, %v544_v45  ;;  %v205_v34 = vld [vmem:[#allocation5 + $0x50] sm:$0xff] }
 0x102   :  { %v7239_v57 = vcombine.low %v540_v44, %v544_v45  ;;  %v157_v59 = vadd.f32 1.0, %v9480_v48  ;;  %v218_v48 = vld [vmem:[#allocation5 + $0xb8] sm:$0xff] }
 0x104   :  { %2636 = vmatpush1.bf16.msra.mxu0 %v7181_v54  ;;  %2765 = vmatpush1.bf16.msra.mxu1 %v7183_v52  ;;  %v9482_v54 = vpop.eup %9481  ;;  %v548_v52 = vld [vmem:[#allocation5 + $0xb08] sm:$0xff]  ;;  %9483 = vrcp.f32 %v157_v59 }
 0x105   :  { %2637 = vmatprep.subr.bf16.mxu0 %v7190_v55  ;;  %2766 = vmatprep.subr.bf16.mxu1 %v7192_v56  ;;  %v552_v55 = vld [vmem:[#allocation5 + $0xb28] sm:$0xff]  ;;  %v7237_v56 = vcombine.low %v539_v42, %v543_v43  ;;  %v6897_v42 = vcombine.low %v197_v25, %v201_v26  ;;  %v257_v25 = vld [vmem:[#allocation5 + $0x1f0] sm:$0xff]  ;;  %v254_v26 = vld [vmem:[#allocation5 + $0x1d8] sm:$0xff] }
 0x106   :  { %v7248_v60 = vcombine.high %v548_v52, %v552_v55  ;;  %v7247_v3 = vcombine.low %v548_v52, %v552_v55  ;;  %v221_v52 = vld [vmem:[#allocation5 + $0xd0] sm:$0xff] }
 0x107   :  { %v225_v55 = vld [vmem:[#allocation5 + $0xf0] sm:$0xff] }
 0x108   :  { %2638 = vmatpush1.bf16.msra.mxu0 %v7189_v61  ;;  %2767 = vmatpush1.bf16.msra.mxu1 %v7191_v62  ;;  %v555_v61 = vld [vmem:[#allocation5 + $0xb40] sm:$0xff] }
 0x109   :  { %2639 = vmatprep.subr.bf16.mxu0 %v7198_v63  ;;  %2768 = vmatprep.subr.bf16.mxu1 %v7200_v0  ;;  %v559_v62 = vld [vmem:[#allocation5 + $0xb60] sm:$0xff]  ;;  %v163_v63 = vadd.f32 1.0, %v9482_v54  ;;  %v556_v0 = vld [vmem:[#allocation5 + $0xb48] sm:$0xff] }
 0x10a   :  { %v7254_v4 = vcombine.high %v555_v61, %v559_v62  ;;  %v7255_v13 = vcombine.low %v556_v0, %v560_v1 }
 0x10b   :  { %9485 = vrcp.f32 %v163_v63  ;;  %v233_v63 = vld [vmem:[#allocation5 + $0x130] sm:$0xff] }
 0x10c   :  { %2640 = vmatpush1.bf16.msra.mxu0 %v7197_v5  ;;  %2769 = vmatpush1.bf16.msra.mxu1 %v7199_v8  ;;  %v7256_v5 = vcombine.high %v556_v0, %v560_v1  ;;  %v567_v8 = vld [vmem:[#allocation5 + $0xba0] sm:$0xff]  ;;  %v230_v0 = vld [vmem:[#allocation5 + $0x118] sm:$0xff] }
 0x10d   :  { %2641 = vmatprep.subr.bf16.mxu0 %v7206_v9  ;;  %2770 = vmatprep.subr.bf16.mxu1 %v7208_v11  ;;  %v564_v9 = vld [vmem:[#allocation5 + $0xb88] sm:$0xff]  ;;  %v7253_v11 = vcombine.low %v555_v61, %v559_v62  ;;  %v7262_v15 = vcombine.high %v563_v7, %v567_v8  ;;  %v229_v62 = vld [vmem:[#allocation5 + $0x110] sm:$0xff]  ;;  %v234_v1 = vld [vmem:[#allocation5 + $0x138] sm:$0xff] }
 0x10e   :  { %v7264_v16 = vcombine.high %v564_v9, %v568_v10  ;;  %v7263_v36 = vcombine.low %v564_v9, %v568_v10  ;;  %v9484_v40 = vpop.eup %9483  ;;  %v242_v9 = vld [vmem:[#allocation5 + $0x178] sm:$0xff]  ;;  %v6929_v10 = vcombine.low %v229_v62, %v233_v63 }
 0x110   :  { %2642 = vmatpush1.bf16.msra.mxu0 %v7205_v18  ;;  %2771 = vmatpush1.bf16.msra.mxu1 %v7207_v20  ;;  %v575_v18 = vld [vmem:[#allocation5 + $0xbe0] sm:$0xff]  ;;  %v576_v20 = vld [vmem:[#allocation5 + $0xbe8] sm:$0xff] }
 0x111   :  { %2643 = vmatprep.subr.bf16.mxu0 %v7214_v21  ;;  %2772 = vmatprep.subr.bf16.mxu1 %v7216_v22  ;;  %v7261_v21 = vcombine.low %v563_v7, %v567_v8  ;;  %v7270_v22 = vcombine.high %v571_v17, %v575_v18  ;;  %v7272_v24 = vcombine.high %v572_v19, %v576_v20  ;;  %v241_v7 = vld [vmem:[#allocation5 + $0x170] sm:$0xff]  ;;  %v238_v8 = vld [vmem:[#allocation5 + $0x158] sm:$0xff] }
 0x112   :  { %v7271_v31 = vcombine.low %v572_v19, %v576_v20  ;;  %v250_v19 = vld [vmem:[#allocation5 + $0x1b8] sm:$0xff] }
 0x114   :  { %2644 = vmatpush1.bf16.msra.mxu0 %v7213_v27  ;;  %2773 = vmatpush1.bf16.msra.mxu1 %v7215_v28  ;;  %v198_v27 = vld [vmem:[#allocation5 + $0x18] sm:$0xff] }
 0x115   :  { %2645 = vmatprep.subr.bf16.mxu0 %v7222_v29  ;;  %2774 = vmatprep.subr.bf16.mxu1 %v7224_v30  ;;  %v202_v28 = vld [vmem:[#allocation5 + $0x38] sm:$0xff]  ;;  %v9486_v29 = vpop.eup %9485  ;;  %v7269_v30 = vcombine.low %v571_v17, %v575_v18  ;;  %v249_v17 = vld [vmem:[#allocation5 + $0x1b0] sm:$0xff] }
 0x116   :  { %v6900_v33 = vcombine.high %v198_v27, %v202_v28  ;;  %v6899_v43 = vcombine.low %v198_v27, %v202_v28  ;;  %v246_v18 = vld [vmem:[#allocation5 + $0x198] sm:$0xff] }
 0x117   :  { %v6947_v28 = vcombine.low %v246_v18, %v250_v19 }
 0x118   :  { %2646 = vmatpush1.bf16.msra.mxu0 %v7221_v35  ;;  %2775 = vmatpush1.bf16.msra.mxu1 %v7223_v37  ;;  %v209_v35 = vld [vmem:[#allocation5 + $0x70] sm:$0xff]  ;;  %v10043_v37 = vpack.c.bf16 %v9486_v29, %v9484_v40  ;;  %v258_v40 = vld [vmem:[#allocation5 + $0x1f8] sm:$0xff] }
 0x119   :  { %2647 = vmatprep.subr.bf16.mxu0 %v7230_v38  ;;  %2776 = vmatprep.subr.bf16.mxu1 %v7232_v39  ;;  %v206_v38 = vld [vmem:[#allocation5 + $0x58] sm:$0xff]  ;;  %v6906_v44 = vcombine.high %v205_v34, %v209_v35 }
 0x11a   :  { %v210_v39 = vld [vmem:[#allocation5 + $0x78] sm:$0xff] }
 0x11b   :  { %v6908_v45 = vcombine.high %v206_v38, %v210_v39  ;;  %v6907_v50 = vcombine.low %v206_v38, %v210_v39  ;;  %v6955_v38 = vcombine.low %v254_v26, %v258_v40 }
 0x11c   :  { %2648 = vmatpush1.bf16.msra.mxu0 %v7229_v46  ;;  %2777 = vmatpush1.bf16.msra.mxu1 %v7231_v47  ;;  %v213_v46 = vld [vmem:[#allocation5 + $0x90] sm:$0xff] }
 0x11d   :  { %2649 = vmatprep.subr.bf16.mxu0 %v7238_v53  ;;  %2778 = vmatprep.subr.bf16.mxu1 %v7240_v49  ;;  %v217_v47 = vld [vmem:[#allocation5 + $0xb0] sm:$0xff]  ;;  %v214_v53 = vld [vmem:[#allocation5 + $0x98] sm:$0xff]  ;;  %v6905_v49 = vcombine.low %v205_v34, %v209_v35 }
 0x11e   :  { %v6914_v51 = vcombine.high %v213_v46, %v217_v47  ;;  %v6916_v54 = vcombine.high %v214_v53, %v218_v48  ;;  %v6915_v59 = vcombine.low %v214_v53, %v218_v48  ;;  %v266_v34 = vld [vmem:[#allocation5 + $0x238] sm:$0xff] }
 0x120   :  { %2650 = vmatpush1.bf16.msra.mxu0 %v7237_v56  ;;  %2779 = vmatpush1.bf16.msra.mxu1 %v7239_v57  ;;  %v222_v56 = vld [vmem:[#allocation5 + $0xd8] sm:$0xff] }
 0x121   :  { %2651 = vmatprep.subr.bf16.mxu0 %v7246_v58  ;;  %2780 = vmatprep.subr.bf16.mxu1 %v7248_v60  ;;  %v226_v57 = vld [vmem:[#allocation5 + $0xf8] sm:$0xff]  ;;  %v6913_v58 = vcombine.low %v213_v46, %v217_v47  ;;  %v6922_v60 = vcombine.high %v221_v52, %v225_v55 }
 0x122   :  { %v6924_v61 = vcombine.high %v222_v56, %v226_v57  ;;  %v274_v46 = vld [vmem:[#allocation5 + $0x278] sm:$0xff] }
 0x124   :  { %2652 = vmatpush1.bf16.msra.mxu0 %v7245_v2  ;;  %2781 = vmatpush1.bf16.msra.mxu1 %v7247_v3  ;;  %v6921_v2 = vcombine.low %v221_v52, %v225_v55  ;;  %v6923_v3 = vcombine.low %v222_v56, %v226_v57  ;;  %v282_v52 = vld [vmem:[#allocation5 + $0x2b8] sm:$0xff] }
 0x125   :  { %2653 = vmatprep.subr.bf16.mxu0 %v7254_v4  ;;  %2782 = vmatprep.subr.bf16.mxu1 %v7256_v5  ;;  %v6930_v4 = vcombine.high %v229_v62, %v233_v63  ;;  %v237_v5 = vld [vmem:[#allocation5 + $0x150] sm:$0xff]  ;;  %v290_v62 = vld [vmem:[#allocation5 + $0x2f8] sm:$0xff] }
 0x126   :  { %v6937_v20 = vcombine.low %v237_v5, %v241_v7 }
 0x128   :  { %2654 = vmatpush1.bf16.msra.mxu0 %v7253_v11  ;;  %2783 = vmatpush1.bf16.msra.mxu1 %v7255_v13  ;;  %v6931_v11 = vcombine.low %v230_v0, %v234_v1  ;;  %v6938_v13 = vcombine.high %v237_v5, %v241_v7  ;;  %v298_v5 = vld [vmem:[#allocation5 + $0x338] sm:$0xff] }
 0x129   :  { %2655 = vmatprep.subr.bf16.mxu0 %v7262_v15  ;;  %2784 = vmatprep.subr.bf16.mxu1 %v7264_v16  ;;  %v6940_v15 = vcombine.high %v238_v8, %v242_v9  ;;  %v245_v16 = vld [vmem:[#allocation5 + $0x190] sm:$0xff] }
 0x12a   :  { %v6945_v27 = vcombine.low %v245_v16, %v249_v17 }
 0x12c   :  { %2656 = vmatpush1.bf16.msra.mxu0 %v7261_v21  ;;  %2785 = vmatpush1.bf16.msra.mxu1 %v7263_v36  ;;  %v6939_v21 = vcombine.low %v238_v8, %v242_v9  ;;  %v6946_v36 = vcombine.high %v245_v16, %v249_v17  ;;  %v306_v16 = vld [vmem:[#allocation5 + $0x378] sm:$0xff] }
 0x12d   :  { %2657 = vmatprep.subr.bf16.mxu0 %v7270_v22  ;;  %2786 = vmatprep.subr.bf16.mxu1 %v7272_v24  ;;  %v6948_v22 = vcombine.high %v246_v18, %v250_v19  ;;  %v253_v24 = vld [vmem:[#allocation5 + $0x1d0] sm:$0xff] }
 0x12e   :  { %v6954_v29 = vcombine.high %v253_v24, %v257_v25  ;;  %v6953_v35 = vcombine.low %v253_v24, %v257_v25  ;;  %v314_v24 = vld [vmem:[#allocation5 + $0x3b8] sm:$0xff] }
 0x130   :  { %2658 = vmatpush1.bf16.msra.mxu0 %v7269_v30  ;;  %2787 = vmatpush1.bf16.msra.mxu1 %v7271_v31  ;;  %v6956_v30 = vcombine.high %v254_v26, %v258_v40  ;;  %v261_v31 = vld [vmem:[#allocation5 + $0x210] sm:$0xff] }
 0x131   :  { %2799 = vmatprep.subr.bf16.mxu0 %v6898_v32  ;;  %2928 = vmatprep.subr.bf16.mxu1 %v6900_v33  ;;  %v265_v32 = vld [vmem:[#allocation5 + $0x230] sm:$0xff]  ;;  %v262_v33 = vld [vmem:[#allocation5 + $0x218] sm:$0xff] }
 0x132   :  { %v6962_v39 = vcombine.high %v261_v31, %v265_v32  ;;  %v6961_v47 = vcombine.low %v261_v31, %v265_v32  ;;  %v6963_v53 = vcombine.low %v262_v33, %v266_v34  ;;  %v322_v31 = vld [vmem:[#allocation5 + $0x3f8] sm:$0xff] }
 0x133   :  { %2660 = vmatmul.mubr.bf16.vlgmr.msra.gmra.mrb[0].mxu0 %v10043_v37  ;;  %2789 = vmatmul.mubr.bf16.vlgmr.msra.gmra.mrb[0].mxu1 %v10043_v37 }
 0x134   :  { %2800 = vmatpush1.bf16.msra.mxu0 %v6897_v42  ;;  %2929 = vmatpush1.bf16.msra.mxu1 %v6899_v43  ;;  %v6964_v42 = vcombine.high %v262_v33, %v266_v34  ;;  %v269_v43 = vld [vmem:[#allocation5 + $0x250] sm:$0xff] }
 0x135   :  { %2801 = vmatprep.subr.bf16.mxu0 %v6906_v44  ;;  %2930 = vmatprep.subr.bf16.mxu1 %v6908_v45  ;;  %v273_v44 = vld [vmem:[#allocation5 + $0x270] sm:$0xff]  ;;  %v270_v45 = vld [vmem:[#allocation5 + $0x258] sm:$0xff] }
 0x136   :  { %2831 = vmatprep.mubr.bf16.mxu0 %v10013_v12  ;;  %2960 = vmatprep.mubr.bf16.mxu1 %v10013_v12  ;;  %v6932_v12 = vcombine.high %v230_v0, %v234_v1  ;;  %v6970_v48 = vcombine.high %v269_v43, %v273_v44  ;;  %v6969_v55 = vcombine.low %v269_v43, %v273_v44  ;;  %v330_v43 = vld [vmem:[#allocation5 + $0x438] sm:$0xff] }
 0x137   :  { %v6971_v56 = vcombine.low %v270_v45, %v274_v46 }
 0x138   :  { %2802 = vmatpush1.bf16.msra.mxu0 %v6905_v49  ;;  %2931 = vmatpush1.bf16.msra.mxu1 %v6907_v50  ;;  %v6972_v49 = vcombine.high %v270_v45, %v274_v46  ;;  %v277_v50 = vld [vmem:[#allocation5 + $0x290] sm:$0xff] }
 0x139   :  { %2803 = vmatprep.subr.bf16.mxu0 %v6914_v51  ;;  %2932 = vmatprep.subr.bf16.mxu1 %v6916_v54  ;;  %v281_v51 = vld [vmem:[#allocation5 + $0x2b0] sm:$0xff]  ;;  %v278_v54 = vld [vmem:[#allocation5 + $0x298] sm:$0xff] }
 0x13a   :  { %v6978_v57 = vcombine.high %v277_v50, %v281_v51  ;;  %v6977_v63 = vcombine.low %v277_v50, %v281_v51  ;;  %v6979_v0 = vcombine.low %v278_v54, %v282_v52  ;;  %v338_v50 = vld [vmem:[#allocation5 + $0x478] sm:$0xff] }
 0x13c   :  { %2804 = vmatpush1.bf16.msra.mxu0 %v6913_v58  ;;  %2933 = vmatpush1.bf16.msra.mxu1 %v6915_v59  ;;  %v6980_v58 = vcombine.high %v278_v54, %v282_v52  ;;  %v285_v59 = vld [vmem:[#allocation5 + $0x2d0] sm:$0xff] }
 0x13d   :  { %2805 = vmatprep.subr.bf16.mxu0 %v6922_v60  ;;  %2934 = vmatprep.subr.bf16.mxu1 %v6924_v61  ;;  %v289_v60 = vld [vmem:[#allocation5 + $0x2f0] sm:$0xff]  ;;  %v286_v61 = vld [vmem:[#allocation5 + $0x2d8] sm:$0xff] }
 0x13e   :  { %v6986_v1 = vcombine.high %v285_v59, %v289_v60  ;;  %v6985_v7 = vcombine.low %v285_v59, %v289_v60  ;;  %v6987_v8 = vcombine.low %v286_v61, %v290_v62  ;;  %v346_v59 = vld [vmem:[#allocation5 + $0x4b8] sm:$0xff] }
 0x140   :  { %2806 = vmatpush1.bf16.msra.mxu0 %v6921_v2  ;;  %2935 = vmatpush1.bf16.msra.mxu1 %v6923_v3  ;;  %v6988_v2 = vcombine.high %v286_v61, %v290_v62  ;;  %v293_v3 = vld [vmem:[#allocation5 + $0x310] sm:$0xff] }
 0x141   :  { %2807 = vmatprep.subr.bf16.mxu0 %v6930_v4  ;;  %2936 = vmatprep.subr.bf16.mxu1 %v6932_v12  ;;  %v297_v4 = vld [vmem:[#allocation5 + $0x330] sm:$0xff]  ;;  %v294_v12 = vld [vmem:[#allocation5 + $0x318] sm:$0xff] }
 0x142   :  { %v6994_v9 = vcombine.high %v293_v3, %v297_v4  ;;  %v6993_v17 = vcombine.low %v293_v3, %v297_v4  ;;  %v6995_v18 = vcombine.low %v294_v12, %v298_v5  ;;  %v354_v3 = vld [vmem:[#allocation5 + $0x4f8] sm:$0xff] }
 0x144   :  { %2808 = vmatpush1.bf16.msra.mxu0 %v6929_v10  ;;  %2937 = vmatpush1.bf16.msra.mxu1 %v6931_v11  ;;  %v6996_v10 = vcombine.high %v294_v12, %v298_v5  ;;  %v301_v11 = vld [vmem:[#allocation5 + $0x350] sm:$0xff] }
 0x145   :  { %2809 = vmatprep.subr.bf16.mxu0 %v6938_v13  ;;  %2938 = vmatprep.subr.bf16.mxu1 %v6940_v15  ;;  %v305_v13 = vld [vmem:[#allocation5 + $0x370] sm:$0xff]  ;;  %v302_v15 = vld [vmem:[#allocation5 + $0x358] sm:$0xff] }
 0x146   :  { %v7002_v19 = vcombine.high %v301_v11, %v305_v13  ;;  %v7001_v25 = vcombine.low %v301_v11, %v305_v13  ;;  %v7003_v26 = vcombine.low %v302_v15, %v306_v16 }
 0x148   :  { %2810 = vmatpush1.bf16.msra.mxu0 %v6937_v20  ;;  %2939 = vmatpush1.bf16.msra.mxu1 %v6939_v21  ;;  %v7004_v20 = vcombine.high %v302_v15, %v306_v16  ;;  %v309_v21 = vld [vmem:[#allocation5 + $0x390] sm:$0xff] }
 0x149   :  { %2811 = vmatprep.subr.bf16.mxu0 %v6946_v36  ;;  %2940 = vmatprep.subr.bf16.mxu1 %v6948_v22  ;;  %v313_v36 = vld [vmem:[#allocation5 + $0x3b0] sm:$0xff]  ;;  %v310_v22 = vld [vmem:[#allocation5 + $0x398] sm:$0xff] }
 0x14a   :  { %v7010_v40 = vcombine.high %v309_v21, %v313_v36  ;;  %v7009_v32 = vcombine.low %v309_v21, %v313_v36  ;;  %v7011_v33 = vcombine.low %v310_v22, %v314_v24  ;;  %v365_v16 = vld [vmem:[#allocation5 + $0x550] sm:$0xff] }
 0x14c   :  { %2812 = vmatpush1.bf16.msra.mxu0 %v6945_v27  ;;  %2941 = vmatpush1.bf16.msra.mxu1 %v6947_v28  ;;  %v7012_v27 = vcombine.high %v310_v22, %v314_v24  ;;  %v317_v28 = vld [vmem:[#allocation5 + $0x3d0] sm:$0xff] }
 0x14d   :  { %2813 = vmatprep.subr.bf16.mxu0 %v6954_v29  ;;  %2942 = vmatprep.subr.bf16.mxu1 %v6956_v30  ;;  %v321_v29 = vld [vmem:[#allocation5 + $0x3f0] sm:$0xff]  ;;  %v318_v30 = vld [vmem:[#allocation5 + $0x3d8] sm:$0xff] }
 0x14e   :  { %v7018_v34 = vcombine.high %v317_v28, %v321_v29  ;;  %v7017_v44 = vcombine.low %v317_v28, %v321_v29  ;;  %v7019_v45 = vcombine.low %v318_v30, %v322_v31  ;;  %v373_v24 = vld [vmem:[#allocation5 + $0x590] sm:$0xff] }
 0x150   :  { %2814 = vmatpush1.bf16.msra.mxu0 %v6953_v35  ;;  %2943 = vmatpush1.bf16.msra.mxu1 %v6955_v38  ;;  %v7020_v35 = vcombine.high %v318_v30, %v322_v31  ;;  %v325_v38 = vld [vmem:[#allocation5 + $0x410] sm:$0xff] }
 0x151   :  { %2815 = vmatprep.subr.bf16.mxu0 %v6962_v39  ;;  %2944 = vmatprep.subr.bf16.mxu1 %v6964_v42  ;;  %v329_v39 = vld [vmem:[#allocation5 + $0x430] sm:$0xff]  ;;  %v326_v42 = vld [vmem:[#allocation5 + $0x418] sm:$0xff] }
 0x152   :  { %v7026_v46 = vcombine.high %v325_v38, %v329_v39  ;;  %v7025_v51 = vcombine.low %v325_v38, %v329_v39  ;;  %v7027_v54 = vcombine.low %v326_v42, %v330_v43  ;;  %v381_v31 = vld [vmem:[#allocation5 + $0x5d0] sm:$0xff] }
 0x154   :  { %2816 = vmatpush1.bf16.msra.mxu0 %v6961_v47  ;;  %2945 = vmatpush1.bf16.msra.mxu1 %v6963_v53  ;;  %v7028_v47 = vcombine.high %v326_v42, %v330_v43  ;;  %v333_v53 = vld [vmem:[#allocation5 + $0x450] sm:$0xff] }
 0x155   :  { %2817 = vmatprep.subr.bf16.mxu0 %v6970_v48  ;;  %2946 = vmatprep.subr.bf16.mxu1 %v6972_v49  ;;  %v337_v48 = vld [vmem:[#allocation5 + $0x470] sm:$0xff]  ;;  %v334_v49 = vld [vmem:[#allocation5 + $0x458] sm:$0xff] }
 0x156   :  { %v7034_v52 = vcombine.high %v333_v53, %v337_v48  ;;  %v7033_v60 = vcombine.low %v333_v53, %v337_v48  ;;  %v7035_v61 = vcombine.low %v334_v49, %v338_v50  ;;  %v389_v43 = vld [vmem:[#allocation5 + $0x610] sm:$0xff] }
 0x158   :  { %2818 = vmatpush1.bf16.msra.mxu0 %v6969_v55  ;;  %2947 = vmatpush1.bf16.msra.mxu1 %v6971_v56  ;;  %v7036_v55 = vcombine.high %v334_v49, %v338_v50  ;;  %v341_v56 = vld [vmem:[#allocation5 + $0x490] sm:$0xff] }
 0x159   :  { %2819 = vmatprep.subr.bf16.mxu0 %v6978_v57  ;;  %2948 = vmatprep.subr.bf16.mxu1 %v6980_v58  ;;  %v345_v57 = vld [vmem:[#allocation5 + $0x4b0] sm:$0xff]  ;;  %v342_v58 = vld [vmem:[#allocation5 + $0x498] sm:$0xff] }
 0x15a   :  { %v7042_v62 = vcombine.high %v341_v56, %v345_v57  ;;  %v7041_v4 = vcombine.low %v341_v56, %v345_v57  ;;  %v397_v50 = vld [vmem:[#allocation5 + $0x650] sm:$0xff] }
 0x15c   :  { %2820 = vmatpush1.bf16.msra.mxu0 %v6977_v63  ;;  %2949 = vmatpush1.bf16.msra.mxu1 %v6979_v0  ;;  %v7044_v63 = vcombine.high %v342_v58, %v346_v59  ;;  %v349_v0 = vld [vmem:[#allocation5 + $0x4d0] sm:$0xff] }
 0x15d   :  { %2821 = vmatprep.subr.bf16.mxu0 %v6986_v1  ;;  %2950 = vmatprep.subr.bf16.mxu1 %v6988_v2  ;;  %v353_v1 = vld [vmem:[#allocation5 + $0x4f0] sm:$0xff]  ;;  %v350_v2 = vld [vmem:[#allocation5 + $0x4d8] sm:$0xff] }
 0x15e   :  { %v7050_v12 = vcombine.high %v349_v0, %v353_v1  ;;  %v7052_v5 = vcombine.high %v350_v2, %v354_v3  ;;  %v7049_v11 = vcombine.low %v349_v0, %v353_v1  ;;  %v7051_v13 = vcombine.low %v350_v2, %v354_v3  ;;  %v413_v3 = vld [vmem:[#allocation5 + $0x6d0] sm:$0xff] }
 0x160   :  { %2822 = vmatpush1.bf16.msra.mxu0 %v6985_v7  ;;  %2951 = vmatpush1.bf16.msra.mxu1 %v6987_v8  ;;  %v357_v7 = vld [vmem:[#allocation5 + $0x510] sm:$0xff] }
 0x161   :  { %2823 = vmatprep.subr.bf16.mxu0 %v6994_v9  ;;  %2952 = vmatprep.subr.bf16.mxu1 %v6996_v10  ;;  %v361_v8 = vld [vmem:[#allocation5 + $0x530] sm:$0xff]  ;;  %v358_v9 = vld [vmem:[#allocation5 + $0x518] sm:$0xff] }
 0x162   :  { %v362_v10 = vld [vmem:[#allocation5 + $0x538] sm:$0xff]  ;;  %v7058_v15 = vcombine.high %v357_v7, %v361_v8 }
 0x163   :  { %v7059_v21 = vcombine.low %v358_v9, %v362_v10 }
 0x164   :  { %2824 = vmatpush1.bf16.msra.mxu0 %v6993_v17  ;;  %2953 = vmatpush1.bf16.msra.mxu1 %v6995_v18  ;;  %v369_v17 = vld [vmem:[#allocation5 + $0x570] sm:$0xff]  ;;  %v366_v18 = vld [vmem:[#allocation5 + $0x558] sm:$0xff] }
 0x165   :  { %2825 = vmatprep.subr.bf16.mxu0 %v7002_v19  ;;  %2954 = vmatprep.subr.bf16.mxu1 %v7004_v20  ;;  %v370_v19 = vld [vmem:[#allocation5 + $0x578] sm:$0xff]  ;;  %v7057_v20 = vcombine.low %v357_v7, %v361_v8  ;;  %v7066_v36 = vcombine.high %v365_v16, %v369_v17 }
 0x166   :  { %v7068_v22 = vcombine.high %v366_v18, %v370_v19  ;;  %v7067_v28 = vcombine.low %v366_v18, %v370_v19  ;;  %v429_v19 = vld [vmem:[#allocation5 + $0x750] sm:$0xff] }
 0x168   :  { %2826 = vmatpush1.bf16.msra.mxu0 %v7001_v25  ;;  %2955 = vmatpush1.bf16.msra.mxu1 %v7003_v26  ;;  %v377_v25 = vld [vmem:[#allocation5 + $0x5b0] sm:$0xff]  ;;  %v374_v26 = vld [vmem:[#allocation5 + $0x598] sm:$0xff] }
 0x169   :  { %2827 = vmatprep.subr.bf16.mxu0 %v7010_v40  ;;  %2956 = vmatprep.subr.bf16.mxu1 %v7012_v27  ;;  %v378_v40 = vld [vmem:[#allocation5 + $0x5b8] sm:$0xff]  ;;  %v7065_v27 = vcombine.low %v365_v16, %v369_v17  ;;  %v7074_v29 = vcombine.high %v373_v24, %v377_v25 }
 0x16a   :  { %v7076_v30 = vcombine.high %v374_v26, %v378_v40  ;;  %v7075_v38 = vcombine.low %v374_v26, %v378_v40  ;;  %v437_v40 = vld [vmem:[#allocation5 + $0x790] sm:$0xff] }
 0x16c   :  { %2828 = vmatpush1.bf16.msra.mxu0 %v7009_v32  ;;  %2957 = vmatpush1.bf16.msra.mxu1 %v7011_v33  ;;  %v385_v32 = vld [vmem:[#allocation5 + $0x5f0] sm:$0xff]  ;;  %v382_v33 = vld [vmem:[#allocation5 + $0x5d8] sm:$0xff] }
 0x16d   :  { %2829 = vmatprep.subr.bf16.mxu0 %v7018_v34  ;;  %2958 = vmatprep.subr.bf16.mxu1 %v7020_v35  ;;  %v386_v34 = vld [vmem:[#allocation5 + $0x5f8] sm:$0xff]  ;;  %v7073_v35 = vcombine.low %v373_v24, %v377_v25  ;;  %v7082_v39 = vcombine.high %v381_v31, %v385_v32 }
 0x16e   :  { %v7084_v42 = vcombine.high %v382_v33, %v386_v34  ;;  %v7083_v53 = vcombine.low %v382_v33, %v386_v34  ;;  %v445_v34 = vld [vmem:[#allocation5 + $0x7d0] sm:$0xff] }
 0x170   :  { %2830 = vmatpush1.bf16.msra.mxu0 %v7017_v44  ;;  %2959 = vmatpush1.bf16.msra.mxu1 %v7019_v45  ;;  %v393_v44 = vld [vmem:[#allocation5 + $0x630] sm:$0xff]  ;;  %v390_v45 = vld [vmem:[#allocation5 + $0x618] sm:$0xff] }
 0x171   :  { %2842 = vmatprep.subr.bf16.mxu0 %v7026_v46  ;;  %2971 = vmatprep.subr.bf16.mxu1 %v7028_v47  ;;  %v394_v46 = vld [vmem:[#allocation5 + $0x638] sm:$0xff]  ;;  %v7081_v47 = vcombine.low %v381_v31, %v385_v32  ;;  %v7090_v48 = vcombine.high %v389_v43, %v393_v44 }
 0x172   :  { %v7092_v49 = vcombine.high %v390_v45, %v394_v46  ;;  %v7091_v56 = vcombine.low %v390_v45, %v394_v46  ;;  %v453_v46 = vld [vmem:[#allocation5 + $0x810] sm:$0xff] }
 0x173   :  { %2832 = vmatmul.mubr.bf16.vlgmr.msra.gmra.mrb[4].mxu0 %v10017_v41  ;;  %2961 = vmatmul.mubr.bf16.vlgmr.msra.gmra.mrb[4].mxu1 %v10017_v41  ;;  %v7043_v41 = vcombine.low %v342_v58, %v346_v59  ;;  %v405_v59 = vld [vmem:[#allocation5 + $0x690] sm:$0xff] }
 0x174   :  { %2843 = vmatpush1.bf16.msra.mxu0 %v7025_v51  ;;  %2972 = vmatpush1.bf16.msra.mxu1 %v7027_v54  ;;  %v401_v51 = vld [vmem:[#allocation5 + $0x670] sm:$0xff]  ;;  %v398_v54 = vld [vmem:[#allocation5 + $0x658] sm:$0xff] }
 0x175   :  { %2844 = vmatprep.subr.bf16.mxu0 %v7034_v52  ;;  %2973 = vmatprep.subr.bf16.mxu1 %v7036_v55  ;;  %v402_v52 = vld [vmem:[#allocation5 + $0x678] sm:$0xff]  ;;  %v7089_v55 = vcombine.low %v389_v43, %v393_v44  ;;  %v7098_v57 = vcombine.high %v397_v50, %v401_v51 }
 0x176   :  { %2874 = vmatprep.mubr.bf16.mxu0 %v10021_v6  ;;  %3003 = vmatprep.mubr.bf16.mxu1 %v10021_v6  ;;  %v7060_v6 = vcombine.high %v358_v9, %v362_v10  ;;  %v7100_v58 = vcombine.high %v398_v54, %v402_v52  ;;  %v7099_v0 = vcombine.low %v398_v54, %v402_v52  ;;  %v421_v10 = vld [vmem:[#allocation5 + $0x710] sm:$0xff] }
 0x177   :  { %v461_v52 = vld [vmem:[#allocation5 + $0x850] sm:$0xff] }
 0x178   :  { %2845 = vmatpush1.bf16.msra.mxu0 %v7033_v60  ;;  %2974 = vmatpush1.bf16.msra.mxu1 %v7035_v61  ;;  %v409_v60 = vld [vmem:[#allocation5 + $0x6b0] sm:$0xff]  ;;  %v406_v61 = vld [vmem:[#allocation5 + $0x698] sm:$0xff] }
 0x179   :  { %2846 = vmatprep.subr.bf16.mxu0 %v7042_v62  ;;  %2975 = vmatprep.subr.bf16.mxu1 %v7044_v63  ;;  %v410_v62 = vld [vmem:[#allocation5 + $0x6b8] sm:$0xff]  ;;  %v7097_v63 = vcombine.low %v397_v50, %v401_v51  ;;  %v7106_v1 = vcombine.high %v405_v59, %v409_v60 }
 0x17a   :  { %v7108_v2 = vcombine.high %v406_v61, %v410_v62  ;;  %v7107_v7 = vcombine.low %v406_v61, %v410_v62  ;;  %v469_v62 = vld [vmem:[#allocation5 + $0x890] sm:$0xff] }
 0x17c   :  { %2847 = vmatpush1.bf16.msra.mxu0 %v7041_v4  ;;  %2976 = vmatpush1.bf16.msra.mxu1 %v7043_v41  ;;  %v417_v4 = vld [vmem:[#allocation5 + $0x6f0] sm:$0xff]  ;;  %v414_v41 = vld [vmem:[#allocation5 + $0x6d8] sm:$0xff] }
 0x17d   :  { %2848 = vmatprep.subr.bf16.mxu0 %v7050_v12  ;;  %2977 = vmatprep.subr.bf16.mxu1 %v7052_v5  ;;  %v418_v12 = vld [vmem:[#allocation5 + $0x6f8] sm:$0xff]  ;;  %v7105_v5 = vcombine.low %v405_v59, %v409_v60  ;;  %v7114_v8 = vcombine.high %v413_v3, %v417_v4 }
 0x17e   :  { %v7116_v9 = vcombine.high %v414_v41, %v418_v12  ;;  %v7115_v16 = vcombine.low %v414_v41, %v418_v12  ;;  %v477_v12 = vld [vmem:[#allocation5 + $0x8d0] sm:$0xff] }
 0x180   :  { %2849 = vmatpush1.bf16.msra.mxu0 %v7049_v11  ;;  %2978 = vmatpush1.bf16.msra.mxu1 %v7051_v13  ;;  %v425_v11 = vld [vmem:[#allocation5 + $0x730] sm:$0xff]  ;;  %v422_v13 = vld [vmem:[#allocation5 + $0x718] sm:$0xff] }
 0x181   :  { %2850 = vmatprep.subr.bf16.mxu0 %v7058_v15  ;;  %2979 = vmatprep.subr.bf16.mxu1 %v7060_v6  ;;  %v426_v15 = vld [vmem:[#allocation5 + $0x738] sm:$0xff]  ;;  %v7113_v6 = vcombine.low %v413_v3, %v417_v4  ;;  %v7122_v17 = vcombine.high %v421_v10, %v425_v11 }
 0x182   :  { %v7124_v18 = vcombine.high %v422_v13, %v426_v15  ;;  %v7123_v24 = vcombine.low %v422_v13, %v426_v15  ;;  %v485_v13 = vld [vmem:[#allocation5 + $0x910] sm:$0xff] }
 0x183   :  { %v489_v15 = vld [vmem:[#allocation5 + $0x930] sm:$0xff] }
 0x184   :  { %2851 = vmatpush1.bf16.msra.mxu0 %v7057_v20  ;;  %2980 = vmatpush1.bf16.msra.mxu1 %v7059_v21  ;;  %v433_v20 = vld [vmem:[#allocation5 + $0x770] sm:$0xff]  ;;  %v430_v21 = vld [vmem:[#allocation5 + $0x758] sm:$0xff] }
 0x185   :  { %2852 = vmatprep.subr.bf16.mxu0 %v7066_v36  ;;  %2981 = vmatprep.subr.bf16.mxu1 %v7068_v22  ;;  %v434_v36 = vld [vmem:[#allocation5 + $0x778] sm:$0xff]  ;;  %v7121_v22 = vcombine.low %v421_v10, %v425_v11  ;;  %v7130_v25 = vcombine.high %v429_v19, %v433_v20 }
 0x186   :  { %v7132_v26 = vcombine.high %v430_v21, %v434_v36  ;;  %v7131_v31 = vcombine.low %v430_v21, %v434_v36  ;;  %v497_v21 = vld [vmem:[#allocation5 + $0x970] sm:$0xff]  ;;  %v494_v36 = vld [vmem:[#allocation5 + $0x958] sm:$0xff] }
 0x188   :  { %2853 = vmatpush1.bf16.msra.mxu0 %v7065_v27  ;;  %2982 = vmatpush1.bf16.msra.mxu1 %v7067_v28  ;;  %v441_v27 = vld [vmem:[#allocation5 + $0x7b0] sm:$0xff]  ;;  %v438_v28 = vld [vmem:[#allocation5 + $0x798] sm:$0xff] }
 0x189   :  { %2854 = vmatprep.subr.bf16.mxu0 %v7074_v29  ;;  %2983 = vmatprep.subr.bf16.mxu1 %v7076_v30  ;;  %v442_v29 = vld [vmem:[#allocation5 + $0x7b8] sm:$0xff]  ;;  %v7129_v30 = vcombine.low %v429_v19, %v433_v20  ;;  %v7138_v32 = vcombine.high %v437_v40, %v441_v27  ;;  %v7186_v19 = vcombine.high %v485_v13, %v489_v15  ;;  %v493_v20 = vld [vmem:[#allocation5 + $0x950] sm:$0xff] }
 0x18a   :  { %v7140_v33 = vcombine.high %v438_v28, %v442_v29  ;;  %v7139_v43 = vcombine.low %v438_v28, %v442_v29  ;;  %v505_v28 = vld [vmem:[#allocation5 + $0x9b0] sm:$0xff]  ;;  %v502_v29 = vld [vmem:[#allocation5 + $0x998] sm:$0xff] }
 0x18c   :  { %2855 = vmatpush1.bf16.msra.mxu0 %v7073_v35  ;;  %2984 = vmatpush1.bf16.msra.mxu1 %v7075_v38  ;;  %v449_v35 = vld [vmem:[#allocation5 + $0x7f0] sm:$0xff]  ;;  %v446_v38 = vld [vmem:[#allocation5 + $0x7d8] sm:$0xff] }
 0x18d   :  { %2856 = vmatprep.subr.bf16.mxu0 %v7082_v39  ;;  %2985 = vmatprep.subr.bf16.mxu1 %v7084_v42  ;;  %v450_v39 = vld [vmem:[#allocation5 + $0x7f8] sm:$0xff]  ;;  %v7137_v42 = vcombine.low %v437_v40, %v441_v27  ;;  %v7146_v44 = vcombine.high %v445_v34, %v449_v35  ;;  %v501_v27 = vld [vmem:[#allocation5 + $0x990] sm:$0xff] }
 0x18e   :  { %v7148_v45 = vcombine.high %v446_v38, %v450_v39  ;;  %v7147_v50 = vcombine.low %v446_v38, %v450_v39  ;;  %v513_v38 = vld [vmem:[#allocation5 + $0x9f0] sm:$0xff]  ;;  %v510_v39 = vld [vmem:[#allocation5 + $0x9d8] sm:$0xff] }
 0x190   :  { %2857 = vmatpush1.bf16.msra.mxu0 %v7081_v47  ;;  %2986 = vmatpush1.bf16.msra.mxu1 %v7083_v53  ;;  %v457_v47 = vld [vmem:[#allocation5 + $0x830] sm:$0xff]  ;;  %v454_v53 = vld [vmem:[#allocation5 + $0x818] sm:$0xff] }
 0x191   :  { %2858 = vmatprep.subr.bf16.mxu0 %v7090_v48  ;;  %2987 = vmatprep.subr.bf16.mxu1 %v7092_v49  ;;  %v458_v48 = vld [vmem:[#allocation5 + $0x838] sm:$0xff]  ;;  %v7145_v49 = vcombine.low %v445_v34, %v449_v35  ;;  %v7154_v51 = vcombine.high %v453_v46, %v457_v47  ;;  %v509_v35 = vld [vmem:[#allocation5 + $0x9d0] sm:$0xff] }
 0x192   :  { %v7156_v54 = vcombine.high %v454_v53, %v458_v48  ;;  %v7155_v59 = vcombine.low %v454_v53, %v458_v48  ;;  %v521_v53 = vld [vmem:[#allocation5 + $0xa30] sm:$0xff]  ;;  %v518_v48 = vld [vmem:[#allocation5 + $0xa18] sm:$0xff] }
 0x194   :  { %2859 = vmatpush1.bf16.msra.mxu0 %v7089_v55  ;;  %2988 = vmatpush1.bf16.msra.mxu1 %v7091_v56  ;;  %v465_v55 = vld [vmem:[#allocation5 + $0x870] sm:$0xff]  ;;  %v462_v56 = vld [vmem:[#allocation5 + $0x858] sm:$0xff] }
 0x195   :  { %2860 = vmatprep.subr.bf16.mxu0 %v7098_v57  ;;  %2989 = vmatprep.subr.bf16.mxu1 %v7100_v58  ;;  %v466_v57 = vld [vmem:[#allocation5 + $0x878] sm:$0xff]  ;;  %v7153_v58 = vcombine.low %v453_v46, %v457_v47  ;;  %v7162_v60 = vcombine.high %v461_v52, %v465_v55  ;;  %v517_v47 = vld [vmem:[#allocation5 + $0xa10] sm:$0xff] }
 0x196   :  { %v7164_v61 = vcombine.high %v462_v56, %v466_v57  ;;  %v7163_v3 = vcombine.low %v462_v56, %v466_v57  ;;  %v529_v56 = vld [vmem:[#allocation5 + $0xa70] sm:$0xff]  ;;  %v526_v57 = vld [vmem:[#allocation5 + $0xa58] sm:$0xff] }
 0x198   :  { %2861 = vmatpush1.bf16.msra.mxu0 %v7097_v63  ;;  %2990 = vmatpush1.bf16.msra.mxu1 %v7099_v0  ;;  %v473_v63 = vld [vmem:[#allocation5 + $0x8b0] sm:$0xff]  ;;  %v470_v0 = vld [vmem:[#allocation5 + $0x898] sm:$0xff] }
 0x199   :  { %2862 = vmatprep.subr.bf16.mxu0 %v7106_v1  ;;  %2991 = vmatprep.subr.bf16.mxu1 %v7108_v2  ;;  %v474_v1 = vld [vmem:[#allocation5 + $0x8b8] sm:$0xff]  ;;  %v7161_v2 = vcombine.low %v461_v52, %v465_v55  ;;  %v7170_v4 = vcombine.high %v469_v62, %v473_v63  ;;  %v525_v55 = vld [vmem:[#allocation5 + $0xa50] sm:$0xff] }
 0x19a   :  { %v7172_v41 = vcombine.high %v470_v0, %v474_v1 }
 0x19c   :  { %2863 = vmatpush1.bf16.msra.mxu0 %v7105_v5  ;;  %2992 = vmatpush1.bf16.msra.mxu1 %v7107_v7  ;;  %v481_v5 = vld [vmem:[#allocation5 + $0x8f0] sm:$0xff]  ;;  %v478_v7 = vld [vmem:[#allocation5 + $0x8d8] sm:$0xff] }
 0x19d   :  { %2864 = vmatprep.subr.bf16.mxu0 %v7114_v8  ;;  %2993 = vmatprep.subr.bf16.mxu1 %v7116_v9  ;;  %v482_v8 = vld [vmem:[#allocation5 + $0x8f8] sm:$0xff]  ;;  %v7169_v9 = vcombine.low %v469_v62, %v473_v63  ;;  %v7178_v10 = vcombine.high %v477_v12, %v481_v5  ;;  %v533_v63 = vld [vmem:[#allocation5 + $0xa90] sm:$0xff] }
 0x19e   :  { %v7180_v11 = vcombine.high %v478_v7, %v482_v8 }
 0x1a0   :  { %2865 = vmatpush1.bf16.msra.mxu0 %v7113_v6  ;;  %2994 = vmatpush1.bf16.msra.mxu1 %v7115_v16  ;;  %v486_v6 = vld [vmem:[#allocation5 + $0x918] sm:$0xff] }
 0x1a1   :  { %2866 = vmatprep.subr.bf16.mxu0 %v7122_v17  ;;  %2995 = vmatprep.subr.bf16.mxu1 %v7124_v18  ;;  %v490_v16 = vld [vmem:[#allocation5 + $0x938] sm:$0xff]  ;;  %v7177_v17 = vcombine.low %v477_v12, %v481_v5  ;;  %v7179_v18 = vcombine.low %v478_v7, %v482_v8  ;;  %v541_v5 = vld [vmem:[#allocation5 + $0xad0] sm:$0xff] }
 0x1a2   :  { %v545_v7 = vld [vmem:[#allocation5 + $0xaf0] sm:$0xff]  ;;  %v542_v8 = vld [vmem:[#allocation5 + $0xad8] sm:$0xff] }
 0x1a4   :  { %2867 = vmatpush1.bf16.msra.mxu0 %v7121_v22  ;;  %2996 = vmatpush1.bf16.msra.mxu1 %v7123_v24  ;;  %v498_v22 = vld [vmem:[#allocation5 + $0x978] sm:$0xff]  ;;  %v7185_v24 = vcombine.low %v485_v13, %v489_v15  ;;  %v549_v15 = vld [vmem:[#allocation5 + $0xb10] sm:$0xff] }
 0x1a5   :  { %2868 = vmatprep.subr.bf16.mxu0 %v7130_v25  ;;  %2997 = vmatprep.subr.bf16.mxu1 %v7132_v26  ;;  %v7187_v25 = vcombine.low %v486_v6, %v490_v16  ;;  %v7194_v26 = vcombine.high %v493_v20, %v497_v21  ;;  %v7196_v40 = vcombine.high %v494_v36, %v498_v22 }
 0x1a8   :  { %2869 = vmatpush1.bf16.msra.mxu0 %v7129_v30  ;;  %2998 = vmatpush1.bf16.msra.mxu1 %v7131_v31  ;;  %v506_v30 = vld [vmem:[#allocation5 + $0x9b8] sm:$0xff]  ;;  %v7193_v31 = vcombine.low %v493_v20, %v497_v21  ;;  %v557_v21 = vld [vmem:[#allocation5 + $0xb50] sm:$0xff] }
 0x1a9   :  { %2870 = vmatprep.subr.bf16.mxu0 %v7138_v32  ;;  %2999 = vmatprep.subr.bf16.mxu1 %v7140_v33  ;;  %v7195_v32 = vcombine.low %v494_v36, %v498_v22  ;;  %v7202_v33 = vcombine.high %v501_v27, %v505_v28  ;;  %v7204_v34 = vcombine.high %v502_v29, %v506_v30  ;;  %v561_v36 = vld [vmem:[#allocation5 + $0xb70] sm:$0xff]  ;;  %v558_v22 = vld [vmem:[#allocation5 + $0xb58] sm:$0xff] }
 0x1ac   :  { %2871 = vmatpush1.bf16.msra.mxu0 %v7137_v42  ;;  %3000 = vmatpush1.bf16.msra.mxu1 %v7139_v43  ;;  %v514_v42 = vld [vmem:[#allocation5 + $0x9f8] sm:$0xff]  ;;  %v7201_v43 = vcombine.low %v501_v27, %v505_v28  ;;  %v565_v28 = vld [vmem:[#allocation5 + $0xb90] sm:$0xff] }
 0x1ad   :  { %2872 = vmatprep.subr.bf16.mxu0 %v7146_v44  ;;  %3001 = vmatprep.subr.bf16.mxu1 %v7148_v45  ;;  %v7203_v44 = vcombine.low %v502_v29, %v506_v30  ;;  %v7210_v45 = vcombine.high %v509_v35, %v513_v38  ;;  %v7212_v46 = vcombine.high %v510_v39, %v514_v42  ;;  %v569_v29 = vld [vmem:[#allocation5 + $0xbb0] sm:$0xff]  ;;  %v566_v30 = vld [vmem:[#allocation5 + $0xb98] sm:$0xff] }
 0x1b0   :  { %2873 = vmatpush1.bf16.msra.mxu0 %v7145_v49  ;;  %3002 = vmatpush1.bf16.msra.mxu1 %v7147_v50  ;;  %v522_v49 = vld [vmem:[#allocation5 + $0xa38] sm:$0xff]  ;;  %v7209_v50 = vcombine.low %v509_v35, %v513_v38  ;;  %v573_v38 = vld [vmem:[#allocation5 + $0xbd0] sm:$0xff] }
 0x1b1   :  { %2885 = vmatprep.subr.bf16.mxu0 %v7154_v51  ;;  %3014 = vmatprep.subr.bf16.mxu1 %v7156_v54  ;;  %v7211_v51 = vcombine.low %v510_v39, %v514_v42  ;;  %v7218_v54 = vcombine.high %v517_v47, %v521_v53  ;;  %v7220_v52 = vcombine.high %v518_v48, %v522_v49  ;;  %v577_v39 = vld [vmem:[#allocation5 + $0xbf0] sm:$0xff]  ;;  %v574_v42 = vld [vmem:[#allocation5 + $0xbd8] sm:$0xff] }
 0x1b3   :  { %2875 = vmatmul.mubr.bf16.vlgmr.msra.gmra.mrb[4].mxu0 %v10033_v14  ;;  %3004 = vmatmul.mubr.bf16.vlgmr.msra.gmra.mrb[4].mxu1 %v10033_v14  ;;  %v7171_v14 = vcombine.low %v470_v0, %v474_v1  ;;  %v537_v0 = vld [vmem:[#allocation5 + $0xab0] sm:$0xff]  ;;  %v534_v1 = vld [vmem:[#allocation5 + $0xa98] sm:$0xff] }
 0x1b4   :  { %2886 = vmatpush1.bf16.msra.mxu0 %v7153_v58  ;;  %3015 = vmatpush1.bf16.msra.mxu1 %v7155_v59  ;;  %v530_v58 = vld [vmem:[#allocation5 + $0xa78] sm:$0xff]  ;;  %v7217_v59 = vcombine.low %v517_v47, %v521_v53  ;;  %v3074_v53 = vld [vmem:[#allocation8 + $0x8] sm:$0xff] }
 0x1b5   :  { %2887 = vmatprep.subr.bf16.mxu0 %v7162_v60  ;;  %3016 = vmatprep.subr.bf16.mxu1 %v7164_v61  ;;  %v7219_v60 = vcombine.low %v518_v48, %v522_v49  ;;  %v7226_v61 = vcombine.high %v525_v55, %v529_v56  ;;  %v7228_v62 = vcombine.high %v526_v57, %v530_v58  ;;  %v3082_v48 = vld [vmem:[#allocation8 + $0x48] sm:$0xff]  ;;  %v3076_v49 = vld [vmem:[#allocation8 + $0x18] sm:$0xff] }
 0x1b6   :  { %2917 = vmatprep.mubr.bf16.mxu0 %v10035_v23  ;;  %3046 = vmatprep.mubr.bf16.mxu1 %v10035_v23  ;;  %v7188_v23 = vcombine.high %v486_v6, %v490_v16  ;;  %v553_v6 = vld [vmem:[#allocation5 + $0xb30] sm:$0xff]  ;;  %v550_v16 = vld [vmem:[#allocation5 + $0xb18] sm:$0xff] }
 0x1b8   :  { %2888 = vmatpush1.bf16.msra.mxu0 %v7161_v2  ;;  %3017 = vmatpush1.bf16.msra.mxu1 %v7163_v3  ;;  %v538_v2 = vld [vmem:[#allocation5 + $0xab8] sm:$0xff]  ;;  %v7225_v3 = vcombine.low %v525_v55, %v529_v56  ;;  %v3073_v55 = vld [vmem:[#allocation8] sm:$0xff] }
 0x1b9   :  { %2889 = vmatprep.subr.bf16.mxu0 %v7170_v4  ;;  %3018 = vmatprep.subr.bf16.mxu1 %v7172_v41  ;;  %v7227_v4 = vcombine.low %v526_v57, %v530_v58  ;;  %v7234_v41 = vcombine.high %v533_v63, %v537_v0  ;;  %v7236_v12 = vcombine.high %v534_v1, %v538_v2  ;;  %v3081_v56 = vld [vmem:[#allocation8 + $0x40] sm:$0xff]  ;;  %v3075_v57 = vld [vmem:[#allocation8 + $0x10] sm:$0xff] }
 0x1bc   :  { %2890 = vmatpush1.bf16.msra.mxu0 %v7169_v9  ;;  %3019 = vmatpush1.bf16.msra.mxu1 %v7171_v14  ;;  %v546_v9 = vld [vmem:[#allocation5 + $0xaf8] sm:$0xff]  ;;  %v7233_v14 = vcombine.low %v533_v63, %v537_v0  ;;  %v3100_v63 = vld [vmem:[#allocation8 + $0xd8] sm:$0xff]  ;;  %v10061_v0 = vpack.c.bf16 %v3081_v56, %v3073_v55 }
 0x1bd   :  { %2891 = vmatprep.subr.bf16.mxu0 %v7178_v10  ;;  %3020 = vmatprep.subr.bf16.mxu1 %v7180_v11  ;;  %v7235_v10 = vcombine.low %v534_v1, %v538_v2  ;;  %v7242_v11 = vcombine.high %v541_v5, %v545_v7  ;;  %v7244_v13 = vcombine.high %v542_v8, %v546_v9 }
 0x1be   :  { %12263 = vst [vmem:[#allocation19_spill] sm:$0xff] %v10061_v0 }
 0x1c0   :  { %2892 = vmatpush1.bf16.msra.mxu0 %v7177_v17  ;;  %3021 = vmatpush1.bf16.msra.mxu1 %v7179_v18  ;;  %v554_v17 = vld [vmem:[#allocation5 + $0xb38] sm:$0xff]  ;;  %v7241_v18 = vcombine.low %v541_v5, %v545_v7  ;;  %v3106_v7 = vld [vmem:[#allocation8 + $0x108] sm:$0xff] }
 0x1c1   :  { %2893 = vmatprep.subr.bf16.mxu0 %v7186_v19  ;;  %3022 = vmatprep.subr.bf16.mxu1 %v7188_v23  ;;  %v7243_v19 = vcombine.low %v542_v8, %v546_v9  ;;  %v7250_v23 = vcombine.high %v549_v15, %v553_v6  ;;  %v7252_v20 = vcombine.high %v550_v16, %v554_v17  ;;  %v3099_v5 = vld [vmem:[#allocation8 + $0xd0] sm:$0xff]  ;;  %v3114_v8 = vld [vmem:[#allocation8 + $0x148] sm:$0xff]  ;;  %v3108_v9 = vld [vmem:[#allocation8 + $0x118] sm:$0xff] }
 0x1c4   :  { %2894 = vmatpush1.bf16.msra.mxu0 %v7185_v24  ;;  %3023 = vmatpush1.bf16.msra.mxu1 %v7187_v25  ;;  %v562_v24 = vld [vmem:[#allocation5 + $0xb78] sm:$0xff]  ;;  %v7249_v25 = vcombine.low %v549_v15, %v553_v6  ;;  %v3105_v15 = vld [vmem:[#allocation8 + $0x100] sm:$0xff] }
 0x1c5   :  { %2895 = vmatprep.subr.bf16.mxu0 %v7194_v26  ;;  %3024 = vmatprep.subr.bf16.mxu1 %v7196_v40  ;;  %v7251_v26 = vcombine.low %v550_v16, %v554_v17  ;;  %v7258_v40 = vcombine.high %v557_v21, %v561_v36  ;;  %v7260_v27 = vcombine.high %v558_v22, %v562_v24  ;;  %v3113_v6 = vld [vmem:[#allocation8 + $0x140] sm:$0xff]  ;;  %v3107_v16 = vld [vmem:[#allocation8 + $0x110] sm:$0xff] }
 0x1c8   :  { %2896 = vmatpush1.bf16.msra.mxu0 %v7193_v31  ;;  %3025 = vmatpush1.bf16.msra.mxu1 %v7195_v32  ;;  %v570_v31 = vld [vmem:[#allocation5 + $0xbb8] sm:$0xff]  ;;  %v7257_v32 = vcombine.low %v557_v21, %v561_v36  ;;  %v3132_v21 = vld [vmem:[#allocation8 + $0x1d8] sm:$0xff]  ;;  %v581_v36 = vlaneseq }
 0x1c9   :  { %2897 = vmatprep.subr.bf16.mxu0 %v7202_v33  ;;  %3026 = vmatprep.subr.bf16.mxu1 %v7204_v34  ;;  %v7259_v33 = vcombine.low %v558_v22, %v562_v24  ;;  %v7266_v34 = vcombine.high %v565_v28, %v569_v29  ;;  %v7268_v35 = vcombine.high %v566_v30, %v570_v31 }
 0x1ca   :  { %v10088_v22 = vpack.c.bf16 %v3113_v6, %v3105_v15 }
 0x1cc   :  { %2898 = vmatpush1.bf16.msra.mxu0 %v7201_v43  ;;  %3027 = vmatpush1.bf16.msra.mxu1 %v7203_v44  ;;  %v578_v43 = vld [vmem:[#allocation5 + $0xbf8] sm:$0xff]  ;;  %v7265_v44 = vcombine.low %v565_v28, %v569_v29  ;;  %12271 = vst [vmem:[#allocation27_spill] sm:$0xff] %v10088_v22 }
 0x1cd   :  { %2899 = vmatprep.subr.bf16.mxu0 %v7210_v45  ;;  %3028 = vmatprep.subr.bf16.mxu1 %v7212_v46  ;;  %v7267_v45 = vcombine.low %v566_v30, %v570_v31  ;;  %v7274_v46 = vcombine.high %v573_v38, %v577_v39  ;;  %v7276_v47 = vcombine.high %v574_v42, %v578_v43  ;;  %v3131_v29 = vld [vmem:[#allocation8 + $0x1d0] sm:$0xff]  ;;  %v3138_v30 = vld [vmem:[#allocation8 + $0x208] sm:$0xff] }
 0x1ce   :  { %v3146_v31 = vld [vmem:[#allocation8 + $0x248] sm:$0xff] }
 0x1d0   :  { %2900 = vmatpush1.bf16.msra.mxu0 %v7209_v50  ;;  %3029 = vmatpush1.bf16.msra.mxu1 %v7211_v51  ;;  %v3084_v50 = vld [vmem:[#allocation8 + $0x58] sm:$0xff]  ;;  %v7273_v51 = vcombine.low %v573_v38, %v577_v39  ;;  %v10108_v39 = vpack.c.bf16 %v3146_v31, %v3138_v30 }
 0x1d1   :  { %2901 = vmatprep.subr.bf16.mxu0 %v7218_v54  ;;  %3030 = vmatprep.subr.bf16.mxu1 %v7220_v52  ;;  %v7275_v54 = vcombine.low %v574_v42, %v578_v43  ;;  %v10057_v52 = vpack.c.bf16 %v3082_v48, %v3074_v53  ;;  %v10059_v58 = vpack.c.bf16 %v3084_v50, %v3076_v49  ;;  %v3137_v42 = vld [vmem:[#allocation8 + $0x200] sm:$0xff]  ;;  %v3162_v53 = vld [vmem:[#allocation8 + $0x2c8] sm:$0xff]  ;;  %v3156_v49 = vld [vmem:[#allocation8 + $0x298] sm:$0xff] }
 0x1d2   :  { %12278 = vst [vmem:[#allocation34_spill] sm:$0xff] %v10108_v39  ;;  %v3145_v43 = vld [vmem:[#allocation8 + $0x240] sm:$0xff]  ;;  %v3164_v50 = vld [vmem:[#allocation8 + $0x2d8] sm:$0xff] }
 0x1d3   :  { %12261 = vst [vmem:[#allocation17_spill] sm:$0xff] %v10057_v52  ;;  %12262 = vst [vmem:[#allocation18_spill] sm:$0xff] %v10059_v58 }
 0x1d4   :  { %2902 = vmatpush1.bf16.msra.mxu0 %v7217_v59  ;;  %3031 = vmatpush1.bf16.msra.mxu1 %v7219_v60  ;;  %v3083_v59 = vld [vmem:[#allocation8 + $0x50] sm:$0xff]  ;;  %v3090_v60 = vld [vmem:[#allocation8 + $0x88] sm:$0xff] }
 0x1d5   :  { %2903 = vmatprep.subr.bf16.mxu0 %v7226_v61  ;;  %3032 = vmatprep.subr.bf16.mxu1 %v7228_v62  ;;  %v3098_v61 = vld [vmem:[#allocation8 + $0xc8] sm:$0xff]  ;;  %v3092_v62 = vld [vmem:[#allocation8 + $0x98] sm:$0xff]  ;;  %v10064_v1 = vpack.c.bf16 %v3083_v59, %v3075_v57 }
 0x1d6   :  { %v10066_v2 = vpack.c.bf16 %v3098_v61, %v3090_v60  ;;  %v3153_v61 = vld [vmem:[#allocation8 + $0x280] sm:$0xff] }
 0x1d7   :  { %12264 = vst [vmem:[#allocation20_spill] sm:$0xff] %v10064_v1 }
 0x1d8   :  { %2904 = vmatpush1.bf16.msra.mxu0 %v7225_v3  ;;  %3033 = vmatpush1.bf16.msra.mxu1 %v7227_v4  ;;  %12265 = vst [vmem:[#allocation21_spill] sm:$0xff] %v10066_v2  ;;  %v3089_v3 = vld [vmem:[#allocation8 + $0x80] sm:$0xff] }
 0x1d9   :  { %2905 = vmatprep.subr.bf16.mxu0 %v7234_v41  ;;  %3034 = vmatprep.subr.bf16.mxu1 %v7236_v12  ;;  %v3097_v4 = vld [vmem:[#allocation8 + $0xc0] sm:$0xff]  ;;  %v3091_v41 = vld [vmem:[#allocation8 + $0x90] sm:$0xff]  ;;  %v10069_v12 = vpack.c.bf16 %v3100_v63, %v3092_v62 }
 0x1da   :  { %v3161_v62 = vld [vmem:[#allocation8 + $0x2c0] sm:$0xff]  ;;  %v3155_v63 = vld [vmem:[#allocation8 + $0x290] sm:$0xff] }
 0x1db   :  { %12266 = vst [vmem:[#allocation22_spill] sm:$0xff] %v10069_v12  ;;  %v10141_v6 = vpack.c.bf16 %v3161_v62, %v3153_v61 }
 0x1dc   :  { %2906 = vmatpush1.bf16.msra.mxu0 %v7233_v14  ;;  %3035 = vmatpush1.bf16.msra.mxu1 %v7235_v10  ;;  %v3116_v14 = vld [vmem:[#allocation8 + $0x158] sm:$0xff]  ;;  %v10074_v10 = vpack.c.bf16 %v3097_v4, %v3089_v3  ;;  %v10135_v3 = vpack.c.bf16 %v3164_v50, %v3156_v49  ;;  %v3163_v4 = vld [vmem:[#allocation8 + $0x2d0] sm:$0xff] }
 0x1dd   :  { %2907 = vmatprep.subr.bf16.mxu0 %v7242_v11  ;;  %3036 = vmatprep.subr.bf16.mxu1 %v7244_v13  ;;  %v10078_v11 = vpack.c.bf16 %v3099_v5, %v3091_v41  ;;  %v10080_v13 = vpack.c.bf16 %v3114_v8, %v3106_v7  ;;  %v10083_v17 = vpack.c.bf16 %v3116_v14, %v3108_v9  ;;  %v3170_v41 = vld [vmem:[#allocation8 + $0x308] sm:$0xff]  ;;  %v3172_v8 = vld [vmem:[#allocation8 + $0x318] sm:$0xff] }
 0x1de   :  { %12267 = vst [vmem:[#allocation23_spill] sm:$0xff] %v10074_v10  ;;  %12287 = vst [vmem:[#allocation43_spill] sm:$0xff] %v10135_v3  ;;  %v3178_v5 = vld [vmem:[#allocation8 + $0x348] sm:$0xff]  ;;  %v3180_v9 = vld [vmem:[#allocation8 + $0x358] sm:$0xff] }
 0x1df   :  { %12268 = vst [vmem:[#allocation24_spill] sm:$0xff] %v10078_v11  ;;  %12269 = vst [vmem:[#allocation25_spill] sm:$0xff] %v10080_v13 }
 0x1e0   :  { %2908 = vmatpush1.bf16.msra.mxu0 %v7241_v18  ;;  %3037 = vmatpush1.bf16.msra.mxu1 %v7243_v19  ;;  %12270 = vst [vmem:[#allocation26_spill] sm:$0xff] %v10083_v17  ;;  %v3122_v18 = vld [vmem:[#allocation8 + $0x188] sm:$0xff]  ;;  %12288 = vst [vmem:[#allocation44_spill] sm:$0xff] %v10141_v6 }
 0x1e1   :  { %2909 = vmatprep.subr.bf16.mxu0 %v7250_v23  ;;  %3038 = vmatprep.subr.bf16.mxu1 %v7252_v20  ;;  %v3130_v19 = vld [vmem:[#allocation8 + $0x1c8] sm:$0xff]  ;;  %v11955_v23 = vmov 0.0   ;;  %v3124_v20 = vld [vmem:[#allocation8 + $0x198] sm:$0xff] }
 0x1e2   :  { %v10097_v28 = vpack.c.bf16 %v3132_v21, %v3124_v20  ;;  %v3177_v20 = vld [vmem:[#allocation8 + $0x340] sm:$0xff]  ;;  %v3171_v21 = vld [vmem:[#allocation8 + $0x310] sm:$0xff] }
 0x1e4   :  { %2910 = vmatpush1.bf16.msra.mxu0 %v7249_v25  ;;  %3039 = vmatpush1.bf16.msra.mxu1 %v7251_v26  ;;  %v10094_v25 = vpack.c.bf16 %v3130_v19, %v3122_v18  ;;  %v3121_v26 = vld [vmem:[#allocation8 + $0x180] sm:$0xff]  ;;  %12274 = vst [vmem:[#allocation30_spill] sm:$0xff] %v10097_v28  ;;  %v10146_v18 = vpack.c.bf16 %v3163_v4, %v3155_v63 }
 0x1e5   :  { %2911 = vmatprep.subr.bf16.mxu0 %v7258_v40  ;;  %3040 = vmatprep.subr.bf16.mxu1 %v7260_v27  ;;  %v3129_v40 = vld [vmem:[#allocation8 + $0x1c0] sm:$0xff]  ;;  %v3123_v27 = vld [vmem:[#allocation8 + $0x190] sm:$0xff]  ;;  %v10148_v19 = vpack.c.bf16 %v3178_v5, %v3170_v41 }
 0x1e6   :  { %12273 = vst [vmem:[#allocation29_spill] sm:$0xff] %v10094_v25  ;;  %v10106_v38 = vpack.c.bf16 %v3131_v29, %v3123_v27  ;;  %12289 = vst [vmem:[#allocation45_spill] sm:$0xff] %v10146_v18  ;;  %v3186_v27 = vld [vmem:[#allocation8 + $0x388] sm:$0xff]  ;;  %v3185_v4 = vld [vmem:[#allocation8 + $0x380] sm:$0xff] }
 0x1e7   :  { %12290 = vst [vmem:[#allocation46_spill] sm:$0xff] %v10148_v19  ;;  %v3194_v29 = vld [vmem:[#allocation8 + $0x3c8] sm:$0xff]  ;;  %v3193_v41 = vld [vmem:[#allocation8 + $0x3c0] sm:$0xff]  ;;  %v3187_v5 = vld [vmem:[#allocation8 + $0x390] sm:$0xff] }
 0x1e8   :  { %2912 = vmatpush1.bf16.msra.mxu0 %v7257_v32  ;;  %3041 = vmatpush1.bf16.msra.mxu1 %v7259_v33  ;;  %v3140_v32 = vld [vmem:[#allocation8 + $0x218] sm:$0xff]  ;;  %12277 = vst [vmem:[#allocation33_spill] sm:$0xff] %v10106_v38  ;;  %v10160_v63 = vpack.c.bf16 %v3194_v29, %v3186_v27 }
 0x1e9   :  { %2913 = vmatprep.subr.bf16.mxu0 %v7266_v34  ;;  %3042 = vmatprep.subr.bf16.mxu1 %v7268_v35  ;;  %v3148_v33 = vld [vmem:[#allocation8 + $0x258] sm:$0xff]  ;;  %v10099_v34 = vshrl.u32 %v581_v36, 7  ;;  %v10102_v35 = vpack.c.bf16 %v3129_v40, %v3121_v26  ;;  %v3179_v36 = vld [vmem:[#allocation8 + $0x350] sm:$0xff]  ;;  %v10151_v40 = vpack.c.bf16 %v3180_v9, %v3172_v8 }
 0x1ea   :  { %v10156_v49 = vpack.c.bf16 %v3179_v36, %v3171_v21  ;;  %12294 = vst [vmem:[#allocation50_spill] sm:$0xff] %v10160_v63  ;;  %v3202_v21 = vld [vmem:[#allocation8 + $0x408] sm:$0xff]  ;;  %v3204_v27 = vld [vmem:[#allocation8 + $0x418] sm:$0xff] }
 0x1eb   :  { %12275 = vst [vmem:[#allocation31_spill] sm:$0xff] %v10099_v34  ;;  %12276 = vst [vmem:[#allocation32_spill] sm:$0xff] %v10102_v35  ;;  %v10114_v48 = vsub.s32 0, %v10099_v34  ;;  %v10120_v55 = vsub.s32 2, %v10099_v34  ;;  %v10123_v56 = vsub.s32 1, %v10099_v34  ;;  %v10130_v59 = vsub.s32 3, %v10099_v34 }
 0x1ec   :  { %2914 = vmatpush1.bf16.msra.mxu0 %v7265_v44  ;;  %3043 = vmatpush1.bf16.msra.mxu1 %v7267_v45  ;;  %v3139_v44 = vld [vmem:[#allocation8 + $0x210] sm:$0xff]  ;;  %v10111_v45 = vpack.c.bf16 %v3148_v33, %v3140_v32  ;;  %12291 = vst [vmem:[#allocation47_spill] sm:$0xff] %v10151_v40  ;;  %v3188_v33 = vld [vmem:[#allocation8 + $0x398] sm:$0xff]  ;;  %12293 = vst [vmem:[#allocation49_spill] sm:$0xff] %v10156_v49 }
 0x1ed   :  { %2915 = vmatprep.subr.bf16.mxu0 %v7274_v46  ;;  %3044 = vmatprep.subr.bf16.mxu1 %v7276_v47  ;;  %v3147_v46 = vld [vmem:[#allocation8 + $0x250] sm:$0xff]  ;;  %v3154_v47 = vld [vmem:[#allocation8 + $0x288] sm:$0xff]  ;;  %12280 = vst [vmem:[#allocation36_spill] sm:$0xff] %v10114_v48  ;;  %12282 = vst [vmem:[#allocation38_spill] sm:$0xff] %v10120_v55 }
 0x1ee   :  { %12279 = vst [vmem:[#allocation35_spill] sm:$0xff] %v10111_v45  ;;  %12283 = vst [vmem:[#allocation39_spill] sm:$0xff] %v10123_v56  ;;  %v10127_v57 = vpack.c.bf16 %v3147_v46, %v3139_v44  ;;  %v10132_v60 = vpack.c.bf16 %v3162_v53, %v3154_v47  ;;  %v3210_v36 = vld [vmem:[#allocation8 + $0x448] sm:$0xff]  ;;  %v3212_v29 = vld [vmem:[#allocation8 + $0x458] sm:$0xff] }
 0x1ef   :  { %12285 = vst [vmem:[#allocation41_spill] sm:$0xff] %v10130_v59  ;;  %v3290_v34 = vld [vmem:[#allocation8 + $0x6c8] sm:$0xff] }
 0x1f0   :  { %2916 = vmatpush1.bf16.msra.mxu0 %v7273_v51  ;;  %3045 = vmatpush1.bf16.msra.mxu1 %v7275_v54  ;;  %v10117_v51 = vpack.c.bf16 %v3145_v43, %v3137_v42  ;;  %v579_v54 = vld [vmem:[#allocation7] sm:$0xff]  ;;  %12284 = vst [vmem:[#allocation40_spill] sm:$0xff] %v10127_v57  ;;  %12286 = vst [vmem:[#allocation42_spill] sm:$0xff] %v10132_v60 }
 0x1f1   :  { %7328 = vmatprep.subr.bf16.mxu0 %v10057_v52  ;;  %7392 = vmatprep.subr.bf16.mxu1 %v10059_v58  ;;  %v584_v7 = vrot.slane %v579_v54, %v10114_v48  ;;  %v592_v14 = vrot.slane %v579_v54, %v10120_v55  ;;  %v588_v15 = vrot.slane %v579_v54, %v10123_v56  ;;  %v3196_v42 = vld [vmem:[#allocation8 + $0x3d8] sm:$0xff]  ;;  %v3275_v56 = vld [vmem:[#allocation8 + $0x650] sm:$0xff]  ;;  %v3282_v48 = vld [vmem:[#allocation8 + $0x688] sm:$0xff] }
 0x1f2   :  { %12281 = vst [vmem:[#allocation37_spill] sm:$0xff] %v10117_v51 }
 0x1f3   :  { %2918 = vmatmul.mubr.bf16.vlgmr.msra.gmra.mrb[4].mxu0 %v10043_v37  ;;  %3047 = vmatmul.mubr.bf16.vlgmr.msra.gmra.mrb[4].mxu1 %v10043_v37  ;;  %v3115_v37 = vld [vmem:[#allocation8 + $0x150] sm:$0xff] }
 0x1f4   :  { %7330 = vmatpush1.bf16.msra.mxu0 %v10061_v0  ;;  %7394 = vmatpush1.bf16.msra.mxu1 %v10064_v1  ;;  %v10092_v24 = vpack.c.bf16 %v3115_v37, %v3107_v16  ;;  %v3169_v16 = vld [vmem:[#allocation8 + $0x300] sm:$0xff]  ;;  %v596_v37 = vrot.slane %v579_v54, %v10130_v59  ;;  %v3274_v59 = vld [vmem:[#allocation8 + $0x648] sm:$0xff] }
 0x1f5   :  { %7332 = vmatprep.subr.bf16.mxu0 %v10066_v2  ;;  %7396 = vmatprep.subr.bf16.mxu1 %v10069_v12  ;;  %v10154_v53 = vpack.c.bf16 %v3177_v20, %v3169_v16  ;;  %v10163_v20 = vpack.c.bf16 %v3196_v42, %v3188_v33  ;;  %v10175_v33 = vpack.c.bf16 %v3212_v29, %v3204_v27  ;;  %v3211_v42 = vld [vmem:[#allocation8 + $0x450] sm:$0xff]  ;;  %v3233_v29 = vld [vmem:[#allocation8 + $0x500] sm:$0xff] }
 0x1f6   :  { %3393 = vmatprep.mubr.f32.mxu0 %v11955_v23  ;;  %3464 = vmatprep.mubr.f32.mxu1 %v11955_v23  ;;  %12272 = vst [vmem:[#allocation28_spill] sm:$0xff] %v10092_v24  ;;  %v3266_v23 = vld [vmem:[#allocation8 + $0x608] sm:$0xff] }
 0x1f7   :  { %12292 = vst [vmem:[#allocation48_spill] sm:$0xff] %v10154_v53  ;;  %12295 = vst [vmem:[#allocation51_spill] sm:$0xff] %v10163_v20 }
 0x1f8   :  { %7334 = vmatpush1.bf16.msra.mxu0 %v10074_v10  ;;  %7398 = vmatpush1.bf16.msra.mxu1 %v10078_v11  ;;  %12299 = vst [vmem:[#allocation55_spill] sm:$0xff] %v10175_v33 }
 0x1f9   :  { %7336 = vmatprep.subr.bf16.mxu0 %v10080_v13  ;;  %7400 = vmatprep.subr.bf16.mxu1 %v10083_v17 }
 0x1fc   :  { %7338 = vmatpush1.bf16.msra.mxu0 %v10088_v22  ;;  %7402 = vmatpush1.bf16.msra.mxu1 %v10092_v24 }
 0x1fd   :  { %7340 = vmatprep.subr.bf16.mxu0 %v10094_v25  ;;  %7404 = vmatprep.subr.bf16.mxu1 %v10097_v28 }
 0x200   :  { %7342 = vmatpush1.bf16.msra.mxu0 %v10102_v35  ;;  %7406 = vmatpush1.bf16.msra.mxu1 %v10106_v38 }
 0x201   :  { %7344 = vmatprep.subr.bf16.mxu0 %v10108_v39  ;;  %7408 = vmatprep.subr.bf16.mxu1 %v10111_v45 }
 0x204   :  { %7346 = vmatpush1.bf16.msra.mxu0 %v10117_v51  ;;  %7410 = vmatpush1.bf16.msra.mxu1 %v10127_v57 }
 0x205   :  { %7348 = vmatprep.subr.bf16.mxu0 %v10132_v60  ;;  %7412 = vmatprep.subr.bf16.mxu1 %v10135_v3 }
 0x206   :  { %v2661_v26 = vpop.f32.mrb[0].mxu0  ;;  %v2790_v31 = vpop.f32.mrb[0].mxu1 }
 0x207   :  { %v9375_v30 = vadd.f32 %v2661_v26, %v584_v7  ;;  %v2663_v32 = vpop.f32.mrb[1].mxu0  ;;  %v9379_v43 = vadd.f32 %v2790_v31, %v592_v14  ;;  %v2792_v46 = vpop.f32.mrb[1].mxu1  ;;  %v3201_v31 = vld [vmem:[#allocation8 + $0x400] sm:$0xff] }
 0x208   :  { %v9376_v44 = vadd.f32 %v2663_v32, %v588_v15  ;;  %v2665_v47 = vpop.f32.mrb[2].mxu0  ;;  %7350 = vmatpush1.bf16.msra.mxu0 %v10141_v6  ;;  %v9380_v50 = vadd.f32 %v2792_v46, %v596_v37  ;;  %v2794_v61 = vpop.f32.mrb[2].mxu1  ;;  %7414 = vmatpush1.bf16.msra.mxu1 %v10146_v18  ;;  %v3209_v32 = vld [vmem:[#allocation8 + $0x440] sm:$0xff]  ;;  %v3220_v46 = vld [vmem:[#allocation8 + $0x498] sm:$0xff] }
 0x209   :  { %3057 = vst [vmem:[#allocation2] sm:$0xff] %v9375_v30  ;;  %v9377_v54 = vadd.f32 %v2665_v47, %v584_v7  ;;  %v2667_v62 = vpop.f32.mrb[3].mxu0  ;;  %7352 = vmatprep.subr.bf16.mxu0 %v10148_v19  ;;  %3059 = vst [vmem:[#allocation2 + $0x10] sm:$0xff] %v9379_v43  ;;  %v9381_v8 = vadd.f32 %v2794_v61, %v592_v14  ;;  %v2796_v16 = vpop.f32.mrb[3].mxu1  ;;  %7416 = vmatprep.subr.bf16.mxu1 %v10151_v40  ;;  %v3195_v7 = vld [vmem:[#allocation8 + $0x3d0] sm:$0xff]  ;;  %v3218_v43 = vld [vmem:[#allocation8 + $0x488] sm:$0xff] }
 0x20a   :  { %3058 = vst [vmem:[#allocation2 + $0x8] sm:$0xff] %v9376_v44  ;;  %v9378_v9 = vadd.f32 %v2667_v62, %v588_v15  ;;  %3060 = vst [vmem:[#allocation2 + $0x18] sm:$0xff] %v9380_v50  ;;  %v9382_v26 = vadd.f32 %v2796_v16, %v596_v37  ;;  %v10166_v30 = vpack.c.bf16 %v3193_v41, %v3185_v4  ;;  %v3203_v37 = vld [vmem:[#allocation8 + $0x410] sm:$0xff]  ;;  %v3226_v44 = vld [vmem:[#allocation8 + $0x4c8] sm:$0xff] }
 0x20b   :  { %3065 = vst [vmem:[#allocation2 + $0x40] sm:$0xff] %v9377_v54  ;;  %3067 = vst [vmem:[#allocation2 + $0x50] sm:$0xff] %v9381_v8  ;;  %v10170_v14 = vpack.c.bf16 %v3195_v7, %v3187_v5  ;;  %v10172_v15 = vpack.c.bf16 %v3210_v36, %v3202_v21  ;;  %v3228_v47 = vld [vmem:[#allocation8 + $0x4d8] sm:$0xff]  ;;  %v10178_v50 = vpack.c.bf16 %v3209_v32, %v3201_v31  ;;  %v3217_v62 = vld [vmem:[#allocation8 + $0x480] sm:$0xff] }
 0x20c   :  { %3066 = vst [vmem:[#allocation2 + $0x48] sm:$0xff] %v9378_v9  ;;  %7354 = vmatpush1.bf16.msra.mxu0 %v10154_v53  ;;  %12296 = vst [vmem:[#allocation52_spill] sm:$0xff] %v10166_v30  ;;  %7418 = vmatpush1.bf16.msra.mxu1 %v10156_v49  ;;  %v10182_v54 = vpack.c.bf16 %v3211_v42, %v3203_v37  ;;  %v10184_v61 = vpack.c.bf16 %v3226_v44, %v3218_v43  ;;  %v3225_v4 = vld [vmem:[#allocation8 + $0x4c0] sm:$0xff]  ;;  %v3219_v41 = vld [vmem:[#allocation8 + $0x490] sm:$0xff] }
 0x20d   :  { %3068 = vst [vmem:[#allocation2 + $0x58] sm:$0xff] %v9382_v26  ;;  %7356 = vmatprep.subr.bf16.mxu0 %v10160_v63  ;;  %12297 = vst [vmem:[#allocation53_spill] sm:$0xff] %v10170_v14  ;;  %7420 = vmatprep.subr.bf16.mxu1 %v10163_v20  ;;  %v10187_v5 = vpack.c.bf16 %v3228_v47, %v3220_v46  ;;  %v3227_v8 = vld [vmem:[#allocation8 + $0x4d0] sm:$0xff]  ;;  %v3234_v9 = vld [vmem:[#allocation8 + $0x508] sm:$0xff]  ;;  %v10190_v36 = vpack.c.bf16 %v3225_v4, %v3217_v62 }
 0x20e   :  { %12298 = vst [vmem:[#allocation54_spill] sm:$0xff] %v10172_v15  ;;  %12300 = vst [vmem:[#allocation56_spill] sm:$0xff] %v10178_v50  ;;  %v3242_v16 = vld [vmem:[#allocation8 + $0x548] sm:$0xff]  ;;  %v3236_v7 = vld [vmem:[#allocation8 + $0x518] sm:$0xff]  ;;  %v10194_v26 = vpack.c.bf16 %v3227_v8, %v3219_v41 }
 0x20f   :  { %12301 = vst [vmem:[#allocation57_spill] sm:$0xff] %v10182_v54  ;;  %12302 = vst [vmem:[#allocation58_spill] sm:$0xff] %v10184_v61  ;;  %v3244_v21 = vld [vmem:[#allocation8 + $0x558] sm:$0xff]  ;;  %v10196_v27 = vpack.c.bf16 %v3242_v16, %v3234_v9  ;;  %v3241_v31 = vld [vmem:[#allocation8 + $0x540] sm:$0xff] }
 0x210   :  { %7358 = vmatpush1.bf16.msra.mxu0 %v10166_v30  ;;  %7422 = vmatpush1.bf16.msra.mxu1 %v10170_v14  ;;  %12303 = vst [vmem:[#allocation59_spill] sm:$0xff] %v10187_v5  ;;  %12304 = vst [vmem:[#allocation60_spill] sm:$0xff] %v10190_v36  ;;  %v3235_v32 = vld [vmem:[#allocation8 + $0x510] sm:$0xff]  ;;  %v10199_v37 = vpack.c.bf16 %v3244_v21, %v3236_v7  ;;  %v3250_v43 = vld [vmem:[#allocation8 + $0x588] sm:$0xff]  ;;  %v10202_v62 = vpack.c.bf16 %v3241_v31, %v3233_v29 }
 0x211   :  { %7360 = vmatprep.subr.bf16.mxu0 %v10172_v15  ;;  %7424 = vmatprep.subr.bf16.mxu1 %v10175_v33  ;;  %12305 = vst [vmem:[#allocation61_spill] sm:$0xff] %v10194_v26  ;;  %12306 = vst [vmem:[#allocation62_spill] sm:$0xff] %v10196_v27  ;;  %v3243_v42 = vld [vmem:[#allocation8 + $0x550] sm:$0xff]  ;;  %v3258_v44 = vld [vmem:[#allocation8 + $0x5c8] sm:$0xff] }
 0x212   :  { %12307 = vst [vmem:[#allocation63_spill] sm:$0xff] %v10199_v37  ;;  %v3252_v46 = vld [vmem:[#allocation8 + $0x598] sm:$0xff]  ;;  %12308 = vst [vmem:[#allocation64_spill] sm:$0xff] %v10202_v62  ;;  %v10206_v4 = vpack.c.bf16 %v3243_v42, %v3235_v32  ;;  %v10208_v41 = vpack.c.bf16 %v3258_v44, %v3250_v43  ;;  %v3249_v8 = vld [vmem:[#allocation8 + $0x580] sm:$0xff]  ;;  %v10220_v42 = vpack.c.bf16 %v3274_v59, %v3266_v23 }
 0x213   :  { %v3260_v47 = vld [vmem:[#allocation8 + $0x5d8] sm:$0xff]  ;;  %v3257_v9 = vld [vmem:[#allocation8 + $0x5c0] sm:$0xff]  ;;  %v3251_v16 = vld [vmem:[#allocation8 + $0x590] sm:$0xff]  ;;  %v10232_v59 = vpack.c.bf16 %v3290_v34, %v3282_v48 }
 0x214   :  { %7362 = vmatpush1.bf16.msra.mxu0 %v10178_v50  ;;  %7426 = vmatpush1.bf16.msra.mxu1 %v10182_v54  ;;  %12309 = vst [vmem:[#allocation65_spill] sm:$0xff] %v10206_v4  ;;  %12310 = vst [vmem:[#allocation66_spill] sm:$0xff] %v10208_v41  ;;  %v10211_v7 = vpack.c.bf16 %v3260_v47, %v3252_v46  ;;  %v3259_v21 = vld [vmem:[#allocation8 + $0x5d0] sm:$0xff]  ;;  %v3268_v29 = vld [vmem:[#allocation8 + $0x618] sm:$0xff]  ;;  %v10214_v55 = vpack.c.bf16 %v3257_v9, %v3249_v8 }
 0x215   :  { %7364 = vmatprep.subr.bf16.mxu0 %v10184_v61  ;;  %7428 = vmatprep.subr.bf16.mxu1 %v10187_v5  ;;  %v3276_v31 = vld [vmem:[#allocation8 + $0x658] sm:$0xff]  ;;  %v10218_v32 = vpack.c.bf16 %v3259_v21, %v3251_v16  ;;  %12314 = vst [vmem:[#allocation70_spill] sm:$0xff] %v10220_v42  ;;  %v3265_v43 = vld [vmem:[#allocation8 + $0x600] sm:$0xff]  ;;  %v3267_v46 = vld [vmem:[#allocation8 + $0x610] sm:$0xff] }
 0x216   :  { %12311 = vst [vmem:[#allocation67_spill] sm:$0xff] %v10211_v7  ;;  %12312 = vst [vmem:[#allocation68_spill] sm:$0xff] %v10214_v55  ;;  %v3273_v44 = vld [vmem:[#allocation8 + $0x640] sm:$0xff]  ;;  %v10223_v47 = vpack.c.bf16 %v3276_v31, %v3268_v29  ;;  %v3284_v8 = vld [vmem:[#allocation8 + $0x698] sm:$0xff]  ;;  %v10230_v23 = vpack.c.bf16 %v3275_v56, %v3267_v46 }
 0x217   :  { %12313 = vst [vmem:[#allocation69_spill] sm:$0xff] %v10218_v32  ;;  %v3292_v9 = vld [vmem:[#allocation8 + $0x6d8] sm:$0xff]  ;;  %12318 = vst [vmem:[#allocation74_spill] sm:$0xff] %v10232_v59  ;;  %v3281_v16 = vld [vmem:[#allocation8 + $0x680] sm:$0xff] }
 0x218   :  { %7366 = vmatpush1.bf16.msra.mxu0 %v10190_v36  ;;  %7430 = vmatpush1.bf16.msra.mxu1 %v10194_v26  ;;  %12315 = vst [vmem:[#allocation71_spill] sm:$0xff] %v10223_v47  ;;  %12317 = vst [vmem:[#allocation73_spill] sm:$0xff] %v10230_v23  ;;  %v3289_v21 = vld [vmem:[#allocation8 + $0x6c0] sm:$0xff]  ;;  %v3283_v29 = vld [vmem:[#allocation8 + $0x690] sm:$0xff]  ;;  %v10235_v31 = vpack.c.bf16 %v3292_v9, %v3284_v8 }
 0x219   :  { %7368 = vmatprep.subr.bf16.mxu0 %v10196_v27  ;;  %7432 = vmatprep.subr.bf16.mxu1 %v10199_v37  ;;  %v3297_v56 = vld [vmem:[#allocation8 + $0x700] sm:$0xff]  ;;  %v3299_v8 = vld [vmem:[#allocation8 + $0x710] sm:$0xff] }
 0x21a   :  { %12319 = vst [vmem:[#allocation75_spill] sm:$0xff] %v10235_v31  ;;  %v3305_v46 = vld [vmem:[#allocation8 + $0x740] sm:$0xff] }
 0x21c   :  { %7370 = vmatpush1.bf16.msra.mxu0 %v10202_v62  ;;  %7434 = vmatpush1.bf16.msra.mxu1 %v10206_v4  ;;  %v10226_v4 = vpack.c.bf16 %v3273_v44, %v3265_v43  ;;  %v3300_v43 = vld [vmem:[#allocation8 + $0x718] sm:$0xff]  ;;  %v3126_v62 = vld [vmem:[#allocation8 + $0x1a8] sm:$0xff] }
 0x21d   :  { %7372 = vmatprep.subr.bf16.mxu0 %v10208_v41  ;;  %7436 = vmatprep.subr.bf16.mxu1 %v10211_v7  ;;  %v3291_v7 = vld [vmem:[#allocation8 + $0x6d0] sm:$0xff]  ;;  %v3298_v41 = vld [vmem:[#allocation8 + $0x708] sm:$0xff]  ;;  %v3308_v44 = vld [vmem:[#allocation8 + $0x758] sm:$0xff] }
 0x21e   :  { %12316 = vst [vmem:[#allocation72_spill] sm:$0xff] %v10226_v4  ;;  %v10242_v34 = vpack.c.bf16 %v3291_v7, %v3283_v29  ;;  %v10247_v9 = vpack.c.bf16 %v3308_v44, %v3300_v43  ;;  %v3313_v7 = vld [vmem:[#allocation8 + $0x780] sm:$0xff]  ;;  %v3315_v43 = vld [vmem:[#allocation8 + $0x790] sm:$0xff] }
 0x21f   :  { %v3321_v29 = vld [vmem:[#allocation8 + $0x7c0] sm:$0xff] }
 0x220   :  { %7374 = vmatpush1.bf16.msra.mxu0 %v10214_v55  ;;  %7438 = vmatpush1.bf16.msra.mxu1 %v10218_v32  ;;  %v3306_v55 = vld [vmem:[#allocation8 + $0x748] sm:$0xff]  ;;  %v10238_v32 = vpack.c.bf16 %v3289_v21, %v3281_v16  ;;  %12321 = vst [vmem:[#allocation77_spill] sm:$0xff] %v10242_v34  ;;  %12323 = vst [vmem:[#allocation79_spill] sm:$0xff] %v10247_v9  ;;  %v3316_v16 = vld [vmem:[#allocation8 + $0x798] sm:$0xff] }
 0x221   :  { %7376 = vmatprep.subr.bf16.mxu0 %v10220_v42  ;;  %7440 = vmatprep.subr.bf16.mxu1 %v10223_v47  ;;  %v10244_v48 = vpack.c.bf16 %v3306_v55, %v3298_v41  ;;  %v3307_v47 = vld [vmem:[#allocation8 + $0x750] sm:$0xff]  ;;  %v3314_v42 = vld [vmem:[#allocation8 + $0x788] sm:$0xff]  ;;  %v3324_v21 = vld [vmem:[#allocation8 + $0x7d8] sm:$0xff] }
 0x222   :  { %12320 = vst [vmem:[#allocation76_spill] sm:$0xff] %v10238_v32  ;;  %v10254_v55 = vpack.c.bf16 %v3307_v47, %v3299_v8  ;;  %v10259_v44 = vpack.c.bf16 %v3324_v21, %v3316_v16  ;;  %v3077_v47 = vld [vmem:[#allocation8 + $0x20] sm:$0xff]  ;;  %v3079_v16 = vld [vmem:[#allocation8 + $0x30] sm:$0xff] }
 0x223   :  { %12322 = vst [vmem:[#allocation78_spill] sm:$0xff] %v10244_v48  ;;  %v3085_v8 = vld [vmem:[#allocation8 + $0x60] sm:$0xff] }
 0x224   :  { %7378 = vmatpush1.bf16.msra.mxu0 %v10226_v4  ;;  %7442 = vmatpush1.bf16.msra.mxu1 %v10230_v23  ;;  %v3322_v4 = vld [vmem:[#allocation8 + $0x7c8] sm:$0xff]  ;;  %v10250_v23 = vpack.c.bf16 %v3305_v46, %v3297_v56  ;;  %12325 = vst [vmem:[#allocation81_spill] sm:$0xff] %v10254_v55  ;;  %12327 = vst [vmem:[#allocation83_spill] sm:$0xff] %v10259_v44  ;;  %v3080_v56 = vld [vmem:[#allocation8 + $0x38] sm:$0xff] }
 0x225   :  { %7380 = vmatprep.subr.bf16.mxu0 %v10232_v59  ;;  %7444 = vmatprep.subr.bf16.mxu1 %v10235_v31  ;;  %v10256_v41 = vpack.c.bf16 %v3322_v4, %v3314_v42  ;;  %v3323_v31 = vld [vmem:[#allocation8 + $0x7d0] sm:$0xff]  ;;  %v3078_v59 = vld [vmem:[#allocation8 + $0x28] sm:$0xff]  ;;  %v3088_v46 = vld [vmem:[#allocation8 + $0x78] sm:$0xff] }
 0x226   :  { %12324 = vst [vmem:[#allocation80_spill] sm:$0xff] %v10250_v23  ;;  %v10266_v4 = vpack.c.bf16 %v3323_v31, %v3315_v43  ;;  %v10271_v21 = vpack.c.bf16 %v3088_v46, %v3080_v56  ;;  %v3093_v31 = vld [vmem:[#allocation8 + $0xa0] sm:$0xff]  ;;  %v3095_v56 = vld [vmem:[#allocation8 + $0xb0] sm:$0xff] }
 0x227   :  { %12326 = vst [vmem:[#allocation82_spill] sm:$0xff] %v10256_v41  ;;  %v3101_v43 = vld [vmem:[#allocation8 + $0xe0] sm:$0xff] }
 0x228   :  { %7382 = vmatpush1.bf16.msra.mxu0 %v10238_v32  ;;  %7446 = vmatpush1.bf16.msra.mxu1 %v10242_v34  ;;  %v3086_v32 = vld [vmem:[#allocation8 + $0x68] sm:$0xff]  ;;  %v10262_v34 = vpack.c.bf16 %v3321_v29, %v3313_v7  ;;  %12329 = vst [vmem:[#allocation85_spill] sm:$0xff] %v10266_v4  ;;  %12331 = vst [vmem:[#allocation87_spill] sm:$0xff] %v10271_v21  ;;  %v3096_v7 = vld [vmem:[#allocation8 + $0xb8] sm:$0xff] }
 0x229   :  { %7384 = vmatprep.subr.bf16.mxu0 %v10244_v48  ;;  %7448 = vmatprep.subr.bf16.mxu1 %v10247_v9  ;;  %v10268_v42 = vpack.c.bf16 %v3086_v32, %v3078_v59  ;;  %v3087_v9 = vld [vmem:[#allocation8 + $0x70] sm:$0xff]  ;;  %v3094_v48 = vld [vmem:[#allocation8 + $0xa8] sm:$0xff]  ;;  %v3104_v29 = vld [vmem:[#allocation8 + $0xf8] sm:$0xff] }
 0x22a   :  { %12328 = vst [vmem:[#allocation84_spill] sm:$0xff] %v10262_v34  ;;  %v10278_v32 = vpack.c.bf16 %v3087_v9, %v3079_v16  ;;  %v10283_v46 = vpack.c.bf16 %v3104_v29, %v3096_v7  ;;  %v3109_v16 = vld [vmem:[#allocation8 + $0x120] sm:$0xff]  ;;  %v3111_v29 = vld [vmem:[#allocation8 + $0x130] sm:$0xff] }
 0x22b   :  { %12330 = vst [vmem:[#allocation86_spill] sm:$0xff] %v10268_v42  ;;  %v3117_v7 = vld [vmem:[#allocation8 + $0x160] sm:$0xff] }
 0x22c   :  { %7386 = vmatpush1.bf16.msra.mxu0 %v10250_v23  ;;  %7450 = vmatpush1.bf16.msra.mxu1 %v10254_v55  ;;  %v3102_v23 = vld [vmem:[#allocation8 + $0xe8] sm:$0xff]  ;;  %v10274_v55 = vpack.c.bf16 %v3085_v8, %v3077_v47  ;;  %12333 = vst [vmem:[#allocation89_spill] sm:$0xff] %v10278_v32  ;;  %12335 = vst [vmem:[#allocation91_spill] sm:$0xff] %v10283_v46  ;;  %v12336_v47 = vmov 0.0   ;;  %v3112_v8 = vld [vmem:[#allocation8 + $0x138] sm:$0xff] }
 0x22d   :  { %7388 = vmatprep.subr.bf16.mxu0 %v10256_v41  ;;  %7452 = vmatprep.subr.bf16.mxu1 %v10259_v44  ;;  %v10280_v59 = vpack.c.bf16 %v3102_v23, %v3094_v48  ;;  %v3103_v44 = vld [vmem:[#allocation8 + $0xf0] sm:$0xff]  ;;  %v3110_v41 = vld [vmem:[#allocation8 + $0x128] sm:$0xff]  ;;  %v10288_v23 = vpack.c.bf16 %v3101_v43, %v3093_v31  ;;  %v3128_v31 = vld [vmem:[#allocation8 + $0x1b8] sm:$0xff] }
 0x22e   :  { %12332 = vst [vmem:[#allocation88_spill] sm:$0xff] %v10274_v55  ;;  %v10292_v48 = vpack.c.bf16 %v3103_v44, %v3095_v56  ;;  %v3136_v43 = vld [vmem:[#allocation8 + $0x1f8] sm:$0xff]  ;;  %v3133_v56 = vld [vmem:[#allocation8 + $0x1e0] sm:$0xff] }
 0x22f   :  { %12334 = vst [vmem:[#allocation90_spill] sm:$0xff] %v10280_v59  ;;  %12337 = vst [vmem:[#allocation92_spill] sm:$0xff] %v10288_v23 }
 0x230   :  { %7390 = vmatpush1.bf16.msra.mxu0 %v10262_v34  ;;  %7454 = vmatpush1.bf16.msra.mxu1 %v10266_v4  ;;  %v3118_v34 = vld [vmem:[#allocation8 + $0x168] sm:$0xff]  ;;  %v3120_v4 = vld [vmem:[#allocation8 + $0x178] sm:$0xff]  ;;  %12338 = vst [vmem:[#allocation93_spill] sm:$0xff] %v10292_v48 }
 0x231   :  { %7456 = vmatprep.subr.bf16.mxu0 %v10268_v42  ;;  %7520 = vmatprep.subr.bf16.mxu1 %v10271_v21  ;;  %v10294_v9 = vpack.c.bf16 %v3118_v34, %v3110_v41  ;;  %v10297_v21 = vpack.c.bf16 %v3120_v4, %v3112_v8  ;;  %v3119_v42 = vld [vmem:[#allocation8 + $0x170] sm:$0xff]  ;;  %v10302_v34 = vpack.c.bf16 %v3117_v7, %v3109_v16  ;;  %v3125_v4 = vld [vmem:[#allocation8 + $0x1a0] sm:$0xff]  ;;  %v3144_v16 = vld [vmem:[#allocation8 + $0x238] sm:$0xff] }
 0x232   :  { %v10306_v41 = vpack.c.bf16 %v3119_v42, %v3111_v29  ;;  %v3127_v8 = vld [vmem:[#allocation8 + $0x1b0] sm:$0xff]  ;;  %v3152_v7 = vld [vmem:[#allocation8 + $0x278] sm:$0xff]  ;;  %v3141_v42 = vld [vmem:[#allocation8 + $0x220] sm:$0xff] }
 0x233   :  { %3394 = vmatmul.mubr.f32.vlgmr.msra.gmra.mrb[8].mxu0 %v12336_v47  ;;  %3465 = vmatmul.mubr.f32.vlgmr.msra.gmra.mrb[8].mxu1 %v12336_v47  ;;  %12339 = vst [vmem:[#allocation94_spill] sm:$0xff] %v10294_v9  ;;  %12340 = vst [vmem:[#allocation95_spill] sm:$0xff] %v10297_v21  ;;  %v3149_v29 = vld [vmem:[#allocation8 + $0x260] sm:$0xff] }
 0x234   :  { %7458 = vmatpush1.bf16.msra.mxu0 %v10274_v55  ;;  %7522 = vmatpush1.bf16.msra.mxu1 %v10278_v32  ;;  %v3134_v55 = vld [vmem:[#allocation8 + $0x1e8] sm:$0xff]  ;;  %12341 = vst [vmem:[#allocation96_spill] sm:$0xff] %v10302_v34  ;;  %12342 = vst [vmem:[#allocation97_spill] sm:$0xff] %v10306_v41 }
 0x235   :  { %7460 = vmatprep.subr.bf16.mxu0 %v10280_v59  ;;  %7524 = vmatprep.subr.bf16.mxu1 %v10283_v46  ;;  %v10308_v44 = vpack.c.bf16 %v3134_v55, %v3126_v62  ;;  %v10311_v46 = vpack.c.bf16 %v3136_v43, %v3128_v31  ;;  %v3135_v59 = vld [vmem:[#allocation8 + $0x1f0] sm:$0xff]  ;;  %v3142_v32 = vld [vmem:[#allocation8 + $0x228] sm:$0xff]  ;;  %v10323_v43 = vpack.c.bf16 %v3152_v7, %v3144_v16 }
 0x236   :  { %3535 = vmatprep.mubr.f32.mxu0 %v12336_v47  ;;  %3606 = vmatprep.mubr.f32.mxu1 %v12336_v47  ;;  %v10318_v62 = vpack.c.bf16 %v3135_v59, %v3127_v8  ;;  %v3143_v31 = vld [vmem:[#allocation8 + $0x230] sm:$0xff]  ;;  %v3165_v8 = vld [vmem:[#allocation8 + $0x2e0] sm:$0xff] }
 0x237   :  { %12343 = vst [vmem:[#allocation98_spill] sm:$0xff] %v10308_v44  ;;  %12344 = vst [vmem:[#allocation99_spill] sm:$0xff] %v10311_v46  ;;  %v3159_v16 = vld [vmem:[#allocation8 + $0x2b0] sm:$0xff] }
 0x238   :  { %7462 = vmatpush1.bf16.msra.mxu0 %v10288_v23  ;;  %7526 = vmatpush1.bf16.msra.mxu1 %v10292_v48  ;;  %v3150_v23 = vld [vmem:[#allocation8 + $0x268] sm:$0xff]  ;;  %v10314_v48 = vpack.c.bf16 %v3133_v56, %v3125_v4  ;;  %12346 = vst [vmem:[#allocation101_spill] sm:$0xff] %v10318_v62  ;;  %12348 = vst [vmem:[#allocation103_spill] sm:$0xff] %v10323_v43  ;;  %v3160_v4 = vld [vmem:[#allocation8 + $0x2b8] sm:$0xff] }
 0x239   :  { %7464 = vmatprep.subr.bf16.mxu0 %v10294_v9  ;;  %7528 = vmatprep.subr.bf16.mxu1 %v10297_v21  ;;  %v10320_v55 = vpack.c.bf16 %v3150_v23, %v3142_v32  ;;  %v3151_v21 = vld [vmem:[#allocation8 + $0x270] sm:$0xff]  ;;  %v3158_v9 = vld [vmem:[#allocation8 + $0x2a8] sm:$0xff]  ;;  %v3168_v56 = vld [vmem:[#allocation8 + $0x2f8] sm:$0xff] }
 0x23a   :  { %12345 = vst [vmem:[#allocation100_spill] sm:$0xff] %v10314_v48  ;;  %v10330_v32 = vpack.c.bf16 %v3151_v21, %v3143_v31  ;;  %v3157_v23 = vld [vmem:[#allocation8 + $0x2a0] sm:$0xff]  ;;  %v10335_v7 = vpack.c.bf16 %v3168_v56, %v3160_v4  ;;  %v3175_v4 = vld [vmem:[#allocation8 + $0x330] sm:$0xff] }
 0x23b   :  { %12347 = vst [vmem:[#allocation102_spill] sm:$0xff] %v10320_v55  ;;  %v3181_v31 = vld [vmem:[#allocation8 + $0x360] sm:$0xff] }
 0x23c   :  { %7466 = vmatpush1.bf16.msra.mxu0 %v10302_v34  ;;  %7530 = vmatpush1.bf16.msra.mxu1 %v10306_v41  ;;  %v3166_v34 = vld [vmem:[#allocation8 + $0x2e8] sm:$0xff]  ;;  %v10326_v41 = vpack.c.bf16 %v3149_v29, %v3141_v42  ;;  %12350 = vst [vmem:[#allocation105_spill] sm:$0xff] %v10330_v32  ;;  %12352 = vst [vmem:[#allocation107_spill] sm:$0xff] %v10335_v7  ;;  %v3176_v42 = vld [vmem:[#allocation8 + $0x338] sm:$0xff] }
 0x23d   :  { %7468 = vmatprep.subr.bf16.mxu0 %v10308_v44  ;;  %7532 = vmatprep.subr.bf16.mxu1 %v10311_v46  ;;  %v10332_v59 = vpack.c.bf16 %v3166_v34, %v3158_v9  ;;  %v3167_v46 = vld [vmem:[#allocation8 + $0x2f0] sm:$0xff]  ;;  %v3174_v44 = vld [vmem:[#allocation8 + $0x328] sm:$0xff]  ;;  %v3184_v29 = vld [vmem:[#allocation8 + $0x378] sm:$0xff] }
 0x23e   :  { %12349 = vst [vmem:[#allocation104_spill] sm:$0xff] %v10326_v41  ;;  %v10342_v21 = vpack.c.bf16 %v3167_v46, %v3159_v16  ;;  %v3173_v34 = vld [vmem:[#allocation8 + $0x320] sm:$0xff]  ;;  %v10347_v56 = vpack.c.bf16 %v3184_v29, %v3176_v42  ;;  %v3191_v42 = vld [vmem:[#allocation8 + $0x3b0] sm:$0xff] }
 0x23f   :  { %12351 = vst [vmem:[#allocation106_spill] sm:$0xff] %v10332_v59  ;;  %v3197_v16 = vld [vmem:[#allocation8 + $0x3e0] sm:$0xff] }
 0x240   :  { %7470 = vmatpush1.bf16.msra.mxu0 %v10314_v48  ;;  %7534 = vmatpush1.bf16.msra.mxu1 %v10318_v62  ;;  %v3182_v48 = vld [vmem:[#allocation8 + $0x368] sm:$0xff]  ;;  %v10338_v62 = vpack.c.bf16 %v3165_v8, %v3157_v23  ;;  %12354 = vst [vmem:[#allocation109_spill] sm:$0xff] %v10342_v21  ;;  %12356 = vst [vmem:[#allocation111_spill] sm:$0xff] %v10347_v56  ;;  %v3192_v23 = vld [vmem:[#allocation8 + $0x3b8] sm:$0xff] }
 0x241   :  { %7472 = vmatprep.subr.bf16.mxu0 %v10320_v55  ;;  %7536 = vmatprep.subr.bf16.mxu1 %v10323_v43  ;;  %v10344_v9 = vpack.c.bf16 %v3182_v48, %v3174_v44  ;;  %v3183_v43 = vld [vmem:[#allocation8 + $0x370] sm:$0xff]  ;;  %v3190_v55 = vld [vmem:[#allocation8 + $0x3a8] sm:$0xff]  ;;  %v3200_v8 = vld [vmem:[#allocation8 + $0x3f8] sm:$0xff] }
 0x242   :  { %12353 = vst [vmem:[#allocation108_spill] sm:$0xff] %v10338_v62  ;;  %v10354_v46 = vpack.c.bf16 %v3183_v43, %v3175_v4  ;;  %v3189_v44 = vld [vmem:[#allocation8 + $0x3a0] sm:$0xff]  ;;  %v10359_v29 = vpack.c.bf16 %v3200_v8, %v3192_v23  ;;  %v3207_v23 = vld [vmem:[#allocation8 + $0x430] sm:$0xff] }
 0x243   :  { %12355 = vst [vmem:[#allocation110_spill] sm:$0xff] %v10344_v9  ;;  %v3205_v43 = vld [vmem:[#allocation8 + $0x420] sm:$0xff] }
 0x244   :  { %7474 = vmatpush1.bf16.msra.mxu0 %v10326_v41  ;;  %7538 = vmatpush1.bf16.msra.mxu1 %v10330_v32  ;;  %v3198_v41 = vld [vmem:[#allocation8 + $0x3e8] sm:$0xff]  ;;  %v10350_v32 = vpack.c.bf16 %v3181_v31, %v3173_v34  ;;  %12358 = vst [vmem:[#allocation113_spill] sm:$0xff] %v10354_v46  ;;  %12360 = vst [vmem:[#allocation115_spill] sm:$0xff] %v10359_v29  ;;  %v3208_v34 = vld [vmem:[#allocation8 + $0x438] sm:$0xff] }
 0x245   :  { %7476 = vmatprep.subr.bf16.mxu0 %v10332_v59  ;;  %7540 = vmatprep.subr.bf16.mxu1 %v10335_v7  ;;  %v10356_v48 = vpack.c.bf16 %v3198_v41, %v3190_v55  ;;  %v3199_v7 = vld [vmem:[#allocation8 + $0x3f0] sm:$0xff]  ;;  %v3206_v59 = vld [vmem:[#allocation8 + $0x428] sm:$0xff]  ;;  %v3216_v31 = vld [vmem:[#allocation8 + $0x478] sm:$0xff] }
 0x246   :  { %12357 = vst [vmem:[#allocation112_spill] sm:$0xff] %v10350_v32  ;;  %v10366_v41 = vpack.c.bf16 %v3199_v7, %v3191_v42  ;;  %v3213_v4 = vld [vmem:[#allocation8 + $0x460] sm:$0xff]  ;;  %v10371_v8 = vpack.c.bf16 %v3216_v31, %v3208_v34  ;;  %v3223_v34 = vld [vmem:[#allocation8 + $0x4b0] sm:$0xff] }
 0x247   :  { %12359 = vst [vmem:[#allocation114_spill] sm:$0xff] %v10356_v48  ;;  %v3221_v7 = vld [vmem:[#allocation8 + $0x4a0] sm:$0xff] }
 0x248   :  { %7478 = vmatpush1.bf16.msra.mxu0 %v10338_v62  ;;  %7542 = vmatpush1.bf16.msra.mxu1 %v10342_v21  ;;  %v3214_v62 = vld [vmem:[#allocation8 + $0x468] sm:$0xff]  ;;  %v10362_v21 = vpack.c.bf16 %v3197_v16, %v3189_v44  ;;  %12362 = vst [vmem:[#allocation117_spill] sm:$0xff] %v10366_v41  ;;  %12364 = vst [vmem:[#allocation119_spill] sm:$0xff] %v10371_v8  ;;  %v3224_v44 = vld [vmem:[#allocation8 + $0x4b8] sm:$0xff] }
 0x249   :  { %7480 = vmatprep.subr.bf16.mxu0 %v10344_v9  ;;  %7544 = vmatprep.subr.bf16.mxu1 %v10347_v56  ;;  %v10368_v55 = vpack.c.bf16 %v3214_v62, %v3206_v59  ;;  %v3215_v56 = vld [vmem:[#allocation8 + $0x470] sm:$0xff]  ;;  %v3222_v9 = vld [vmem:[#allocation8 + $0x4a8] sm:$0xff]  ;;  %v3232_v16 = vld [vmem:[#allocation8 + $0x4f8] sm:$0xff] }
 0x24a   :  { %12361 = vst [vmem:[#allocation116_spill] sm:$0xff] %v10362_v21  ;;  %v10378_v62 = vpack.c.bf16 %v3215_v56, %v3207_v23  ;;  %v3229_v42 = vld [vmem:[#allocation8 + $0x4e0] sm:$0xff]  ;;  %v10383_v31 = vpack.c.bf16 %v3232_v16, %v3224_v44  ;;  %v3239_v44 = vld [vmem:[#allocation8 + $0x530] sm:$0xff] }
 0x24b   :  { %12363 = vst [vmem:[#allocation118_spill] sm:$0xff] %v10368_v55  ;;  %v3237_v56 = vld [vmem:[#allocation8 + $0x520] sm:$0xff] }
 0x24c   :  { %7482 = vmatpush1.bf16.msra.mxu0 %v10350_v32  ;;  %7546 = vmatpush1.bf16.msra.mxu1 %v10354_v46  ;;  %v3230_v32 = vld [vmem:[#allocation8 + $0x4e8] sm:$0xff]  ;;  %v10374_v46 = vpack.c.bf16 %v3213_v4, %v3205_v43  ;;  %12366 = vst [vmem:[#allocation121_spill] sm:$0xff] %v10378_v62  ;;  %12368 = vst [vmem:[#allocation123_spill] sm:$0xff] %v10383_v31  ;;  %v3240_v43 = vld [vmem:[#allocation8 + $0x538] sm:$0xff] }
 0x24d   :  { %7484 = vmatprep.subr.bf16.mxu0 %v10356_v48  ;;  %7548 = vmatprep.subr.bf16.mxu1 %v10359_v29  ;;  %v10380_v59 = vpack.c.bf16 %v3230_v32, %v3222_v9  ;;  %v3231_v29 = vld [vmem:[#allocation8 + $0x4f0] sm:$0xff]  ;;  %v3238_v48 = vld [vmem:[#allocation8 + $0x528] sm:$0xff]  ;;  %v3248_v4 = vld [vmem:[#allocation8 + $0x578] sm:$0xff] }
 0x24e   :  { %12365 = vst [vmem:[#allocation120_spill] sm:$0xff] %v10374_v46  ;;  %v10390_v32 = vpack.c.bf16 %v3231_v29, %v3223_v34  ;;  %v3245_v23 = vld [vmem:[#allocation8 + $0x560] sm:$0xff]  ;;  %v10395_v16 = vpack.c.bf16 %v3248_v4, %v3240_v43  ;;  %v3255_v43 = vld [vmem:[#allocation8 + $0x5b0] sm:$0xff] }
 0x24f   :  { %12367 = vst [vmem:[#allocation122_spill] sm:$0xff] %v10380_v59  ;;  %v3253_v29 = vld [vmem:[#allocation8 + $0x5a0] sm:$0xff] }
 0x250   :  { %7486 = vmatpush1.bf16.msra.mxu0 %v10362_v21  ;;  %7550 = vmatpush1.bf16.msra.mxu1 %v10366_v41  ;;  %v3246_v21 = vld [vmem:[#allocation8 + $0x568] sm:$0xff]  ;;  %v10386_v41 = vpack.c.bf16 %v3229_v42, %v3221_v7  ;;  %12370 = vst [vmem:[#allocation125_spill] sm:$0xff] %v10390_v32  ;;  %12372 = vst [vmem:[#allocation127_spill] sm:$0xff] %v10395_v16  ;;  %v3256_v7 = vld [vmem:[#allocation8 + $0x5b8] sm:$0xff] }
 0x251   :  { %7488 = vmatprep.subr.bf16.mxu0 %v10368_v55  ;;  %7552 = vmatprep.subr.bf16.mxu1 %v10371_v8  ;;  %v10392_v9 = vpack.c.bf16 %v3246_v21, %v3238_v48  ;;  %v3247_v8 = vld [vmem:[#allocation8 + $0x570] sm:$0xff]  ;;  %v3254_v55 = vld [vmem:[#allocation8 + $0x5a8] sm:$0xff]  ;;  %v3264_v42 = vld [vmem:[#allocation8 + $0x5f8] sm:$0xff] }
 0x252   :  { %12369 = vst [vmem:[#allocation124_spill] sm:$0xff] %v10386_v41  ;;  %v10402_v21 = vpack.c.bf16 %v3247_v8, %v3239_v44  ;;  %v3261_v34 = vld [vmem:[#allocation8 + $0x5e0] sm:$0xff]  ;;  %v10407_v4 = vpack.c.bf16 %v3264_v42, %v3256_v7  ;;  %v3271_v7 = vld [vmem:[#allocation8 + $0x630] sm:$0xff] }
 0x253   :  { %12371 = vst [vmem:[#allocation126_spill] sm:$0xff] %v10392_v9  ;;  %v3269_v8 = vld [vmem:[#allocation8 + $0x620] sm:$0xff] }
 0x254   :  { %7490 = vmatpush1.bf16.msra.mxu0 %v10374_v46  ;;  %7554 = vmatpush1.bf16.msra.mxu1 %v10378_v62  ;;  %v3262_v46 = vld [vmem:[#allocation8 + $0x5e8] sm:$0xff]  ;;  %v10398_v62 = vpack.c.bf16 %v3245_v23, %v3237_v56  ;;  %12374 = vst [vmem:[#allocation129_spill] sm:$0xff] %v10402_v21  ;;  %12376 = vst [vmem:[#allocation131_spill] sm:$0xff] %v10407_v4  ;;  %v3272_v56 = vld [vmem:[#allocation8 + $0x638] sm:$0xff] }
 0x255   :  { %7492 = vmatprep.subr.bf16.mxu0 %v10380_v59  ;;  %7556 = vmatprep.subr.bf16.mxu1 %v10383_v31  ;;  %v10404_v48 = vpack.c.bf16 %v3262_v46, %v3254_v55  ;;  %v3263_v31 = vld [vmem:[#allocation8 + $0x5f0] sm:$0xff]  ;;  %v3270_v59 = vld [vmem:[#allocation8 + $0x628] sm:$0xff]  ;;  %v3280_v23 = vld [vmem:[#allocation8 + $0x678] sm:$0xff] }
 0x256   :  { %12373 = vst [vmem:[#allocation128_spill] sm:$0xff] %v10398_v62  ;;  %v10414_v46 = vpack.c.bf16 %v3263_v31, %v3255_v43  ;;  %v3277_v44 = vld [vmem:[#allocation8 + $0x660] sm:$0xff]  ;;  %v10419_v42 = vpack.c.bf16 %v3280_v23, %v3272_v56  ;;  %v3287_v56 = vld [vmem:[#allocation8 + $0x6b0] sm:$0xff] }
 0x257   :  { %12375 = vst [vmem:[#allocation130_spill] sm:$0xff] %v10404_v48  ;;  %v3285_v31 = vld [vmem:[#allocation8 + $0x6a0] sm:$0xff] }
 0x258   :  { %7494 = vmatpush1.bf16.msra.mxu0 %v10386_v41  ;;  %7558 = vmatpush1.bf16.msra.mxu1 %v10390_v32  ;;  %v3278_v41 = vld [vmem:[#allocation8 + $0x668] sm:$0xff]  ;;  %v10410_v32 = vpack.c.bf16 %v3261_v34, %v3253_v29  ;;  %12378 = vst [vmem:[#allocation133_spill] sm:$0xff] %v10414_v46  ;;  %12380 = vst [vmem:[#allocation135_spill] sm:$0xff] %v10419_v42  ;;  %v3288_v29 = vld [vmem:[#allocation8 + $0x6b8] sm:$0xff] }
 0x259   :  { %7496 = vmatprep.subr.bf16.mxu0 %v10392_v9  ;;  %7560 = vmatprep.subr.bf16.mxu1 %v10395_v16  ;;  %v10416_v55 = vpack.c.bf16 %v3278_v41, %v3270_v59  ;;  %v3279_v16 = vld [vmem:[#allocation8 + $0x670] sm:$0xff]  ;;  %v3286_v9 = vld [vmem:[#allocation8 + $0x6a8] sm:$0xff]  ;;  %v3296_v34 = vld [vmem:[#allocation8 + $0x6f8] sm:$0xff] }
 0x25a   :  { %12377 = vst [vmem:[#allocation132_spill] sm:$0xff] %v10410_v32  ;;  %v10426_v41 = vpack.c.bf16 %v3279_v16, %v3271_v7  ;;  %v3293_v43 = vld [vmem:[#allocation8 + $0x6e0] sm:$0xff]  ;;  %v10431_v23 = vpack.c.bf16 %v3296_v34, %v3288_v29  ;;  %v3303_v29 = vld [vmem:[#allocation8 + $0x730] sm:$0xff] }
 0x25b   :  { %12379 = vst [vmem:[#allocation134_spill] sm:$0xff] %v10416_v55  ;;  %v3301_v16 = vld [vmem:[#allocation8 + $0x720] sm:$0xff] }
 0x25c   :  { %7498 = vmatpush1.bf16.msra.mxu0 %v10398_v62  ;;  %7562 = vmatpush1.bf16.msra.mxu1 %v10402_v21  ;;  %v3294_v62 = vld [vmem:[#allocation8 + $0x6e8] sm:$0xff]  ;;  %v10422_v21 = vpack.c.bf16 %v3277_v44, %v3269_v8  ;;  %12382 = vst [vmem:[#allocation137_spill] sm:$0xff] %v10426_v41  ;;  %12384 = vst [vmem:[#allocation139_spill] sm:$0xff] %v10431_v23  ;;  %v3304_v8 = vld [vmem:[#allocation8 + $0x738] sm:$0xff] }
 0x25d   :  { %7500 = vmatprep.subr.bf16.mxu0 %v10404_v48  ;;  %7564 = vmatprep.subr.bf16.mxu1 %v10407_v4  ;;  %v10428_v59 = vpack.c.bf16 %v3294_v62, %v3286_v9  ;;  %v3295_v4 = vld [vmem:[#allocation8 + $0x6f0] sm:$0xff]  ;;  %v3302_v48 = vld [vmem:[#allocation8 + $0x728] sm:$0xff]  ;;  %v3312_v44 = vld [vmem:[#allocation8 + $0x778] sm:$0xff] }
 0x25e   :  { %12381 = vst [vmem:[#allocation136_spill] sm:$0xff] %v10422_v21  ;;  %v10438_v62 = vpack.c.bf16 %v3295_v4, %v3287_v56  ;;  %v3309_v7 = vld [vmem:[#allocation8 + $0x760] sm:$0xff]  ;;  %v10443_v34 = vpack.c.bf16 %v3312_v44, %v3304_v8  ;;  %v3319_v44 = vld [vmem:[#allocation8 + $0x7b0] sm:$0xff] }
 0x25f   :  { %12383 = vst [vmem:[#allocation138_spill] sm:$0xff] %v10428_v59  ;;  %v3317_v4 = vld [vmem:[#allocation8 + $0x7a0] sm:$0xff] }
 0x260   :  { %7502 = vmatpush1.bf16.msra.mxu0 %v10410_v32  ;;  %7566 = vmatpush1.bf16.msra.mxu1 %v10414_v46  ;;  %v3310_v32 = vld [vmem:[#allocation8 + $0x768] sm:$0xff]  ;;  %v10434_v46 = vpack.c.bf16 %v3293_v43, %v3285_v31  ;;  %12386 = vst [vmem:[#allocation141_spill] sm:$0xff] %v10438_v62  ;;  %12388 = vst [vmem:[#allocation143_spill] sm:$0xff] %v10443_v34  ;;  %v3320_v31 = vld [vmem:[#allocation8 + $0x7b8] sm:$0xff] }
 0x261   :  { %7504 = vmatprep.subr.bf16.mxu0 %v10416_v55  ;;  %7568 = vmatprep.subr.bf16.mxu1 %v10419_v42  ;;  %v10440_v9 = vpack.c.bf16 %v3310_v32, %v3302_v48  ;;  %v3311_v42 = vld [vmem:[#allocation8 + $0x770] sm:$0xff]  ;;  %v3318_v55 = vld [vmem:[#allocation8 + $0x7a8] sm:$0xff]  ;;  %v3328_v43 = vld [vmem:[#allocation8 + $0x7f8] sm:$0xff] }
 0x262   :  { %12385 = vst [vmem:[#allocation140_spill] sm:$0xff] %v10434_v46  ;;  %v10450_v32 = vpack.c.bf16 %v3311_v42, %v3303_v29  ;;  %v3325_v56 = vld [vmem:[#allocation8 + $0x7e0] sm:$0xff]  ;;  %v10455_v8 = vpack.c.bf16 %v3328_v43, %v3320_v31  ;;  %v12401_v31 = vld [vmem:[#allocation70_spill] sm:$0xff]  ;;  %v12402_v43 = vld [vmem:[#allocation71_spill] sm:$0xff] }
 0x263   :  { %12387 = vst [vmem:[#allocation142_spill] sm:$0xff] %v10440_v9  ;;  %v12400_v29 = vld [vmem:[#allocation69_spill] sm:$0xff] }
 0x264   :  { %7506 = vmatpush1.bf16.msra.mxu0 %v10422_v21  ;;  %7570 = vmatpush1.bf16.msra.mxu1 %v10426_v41  ;;  %v3326_v21 = vld [vmem:[#allocation8 + $0x7e8] sm:$0xff]  ;;  %v10446_v41 = vpack.c.bf16 %v3309_v7, %v3301_v16  ;;  %12390 = vst [vmem:[#allocation145_spill] sm:$0xff] %v10450_v32  ;;  %12392 = vst [vmem:[#allocation147_spill] sm:$0xff] %v10455_v8  ;;  %v10458_v16 = vpack.c.bf16 %v3325_v56, %v3317_v4  ;;  %v12399_v7 = vld [vmem:[#allocation68_spill] sm:$0xff] }
 0x265   :  { %7508 = vmatprep.subr.bf16.mxu0 %v10428_v59  ;;  %7572 = vmatprep.subr.bf16.mxu1 %v10431_v23  ;;  %v10452_v48 = vpack.c.bf16 %v3326_v21, %v3318_v55  ;;  %v3327_v23 = vld [vmem:[#allocation8 + $0x7f0] sm:$0xff]  ;;  %v12396_v21 = vld [vmem:[#allocation65_spill] sm:$0xff]  ;;  %v12403_v4 = vld [vmem:[#allocation72_spill] sm:$0xff] }
 0x266   :  { %12389 = vst [vmem:[#allocation144_spill] sm:$0xff] %v10446_v41  ;;  %12393 = vst [vmem:[#allocation148_spill] sm:$0xff] %v10458_v16  ;;  %v10462_v42 = vpack.c.bf16 %v3327_v23, %v3319_v44  ;;  %v12397_v55 = vld [vmem:[#allocation66_spill] sm:$0xff]  ;;  %v12398_v23 = vld [vmem:[#allocation67_spill] sm:$0xff] }
 0x267   :  { %12391 = vst [vmem:[#allocation146_spill] sm:$0xff] %v10452_v48  ;;  %v12404_v56 = vld [vmem:[#allocation73_spill] sm:$0xff]  ;;  %v12405_v44 = vld [vmem:[#allocation74_spill] sm:$0xff] }
 0x268   :  { %7510 = vmatpush1.bf16.msra.mxu0 %v10434_v46  ;;  %7574 = vmatpush1.bf16.msra.mxu1 %v10438_v62  ;;  %12394 = vst [vmem:[#allocation149_spill] sm:$0xff] %v10462_v42 }
 0x269   :  { %7512 = vmatprep.subr.bf16.mxu0 %v10440_v9  ;;  %7576 = vmatprep.subr.bf16.mxu1 %v10443_v34 }
 0x26c   :  { %7514 = vmatpush1.bf16.msra.mxu0 %v10446_v41  ;;  %7578 = vmatpush1.bf16.msra.mxu1 %v10450_v32 }
 0x26d   :  { %7516 = vmatprep.subr.bf16.mxu0 %v10452_v48  ;;  %7580 = vmatprep.subr.bf16.mxu1 %v10455_v8 }
 0x270   :  { %7518 = vmatpush1.bf16.msra.mxu0 %v10458_v16  ;;  %7582 = vmatpush1.bf16.msra.mxu1 %v10462_v42 }
 0x271   :  { %7584 = vmatprep.subr.bf16.mxu0 %v10057_v52  ;;  %7648 = vmatprep.subr.bf16.mxu1 %v10059_v58 }
 0x273   :  { %3536 = vmatmul.mubr.f32.vlgmr.msra.gmra.mrb[10].mxu0 %v12336_v47  ;;  %3607 = vmatmul.mubr.f32.vlgmr.msra.gmra.mrb[10].mxu1 %v12336_v47  ;;  %v12395_v47 = vld [vmem:[#allocation64_spill] sm:$0xff] }
 0x274   :  { %7586 = vmatpush1.bf16.msra.mxu0 %v10061_v0  ;;  %7650 = vmatpush1.bf16.msra.mxu1 %v10064_v1 }
 0x275   :  { %7588 = vmatprep.subr.bf16.mxu0 %v10066_v2  ;;  %7652 = vmatprep.subr.bf16.mxu1 %v10069_v12 }
 0x278   :  { %7590 = vmatpush1.bf16.msra.mxu0 %v10074_v10  ;;  %7654 = vmatpush1.bf16.msra.mxu1 %v10078_v11 }
 0x279   :  { %7592 = vmatprep.subr.bf16.mxu0 %v10080_v13  ;;  %7656 = vmatprep.subr.bf16.mxu1 %v10083_v17 }
 0x27c   :  { %7594 = vmatpush1.bf16.msra.mxu0 %v10088_v22  ;;  %7658 = vmatpush1.bf16.msra.mxu1 %v10092_v24 }
 0x27d   :  { %7596 = vmatprep.subr.bf16.mxu0 %v10094_v25  ;;  %7660 = vmatprep.subr.bf16.mxu1 %v10097_v28 }
 0x280   :  { %7598 = vmatpush1.bf16.msra.mxu0 %v10102_v35  ;;  %7662 = vmatpush1.bf16.msra.mxu1 %v10106_v38  ;;  %v4252_v35 = vld [vmem:[#allocation2 + $0x46] ss:$8 sm:$0xf] }
 0x281   :  { %7600 = vmatprep.subr.bf16.mxu0 %v10108_v39  ;;  %7664 = vmatprep.subr.bf16.mxu1 %v10111_v45  ;;  %v12424_v39 = vld [vmem:[#allocation36_spill] sm:$0xff] }
 0x284   :  { %7602 = vmatpush1.bf16.msra.mxu0 %v10117_v51  ;;  %7666 = vmatpush1.bf16.msra.mxu1 %v10127_v57 }
 0x285   :  { %7604 = vmatprep.subr.bf16.mxu0 %v10132_v60  ;;  %7668 = vmatprep.subr.bf16.mxu1 %v10135_v3 }
 0x288   :  { %7606 = vmatpush1.bf16.msra.mxu0 %v10141_v6  ;;  %7670 = vmatpush1.bf16.msra.mxu1 %v10146_v18  ;;  %v4154_v18 = vld [vmem:[#allocation2 + $0x41] ss:$8 sm:$0xf] }
 0x289   :  { %7608 = vmatprep.subr.bf16.mxu0 %v10148_v19  ;;  %7672 = vmatprep.subr.bf16.mxu1 %v10151_v40  ;;  %v3716_v19 = vld [vmem:[#allocation2 + $0x47] ss:$8 sm:$0xf] }
 0x28c   :  { %7610 = vmatpush1.bf16.msra.mxu0 %v10154_v53  ;;  %7674 = vmatpush1.bf16.msra.mxu1 %v10156_v49  ;;  %v5222_v49 = vld [vmem:[#allocation2 + $0x3] ss:$8 sm:$0xf] }
 0x28d   :  { %7612 = vmatprep.subr.bf16.mxu0 %v10160_v63  ;;  %7676 = vmatprep.subr.bf16.mxu1 %v10163_v20 }
 0x290   :  { %7614 = vmatpush1.bf16.msra.mxu0 %v10166_v30  ;;  %7678 = vmatpush1.bf16.msra.mxu1 %v10170_v14 }
 0x291   :  { %7616 = vmatprep.subr.bf16.mxu0 %v10172_v15  ;;  %7680 = vmatprep.subr.bf16.mxu1 %v10175_v33 }
 0x294   :  { %7618 = vmatpush1.bf16.msra.mxu0 %v10178_v50  ;;  %7682 = vmatpush1.bf16.msra.mxu1 %v10182_v54 }
 0x295   :  { %7620 = vmatprep.subr.bf16.mxu0 %v10184_v61  ;;  %7684 = vmatprep.subr.bf16.mxu1 %v10187_v5 }
 0x298   :  { %7622 = vmatpush1.bf16.msra.mxu0 %v10190_v36  ;;  %7686 = vmatpush1.bf16.msra.mxu1 %v10194_v26 }
 0x299   :  { %7624 = vmatprep.subr.bf16.mxu0 %v10196_v27  ;;  %7688 = vmatprep.subr.bf16.mxu1 %v10199_v37 }
 0x29c   :  { %7626 = vmatpush1.bf16.msra.mxu0 %v12395_v47  ;;  %7690 = vmatpush1.bf16.msra.mxu1 %v12396_v21  ;;  %v12406_v47 = vld [vmem:[#allocation75_spill] sm:$0xff]  ;;  %v12407_v21 = vld [vmem:[#allocation76_spill] sm:$0xff] }
 0x29d   :  { %7628 = vmatprep.subr.bf16.mxu0 %v12397_v55  ;;  %7692 = vmatprep.subr.bf16.mxu1 %v12398_v23  ;;  %v12408_v55 = vld [vmem:[#allocation77_spill] sm:$0xff]  ;;  %v12409_v23 = vld [vmem:[#allocation78_spill] sm:$0xff] }
 0x2a0   :  { %7630 = vmatpush1.bf16.msra.mxu0 %v12399_v7  ;;  %7694 = vmatpush1.bf16.msra.mxu1 %v12400_v29  ;;  %v12410_v7 = vld [vmem:[#allocation79_spill] sm:$0xff]  ;;  %v12411_v29 = vld [vmem:[#allocation80_spill] sm:$0xff] }
 0x2a1   :  { %7632 = vmatprep.subr.bf16.mxu0 %v12401_v31  ;;  %7696 = vmatprep.subr.bf16.mxu1 %v12402_v43  ;;  %v12412_v31 = vld [vmem:[#allocation81_spill] sm:$0xff]  ;;  %v12413_v43 = vld [vmem:[#allocation82_spill] sm:$0xff] }
 0x2a4   :  { %7634 = vmatpush1.bf16.msra.mxu0 %v12403_v4  ;;  %7698 = vmatpush1.bf16.msra.mxu1 %v12404_v56  ;;  %v12414_v4 = vld [vmem:[#allocation83_spill] sm:$0xff]  ;;  %v12415_v56 = vld [vmem:[#allocation84_spill] sm:$0xff] }
 0x2a5   :  { %7636 = vmatprep.subr.bf16.mxu0 %v12405_v44  ;;  %7700 = vmatprep.subr.bf16.mxu1 %v12406_v47  ;;  %v12416_v44 = vld [vmem:[#allocation85_spill] sm:$0xff]  ;;  %v12417_v47 = vld [vmem:[#allocation86_spill] sm:$0xff] }
 0x2a8   :  { %7638 = vmatpush1.bf16.msra.mxu0 %v12407_v21  ;;  %7702 = vmatpush1.bf16.msra.mxu1 %v12408_v55  ;;  %v12418_v21 = vld [vmem:[#allocation87_spill] sm:$0xff] }
 0x2a9   :  { %7640 = vmatprep.subr.bf16.mxu0 %v12409_v23  ;;  %7704 = vmatprep.subr.bf16.mxu1 %v12410_v7  ;;  %v12419_v55 = vld [vmem:[#allocation31_spill] sm:$0xff] }
 0x2aa   :  { %v10536_v23 = vsub.s32 4, %v12419_v55  ;;  %v10539_v7 = vsub.s32 6, %v12419_v55 }
 0x2ac   :  { %7642 = vmatpush1.bf16.msra.mxu0 %v12411_v29  ;;  %7706 = vmatpush1.bf16.msra.mxu1 %v12412_v31  ;;  %v10542_v31 = vsub.s32 5, %v12419_v55 }
 0x2ad   :  { %7644 = vmatprep.subr.bf16.mxu0 %v12413_v43  ;;  %7708 = vmatprep.subr.bf16.mxu1 %v12414_v4  ;;  %v10545_v43 = vsub.s32 7, %v12419_v55  ;;  %v9743_v4 = vld [vmem:[#allocation7] sm:$0xff] }
 0x2af   :  { %12420 = vst [vmem:[#allocation31_spill] sm:$0xff] %v10545_v43 }
 0x2b0   :  { %7646 = vmatpush1.bf16.msra.mxu0 %v12415_v56  ;;  %7710 = vmatpush1.bf16.msra.mxu1 %v12416_v44  ;;  %v600_v56 = vrot.slane %v9743_v4, %v10536_v23  ;;  %v608_v44 = vrot.slane %v9743_v4, %v10539_v7 }
 0x2b1   :  { %7712 = vmatprep.subr.bf16.mxu0 %v12417_v47  ;;  %7776 = vmatprep.subr.bf16.mxu1 %v12418_v21  ;;  %v604_v47 = vrot.slane %v9743_v4, %v10542_v31  ;;  %v612_v21 = vrot.slane %v9743_v4, %v10545_v43 }
 0x2c6   :  { %v2919_v29 = vpop.f32.mrb[4].mxu0  ;;  %v3048_v27 = vpop.f32.mrb[4].mxu1 }
 0x2c7   :  { %v9383_v37 = vadd.f32 %v2919_v29, %v600_v56  ;;  %v2921_v26 = vpop.f32.mrb[5].mxu0  ;;  %v9387_v36 = vadd.f32 %v3048_v27, %v608_v44  ;;  %v3050_v61 = vpop.f32.mrb[5].mxu1  ;;  %v3617_v27 = vld [vmem:[#allocation2 + $0x40] ss:$8 sm:$0xf] }
 0x2c8   :  { %v9384_v5 = vadd.f32 %v2921_v26, %v604_v47  ;;  %v2923_v54 = vpop.f32.mrb[6].mxu0  ;;  %v9388_v55 = vadd.f32 %v3050_v61, %v612_v21  ;;  %v3052_v33 = vpop.f32.mrb[6].mxu1  ;;  %v3613_v29 = vld [vmem:[#allocation2] ss:$8 sm:$0xf] }
 0x2c9   :  { %3061 = vst [vmem:[#allocation2 + $0x20] sm:$0xff] %v9383_v37  ;;  %v9385_v50 = vadd.f32 %v2923_v54, %v600_v56  ;;  %v2925_v15 = vpop.f32.mrb[7].mxu0  ;;  %3063 = vst [vmem:[#allocation2 + $0x30] sm:$0xff] %v9387_v36  ;;  %v9389_v14 = vadd.f32 %v3052_v33, %v608_v44  ;;  %v3054_v20 = vpop.f32.mrb[7].mxu1 }
 0x2ca   :  { %3062 = vst [vmem:[#allocation2 + $0x28] sm:$0xff] %v9384_v5  ;;  %v9386_v30 = vadd.f32 %v2925_v15, %v604_v47  ;;  %3064 = vst [vmem:[#allocation2 + $0x38] sm:$0xff] %v9388_v55  ;;  %v9390_v4 = vadd.f32 %v3054_v20, %v612_v21  ;;  %v3712_v36 = vld [vmem:[#allocation2 + $0x7] ss:$8 sm:$0xf] }
 0x2cb   :  { %3069 = vst [vmem:[#allocation2 + $0x60] sm:$0xff] %v9385_v50  ;;  %3071 = vst [vmem:[#allocation2 + $0x70] sm:$0xff] %v9389_v14  ;;  %v5320_v5 = vld [vmem:[#allocation2 + $0x4] ss:$8 sm:$0xf] }
 0x2cc   :  { %3070 = vst [vmem:[#allocation2 + $0x68] sm:$0xff] %v9386_v30  ;;  %3072 = vst [vmem:[#allocation2 + $0x78] sm:$0xff] %v9390_v4  ;;  %v5324_v33 = vld [vmem:[#allocation2 + $0x44] ss:$8 sm:$0xf] }
 0x2cd   :  { %v4150_v20 = vld [vmem:[#allocation2 + $0x1] ss:$8 sm:$0xf]  ;;  %v4248_v14 = vld [vmem:[#allocation2 + $0x6] ss:$8 sm:$0xf] }
 0x2ce   :  { %v4686_v30 = vld [vmem:[#allocation2 + $0x2] ss:$8 sm:$0xf]  ;;  %v4784_v4 = vld [vmem:[#allocation2 + $0x5] ss:$8 sm:$0xf] }
 0x2d1   :  { %v3614_v37 = vld [vmem:[#allocation2] ss:$8 sm:$0xf0]  ;;  %v3713_v61 = vld [vmem:[#allocation2 + $0x7] ss:$8 sm:$0xf0] }
 0x2d2   :  { %v4151_v54 = vld [vmem:[#allocation2 + $0x1] ss:$8 sm:$0xf0]  ;;  %v4249_v56 = vld [vmem:[#allocation2 + $0x6] ss:$8 sm:$0xf0]  ;;  %v10553_v21 = vor.u32 %v3614_v37, %v3613_v29  ;;  %v10555_v6 = vor.u32 %v3713_v61, %v3712_v36 }
 0x2d3   :  { %v3618_v26 = vld [vmem:[#allocation2 + $0x40] ss:$8 sm:$0xf0]  ;;  %v4687_v63 = vld [vmem:[#allocation2 + $0x2] ss:$8 sm:$0xf0]  ;;  %v10561_v57 = vor.u32 %v4151_v54, %v4150_v20  ;;  %v10563_v29 = vor.u32 %v4249_v56, %v4248_v14 }
 0x2d4   :  { %v5321_v15 = vld [vmem:[#allocation2 + $0x4] ss:$8 sm:$0xf0]  ;;  %v10551_v47 = vor.u32 %v3618_v26, %v3617_v27  ;;  %v4785_v44 = vld [vmem:[#allocation2 + $0x5] ss:$8 sm:$0xf0]  ;;  %v10565_v37 = vor.u32 %v4687_v63, %v4686_v30 }
 0x2d5   :  { %v5325_v50 = vld [vmem:[#allocation2 + $0x44] ss:$8 sm:$0xf0]  ;;  %v5223_v55 = vld [vmem:[#allocation2 + $0x3] ss:$8 sm:$0xf0]  ;;  %v10557_v3 = vor.u32 %v5321_v15, %v5320_v5  ;;  %v10569_v36 = vor.u32 %v4785_v44, %v4784_v4 }
 0x2d6   :  { %v3717_v53 = vld [vmem:[#allocation2 + $0x47] ss:$8 sm:$0xf0]  ;;  %v4155_v40 = vld [vmem:[#allocation2 + $0x41] ss:$8 sm:$0xf0]  ;;  %v10559_v60 = vor.u32 %v5325_v50, %v5324_v33  ;;  %v3665_v38 = vrot.slane %v10551_v47, %v12424_v39  ;;  %v10571_v5 = vor.u32 %v5223_v55, %v5222_v49  ;;  %v3624_v33 = vrot.slane %v10553_v21, %v12424_v39 }
 0x2d7   :  { %12421 = vst [vmem:[#allocation150_spill] sm:$0xff] %v10557_v3  ;;  %v4253_v27 = vld [vmem:[#allocation2 + $0x46] ss:$8 sm:$0xf0]  ;;  %12423 = vst [vmem:[#allocation152_spill] sm:$0xff] %v10565_v37  ;;  %v10577_v50 = vor.u32 %v3717_v53, %v3716_v19  ;;  %v10579_v20 = vor.u32 %v4155_v40, %v4154_v18  ;;  %v5331_v55 = vrot.slane %v10557_v3, %v12424_v39 }
 0x2d8   :  { %v5227_v26 = vld [vmem:[#allocation2 + $0x43] ss:$8 sm:$0xf0]  ;;  %12422 = vst [vmem:[#allocation151_spill] sm:$0xff] %v10559_v60  ;;  %12425 = vst [vmem:[#allocation153_spill] sm:$0xff] %v10569_v36  ;;  %v10581_v14 = vor.u32 %v4253_v27, %v4252_v35  ;;  %v5372_v4 = vrot.slane %v10559_v60, %v12424_v39  ;;  %v10594_v56 = vsel %vm3702_vm0, %v3624_v33, %v3665_v38 }
 0x2d9   :  { %v4691_v51 = vld [vmem:[#allocation2 + $0x42] ss:$8 sm:$0xf0]  ;;  %v4789_v45 = vld [vmem:[#allocation2 + $0x45] ss:$8 sm:$0xf0]  ;;  %v5249_v33 = vrot.slane %v10571_v5, %v10536_v23 }
 0x2da   :  { %v5226_v61 = vld [vmem:[#allocation2 + $0x43] ss:$8 sm:$0xf]  ;;  %12426 = vst [vmem:[#allocation154_spill] sm:$0xff] %v10571_v5 }
 0x2db   :  { %v12427_v54 = vld [vmem:[#allocation39_spill] sm:$0xff]  ;;  %v10583_v30 = vor.u32 %v5227_v26, %v5226_v61  ;;  %v12431_v35 = vld [vmem:[#allocation38_spill] sm:$0xff]  ;;  %v12433_v38 = vld [vmem:[#allocation41_spill] sm:$0xff] }
 0x2dc   :  { %v4690_v15 = vld [vmem:[#allocation2 + $0x42] ss:$8 sm:$0xf]  ;;  %v4788_v63 = vld [vmem:[#allocation2 + $0x45] ss:$8 sm:$0xf]  ;;  %v5339_v19 = vrot.slane %v10557_v3, %v12431_v35  ;;  %v5335_v40 = vrot.slane %v10557_v3, %v12427_v54  ;;  %v5376_v53 = vrot.slane %v10559_v60, %v12427_v54  ;;  %v5343_v27 = vrot.slane %v10557_v3, %v12433_v38 }
 0x2dd   :  { %12428 = vst [vmem:[#allocation155_spill] sm:$0xff] %v10583_v30  ;;  %v10585_v44 = vor.u32 %v4691_v51, %v4690_v15  ;;  %v10587_v49 = vor.u32 %v4789_v45, %v4788_v63  ;;  %v5380_v51 = vrot.slane %v10559_v60, %v12431_v35  ;;  %v10603_v45 = vsel %vm3702_vm0, %v5331_v55, %v5372_v4 }
 0x2de   :  { %12432 = vst [vmem:[#allocation158_spill] sm:$0xff] %v10603_v45  ;;  %v5384_v61 = vrot.slane %v10559_v60, %v12433_v38  ;;  %v5290_v15 = vrot.slane %v10583_v30, %v10536_v23  ;;  %v10621_v63 = vsel %vm3702_vm0, %v5335_v40, %v5376_v53  ;;  %v5257_v55 = vrot.slane %v10571_v5, %v10539_v7 }
 0x2df   :  { %12429 = vst [vmem:[#allocation156_spill] sm:$0xff] %v10585_v44  ;;  %12430 = vst [vmem:[#allocation157_spill] sm:$0xff] %v10587_v49  ;;  %v10612_v26 = vsel %vm3702_vm0, %v5339_v19, %v5380_v51  ;;  %v5298_v4 = vrot.slane %v10583_v30, %v10539_v7  ;;  %v5253_v19 = vrot.slane %v10571_v5, %v10542_v31 }
 0x2e0   :  { %12434 = vst [vmem:[#allocation159_spill] sm:$0xff] %v10612_v26  ;;  %12435 = vst [vmem:[#allocation160_spill] sm:$0xff] %v10621_v63  ;;  %v10630_v51 = vsel %vm3702_vm0, %v5343_v27, %v5384_v61  ;;  %v10633_v18 = vsel %vm3702_vm0, %v5249_v33, %v5290_v15  ;;  %v5294_v26 = vrot.slane %v10583_v30, %v10542_v31 }
 0x2e1   :  { %12436 = vst [vmem:[#allocation161_spill] sm:$0xff] %v10630_v51  ;;  %12437 = vst [vmem:[#allocation162_spill] sm:$0xff] %v10633_v18  ;;  %v5261_v40 = vrot.slane %v10571_v5, %v10545_v43  ;;  %v10640_v53 = vsel %vm3702_vm0, %v5257_v55, %v5298_v4  ;;  %v5302_v63 = vrot.slane %v10583_v30, %v10545_v43 }
 0x2e2   :  { %12438 = vst [vmem:[#allocation163_spill] sm:$0xff] %v10640_v53  ;;  %v4795_v45 = vrot.slane %v10569_v36, %v12424_v39  ;;  %v4836_v27 = vrot.slane %v10587_v49, %v12424_v39  ;;  %v10649_v61 = vsel %vm3702_vm0, %v5253_v19, %v5294_v26  ;;  %v4803_v33 = vrot.slane %v10569_v36, %v12431_v35 }
 0x2e3   :  { %12439 = vst [vmem:[#allocation164_spill] sm:$0xff] %v10649_v61  ;;  %v4844_v15 = vrot.slane %v10587_v49, %v12431_v35  ;;  %v4799_v55 = vrot.slane %v10569_v36, %v12427_v54  ;;  %v10658_v4 = vsel %vm3702_vm0, %v5261_v40, %v5302_v63  ;;  %v4840_v18 = vrot.slane %v10587_v49, %v12427_v54 }
 0x2e4   :  { %12440 = vst [vmem:[#allocation165_spill] sm:$0xff] %v10658_v4  ;;  %v10661_v53 = vsel %vm3702_vm0, %v4795_v45, %v4836_v27  ;;  %v4807_v26 = vrot.slane %v10569_v36, %v12433_v38  ;;  %v4848_v61 = vrot.slane %v10587_v49, %v12433_v38  ;;  %v4713_v51 = vrot.slane %v10565_v37, %v10536_v23  ;;  %v12487_v36 = vld [vmem:[#allocation108_spill] sm:$0xff]  ;;  %v12488_v49 = vld [vmem:[#allocation109_spill] sm:$0xff] }
 0x2e5   :  { %12441 = vst [vmem:[#allocation166_spill] sm:$0xff] %v10661_v53  ;;  %v10668_v19 = vsel %vm3702_vm0, %v4803_v33, %v4844_v15  ;;  %v4754_v63 = vrot.slane %v10585_v44, %v10536_v23  ;;  %v10677_v45 = vsel %vm3702_vm0, %v4799_v55, %v4840_v18  ;;  %v4721_v40 = vrot.slane %v10565_v37, %v10539_v7 }
 0x2e6   :  { %12442 = vst [vmem:[#allocation167_spill] sm:$0xff] %v10668_v19  ;;  %12443 = vst [vmem:[#allocation168_spill] sm:$0xff] %v10677_v45  ;;  %v4762_v27 = vrot.slane %v10585_v44, %v10539_v7  ;;  %v4717_v33 = vrot.slane %v10565_v37, %v10542_v31  ;;  %v10686_v15 = vsel %vm3702_vm0, %v4807_v26, %v4848_v61 }
 0x2e7   :  { %12444 = vst [vmem:[#allocation169_spill] sm:$0xff] %v10686_v15  ;;  %v10689_v19 = vsel %vm3702_vm0, %v4713_v51, %v4754_v63  ;;  %v4758_v53 = vrot.slane %v10585_v44, %v10542_v31  ;;  %v4725_v18 = vrot.slane %v10565_v37, %v10545_v43  ;;  %v4766_v45 = vrot.slane %v10585_v44, %v10545_v43  ;;  %v12489_v37 = vld [vmem:[#allocation110_spill] sm:$0xff]  ;;  %v12490_v44 = vld [vmem:[#allocation111_spill] sm:$0xff] }
 0x2e8   :  { %12445 = vst [vmem:[#allocation170_spill] sm:$0xff] %v10689_v19  ;;  %v10696_v55 = vsel %vm3702_vm0, %v4721_v40, %v4762_v27  ;;  %v4259_v4 = vrot.slane %v10563_v29, %v12424_v39  ;;  %v4300_v61 = vrot.slane %v10581_v14, %v12424_v39  ;;  %v4267_v26 = vrot.slane %v10563_v29, %v12431_v35 }
 0x2e9   :  { %12446 = vst [vmem:[#allocation171_spill] sm:$0xff] %v10696_v55  ;;  %v10705_v51 = vsel %vm3702_vm0, %v4717_v33, %v4758_v53  ;;  %v4308_v63 = vrot.slane %v10581_v14, %v12431_v35  ;;  %v4263_v40 = vrot.slane %v10563_v29, %v12427_v54  ;;  %v10714_v27 = vsel %vm3702_vm0, %v4725_v18, %v4766_v45 }
 0x2ea   :  { %12447 = vst [vmem:[#allocation172_spill] sm:$0xff] %v10705_v51  ;;  %12448 = vst [vmem:[#allocation173_spill] sm:$0xff] %v10714_v27  ;;  %v10717_v55 = vsel %vm3702_vm0, %v4259_v4, %v4300_v61  ;;  %v4304_v19 = vrot.slane %v10581_v14, %v12427_v54  ;;  %v4271_v53 = vrot.slane %v10563_v29, %v12433_v38 }
 0x2eb   :  { %12449 = vst [vmem:[#allocation174_spill] sm:$0xff] %v10717_v55  ;;  %v10724_v33 = vsel %vm3702_vm0, %v4267_v26, %v4308_v63  ;;  %v4312_v51 = vrot.slane %v10581_v14, %v12433_v38  ;;  %v4177_v15 = vrot.slane %v10561_v57, %v10536_v23  ;;  %v4218_v45 = vrot.slane %v10579_v20, %v10536_v23 }
 0x2ec   :  { %12450 = vst [vmem:[#allocation175_spill] sm:$0xff] %v10724_v33  ;;  %v10733_v4 = vsel %vm3702_vm0, %v4263_v40, %v4304_v19  ;;  %v4185_v18 = vrot.slane %v10561_v57, %v10539_v7  ;;  %v4226_v61 = vrot.slane %v10579_v20, %v10539_v7  ;;  %v4181_v26 = vrot.slane %v10561_v57, %v10542_v31 }
 0x2ed   :  { %12451 = vst [vmem:[#allocation176_spill] sm:$0xff] %v10733_v4  ;;  %v10742_v63 = vsel %vm3702_vm0, %v4271_v53, %v4312_v51  ;;  %v10745_v33 = vsel %vm3702_vm0, %v4177_v15, %v4218_v45  ;;  %v4222_v55 = vrot.slane %v10579_v20, %v10542_v31  ;;  %v4189_v19 = vrot.slane %v10561_v57, %v10545_v43 }
 0x2ee   :  { %12452 = vst [vmem:[#allocation177_spill] sm:$0xff] %v10742_v63  ;;  %12453 = vst [vmem:[#allocation178_spill] sm:$0xff] %v10745_v33  ;;  %v10752_v40 = vsel %vm3702_vm0, %v4185_v18, %v4226_v61  ;;  %v4230_v4 = vrot.slane %v10579_v20, %v10545_v43  ;;  %v3723_v27 = vrot.slane %v10555_v6, %v12424_v39 }
 0x2ef   :  { %12454 = vst [vmem:[#allocation179_spill] sm:$0xff] %v10752_v40  ;;  %v3764_v51 = vrot.slane %v10577_v50, %v12424_v39  ;;  %v10761_v15 = vsel %vm3702_vm0, %v4181_v26, %v4222_v55  ;;  %v3731_v53 = vrot.slane %v10555_v6, %v12431_v35  ;;  %v3772_v45 = vrot.slane %v10577_v50, %v12431_v35 }
 0x2f0   :  { %12455 = vst [vmem:[#allocation180_spill] sm:$0xff] %v10761_v15  ;;  %v3727_v18 = vrot.slane %v10555_v6, %v12427_v54  ;;  %v10770_v61 = vsel %vm3702_vm0, %v4189_v19, %v4230_v4  ;;  %v3768_v33 = vrot.slane %v10577_v50, %v12427_v54  ;;  %v3735_v55 = vrot.slane %v10555_v6, %v12433_v38 }
 0x2f1   :  { %12456 = vst [vmem:[#allocation181_spill] sm:$0xff] %v10770_v61  ;;  %v10773_v40 = vsel %vm3702_vm0, %v3723_v27, %v3764_v51  ;;  %v10780_v26 = vsel %vm3702_vm0, %v3731_v53, %v3772_v45  ;;  %v3776_v15 = vrot.slane %v10577_v50, %v12433_v38  ;;  %v3640_v63 = vrot.slane %v10553_v21, %v10536_v23 }
 0x2f2   :  { %12457 = vst [vmem:[#allocation182_spill] sm:$0xff] %v10773_v40  ;;  %12458 = vst [vmem:[#allocation183_spill] sm:$0xff] %v10780_v26  ;;  %v3681_v4 = vrot.slane %v10551_v47, %v10536_v23  ;;  %v12459_v27 = vrot.slane %v10551_v47, %v12427_v54  ;;  %v12460_v19 = vrot.slane %v10553_v21, %v12427_v54 }
 0x2f3   :  { %v10796_v53 = vsel %vm3702_vm0, %v3727_v18, %v3768_v33  ;;  %v3648_v45 = vrot.slane %v10553_v21, %v10539_v7  ;;  %v3689_v26 = vrot.slane %v10551_v47, %v10539_v7  ;;  %v10803_v61 = vsel %vm3702_vm0, %v3735_v55, %v3776_v15 }
 0x2f4   :  { %v3704_v51 = vsel %vm3702_vm0, %v12460_v19, %v12459_v27  ;;  %12461 = vst [vmem:[#allocation184_spill] sm:$0xff] %v10796_v53  ;;  %12462 = vst [vmem:[#allocation185_spill] sm:$0xff] %v10803_v61  ;;  %v10806_v3 = vsel %vm3702_vm0, %v3640_v63, %v3681_v4  ;;  %v3644_v60 = vrot.slane %v10553_v21, %v10542_v31 }
 0x2f5   :  { %12463 = vst [vmem:[#allocation186_spill] sm:$0xff] %v10806_v3  ;;  %v3685_v33 = vrot.slane %v10551_v47, %v10542_v31  ;;  %v10814_v53 = vsel %vm3702_vm0, %v3648_v45, %v3689_v26  ;;  %v3652_v15 = vrot.slane %v10553_v21, %v10545_v43  ;;  %v3693_v63 = vrot.slane %v10551_v47, %v10545_v43 }
 0x2f6   :  { %12464 = vst [vmem:[#allocation187_spill] sm:$0xff] %v10814_v53  ;;  %v3632_v26 = vrot.slane %v10553_v21, %v12431_v35 }
 0x2f7   :  { %v10821_v3 = vsel %vm3702_vm0, %v3644_v60, %v3685_v33  ;;  %v10824_v5 = vsel %vm3702_vm0, %v3652_v15, %v3693_v63 }
 0x2f8   :  { %12465 = vst [vmem:[#allocation188_spill] sm:$0xff] %v10821_v3  ;;  %12466 = vst [vmem:[#allocation189_spill] sm:$0xff] %v10824_v5  ;;  %v3780_v5 = vrot.slane %v10577_v50, %v10536_v23  ;;  %v3636_v3 = vrot.slane %v10553_v21, %v12433_v38 }
 0x306   :  { %v3395_v40 = vpop.f32.mrb[8].mxu0  ;;  %v3466_v27 = vpop.f32.mrb[8].mxu1 }
 0x307   :  { %v3809_v18 = vadd.f32 %v10594_v56, %v3395_v40  ;;  %v3397_v19 = vpop.f32.mrb[9].mxu0  ;;  %v3468_v4 = vpop.f32.mrb[9].mxu1  ;;  %v3673_v40 = vrot.slane %v10551_v47, %v12431_v35 }
 0x308   :  { %v3810_v55 = vadd.f32 %v3704_v51, %v3397_v19 }
 0x309   :  { %v7277_v61 = vmul.f32 -1.442695, %v3809_v18  ;;  %v3705_v45 = vsel %vm3702_vm0, %v3632_v26, %v3673_v40  ;;  %v3739_v40 = vrot.slane %v10555_v6, %v10536_v23 }
 0x30a   :  { %v7278_v56 = vmul.f32 -1.442695, %v3810_v55  ;;  %v3811_v51 = vadd.f32 %v3705_v45, %v3466_v27  ;;  %v3784_v27 = vrot.slane %v10577_v50, %v10542_v31 }
 0x30b   :  { %9487 = vpow2.f32 %v7277_v61  ;;  %v3805_v45 = vsel %vm3702_vm0, %v3739_v40, %v3780_v5  ;;  %v3751_v5 = vrot.slane %v10555_v6, %v10545_v43 }
 0x30c   :  { %9489 = vpow2.f32 %v7278_v56 }
 0x30d   :  { %9491 = vtanh.f32 %v3811_v51 }
 0x315   :  { %v9488_v19 = vpop.eup %9487 }
 0x316   :  { %v9490_v53 = vpop.eup %9489  ;;  %v3816_v60 = vadd.f32 1.0, %v9488_v19 }
 0x317   :  { %v3822_v33 = vadd.f32 1.0, %v9490_v53  ;;  %v9492_v18 = vpop.eup %9491  ;;  %v3743_v53 = vrot.slane %v10555_v6, %v10542_v31 }
 0x318   :  { %9493 = vrcp.f32 %v3816_v60 }
 0x319   :  { %9495 = vrcp.f32 %v3822_v33  ;;  %v3806_v33 = vsel %vm3702_vm0, %v3743_v53, %v3784_v27  ;;  %v3788_v53 = vrot.slane %v10577_v50, %v10539_v7 }
 0x322   :  { %v9494_v15 = vpop.eup %9493 }
 0x323   :  { %v9496_v61 = vpop.eup %9495  ;;  %v3833_v63 = vmul.f32 %v9494_v15, %v9492_v18  ;;  %v3677_v18 = vrot.slane %v10551_v47, %v12433_v38 }
 0x324   :  { %v3832_v55 = vmul.f32 0.0, %v9496_v61 }
 0x325   :  { %v3706_v40 = vsel %vm3702_vm0, %v3636_v3, %v3677_v18 }
 0x326   :  { %v10831_v56 = vadd.f32 %v3833_v63, %v3832_v55  ;;  %v3792_v55 = vrot.slane %v10577_v50, %v10545_v43  ;;  %v3812_v27 = vadd.f32 %v3706_v40, %v3468_v4 }
 0x328   :  { %v3808_v47 = vsel %vm3702_vm0, %v3751_v5, %v3792_v55 }
 0x346   :  { %v3537_v26 = vpop.f32.mrb[10].mxu0  ;;  %v3608_v19 = vpop.f32.mrb[10].mxu1 }
 0x347   :  { %v3837_v51 = vadd.f32 %v3805_v45, %v3537_v26  ;;  %v3539_v60 = vpop.f32.mrb[11].mxu0  ;;  %v3610_v61 = vpop.f32.mrb[11].mxu1  ;;  %v3747_v45 = vrot.slane %v10555_v6, %v10539_v7 }
 0x348   :  { %v3838_v15 = vadd.f32 %v3806_v33, %v3539_v60  ;;  %v3840_v26 = vadd.f32 %v3808_v47, %v3610_v61 }
 0x349   :  { %v7280_v63 = vmul.f32 -1.442695, %v3837_v51  ;;  %v7279_v51 = vmul.f32 -1.442695, %v3812_v27  ;;  %v3807_v21 = vsel %vm3702_vm0, %v3747_v45, %v3788_v53 }
 0x34a   :  { %v7281_v30 = vmul.f32 -1.442695, %v3838_v15  ;;  %v7282_v60 = vmul.f32 -1.442695, %v3840_v26  ;;  %v3839_v33 = vadd.f32 %v3807_v21, %v3608_v19 }
 0x34b   :  { %9497 = vpow2.f32 %v7280_v63 }
 0x34c   :  { %9499 = vpow2.f32 %v7281_v30 }
 0x34d   :  { %9501 = vpow2.f32 %v7279_v51 }
 0x34e   :  { %9503 = vpow2.f32 %v7282_v60  ;;  %v12467_v60 = vld [vmem:[#allocation88_spill] sm:$0xff] }
 0x34f   :  { %9505 = vtanh.f32 %v3839_v33  ;;  %v12468_v33 = vld [vmem:[#allocation89_spill] sm:$0xff] }
 0x355   :  { %v9498_v15 = vpop.eup %9497 }
 0x356   :  { %v9500_v63 = vpop.eup %9499  ;;  %v3844_v3 = vadd.f32 1.0, %v9498_v15  ;;  %v12469_v15 = vld [vmem:[#allocation90_spill] sm:$0xff] }
 0x357   :  { %v3850_v30 = vadd.f32 1.0, %v9500_v63  ;;  %v9502_v4 = vpop.eup %9501  ;;  %v12470_v63 = vld [vmem:[#allocation91_spill] sm:$0xff] }
 0x358   :  { %9507 = vrcp.f32 %v3844_v3  ;;  %v9504_v50 = vpop.eup %9503  ;;  %v3829_v27 = vadd.f32 1.0, %v9502_v4  ;;  %v12471_v3 = vld [vmem:[#allocation92_spill] sm:$0xff]  ;;  %v12473_v4 = vld [vmem:[#allocation94_spill] sm:$0xff] }
 0x359   :  { %9509 = vrcp.f32 %v3850_v30  ;;  %v9506_v18 = vpop.eup %9505  ;;  %v3857_v5 = vadd.f32 1.0, %v9504_v50  ;;  %v12472_v30 = vld [vmem:[#allocation93_spill] sm:$0xff]  ;;  %v12474_v50 = vld [vmem:[#allocation95_spill] sm:$0xff] }
 0x35a   :  { %9511 = vtanh.f32 %v10831_v56 }
 0x35b   :  { %9513 = vrcp.f32 %v3857_v5  ;;  %v12479_v5 = vld [vmem:[#allocation100_spill] sm:$0xff] }
 0x362   :  { %v9508_v61 = vpop.eup %9507 }
 0x363   :  { %v9510_v55 = vpop.eup %9509  ;;  %v3861_v6 = vmul.f32 %v9508_v61, %v9506_v18  ;;  %v12475_v18 = vld [vmem:[#allocation96_spill] sm:$0xff]  ;;  %v12476_v61 = vld [vmem:[#allocation97_spill] sm:$0xff] }
 0x364   :  { %v3860_v40 = vmul.f32 0.0, %v9510_v55  ;;  %v9512_v47 = vpop.eup %9511  ;;  %v12477_v55 = vld [vmem:[#allocation98_spill] sm:$0xff] }
 0x365   :  { %v9514_v53 = vpop.eup %9513 }
 0x366   :  { %v10859_v19 = vadd.f32 %v3861_v6, %v3860_v40  ;;  %v12478_v6 = vld [vmem:[#allocation99_spill] sm:$0xff]  ;;  %v12480_v40 = vld [vmem:[#allocation101_spill] sm:$0xff] }
 0x368   :  { %9515 = vtanh.f32 %v10859_v19 }
 0x369   :  { %9517 = vrcp.f32 %v3829_v27  ;;  %v12481_v27 = vld [vmem:[#allocation102_spill] sm:$0xff] }
 0x372   :  { %v9516_v26 = vpop.eup %9515 }
 0x373   :  { %v9518_v45 = vpop.eup %9517  ;;  %v3864_v51 = vmul.f32 %v9516_v26, %v9514_v53  ;;  %v12483_v53 = vld [vmem:[#allocation104_spill] sm:$0xff]  ;;  %v12484_v26 = vld [vmem:[#allocation105_spill] sm:$0xff] }
 0x374   :  { %v10862_v21 = vmul.f32 %v9518_v45, %v9512_v47  ;;  %v12482_v47 = vld [vmem:[#allocation103_spill] sm:$0xff]  ;;  %v12485_v45 = vld [vmem:[#allocation106_spill] sm:$0xff] }
 0x375   :  { %3929 = vmatprep.mubr.f32.mxu0 %v3864_v51  ;;  %4000 = vmatprep.mubr.f32.mxu1 %v3864_v51 }
 0x376   :  { %3930 = vmatmul.mubr.f32.vlgmr.msra.gmra.mrb[12].mxu0 %v10862_v21  ;;  %4001 = vmatmul.mubr.f32.vlgmr.msra.gmra.mrb[12].mxu1 %v10862_v21 }
 0x377   :  { %7714 = vmatpush1.bf16.msra.mxu0 %v12467_v60  ;;  %7778 = vmatpush1.bf16.msra.mxu1 %v12468_v33 }
 0x378   :  { %4071 = vmatprep.mubr.f32.mxu0 %v3864_v51  ;;  %4142 = vmatprep.mubr.f32.mxu1 %v3864_v51  ;;  %v12486_v51 = vld [vmem:[#allocation107_spill] sm:$0xff] }
 0x379   :  { %7716 = vmatprep.subr.bf16.mxu0 %v12469_v15  ;;  %7780 = vmatprep.subr.bf16.mxu1 %v12470_v63 }
 0x37b   :  { %7718 = vmatpush1.bf16.msra.mxu0 %v12471_v3  ;;  %7782 = vmatpush1.bf16.msra.mxu1 %v12472_v30 }
 0x37c   :  { %7720 = vmatprep.subr.bf16.mxu0 %v12473_v4  ;;  %7784 = vmatprep.subr.bf16.mxu1 %v12474_v50 }
 0x37f   :  { %7722 = vmatpush1.bf16.msra.mxu0 %v12475_v18  ;;  %7786 = vmatpush1.bf16.msra.mxu1 %v12476_v61 }
 0x380   :  { %7724 = vmatprep.subr.bf16.mxu0 %v12477_v55  ;;  %7788 = vmatprep.subr.bf16.mxu1 %v12478_v6 }
 0x383   :  { %7726 = vmatpush1.bf16.msra.mxu0 %v12479_v5  ;;  %7790 = vmatpush1.bf16.msra.mxu1 %v12480_v40  ;;  %v12491_v40 = vld [vmem:[#allocation112_spill] sm:$0xff] }
 0x384   :  { %7728 = vmatprep.subr.bf16.mxu0 %v12481_v27  ;;  %7792 = vmatprep.subr.bf16.mxu1 %v12482_v47  ;;  %v12492_v27 = vld [vmem:[#allocation113_spill] sm:$0xff]  ;;  %v12493_v47 = vld [vmem:[#allocation114_spill] sm:$0xff] }
 0x387   :  { %7730 = vmatpush1.bf16.msra.mxu0 %v12483_v53  ;;  %7794 = vmatpush1.bf16.msra.mxu1 %v12484_v26  ;;  %v12494_v53 = vld [vmem:[#allocation115_spill] sm:$0xff]  ;;  %v12495_v26 = vld [vmem:[#allocation116_spill] sm:$0xff] }
 0x388   :  { %7732 = vmatprep.subr.bf16.mxu0 %v12485_v45  ;;  %7796 = vmatprep.subr.bf16.mxu1 %v12486_v51  ;;  %v12496_v45 = vld [vmem:[#allocation117_spill] sm:$0xff]  ;;  %v12497_v51 = vld [vmem:[#allocation118_spill] sm:$0xff] }
 0x38b   :  { %7734 = vmatpush1.bf16.msra.mxu0 %v12487_v36  ;;  %7798 = vmatpush1.bf16.msra.mxu1 %v12488_v49  ;;  %v12498_v36 = vld [vmem:[#allocation119_spill] sm:$0xff]  ;;  %v12499_v49 = vld [vmem:[#allocation120_spill] sm:$0xff] }
 0x38c   :  { %7736 = vmatprep.subr.bf16.mxu0 %v12489_v37  ;;  %7800 = vmatprep.subr.bf16.mxu1 %v12490_v44  ;;  %v12500_v37 = vld [vmem:[#allocation121_spill] sm:$0xff]  ;;  %v12501_v44 = vld [vmem:[#allocation122_spill] sm:$0xff] }
 0x38f   :  { %7738 = vmatpush1.bf16.msra.mxu0 %v12491_v40  ;;  %7802 = vmatpush1.bf16.msra.mxu1 %v12492_v27  ;;  %v12502_v40 = vld [vmem:[#allocation123_spill] sm:$0xff]  ;;  %v12503_v27 = vld [vmem:[#allocation124_spill] sm:$0xff] }
 0x390   :  { %7740 = vmatprep.subr.bf16.mxu0 %v12493_v47  ;;  %7804 = vmatprep.subr.bf16.mxu1 %v12494_v53  ;;  %v12504_v47 = vld [vmem:[#allocation125_spill] sm:$0xff]  ;;  %v12505_v53 = vld [vmem:[#allocation126_spill] sm:$0xff] }
 0x393   :  { %7742 = vmatpush1.bf16.msra.mxu0 %v12495_v26  ;;  %7806 = vmatpush1.bf16.msra.mxu1 %v12496_v45  ;;  %v12506_v26 = vld [vmem:[#allocation127_spill] sm:$0xff]  ;;  %v12507_v45 = vld [vmem:[#allocation128_spill] sm:$0xff] }
 0x394   :  { %7744 = vmatprep.subr.bf16.mxu0 %v12497_v51  ;;  %7808 = vmatprep.subr.bf16.mxu1 %v12498_v36  ;;  %v12508_v51 = vld [vmem:[#allocation129_spill] sm:$0xff]  ;;  %v12509_v36 = vld [vmem:[#allocation130_spill] sm:$0xff] }
 0x397   :  { %7746 = vmatpush1.bf16.msra.mxu0 %v12499_v49  ;;  %7810 = vmatpush1.bf16.msra.mxu1 %v12500_v37  ;;  %v12510_v49 = vld [vmem:[#allocation131_spill] sm:$0xff]  ;;  %v12511_v37 = vld [vmem:[#allocation132_spill] sm:$0xff] }
 0x398   :  { %7748 = vmatprep.subr.bf16.mxu0 %v12501_v44  ;;  %7812 = vmatprep.subr.bf16.mxu1 %v12502_v40  ;;  %v12512_v44 = vld [vmem:[#allocation133_spill] sm:$0xff]  ;;  %v12513_v40 = vld [vmem:[#allocation134_spill] sm:$0xff] }
 0x39b   :  { %7750 = vmatpush1.bf16.msra.mxu0 %v12503_v27  ;;  %7814 = vmatpush1.bf16.msra.mxu1 %v12504_v47  ;;  %v12514_v27 = vld [vmem:[#allocation135_spill] sm:$0xff]  ;;  %v12515_v47 = vld [vmem:[#allocation136_spill] sm:$0xff] }
 0x39c   :  { %7752 = vmatprep.subr.bf16.mxu0 %v12505_v53  ;;  %7816 = vmatprep.subr.bf16.mxu1 %v12506_v26  ;;  %v12516_v53 = vld [vmem:[#allocation137_spill] sm:$0xff] }
 0x39f   :  { %7754 = vmatpush1.bf16.msra.mxu0 %v12507_v45  ;;  %7818 = vmatpush1.bf16.msra.mxu1 %v12508_v51  ;;  %v12517_v45 = vld [vmem:[#allocation139_spill] sm:$0xff] }
 0x3a0   :  { %7756 = vmatprep.subr.bf16.mxu0 %v12509_v36  ;;  %7820 = vmatprep.subr.bf16.mxu1 %v12510_v49 }
 0x3a3   :  { %7758 = vmatpush1.bf16.msra.mxu0 %v12511_v37  ;;  %7822 = vmatpush1.bf16.msra.mxu1 %v12512_v44 }
 0x3a4   :  { %7760 = vmatprep.subr.bf16.mxu0 %v12513_v40  ;;  %7824 = vmatprep.subr.bf16.mxu1 %v12514_v27 }
 0x3a7   :  { %7762 = vmatpush1.bf16.msra.mxu0 %v12515_v47  ;;  %7826 = vmatpush1.bf16.msra.mxu1 %v12516_v53 }
 0x3a8   :  { %7764 = vmatprep.subr.bf16.mxu0 %v10428_v59  ;;  %7828 = vmatprep.subr.bf16.mxu1 %v12517_v45 }
 0x3ab   :  { %7766 = vmatpush1.bf16.msra.mxu0 %v10434_v46  ;;  %7830 = vmatpush1.bf16.msra.mxu1 %v10438_v62 }
 0x3ac   :  { %7768 = vmatprep.subr.bf16.mxu0 %v10440_v9  ;;  %7832 = vmatprep.subr.bf16.mxu1 %v10443_v34 }
 0x3af   :  { %7770 = vmatpush1.bf16.msra.mxu0 %v10446_v41  ;;  %7834 = vmatpush1.bf16.msra.mxu1 %v10450_v32 }
 0x3b0   :  { %7772 = vmatprep.subr.bf16.mxu0 %v10452_v48  ;;  %7836 = vmatprep.subr.bf16.mxu1 %v10455_v8 }
 0x3b3   :  { %7774 = vmatpush1.bf16.msra.mxu0 %v10458_v16  ;;  %7838 = vmatpush1.bf16.msra.mxu1 %v10462_v42 }
 0x3b4   :  { %7840 = vmatprep.subr.bf16.mxu0 %v10057_v52  ;;  %7904 = vmatprep.subr.bf16.mxu1 %v10059_v58 }
 0x3b6   :  { %4072 = vmatmul.mubr.f32.vlgmr.msra.gmra.mrb[14].mxu0 %v10862_v21  ;;  %4143 = vmatmul.mubr.f32.vlgmr.msra.gmra.mrb[14].mxu1 %v10862_v21  ;;  %v12518_v21 = vld [vmem:[#allocation32_spill] sm:$0xff] }
 0x3b7   :  { %7842 = vmatpush1.bf16.msra.mxu0 %v10061_v0  ;;  %7906 = vmatpush1.bf16.msra.mxu1 %v10064_v1 }
 0x3b8   :  { %7844 = vmatprep.subr.bf16.mxu0 %v10066_v2  ;;  %7908 = vmatprep.subr.bf16.mxu1 %v10069_v12  ;;  %v12519_v2 = vld [vmem:[#allocation33_spill] sm:$0xff]  ;;  %v12520_v12 = vld [vmem:[#allocation34_spill] sm:$0xff] }
 0x3bb   :  { %7846 = vmatpush1.bf16.msra.mxu0 %v10074_v10  ;;  %7910 = vmatpush1.bf16.msra.mxu1 %v10078_v11  ;;  %v12521_v10 = vld [vmem:[#allocation35_spill] sm:$0xff]  ;;  %v12522_v11 = vld [vmem:[#allocation37_spill] sm:$0xff] }
 0x3bc   :  { %7848 = vmatprep.subr.bf16.mxu0 %v10080_v13  ;;  %7912 = vmatprep.subr.bf16.mxu1 %v10083_v17  ;;  %v12523_v13 = vld [vmem:[#allocation40_spill] sm:$0xff]  ;;  %v12524_v17 = vld [vmem:[#allocation42_spill] sm:$0xff] }
 0x3bf   :  { %7850 = vmatpush1.bf16.msra.mxu0 %v10088_v22  ;;  %7914 = vmatpush1.bf16.msra.mxu1 %v10092_v24  ;;  %v12525_v22 = vld [vmem:[#allocation43_spill] sm:$0xff]  ;;  %v12526_v24 = vld [vmem:[#allocation44_spill] sm:$0xff] }
 0x3c0   :  { %7852 = vmatprep.subr.bf16.mxu0 %v10094_v25  ;;  %7916 = vmatprep.subr.bf16.mxu1 %v10097_v28  ;;  %v12527_v25 = vld [vmem:[#allocation45_spill] sm:$0xff]  ;;  %v12528_v28 = vld [vmem:[#allocation46_spill] sm:$0xff] }
 0x3c3   :  { %7854 = vmatpush1.bf16.msra.mxu0 %v12518_v21  ;;  %7918 = vmatpush1.bf16.msra.mxu1 %v12519_v2  ;;  %v12529_v21 = vld [vmem:[#allocation47_spill] sm:$0xff]  ;;  %v12530_v2 = vld [vmem:[#allocation48_spill] sm:$0xff] }
 0x3c4   :  { %7856 = vmatprep.subr.bf16.mxu0 %v12520_v12  ;;  %7920 = vmatprep.subr.bf16.mxu1 %v12521_v10  ;;  %v12531_v12 = vld [vmem:[#allocation49_spill] sm:$0xff]  ;;  %v12532_v10 = vld [vmem:[#allocation50_spill] sm:$0xff] }
 0x3c7   :  { %7858 = vmatpush1.bf16.msra.mxu0 %v12522_v11  ;;  %7922 = vmatpush1.bf16.msra.mxu1 %v12523_v13  ;;  %v12533_v11 = vld [vmem:[#allocation51_spill] sm:$0xff]  ;;  %v12534_v13 = vld [vmem:[#allocation52_spill] sm:$0xff] }
 0x3c8   :  { %7860 = vmatprep.subr.bf16.mxu0 %v12524_v17  ;;  %7924 = vmatprep.subr.bf16.mxu1 %v12525_v22  ;;  %v12535_v17 = vld [vmem:[#allocation53_spill] sm:$0xff]  ;;  %v12536_v22 = vld [vmem:[#allocation54_spill] sm:$0xff] }
 0x3cb   :  { %7862 = vmatpush1.bf16.msra.mxu0 %v12526_v24  ;;  %7926 = vmatpush1.bf16.msra.mxu1 %v12527_v25  ;;  %v12537_v24 = vld [vmem:[#allocation55_spill] sm:$0xff]  ;;  %v12538_v25 = vld [vmem:[#allocation56_spill] sm:$0xff] }
 0x3cc   :  { %7864 = vmatprep.subr.bf16.mxu0 %v12528_v28  ;;  %7928 = vmatprep.subr.bf16.mxu1 %v12529_v21  ;;  %v12539_v28 = vld [vmem:[#allocation57_spill] sm:$0xff]  ;;  %v12540_v21 = vld [vmem:[#allocation58_spill] sm:$0xff] }
 0x3cf   :  { %7866 = vmatpush1.bf16.msra.mxu0 %v12530_v2  ;;  %7930 = vmatpush1.bf16.msra.mxu1 %v12531_v12  ;;  %v12541_v2 = vld [vmem:[#allocation59_spill] sm:$0xff]  ;;  %v12542_v12 = vld [vmem:[#allocation60_spill] sm:$0xff] }
 0x3d0   :  { %7868 = vmatprep.subr.bf16.mxu0 %v12532_v10  ;;  %7932 = vmatprep.subr.bf16.mxu1 %v12533_v11  ;;  %v12543_v10 = vld [vmem:[#allocation61_spill] sm:$0xff]  ;;  %v12544_v11 = vld [vmem:[#allocation62_spill] sm:$0xff] }
 0x3d3   :  { %7870 = vmatpush1.bf16.msra.mxu0 %v12534_v13  ;;  %7934 = vmatpush1.bf16.msra.mxu1 %v12535_v17  ;;  %v12545_v13 = vld [vmem:[#allocation63_spill] sm:$0xff]  ;;  %v12546_v17 = vld [vmem:[#allocation64_spill] sm:$0xff] }
 0x3d4   :  { %7872 = vmatprep.subr.bf16.mxu0 %v12536_v22  ;;  %7936 = vmatprep.subr.bf16.mxu1 %v12537_v24  ;;  %v12547_v22 = vld [vmem:[#allocation65_spill] sm:$0xff]  ;;  %v12548_v24 = vld [vmem:[#allocation66_spill] sm:$0xff] }
 0x3d7   :  { %7874 = vmatpush1.bf16.msra.mxu0 %v12538_v25  ;;  %7938 = vmatpush1.bf16.msra.mxu1 %v12539_v28  ;;  %v12549_v25 = vld [vmem:[#allocation67_spill] sm:$0xff]  ;;  %v12550_v28 = vld [vmem:[#allocation68_spill] sm:$0xff] }
 0x3d8   :  { %7876 = vmatprep.subr.bf16.mxu0 %v12540_v21  ;;  %7940 = vmatprep.subr.bf16.mxu1 %v12541_v2  ;;  %v12551_v21 = vld [vmem:[#allocation69_spill] sm:$0xff]  ;;  %v12552_v2 = vld [vmem:[#allocation70_spill] sm:$0xff] }
 0x3db   :  { %7878 = vmatpush1.bf16.msra.mxu0 %v12542_v12  ;;  %7942 = vmatpush1.bf16.msra.mxu1 %v12543_v10  ;;  %v12553_v12 = vld [vmem:[#allocation71_spill] sm:$0xff]  ;;  %v12554_v10 = vld [vmem:[#allocation72_spill] sm:$0xff] }
 0x3dc   :  { %7880 = vmatprep.subr.bf16.mxu0 %v12544_v11  ;;  %7944 = vmatprep.subr.bf16.mxu1 %v12545_v13  ;;  %v12555_v11 = vld [vmem:[#allocation73_spill] sm:$0xff]  ;;  %v12556_v13 = vld [vmem:[#allocation74_spill] sm:$0xff] }
 0x3df   :  { %7882 = vmatpush1.bf16.msra.mxu0 %v12546_v17  ;;  %7946 = vmatpush1.bf16.msra.mxu1 %v12547_v22  ;;  %v12557_v17 = vld [vmem:[#allocation75_spill] sm:$0xff]  ;;  %v12558_v22 = vld [vmem:[#allocation76_spill] sm:$0xff] }
 0x3e0   :  { %7884 = vmatprep.subr.bf16.mxu0 %v12548_v24  ;;  %7948 = vmatprep.subr.bf16.mxu1 %v12549_v25  ;;  %v12559_v24 = vld [vmem:[#allocation77_spill] sm:$0xff]  ;;  %v12560_v25 = vld [vmem:[#allocation78_spill] sm:$0xff] }
 0x3e3   :  { %7886 = vmatpush1.bf16.msra.mxu0 %v12550_v28  ;;  %7950 = vmatpush1.bf16.msra.mxu1 %v12551_v21  ;;  %v12561_v28 = vld [vmem:[#allocation79_spill] sm:$0xff]  ;;  %v12562_v21 = vld [vmem:[#allocation80_spill] sm:$0xff] }
 0x3e4   :  { %7888 = vmatprep.subr.bf16.mxu0 %v12552_v2  ;;  %7952 = vmatprep.subr.bf16.mxu1 %v12553_v12  ;;  %v12563_v2 = vld [vmem:[#allocation81_spill] sm:$0xff]  ;;  %v12564_v12 = vld [vmem:[#allocation82_spill] sm:$0xff] }
 0x3e7   :  { %7890 = vmatpush1.bf16.msra.mxu0 %v12554_v10  ;;  %7954 = vmatpush1.bf16.msra.mxu1 %v12555_v11  ;;  %v12565_v10 = vld [vmem:[#allocation83_spill] sm:$0xff]  ;;  %v12566_v11 = vld [vmem:[#allocation84_spill] sm:$0xff] }
 0x3e8   :  { %7892 = vmatprep.subr.bf16.mxu0 %v12556_v13  ;;  %7956 = vmatprep.subr.bf16.mxu1 %v12557_v17  ;;  %v12567_v13 = vld [vmem:[#allocation85_spill] sm:$0xff]  ;;  %v12568_v17 = vld [vmem:[#allocation86_spill] sm:$0xff] }
 0x3eb   :  { %7894 = vmatpush1.bf16.msra.mxu0 %v12558_v22  ;;  %7958 = vmatpush1.bf16.msra.mxu1 %v12559_v24  ;;  %v12569_v22 = vld [vmem:[#allocation87_spill] sm:$0xff] }
 0x3ec   :  { %7896 = vmatprep.subr.bf16.mxu0 %v12560_v25  ;;  %7960 = vmatprep.subr.bf16.mxu1 %v12561_v28  ;;  %v4202_v25 = vrot.slane %v10579_v20, %v12424_v39 }
 0x3ef   :  { %7898 = vmatpush1.bf16.msra.mxu0 %v12562_v21  ;;  %7962 = vmatpush1.bf16.msra.mxu1 %v12563_v2  ;;  %v4210_v21 = vrot.slane %v10579_v20, %v12431_v35  ;;  %v4206_v2 = vrot.slane %v10579_v20, %v12427_v54 }
 0x3f0   :  { %7900 = vmatprep.subr.bf16.mxu0 %v12564_v12  ;;  %7964 = vmatprep.subr.bf16.mxu1 %v12565_v10  ;;  %v4214_v10 = vrot.slane %v10579_v20, %v12433_v38 }
 0x3f3   :  { %7902 = vmatpush1.bf16.msra.mxu0 %v12566_v11  ;;  %7966 = vmatpush1.bf16.msra.mxu1 %v12567_v13  ;;  %v4161_v11 = vrot.slane %v10561_v57, %v12424_v39  ;;  %v4173_v13 = vrot.slane %v10561_v57, %v12433_v38 }
 0x3f4   :  { %7968 = vmatprep.subr.bf16.mxu0 %v12568_v17  ;;  %8032 = vmatprep.subr.bf16.mxu1 %v12569_v22  ;;  %v4169_v17 = vrot.slane %v10561_v57, %v12431_v35  ;;  %v4165_v22 = vrot.slane %v10561_v57, %v12427_v54 }
 0x3f5   :  { %v4239_v28 = vsel %vm3702_vm0, %v4161_v11, %v4202_v25  ;;  %v4242_v35 = vsel %vm3702_vm0, %v4173_v13, %v4214_v10  ;;  %v4328_v13 = vrot.slane %v10581_v14, %v10545_v43 }
 0x3f6   :  { %v4241_v1 = vsel %vm3702_vm0, %v4169_v17, %v4210_v21  ;;  %v4240_v39 = vsel %vm3702_vm0, %v4165_v22, %v4206_v2 }
 0x449   :  { %v3931_v12 = vpop.f32.mrb[12].mxu0  ;;  %v4002_v24 = vpop.f32.mrb[12].mxu1 }
 0x44a   :  { %v4345_v0 = vadd.f32 %v4239_v28, %v3931_v12  ;;  %v4347_v20 = vadd.f32 %v4241_v1, %v4002_v24  ;;  %v3933_v58 = vpop.f32.mrb[13].mxu0  ;;  %v4004_v52 = vpop.f32.mrb[13].mxu1  ;;  %v4275_v24 = vrot.slane %v10563_v29, %v10536_v23  ;;  %v4283_v28 = vrot.slane %v10563_v29, %v10539_v7 }
 0x44b   :  { %v4346_v42 = vadd.f32 %v4240_v39, %v3933_v58  ;;  %v4348_v16 = vadd.f32 %v4242_v35, %v4004_v52  ;;  %v4316_v52 = vrot.slane %v10581_v14, %v10536_v23  ;;  %v4324_v58 = vrot.slane %v10581_v14, %v10539_v7 }
 0x44c   :  { %v7283_v54 = vmul.f32 -1.442695, %v4345_v0  ;;  %v4320_v0 = vrot.slane %v10581_v14, %v10542_v31  ;;  %v4279_v39 = vrot.slane %v10563_v29, %v10542_v31 }
 0x44d   :  { %v7284_v8 = vmul.f32 -1.442695, %v4346_v42 }
 0x44e   :  { %9519 = vpow2.f32 %v7283_v54  ;;  %v4341_v54 = vsel %vm3702_vm0, %v4275_v24, %v4316_v52 }
 0x44f   :  { %9521 = vpow2.f32 %v7284_v8  ;;  %v4287_v8 = vrot.slane %v10563_v29, %v10545_v43  ;;  %v7285_v29 = vmul.f32 -1.442695, %v4348_v16 }
 0x450   :  { %9523 = vtanh.f32 %v4347_v20  ;;  %v4342_v20 = vsel %vm3702_vm0, %v4279_v39, %v4320_v0 }
 0x458   :  { %v9520_v57 = vpop.eup %9519 }
 0x459   :  { %v9522_v38 = vpop.eup %9521  ;;  %v4352_v11 = vadd.f32 1.0, %v9520_v57 }
 0x45a   :  { %v4358_v25 = vadd.f32 1.0, %v9522_v38  ;;  %v9524_v1 = vpop.eup %9523  ;;  %v4343_v38 = vsel %vm3702_vm0, %v4283_v28, %v4324_v58 }
 0x45b   :  { %9525 = vrcp.f32 %v4352_v11  ;;  %v4344_v11 = vsel %vm3702_vm0, %v4287_v8, %v4328_v13 }
 0x45c   :  { %9527 = vrcp.f32 %v4358_v25 }
 0x465   :  { %v9526_v12 = vpop.eup %9525 }
 0x466   :  { %v9528_v17 = vpop.eup %9527  ;;  %v4369_v2 = vmul.f32 %v9526_v12, %v9524_v1 }
 0x467   :  { %v4368_v22 = vmul.f32 %v9528_v17, %v10831_v56 }
 0x469   :  { %v11017_v10 = vadd.f32 %v4369_v2, %v4368_v22 }
 0x489   :  { %v4073_v42 = vpop.f32.mrb[14].mxu0  ;;  %v4144_v35 = vpop.f32.mrb[14].mxu1 }
 0x48a   :  { %v4373_v56 = vadd.f32 %v4341_v54, %v4073_v42  ;;  %v4375_v14 = vadd.f32 %v4343_v38, %v4144_v35  ;;  %v4075_v21 = vpop.f32.mrb[15].mxu0  ;;  %v4146_v57 = vpop.f32.mrb[15].mxu1 }
 0x48b   :  { %v4374_v25 = vadd.f32 %v4342_v20, %v4075_v21  ;;  %v4376_v1 = vadd.f32 %v4344_v11, %v4146_v57 }
 0x48c   :  { %v7286_v12 = vmul.f32 -1.442695, %v4373_v56 }
 0x48d   :  { %v7287_v17 = vmul.f32 -1.442695, %v4374_v25  ;;  %v7288_v2 = vmul.f32 -1.442695, %v4376_v1  ;;  %v12571_v25 = vld [vmem:[#allocation102_spill] sm:$0xff]  ;;  %v12572_v1 = vld [vmem:[#allocation103_spill] sm:$0xff] }
 0x48e   :  { %9529 = vpow2.f32 %v7286_v12  ;;  %v12573_v12 = vld [vmem:[#allocation104_spill] sm:$0xff] }
 0x48f   :  { %9531 = vpow2.f32 %v7287_v17  ;;  %v12574_v17 = vld [vmem:[#allocation105_spill] sm:$0xff] }
 0x490   :  { %9533 = vpow2.f32 %v7285_v29  ;;  %v12575_v29 = vld [vmem:[#allocation106_spill] sm:$0xff] }
 0x491   :  { %9535 = vpow2.f32 %v7288_v2  ;;  %v12576_v2 = vld [vmem:[#allocation107_spill] sm:$0xff] }
 0x492   :  { %9537 = vtanh.f32 %v4375_v14 }
 0x498   :  { %v9530_v22 = vpop.eup %9529 }
 0x499   :  { %v9532_v52 = vpop.eup %9531  ;;  %v4380_v58 = vadd.f32 1.0, %v9530_v22  ;;  %v12577_v22 = vld [vmem:[#allocation108_spill] sm:$0xff] }
 0x49a   :  { %v4386_v24 = vadd.f32 1.0, %v9532_v52  ;;  %v9534_v0 = vpop.eup %9533  ;;  %v12578_v52 = vld [vmem:[#allocation109_spill] sm:$0xff] }
 0x49b   :  { %9539 = vrcp.f32 %v4380_v58  ;;  %v9536_v28 = vpop.eup %9535  ;;  %v4365_v16 = vadd.f32 1.0, %v9534_v0  ;;  %v12579_v58 = vld [vmem:[#allocation110_spill] sm:$0xff]  ;;  %v12581_v0 = vld [vmem:[#allocation112_spill] sm:$0xff] }
 0x49c   :  { %9541 = vrcp.f32 %v4386_v24  ;;  %v9538_v13 = vpop.eup %9537  ;;  %v4393_v54 = vadd.f32 1.0, %v9536_v28  ;;  %v12580_v24 = vld [vmem:[#allocation111_spill] sm:$0xff]  ;;  %v12582_v28 = vld [vmem:[#allocation113_spill] sm:$0xff] }
 0x49d   :  { %9543 = vtanh.f32 %v11017_v10 }
 0x49e   :  { %9545 = vrcp.f32 %v4393_v54  ;;  %v12587_v54 = vld [vmem:[#allocation118_spill] sm:$0xff] }
 0x4a5   :  { %v9540_v39 = vpop.eup %9539 }
 0x4a6   :  { %v9542_v8 = vpop.eup %9541  ;;  %v4397_v42 = vmul.f32 %v9540_v39, %v9538_v13  ;;  %v12583_v13 = vld [vmem:[#allocation114_spill] sm:$0xff]  ;;  %v12584_v39 = vld [vmem:[#allocation115_spill] sm:$0xff] }
 0x4a7   :  { %v4396_v35 = vmul.f32 %v9542_v8, %v10859_v19  ;;  %v9544_v56 = vpop.eup %9543  ;;  %v12570_v19 = vld [vmem:[#allocation101_spill] sm:$0xff]  ;;  %v12585_v8 = vld [vmem:[#allocation116_spill] sm:$0xff] }
 0x4a8   :  { %v9546_v14 = vpop.eup %9545 }
 0x4a9   :  { %v11040_v38 = vadd.f32 %v4397_v42, %v4396_v35  ;;  %v12586_v42 = vld [vmem:[#allocation117_spill] sm:$0xff]  ;;  %v12588_v35 = vld [vmem:[#allocation119_spill] sm:$0xff] }
 0x4ab   :  { %9547 = vtanh.f32 %v11040_v38 }
 0x4ac   :  { %9549 = vrcp.f32 %v4365_v16  ;;  %v12589_v16 = vld [vmem:[#allocation120_spill] sm:$0xff] }
 0x4b5   :  { %v9548_v21 = vpop.eup %9547 }
 0x4b6   :  { %v9550_v20 = vpop.eup %9549  ;;  %v4400_v57 = vmul.f32 %v9548_v21, %v9546_v14  ;;  %v12591_v14 = vld [vmem:[#allocation122_spill] sm:$0xff]  ;;  %v12592_v21 = vld [vmem:[#allocation123_spill] sm:$0xff] }
 0x4b7   :  { %v11044_v11 = vmul.f32 %v9550_v20, %v9544_v56  ;;  %v12590_v56 = vld [vmem:[#allocation121_spill] sm:$0xff]  ;;  %v12593_v20 = vld [vmem:[#allocation124_spill] sm:$0xff] }
 0x4b8   :  { %4465 = vmatprep.mubr.f32.mxu0 %v4400_v57  ;;  %4536 = vmatprep.mubr.f32.mxu1 %v4400_v57 }
 0x4b9   :  { %4466 = vmatmul.mubr.f32.vlgmr.msra.gmra.mrb[16].mxu0 %v11044_v11  ;;  %4537 = vmatmul.mubr.f32.vlgmr.msra.gmra.mrb[16].mxu1 %v11044_v11 }
 0x4ba   :  { %7970 = vmatpush1.bf16.msra.mxu0 %v12467_v60  ;;  %8034 = vmatpush1.bf16.msra.mxu1 %v12468_v33 }
 0x4bb   :  { %4607 = vmatprep.mubr.f32.mxu0 %v4400_v57  ;;  %4678 = vmatprep.mubr.f32.mxu1 %v4400_v57  ;;  %v12594_v57 = vld [vmem:[#allocation125_spill] sm:$0xff] }
 0x4bc   :  { %7972 = vmatprep.subr.bf16.mxu0 %v12469_v15  ;;  %8036 = vmatprep.subr.bf16.mxu1 %v12470_v63 }
 0x4be   :  { %7974 = vmatpush1.bf16.msra.mxu0 %v12471_v3  ;;  %8038 = vmatpush1.bf16.msra.mxu1 %v12472_v30 }
 0x4bf   :  { %7976 = vmatprep.subr.bf16.mxu0 %v12473_v4  ;;  %8040 = vmatprep.subr.bf16.mxu1 %v12474_v50 }
 0x4c2   :  { %7978 = vmatpush1.bf16.msra.mxu0 %v12475_v18  ;;  %8042 = vmatpush1.bf16.msra.mxu1 %v12476_v61 }
 0x4c3   :  { %7980 = vmatprep.subr.bf16.mxu0 %v12477_v55  ;;  %8044 = vmatprep.subr.bf16.mxu1 %v12478_v6 }
 0x4c6   :  { %7982 = vmatpush1.bf16.msra.mxu0 %v12479_v5  ;;  %8046 = vmatpush1.bf16.msra.mxu1 %v12570_v19 }
 0x4c7   :  { %7984 = vmatprep.subr.bf16.mxu0 %v12571_v25  ;;  %8048 = vmatprep.subr.bf16.mxu1 %v12572_v1 }
 0x4ca   :  { %7986 = vmatpush1.bf16.msra.mxu0 %v12573_v12  ;;  %8050 = vmatpush1.bf16.msra.mxu1 %v12574_v17 }
 0x4cb   :  { %7988 = vmatprep.subr.bf16.mxu0 %v12575_v29  ;;  %8052 = vmatprep.subr.bf16.mxu1 %v12576_v2 }
 0x4ce   :  { %7990 = vmatpush1.bf16.msra.mxu0 %v12577_v22  ;;  %8054 = vmatpush1.bf16.msra.mxu1 %v12578_v52 }
 0x4cf   :  { %7992 = vmatprep.subr.bf16.mxu0 %v12579_v58  ;;  %8056 = vmatprep.subr.bf16.mxu1 %v12580_v24 }
 0x4d2   :  { %7994 = vmatpush1.bf16.msra.mxu0 %v12581_v0  ;;  %8058 = vmatpush1.bf16.msra.mxu1 %v12582_v28 }
 0x4d3   :  { %7996 = vmatprep.subr.bf16.mxu0 %v12583_v13  ;;  %8060 = vmatprep.subr.bf16.mxu1 %v12584_v39  ;;  %v12595_v39 = vld [vmem:[#allocation126_spill] sm:$0xff] }
 0x4d6   :  { %7998 = vmatpush1.bf16.msra.mxu0 %v12585_v8  ;;  %8062 = vmatpush1.bf16.msra.mxu1 %v12586_v42  ;;  %v12596_v42 = vld [vmem:[#allocation128_spill] sm:$0xff] }
 0x4d7   :  { %8000 = vmatprep.subr.bf16.mxu0 %v12587_v54  ;;  %8064 = vmatprep.subr.bf16.mxu1 %v12588_v35 }
 0x4da   :  { %8002 = vmatpush1.bf16.msra.mxu0 %v12589_v16  ;;  %8066 = vmatpush1.bf16.msra.mxu1 %v12590_v56 }
 0x4db   :  { %8004 = vmatprep.subr.bf16.mxu0 %v12591_v14  ;;  %8068 = vmatprep.subr.bf16.mxu1 %v12592_v21 }
 0x4de   :  { %8006 = vmatpush1.bf16.msra.mxu0 %v12593_v20  ;;  %8070 = vmatpush1.bf16.msra.mxu1 %v12594_v57 }
 0x4df   :  { %8008 = vmatprep.subr.bf16.mxu0 %v12595_v39  ;;  %8072 = vmatprep.subr.bf16.mxu1 %v12506_v26 }
 0x4e2   :  { %8010 = vmatpush1.bf16.msra.mxu0 %v12596_v42  ;;  %8074 = vmatpush1.bf16.msra.mxu1 %v12508_v51 }
 0x4e3   :  { %8012 = vmatprep.subr.bf16.mxu0 %v12509_v36  ;;  %8076 = vmatprep.subr.bf16.mxu1 %v12510_v49 }
 0x4e6   :  { %8014 = vmatpush1.bf16.msra.mxu0 %v12511_v37  ;;  %8078 = vmatpush1.bf16.msra.mxu1 %v12512_v44 }
 0x4e7   :  { %8016 = vmatprep.subr.bf16.mxu0 %v12513_v40  ;;  %8080 = vmatprep.subr.bf16.mxu1 %v12514_v27  ;;  %v12669_v27 = vld [vmem:[#allocation39_spill] sm:$0xff] }
 0x4ea   :  { %8018 = vmatpush1.bf16.msra.mxu0 %v12515_v47  ;;  %8082 = vmatpush1.bf16.msra.mxu1 %v12516_v53  ;;  %v12597_v47 = vld [vmem:[#allocation147_spill] sm:$0xff]  ;;  %v12598_v53 = vld [vmem:[#allocation148_spill] sm:$0xff] }
 0x4eb   :  { %8020 = vmatprep.subr.bf16.mxu0 %v10428_v59  ;;  %8084 = vmatprep.subr.bf16.mxu1 %v12517_v45  ;;  %v12599_v59 = vld [vmem:[#allocation149_spill] sm:$0xff] }
 0x4ec   :  { %v12600_v45 = vld [vmem:[#allocation17_spill] sm:$0xff] }
 0x4ee   :  { %8022 = vmatpush1.bf16.msra.mxu0 %v10434_v46  ;;  %8086 = vmatpush1.bf16.msra.mxu1 %v10438_v62  ;;  %v12601_v46 = vld [vmem:[#allocation18_spill] sm:$0xff] }
 0x4ef   :  { %8024 = vmatprep.subr.bf16.mxu0 %v10440_v9  ;;  %8088 = vmatprep.subr.bf16.mxu1 %v10443_v34  ;;  %v12602_v34 = vld [vmem:[#allocation19_spill] sm:$0xff]  ;;  %v12611_v9 = vld [vmem:[#allocation28_spill] sm:$0xff] }
 0x4f2   :  { %8026 = vmatpush1.bf16.msra.mxu0 %v10446_v41  ;;  %8090 = vmatpush1.bf16.msra.mxu1 %v10450_v32  ;;  %v12603_v41 = vld [vmem:[#allocation20_spill] sm:$0xff]  ;;  %v12604_v32 = vld [vmem:[#allocation21_spill] sm:$0xff] }
 0x4f3   :  { %8028 = vmatprep.subr.bf16.mxu0 %v10452_v48  ;;  %8092 = vmatprep.subr.bf16.mxu1 %v12597_v47  ;;  %v12605_v48 = vld [vmem:[#allocation22_spill] sm:$0xff]  ;;  %v12606_v47 = vld [vmem:[#allocation23_spill] sm:$0xff] }
 0x4f6   :  { %8030 = vmatpush1.bf16.msra.mxu0 %v12598_v53  ;;  %8094 = vmatpush1.bf16.msra.mxu1 %v12599_v59  ;;  %v12607_v53 = vld [vmem:[#allocation24_spill] sm:$0xff]  ;;  %v12608_v59 = vld [vmem:[#allocation25_spill] sm:$0xff] }
 0x4f7   :  { %8096 = vmatprep.subr.bf16.mxu0 %v12600_v45  ;;  %8160 = vmatprep.subr.bf16.mxu1 %v12601_v46  ;;  %v12609_v45 = vld [vmem:[#allocation26_spill] sm:$0xff]  ;;  %v12610_v46 = vld [vmem:[#allocation27_spill] sm:$0xff] }
 0x4f9   :  { %4608 = vmatmul.mubr.f32.vlgmr.msra.gmra.mrb[18].mxu0 %v11044_v11  ;;  %4679 = vmatmul.mubr.f32.vlgmr.msra.gmra.mrb[18].mxu1 %v11044_v11  ;;  %v12612_v11 = vld [vmem:[#allocation29_spill] sm:$0xff] }
 0x4fa   :  { %8098 = vmatpush1.bf16.msra.mxu0 %v12602_v34  ;;  %8162 = vmatpush1.bf16.msra.mxu1 %v12603_v41  ;;  %v12613_v34 = vld [vmem:[#allocation30_spill] sm:$0xff]  ;;  %v12614_v41 = vld [vmem:[#allocation32_spill] sm:$0xff] }
 0x4fb   :  { %8100 = vmatprep.subr.bf16.mxu0 %v12604_v32  ;;  %8164 = vmatprep.subr.bf16.mxu1 %v12605_v48  ;;  %v12615_v32 = vld [vmem:[#allocation33_spill] sm:$0xff]  ;;  %v12616_v48 = vld [vmem:[#allocation34_spill] sm:$0xff] }
 0x4fe   :  { %8102 = vmatpush1.bf16.msra.mxu0 %v12606_v47  ;;  %8166 = vmatpush1.bf16.msra.mxu1 %v12607_v53  ;;  %v12617_v47 = vld [vmem:[#allocation35_spill] sm:$0xff]  ;;  %v12618_v53 = vld [vmem:[#allocation37_spill] sm:$0xff] }
 0x4ff   :  { %8104 = vmatprep.subr.bf16.mxu0 %v12608_v59  ;;  %8168 = vmatprep.subr.bf16.mxu1 %v12609_v45  ;;  %v12619_v59 = vld [vmem:[#allocation40_spill] sm:$0xff]  ;;  %v12620_v45 = vld [vmem:[#allocation42_spill] sm:$0xff] }
 0x502   :  { %8106 = vmatpush1.bf16.msra.mxu0 %v12610_v46  ;;  %8170 = vmatpush1.bf16.msra.mxu1 %v12611_v9  ;;  %v12621_v46 = vld [vmem:[#allocation43_spill] sm:$0xff]  ;;  %v12622_v9 = vld [vmem:[#allocation44_spill] sm:$0xff] }
 0x503   :  { %8108 = vmatprep.subr.bf16.mxu0 %v12612_v11  ;;  %8172 = vmatprep.subr.bf16.mxu1 %v12613_v34  ;;  %v12623_v11 = vld [vmem:[#allocation45_spill] sm:$0xff]  ;;  %v12624_v34 = vld [vmem:[#allocation46_spill] sm:$0xff] }
 0x506   :  { %8110 = vmatpush1.bf16.msra.mxu0 %v12614_v41  ;;  %8174 = vmatpush1.bf16.msra.mxu1 %v12615_v32  ;;  %v12625_v41 = vld [vmem:[#allocation47_spill] sm:$0xff]  ;;  %v12626_v32 = vld [vmem:[#allocation48_spill] sm:$0xff] }
 0x507   :  { %8112 = vmatprep.subr.bf16.mxu0 %v12616_v48  ;;  %8176 = vmatprep.subr.bf16.mxu1 %v12617_v47  ;;  %v12627_v48 = vld [vmem:[#allocation49_spill] sm:$0xff]  ;;  %v12628_v47 = vld [vmem:[#allocation50_spill] sm:$0xff] }
 0x50a   :  { %8114 = vmatpush1.bf16.msra.mxu0 %v12618_v53  ;;  %8178 = vmatpush1.bf16.msra.mxu1 %v12619_v59  ;;  %v12629_v53 = vld [vmem:[#allocation51_spill] sm:$0xff]  ;;  %v12630_v59 = vld [vmem:[#allocation52_spill] sm:$0xff] }
 0x50b   :  { %8116 = vmatprep.subr.bf16.mxu0 %v12620_v45  ;;  %8180 = vmatprep.subr.bf16.mxu1 %v12621_v46  ;;  %v12631_v45 = vld [vmem:[#allocation53_spill] sm:$0xff]  ;;  %v12632_v46 = vld [vmem:[#allocation54_spill] sm:$0xff] }
 0x50e   :  { %8118 = vmatpush1.bf16.msra.mxu0 %v12622_v9  ;;  %8182 = vmatpush1.bf16.msra.mxu1 %v12623_v11  ;;  %v12633_v9 = vld [vmem:[#allocation55_spill] sm:$0xff]  ;;  %v12634_v11 = vld [vmem:[#allocation56_spill] sm:$0xff] }
 0x50f   :  { %8120 = vmatprep.subr.bf16.mxu0 %v12624_v34  ;;  %8184 = vmatprep.subr.bf16.mxu1 %v12625_v41  ;;  %v12635_v34 = vld [vmem:[#allocation57_spill] sm:$0xff]  ;;  %v12636_v41 = vld [vmem:[#allocation58_spill] sm:$0xff] }
 0x512   :  { %8122 = vmatpush1.bf16.msra.mxu0 %v12626_v32  ;;  %8186 = vmatpush1.bf16.msra.mxu1 %v12627_v48  ;;  %v12637_v32 = vld [vmem:[#allocation59_spill] sm:$0xff]  ;;  %v12638_v48 = vld [vmem:[#allocation60_spill] sm:$0xff] }
 0x513   :  { %8124 = vmatprep.subr.bf16.mxu0 %v12628_v47  ;;  %8188 = vmatprep.subr.bf16.mxu1 %v12629_v53  ;;  %v12639_v47 = vld [vmem:[#allocation61_spill] sm:$0xff]  ;;  %v12640_v53 = vld [vmem:[#allocation62_spill] sm:$0xff] }
 0x516   :  { %8126 = vmatpush1.bf16.msra.mxu0 %v12630_v59  ;;  %8190 = vmatpush1.bf16.msra.mxu1 %v12631_v45  ;;  %v12641_v59 = vld [vmem:[#allocation63_spill] sm:$0xff]  ;;  %v12642_v45 = vld [vmem:[#allocation64_spill] sm:$0xff] }
 0x517   :  { %8128 = vmatprep.subr.bf16.mxu0 %v12632_v46  ;;  %8192 = vmatprep.subr.bf16.mxu1 %v12633_v9  ;;  %v12643_v46 = vld [vmem:[#allocation65_spill] sm:$0xff]  ;;  %v12644_v9 = vld [vmem:[#allocation66_spill] sm:$0xff] }
 0x51a   :  { %8130 = vmatpush1.bf16.msra.mxu0 %v12634_v11  ;;  %8194 = vmatpush1.bf16.msra.mxu1 %v12635_v34  ;;  %v12645_v11 = vld [vmem:[#allocation67_spill] sm:$0xff]  ;;  %v12646_v34 = vld [vmem:[#allocation68_spill] sm:$0xff] }
 0x51b   :  { %8132 = vmatprep.subr.bf16.mxu0 %v12636_v41  ;;  %8196 = vmatprep.subr.bf16.mxu1 %v12637_v32  ;;  %v12647_v41 = vld [vmem:[#allocation69_spill] sm:$0xff]  ;;  %v12648_v32 = vld [vmem:[#allocation70_spill] sm:$0xff] }
 0x51e   :  { %8134 = vmatpush1.bf16.msra.mxu0 %v12638_v48  ;;  %8198 = vmatpush1.bf16.msra.mxu1 %v12639_v47  ;;  %v12649_v48 = vld [vmem:[#allocation71_spill] sm:$0xff]  ;;  %v12650_v47 = vld [vmem:[#allocation72_spill] sm:$0xff] }
 0x51f   :  { %8136 = vmatprep.subr.bf16.mxu0 %v12640_v53  ;;  %8200 = vmatprep.subr.bf16.mxu1 %v12641_v59  ;;  %v12651_v53 = vld [vmem:[#allocation73_spill] sm:$0xff]  ;;  %v12652_v59 = vld [vmem:[#allocation74_spill] sm:$0xff] }
 0x522   :  { %8138 = vmatpush1.bf16.msra.mxu0 %v12642_v45  ;;  %8202 = vmatpush1.bf16.msra.mxu1 %v12643_v46  ;;  %v12653_v45 = vld [vmem:[#allocation75_spill] sm:$0xff]  ;;  %v12654_v46 = vld [vmem:[#allocation76_spill] sm:$0xff] }
 0x523   :  { %8140 = vmatprep.subr.bf16.mxu0 %v12644_v9  ;;  %8204 = vmatprep.subr.bf16.mxu1 %v12645_v11  ;;  %v12655_v9 = vld [vmem:[#allocation77_spill] sm:$0xff]  ;;  %v12656_v11 = vld [vmem:[#allocation78_spill] sm:$0xff] }
 0x526   :  { %8142 = vmatpush1.bf16.msra.mxu0 %v12646_v34  ;;  %8206 = vmatpush1.bf16.msra.mxu1 %v12647_v41  ;;  %v12657_v34 = vld [vmem:[#allocation79_spill] sm:$0xff]  ;;  %v12658_v41 = vld [vmem:[#allocation80_spill] sm:$0xff] }
 0x527   :  { %8144 = vmatprep.subr.bf16.mxu0 %v12648_v32  ;;  %8208 = vmatprep.subr.bf16.mxu1 %v12649_v48  ;;  %v12659_v32 = vld [vmem:[#allocation81_spill] sm:$0xff]  ;;  %v12660_v48 = vld [vmem:[#allocation82_spill] sm:$0xff] }
 0x52a   :  { %8146 = vmatpush1.bf16.msra.mxu0 %v12650_v47  ;;  %8210 = vmatpush1.bf16.msra.mxu1 %v12651_v53  ;;  %v12661_v47 = vld [vmem:[#allocation83_spill] sm:$0xff]  ;;  %v12662_v53 = vld [vmem:[#allocation84_spill] sm:$0xff] }
 0x52b   :  { %8148 = vmatprep.subr.bf16.mxu0 %v12652_v59  ;;  %8212 = vmatprep.subr.bf16.mxu1 %v12653_v45  ;;  %v12663_v59 = vld [vmem:[#allocation85_spill] sm:$0xff]  ;;  %v12664_v45 = vld [vmem:[#allocation86_spill] sm:$0xff] }
 0x52e   :  { %8150 = vmatpush1.bf16.msra.mxu0 %v12654_v46  ;;  %8214 = vmatpush1.bf16.msra.mxu1 %v12655_v9  ;;  %v12665_v46 = vld [vmem:[#allocation87_spill] sm:$0xff]  ;;  %v12666_v9 = vld [vmem:[#allocation36_spill] sm:$0xff] }
 0x52f   :  { %8152 = vmatprep.subr.bf16.mxu0 %v12656_v11  ;;  %8216 = vmatprep.subr.bf16.mxu1 %v12657_v34  ;;  %v12667_v11 = vld [vmem:[#allocation156_spill] sm:$0xff]  ;;  %v12668_v34 = vld [vmem:[#allocation38_spill] sm:$0xff] }
 0x530   :  { %v4738_v62 = vrot.slane %v12667_v11, %v12666_v9 }
 0x532   :  { %8154 = vmatpush1.bf16.msra.mxu0 %v12658_v41  ;;  %8218 = vmatpush1.bf16.msra.mxu1 %v12659_v32  ;;  %v4746_v41 = vrot.slane %v12667_v11, %v12668_v34  ;;  %v4742_v32 = vrot.slane %v12667_v11, %v12669_v27 }
 0x533   :  { %8156 = vmatprep.subr.bf16.mxu0 %v12660_v48  ;;  %8220 = vmatprep.subr.bf16.mxu1 %v12661_v47  ;;  %v12670_v48 = vld [vmem:[#allocation41_spill] sm:$0xff] }
 0x534   :  { %v4750_v47 = vrot.slane %v12667_v11, %v12670_v48 }
 0x536   :  { %8158 = vmatpush1.bf16.msra.mxu0 %v12662_v53  ;;  %8222 = vmatpush1.bf16.msra.mxu1 %v12663_v59  ;;  %v12671_v53 = vld [vmem:[#allocation152_spill] sm:$0xff] }
 0x537   :  { %8224 = vmatprep.subr.bf16.mxu0 %v12664_v45  ;;  %8288 = vmatprep.subr.bf16.mxu1 %v12665_v46  ;;  %v4697_v40 = vrot.slane %v12671_v53, %v12666_v9  ;;  %v4705_v45 = vrot.slane %v12671_v53, %v12668_v34  ;;  %v4701_v46 = vrot.slane %v12671_v53, %v12669_v27 }
 0x538   :  { %v4709_v59 = vrot.slane %v12671_v53, %v12670_v48 }
 0x539   :  { %v4775_v37 = vsel %vm3702_vm0, %v4697_v40, %v4738_v62  ;;  %v4777_v36 = vsel %vm3702_vm0, %v4705_v45, %v4746_v41  ;;  %v4776_v9 = vsel %vm3702_vm0, %v4701_v46, %v4742_v32 }
 0x53a   :  { %v4778_v34 = vsel %vm3702_vm0, %v4709_v59, %v4750_v47 }
 0x58c   :  { %v4467_v44 = vpop.f32.mrb[16].mxu0  ;;  %v4538_v49 = vpop.f32.mrb[16].mxu1 }
 0x58d   :  { %v4881_v51 = vadd.f32 %v4775_v37, %v4467_v44  ;;  %v4883_v11 = vadd.f32 %v4777_v36, %v4538_v49  ;;  %v4469_v42 = vpop.f32.mrb[17].mxu0  ;;  %v4540_v26 = vpop.f32.mrb[17].mxu1 }
 0x58e   :  { %v4882_v39 = vadd.f32 %v4776_v9, %v4469_v42  ;;  %v4884_v57 = vadd.f32 %v4778_v34, %v4540_v26  ;;  %v12672_v9 = vld [vmem:[#allocation157_spill] sm:$0xff] }
 0x58f   :  { %v7289_v27 = vmul.f32 -1.442695, %v4881_v51  ;;  %v4852_v34 = vrot.slane %v12672_v9, %v10536_v23  ;;  %v4860_v44 = vrot.slane %v12672_v9, %v10539_v7  ;;  %v4856_v49 = vrot.slane %v12672_v9, %v10542_v31 }
 0x590   :  { %v7290_v20 = vmul.f32 -1.442695, %v4882_v39 }
 0x591   :  { %9551 = vpow2.f32 %v7289_v27  ;;  %v12673_v27 = vld [vmem:[#allocation153_spill] sm:$0xff] }
 0x592   :  { %9553 = vpow2.f32 %v7290_v20  ;;  %v4811_v47 = vrot.slane %v12673_v27, %v10536_v23  ;;  %v4819_v26 = vrot.slane %v12673_v27, %v10539_v7  ;;  %v4815_v45 = vrot.slane %v12673_v27, %v10542_v31 }
 0x593   :  { %9555 = vtanh.f32 %v4883_v11  ;;  %v4823_v51 = vrot.slane %v12673_v27, %v10545_v43  ;;  %v7291_v27 = vmul.f32 -1.442695, %v4884_v57 }
 0x594   :  { %v4877_v39 = vsel %vm3702_vm0, %v4811_v47, %v4852_v34  ;;  %v4879_v20 = vsel %vm3702_vm0, %v4819_v26, %v4860_v44 }
 0x59b   :  { %v9552_v53 = vpop.eup %9551 }
 0x59c   :  { %v9554_v48 = vpop.eup %9553  ;;  %v4888_v62 = vadd.f32 1.0, %v9552_v53 }
 0x59d   :  { %v4894_v40 = vadd.f32 1.0, %v9554_v48  ;;  %v9556_v41 = vpop.eup %9555  ;;  %v4864_v48 = vrot.slane %v12672_v9, %v10545_v43 }
 0x59e   :  { %9557 = vrcp.f32 %v4888_v62 }
 0x59f   :  { %9559 = vrcp.f32 %v4894_v40  ;;  %v4878_v40 = vsel %vm3702_vm0, %v4815_v45, %v4856_v49 }
 0x5a8   :  { %v9558_v37 = vpop.eup %9557 }
 0x5a9   :  { %v9560_v36 = vpop.eup %9559  ;;  %v4905_v46 = vmul.f32 %v9558_v37, %v9556_v41  ;;  %v4880_v37 = vsel %vm3702_vm0, %v4823_v51, %v4864_v48 }
 0x5aa   :  { %v4904_v32 = vmul.f32 %v9560_v36, %v11017_v10 }
 0x5ac   :  { %v11199_v59 = vadd.f32 %v4905_v46, %v4904_v32 }
 0x5cc   :  { %v4609_v10 = vpop.f32.mrb[18].mxu0  ;;  %v4680_v42 = vpop.f32.mrb[18].mxu1 }
 0x5cd   :  { %v4909_v11 = vadd.f32 %v4877_v39, %v4609_v10  ;;  %v4911_v53 = vadd.f32 %v4879_v20, %v4680_v42  ;;  %v4611_v62 = vpop.f32.mrb[19].mxu0  ;;  %v4682_v41 = vpop.f32.mrb[19].mxu1 }
 0x5ce   :  { %v4910_v36 = vadd.f32 %v4878_v40, %v4611_v62  ;;  %v4912_v46 = vadd.f32 %v4880_v37, %v4682_v41 }
 0x5cf   :  { %v7292_v32 = vmul.f32 -1.442695, %v4909_v11 }
 0x5d0   :  { %v7293_v9 = vmul.f32 -1.442695, %v4910_v36  ;;  %v7294_v43 = vmul.f32 -1.442695, %v4912_v46  ;;  %v12675_v36 = vld [vmem:[#allocation117_spill] sm:$0xff]  ;;  %v12676_v46 = vld [vmem:[#allocation124_spill] sm:$0xff] }
 0x5d1   :  { %9561 = vpow2.f32 %v7292_v32  ;;  %v12677_v32 = vld [vmem:[#allocation125_spill] sm:$0xff] }
 0x5d2   :  { %9563 = vpow2.f32 %v7293_v9  ;;  %v12678_v9 = vld [vmem:[#allocation126_spill] sm:$0xff] }
 0x5d3   :  { %9565 = vpow2.f32 %v7291_v27  ;;  %v12679_v27 = vld [vmem:[#allocation127_spill] sm:$0xff] }
 0x5d4   :  { %9567 = vpow2.f32 %v7294_v43 }
 0x5d5   :  { %9569 = vtanh.f32 %v4911_v53 }
 0x5db   :  { %v9562_v34 = vpop.eup %9561 }
 0x5dc   :  { %v9564_v47 = vpop.eup %9563  ;;  %v4916_v44 = vadd.f32 1.0, %v9562_v34  ;;  %v12680_v34 = vld [vmem:[#allocation128_spill] sm:$0xff] }
 0x5dd   :  { %v4922_v26 = vadd.f32 1.0, %v9564_v47  ;;  %v9566_v49 = vpop.eup %9565  ;;  %v12681_v47 = vld [vmem:[#allocation129_spill] sm:$0xff] }
 0x5de   :  { %9571 = vrcp.f32 %v4916_v44  ;;  %v9568_v45 = vpop.eup %9567  ;;  %v4901_v57 = vadd.f32 1.0, %v9566_v49  ;;  %v12682_v44 = vld [vmem:[#allocation130_spill] sm:$0xff]  ;;  %v12684_v49 = vld [vmem:[#allocation132_spill] sm:$0xff] }
 0x5df   :  { %9573 = vrcp.f32 %v4922_v26  ;;  %v9570_v48 = vpop.eup %9569  ;;  %v4929_v42 = vadd.f32 1.0, %v9568_v45  ;;  %v12683_v26 = vld [vmem:[#allocation131_spill] sm:$0xff]  ;;  %v12685_v45 = vld [vmem:[#allocation133_spill] sm:$0xff] }
 0x5e0   :  { %9575 = vtanh.f32 %v11199_v59 }
 0x5e1   :  { %9577 = vrcp.f32 %v4929_v42  ;;  %v12690_v42 = vld [vmem:[#allocation138_spill] sm:$0xff] }
 0x5e8   :  { %v9572_v51 = vpop.eup %9571 }
 0x5e9   :  { %v9574_v10 = vpop.eup %9573  ;;  %v4933_v39 = vmul.f32 %v9572_v51, %v9570_v48  ;;  %v12686_v48 = vld [vmem:[#allocation134_spill] sm:$0xff]  ;;  %v12687_v51 = vld [vmem:[#allocation135_spill] sm:$0xff] }
 0x5ea   :  { %v4932_v20 = vmul.f32 %v9574_v10, %v11040_v38  ;;  %v9576_v43 = vpop.eup %9575  ;;  %v12674_v38 = vld [vmem:[#allocation115_spill] sm:$0xff]  ;;  %v12688_v10 = vld [vmem:[#allocation136_spill] sm:$0xff] }
 0x5eb   :  { %v9578_v53 = vpop.eup %9577 }
 0x5ec   :  { %v11222_v11 = vadd.f32 %v4933_v39, %v4932_v20  ;;  %v12689_v39 = vld [vmem:[#allocation137_spill] sm:$0xff]  ;;  %v12691_v20 = vld [vmem:[#allocation139_spill] sm:$0xff] }
 0x5ee   :  { %9579 = vtanh.f32 %v11222_v11 }
 0x5ef   :  { %9581 = vrcp.f32 %v4901_v57  ;;  %v12692_v57 = vld [vmem:[#allocation140_spill] sm:$0xff] }
 0x5f8   :  { %v9580_v62 = vpop.eup %9579 }
 0x5f9   :  { %v9582_v40 = vpop.eup %9581  ;;  %v4936_v41 = vmul.f32 %v9580_v62, %v9578_v53  ;;  %v12694_v53 = vld [vmem:[#allocation142_spill] sm:$0xff]  ;;  %v12695_v62 = vld [vmem:[#allocation143_spill] sm:$0xff] }
 0x5fa   :  { %v11226_v37 = vmul.f32 %v9582_v40, %v9576_v43  ;;  %v12693_v43 = vld [vmem:[#allocation141_spill] sm:$0xff]  ;;  %v12696_v40 = vld [vmem:[#allocation144_spill] sm:$0xff] }
 0x5fb   :  { %5001 = vmatprep.mubr.f32.mxu0 %v4936_v41  ;;  %5072 = vmatprep.mubr.f32.mxu1 %v4936_v41 }
 0x5fc   :  { %5002 = vmatmul.mubr.f32.vlgmr.msra.gmra.mrb[20].mxu0 %v11226_v37  ;;  %5073 = vmatmul.mubr.f32.vlgmr.msra.gmra.mrb[20].mxu1 %v11226_v37 }
 0x5fd   :  { %8226 = vmatpush1.bf16.msra.mxu0 %v12467_v60  ;;  %8290 = vmatpush1.bf16.msra.mxu1 %v12468_v33 }
 0x5fe   :  { %5143 = vmatprep.mubr.f32.mxu0 %v4936_v41  ;;  %5214 = vmatprep.mubr.f32.mxu1 %v4936_v41  ;;  %v12697_v41 = vld [vmem:[#allocation145_spill] sm:$0xff] }
 0x5ff   :  { %8228 = vmatprep.subr.bf16.mxu0 %v12469_v15  ;;  %8292 = vmatprep.subr.bf16.mxu1 %v12470_v63 }
 0x601   :  { %8230 = vmatpush1.bf16.msra.mxu0 %v12471_v3  ;;  %8294 = vmatpush1.bf16.msra.mxu1 %v12472_v30 }
 0x602   :  { %8232 = vmatprep.subr.bf16.mxu0 %v12473_v4  ;;  %8296 = vmatprep.subr.bf16.mxu1 %v12474_v50 }
 0x605   :  { %8234 = vmatpush1.bf16.msra.mxu0 %v12475_v18  ;;  %8298 = vmatpush1.bf16.msra.mxu1 %v12476_v61 }
 0x606   :  { %8236 = vmatprep.subr.bf16.mxu0 %v12477_v55  ;;  %8300 = vmatprep.subr.bf16.mxu1 %v12478_v6 }
 0x609   :  { %8238 = vmatpush1.bf16.msra.mxu0 %v12479_v5  ;;  %8302 = vmatpush1.bf16.msra.mxu1 %v12570_v19 }
 0x60a   :  { %8240 = vmatprep.subr.bf16.mxu0 %v12571_v25  ;;  %8304 = vmatprep.subr.bf16.mxu1 %v12572_v1 }
 0x60d   :  { %8242 = vmatpush1.bf16.msra.mxu0 %v12573_v12  ;;  %8306 = vmatpush1.bf16.msra.mxu1 %v12574_v17 }
 0x60e   :  { %8244 = vmatprep.subr.bf16.mxu0 %v12575_v29  ;;  %8308 = vmatprep.subr.bf16.mxu1 %v12576_v2 }
 0x611   :  { %8246 = vmatpush1.bf16.msra.mxu0 %v12577_v22  ;;  %8310 = vmatpush1.bf16.msra.mxu1 %v12578_v52 }
 0x612   :  { %8248 = vmatprep.subr.bf16.mxu0 %v12579_v58  ;;  %8312 = vmatprep.subr.bf16.mxu1 %v12580_v24 }
 0x615   :  { %8250 = vmatpush1.bf16.msra.mxu0 %v12581_v0  ;;  %8314 = vmatpush1.bf16.msra.mxu1 %v12582_v28 }
 0x616   :  { %8252 = vmatprep.subr.bf16.mxu0 %v12583_v13  ;;  %8316 = vmatprep.subr.bf16.mxu1 %v12674_v38 }
 0x619   :  { %8254 = vmatpush1.bf16.msra.mxu0 %v12585_v8  ;;  %8318 = vmatpush1.bf16.msra.mxu1 %v12675_v36 }
 0x61a   :  { %8256 = vmatprep.subr.bf16.mxu0 %v12587_v54  ;;  %8320 = vmatprep.subr.bf16.mxu1 %v12588_v35 }
 0x61d   :  { %8258 = vmatpush1.bf16.msra.mxu0 %v12589_v16  ;;  %8322 = vmatpush1.bf16.msra.mxu1 %v12590_v56 }
 0x61e   :  { %8260 = vmatprep.subr.bf16.mxu0 %v12591_v14  ;;  %8324 = vmatprep.subr.bf16.mxu1 %v12592_v21 }
 0x621   :  { %8262 = vmatpush1.bf16.msra.mxu0 %v12676_v46  ;;  %8326 = vmatpush1.bf16.msra.mxu1 %v12677_v32 }
 0x622   :  { %8264 = vmatprep.subr.bf16.mxu0 %v12678_v9  ;;  %8328 = vmatprep.subr.bf16.mxu1 %v12679_v27 }
 0x625   :  { %8266 = vmatpush1.bf16.msra.mxu0 %v12680_v34  ;;  %8330 = vmatpush1.bf16.msra.mxu1 %v12681_v47 }
 0x626   :  { %8268 = vmatprep.subr.bf16.mxu0 %v12682_v44  ;;  %8332 = vmatprep.subr.bf16.mxu1 %v12683_v26 }
 0x629   :  { %8270 = vmatpush1.bf16.msra.mxu0 %v12684_v49  ;;  %8334 = vmatpush1.bf16.msra.mxu1 %v12685_v45 }
 0x62a   :  { %8272 = vmatprep.subr.bf16.mxu0 %v12686_v48  ;;  %8336 = vmatprep.subr.bf16.mxu1 %v12687_v51  ;;  %v12698_v51 = vld [vmem:[#allocation146_spill] sm:$0xff]  ;;  %v12771_v48 = vld [vmem:[#allocation39_spill] sm:$0xff] }
 0x62d   :  { %8274 = vmatpush1.bf16.msra.mxu0 %v12688_v10  ;;  %8338 = vmatpush1.bf16.msra.mxu1 %v12689_v39  ;;  %v12699_v10 = vld [vmem:[#allocation147_spill] sm:$0xff]  ;;  %v12700_v39 = vld [vmem:[#allocation148_spill] sm:$0xff] }
 0x62e   :  { %8276 = vmatprep.subr.bf16.mxu0 %v12690_v42  ;;  %8340 = vmatprep.subr.bf16.mxu1 %v12691_v20  ;;  %v12701_v42 = vld [vmem:[#allocation149_spill] sm:$0xff] }
 0x62f   :  { %v12702_v20 = vld [vmem:[#allocation17_spill] sm:$0xff] }
 0x631   :  { %8278 = vmatpush1.bf16.msra.mxu0 %v12692_v57  ;;  %8342 = vmatpush1.bf16.msra.mxu1 %v12693_v43  ;;  %v12703_v57 = vld [vmem:[#allocation18_spill] sm:$0xff] }
 0x632   :  { %8280 = vmatprep.subr.bf16.mxu0 %v12694_v53  ;;  %8344 = vmatprep.subr.bf16.mxu1 %v12695_v62  ;;  %v12704_v62 = vld [vmem:[#allocation19_spill] sm:$0xff]  ;;  %v12713_v53 = vld [vmem:[#allocation28_spill] sm:$0xff] }
 0x635   :  { %8282 = vmatpush1.bf16.msra.mxu0 %v12696_v40  ;;  %8346 = vmatpush1.bf16.msra.mxu1 %v12697_v41  ;;  %v12705_v40 = vld [vmem:[#allocation20_spill] sm:$0xff]  ;;  %v12706_v41 = vld [vmem:[#allocation21_spill] sm:$0xff] }
 0x636   :  { %8284 = vmatprep.subr.bf16.mxu0 %v12698_v51  ;;  %8348 = vmatprep.subr.bf16.mxu1 %v12699_v10  ;;  %v12707_v51 = vld [vmem:[#allocation22_spill] sm:$0xff]  ;;  %v12708_v10 = vld [vmem:[#allocation23_spill] sm:$0xff] }
 0x639   :  { %8286 = vmatpush1.bf16.msra.mxu0 %v12700_v39  ;;  %8350 = vmatpush1.bf16.msra.mxu1 %v12701_v42  ;;  %v12709_v39 = vld [vmem:[#allocation24_spill] sm:$0xff]  ;;  %v12710_v42 = vld [vmem:[#allocation25_spill] sm:$0xff] }
 0x63a   :  { %8352 = vmatprep.subr.bf16.mxu0 %v12702_v20  ;;  %8416 = vmatprep.subr.bf16.mxu1 %v12703_v57  ;;  %v12711_v20 = vld [vmem:[#allocation26_spill] sm:$0xff]  ;;  %v12712_v57 = vld [vmem:[#allocation27_spill] sm:$0xff] }
 0x63c   :  { %5144 = vmatmul.mubr.f32.vlgmr.msra.gmra.mrb[22].mxu0 %v11226_v37  ;;  %5215 = vmatmul.mubr.f32.vlgmr.msra.gmra.mrb[22].mxu1 %v11226_v37  ;;  %v12714_v37 = vld [vmem:[#allocation29_spill] sm:$0xff] }
 0x63d   :  { %8354 = vmatpush1.bf16.msra.mxu0 %v12704_v62  ;;  %8418 = vmatpush1.bf16.msra.mxu1 %v12705_v40  ;;  %v12715_v62 = vld [vmem:[#allocation30_spill] sm:$0xff]  ;;  %v12716_v40 = vld [vmem:[#allocation32_spill] sm:$0xff] }
 0x63e   :  { %8356 = vmatprep.subr.bf16.mxu0 %v12706_v41  ;;  %8420 = vmatprep.subr.bf16.mxu1 %v12707_v51  ;;  %v12717_v41 = vld [vmem:[#allocation33_spill] sm:$0xff]  ;;  %v12718_v51 = vld [vmem:[#allocation34_spill] sm:$0xff] }
 0x641   :  { %8358 = vmatpush1.bf16.msra.mxu0 %v12708_v10  ;;  %8422 = vmatpush1.bf16.msra.mxu1 %v12709_v39  ;;  %v12719_v10 = vld [vmem:[#allocation35_spill] sm:$0xff]  ;;  %v12720_v39 = vld [vmem:[#allocation37_spill] sm:$0xff] }
 0x642   :  { %8360 = vmatprep.subr.bf16.mxu0 %v12710_v42  ;;  %8424 = vmatprep.subr.bf16.mxu1 %v12711_v20  ;;  %v12721_v42 = vld [vmem:[#allocation40_spill] sm:$0xff]  ;;  %v12722_v20 = vld [vmem:[#allocation42_spill] sm:$0xff] }
 0x645   :  { %8362 = vmatpush1.bf16.msra.mxu0 %v12712_v57  ;;  %8426 = vmatpush1.bf16.msra.mxu1 %v12713_v53  ;;  %v12723_v57 = vld [vmem:[#allocation43_spill] sm:$0xff]  ;;  %v12724_v53 = vld [vmem:[#allocation44_spill] sm:$0xff] }
 0x646   :  { %8364 = vmatprep.subr.bf16.mxu0 %v12714_v37  ;;  %8428 = vmatprep.subr.bf16.mxu1 %v12715_v62  ;;  %v12725_v37 = vld [vmem:[#allocation45_spill] sm:$0xff]  ;;  %v12726_v62 = vld [vmem:[#allocation46_spill] sm:$0xff] }
 0x649   :  { %8366 = vmatpush1.bf16.msra.mxu0 %v12716_v40  ;;  %8430 = vmatpush1.bf16.msra.mxu1 %v12717_v41  ;;  %v12727_v40 = vld [vmem:[#allocation47_spill] sm:$0xff]  ;;  %v12728_v41 = vld [vmem:[#allocation48_spill] sm:$0xff] }
 0x64a   :  { %8368 = vmatprep.subr.bf16.mxu0 %v12718_v51  ;;  %8432 = vmatprep.subr.bf16.mxu1 %v12719_v10  ;;  %v12729_v51 = vld [vmem:[#allocation49_spill] sm:$0xff]  ;;  %v12730_v10 = vld [vmem:[#allocation50_spill] sm:$0xff] }
 0x64d   :  { %8370 = vmatpush1.bf16.msra.mxu0 %v12720_v39  ;;  %8434 = vmatpush1.bf16.msra.mxu1 %v12721_v42  ;;  %v12731_v39 = vld [vmem:[#allocation51_spill] sm:$0xff]  ;;  %v12732_v42 = vld [vmem:[#allocation52_spill] sm:$0xff] }
 0x64e   :  { %8372 = vmatprep.subr.bf16.mxu0 %v12722_v20  ;;  %8436 = vmatprep.subr.bf16.mxu1 %v12723_v57  ;;  %v12733_v20 = vld [vmem:[#allocation53_spill] sm:$0xff]  ;;  %v12734_v57 = vld [vmem:[#allocation54_spill] sm:$0xff] }
 0x651   :  { %8374 = vmatpush1.bf16.msra.mxu0 %v12724_v53  ;;  %8438 = vmatpush1.bf16.msra.mxu1 %v12725_v37  ;;  %v12735_v53 = vld [vmem:[#allocation55_spill] sm:$0xff]  ;;  %v12736_v37 = vld [vmem:[#allocation56_spill] sm:$0xff] }
 0x652   :  { %8376 = vmatprep.subr.bf16.mxu0 %v12726_v62  ;;  %8440 = vmatprep.subr.bf16.mxu1 %v12727_v40  ;;  %v12737_v62 = vld [vmem:[#allocation57_spill] sm:$0xff]  ;;  %v12738_v40 = vld [vmem:[#allocation58_spill] sm:$0xff] }
 0x655   :  { %8378 = vmatpush1.bf16.msra.mxu0 %v12728_v41  ;;  %8442 = vmatpush1.bf16.msra.mxu1 %v12729_v51  ;;  %v12739_v41 = vld [vmem:[#allocation59_spill] sm:$0xff]  ;;  %v12740_v51 = vld [vmem:[#allocation60_spill] sm:$0xff] }
 0x656   :  { %8380 = vmatprep.subr.bf16.mxu0 %v12730_v10  ;;  %8444 = vmatprep.subr.bf16.mxu1 %v12731_v39  ;;  %v12741_v10 = vld [vmem:[#allocation61_spill] sm:$0xff]  ;;  %v12742_v39 = vld [vmem:[#allocation62_spill] sm:$0xff] }
 0x659   :  { %8382 = vmatpush1.bf16.msra.mxu0 %v12732_v42  ;;  %8446 = vmatpush1.bf16.msra.mxu1 %v12733_v20  ;;  %v12743_v42 = vld [vmem:[#allocation63_spill] sm:$0xff]  ;;  %v12744_v20 = vld [vmem:[#allocation64_spill] sm:$0xff] }
 0x65a   :  { %8384 = vmatprep.subr.bf16.mxu0 %v12734_v57  ;;  %8448 = vmatprep.subr.bf16.mxu1 %v12735_v53  ;;  %v12745_v57 = vld [vmem:[#allocation65_spill] sm:$0xff]  ;;  %v12746_v53 = vld [vmem:[#allocation66_spill] sm:$0xff] }
 0x65d   :  { %8386 = vmatpush1.bf16.msra.mxu0 %v12736_v37  ;;  %8450 = vmatpush1.bf16.msra.mxu1 %v12737_v62  ;;  %v12747_v37 = vld [vmem:[#allocation67_spill] sm:$0xff]  ;;  %v12748_v62 = vld [vmem:[#allocation68_spill] sm:$0xff] }
 0x65e   :  { %8388 = vmatprep.subr.bf16.mxu0 %v12738_v40  ;;  %8452 = vmatprep.subr.bf16.mxu1 %v12739_v41  ;;  %v12749_v40 = vld [vmem:[#allocation69_spill] sm:$0xff]  ;;  %v12750_v41 = vld [vmem:[#allocation70_spill] sm:$0xff] }
 0x661   :  { %8390 = vmatpush1.bf16.msra.mxu0 %v12740_v51  ;;  %8454 = vmatpush1.bf16.msra.mxu1 %v12741_v10  ;;  %v12751_v51 = vld [vmem:[#allocation71_spill] sm:$0xff]  ;;  %v12752_v10 = vld [vmem:[#allocation72_spill] sm:$0xff] }
 0x662   :  { %8392 = vmatprep.subr.bf16.mxu0 %v12742_v39  ;;  %8456 = vmatprep.subr.bf16.mxu1 %v12743_v42  ;;  %v12753_v39 = vld [vmem:[#allocation73_spill] sm:$0xff]  ;;  %v12754_v42 = vld [vmem:[#allocation74_spill] sm:$0xff] }
 0x665   :  { %8394 = vmatpush1.bf16.msra.mxu0 %v12744_v20  ;;  %8458 = vmatpush1.bf16.msra.mxu1 %v12745_v57  ;;  %v12755_v20 = vld [vmem:[#allocation75_spill] sm:$0xff]  ;;  %v12756_v57 = vld [vmem:[#allocation76_spill] sm:$0xff] }
 0x666   :  { %8396 = vmatprep.subr.bf16.mxu0 %v12746_v53  ;;  %8460 = vmatprep.subr.bf16.mxu1 %v12747_v37  ;;  %v12757_v53 = vld [vmem:[#allocation77_spill] sm:$0xff]  ;;  %v12758_v37 = vld [vmem:[#allocation78_spill] sm:$0xff] }
 0x669   :  { %8398 = vmatpush1.bf16.msra.mxu0 %v12748_v62  ;;  %8462 = vmatpush1.bf16.msra.mxu1 %v12749_v40  ;;  %v12759_v62 = vld [vmem:[#allocation79_spill] sm:$0xff]  ;;  %v12760_v40 = vld [vmem:[#allocation80_spill] sm:$0xff] }
 0x66a   :  { %8400 = vmatprep.subr.bf16.mxu0 %v12750_v41  ;;  %8464 = vmatprep.subr.bf16.mxu1 %v12751_v51  ;;  %v12761_v41 = vld [vmem:[#allocation81_spill] sm:$0xff]  ;;  %v12762_v51 = vld [vmem:[#allocation82_spill] sm:$0xff] }
 0x66d   :  { %8402 = vmatpush1.bf16.msra.mxu0 %v12752_v10  ;;  %8466 = vmatpush1.bf16.msra.mxu1 %v12753_v39  ;;  %v12763_v10 = vld [vmem:[#allocation83_spill] sm:$0xff]  ;;  %v12764_v39 = vld [vmem:[#allocation84_spill] sm:$0xff] }
 0x66e   :  { %8404 = vmatprep.subr.bf16.mxu0 %v12754_v42  ;;  %8468 = vmatprep.subr.bf16.mxu1 %v12755_v20  ;;  %v12765_v42 = vld [vmem:[#allocation85_spill] sm:$0xff]  ;;  %v12766_v20 = vld [vmem:[#allocation86_spill] sm:$0xff] }
 0x671   :  { %8406 = vmatpush1.bf16.msra.mxu0 %v12756_v57  ;;  %8470 = vmatpush1.bf16.msra.mxu1 %v12757_v53  ;;  %v12767_v57 = vld [vmem:[#allocation87_spill] sm:$0xff]  ;;  %v12768_v53 = vld [vmem:[#allocation36_spill] sm:$0xff] }
 0x672   :  { %8408 = vmatprep.subr.bf16.mxu0 %v12758_v37  ;;  %8472 = vmatprep.subr.bf16.mxu1 %v12759_v62  ;;  %v12769_v37 = vld [vmem:[#allocation155_spill] sm:$0xff]  ;;  %v12770_v62 = vld [vmem:[#allocation38_spill] sm:$0xff] }
 0x673   :  { %v5274_v43 = vrot.slane %v12769_v37, %v12768_v53 }
 0x675   :  { %8410 = vmatpush1.bf16.msra.mxu0 %v12760_v40  ;;  %8474 = vmatpush1.bf16.msra.mxu1 %v12761_v41  ;;  %v5282_v40 = vrot.slane %v12769_v37, %v12770_v62  ;;  %v5278_v41 = vrot.slane %v12769_v37, %v12771_v48 }
 0x676   :  { %8412 = vmatprep.subr.bf16.mxu0 %v12762_v51  ;;  %8476 = vmatprep.subr.bf16.mxu1 %v12763_v10  ;;  %v12772_v51 = vld [vmem:[#allocation41_spill] sm:$0xff] }
 0x677   :  { %v5286_v10 = vrot.slane %v12769_v37, %v12772_v51 }
 0x679   :  { %8414 = vmatpush1.bf16.msra.mxu0 %v12764_v39  ;;  %8478 = vmatpush1.bf16.msra.mxu1 %v12765_v42  ;;  %v12773_v39 = vld [vmem:[#allocation154_spill] sm:$0xff] }
 0x67a   :  { %8480 = vmatprep.subr.bf16.mxu0 %v12766_v20  ;;  %8544 = vmatprep.subr.bf16.mxu1 %v12767_v57  ;;  %v5233_v45 = vrot.slane %v12773_v39, %v12768_v53  ;;  %v5241_v20 = vrot.slane %v12773_v39, %v12770_v62  ;;  %v5237_v57 = vrot.slane %v12773_v39, %v12771_v48 }
 0x67b   :  { %v5245_v42 = vrot.slane %v12773_v39, %v12772_v51 }
 0x67c   :  { %v5311_v26 = vsel %vm3702_vm0, %v5233_v45, %v5274_v43  ;;  %v5313_v47 = vsel %vm3702_vm0, %v5241_v20, %v5282_v40  ;;  %v5312_v53 = vsel %vm3702_vm0, %v5237_v57, %v5278_v41  ;;  %v12776_v57 = vld [vmem:[#allocation150_spill] sm:$0xff] }
 0x67d   :  { %v5314_v62 = vsel %vm3702_vm0, %v5245_v42, %v5286_v10  ;;  %v5347_v40 = vrot.slane %v12776_v57, %v10536_v23  ;;  %v5351_v41 = vrot.slane %v12776_v57, %v10542_v31 }
 0x6cf   :  { %v5003_v49 = vpop.f32.mrb[20].mxu0  ;;  %v5074_v44 = vpop.f32.mrb[20].mxu1 }
 0x6d0   :  { %v5417_v34 = vadd.f32 %v5311_v26, %v5003_v49  ;;  %v5419_v37 = vadd.f32 %v5313_v47, %v5074_v44  ;;  %v5005_v27 = vpop.f32.mrb[21].mxu0  ;;  %v5076_v9 = vpop.f32.mrb[21].mxu1 }
 0x6d1   :  { %v5418_v32 = vadd.f32 %v5312_v53, %v5005_v27  ;;  %v5420_v46 = vadd.f32 %v5314_v62, %v5076_v9  ;;  %v12774_v9 = vld [vmem:[#allocation151_spill] sm:$0xff] }
 0x6d2   :  { %v7295_v48 = vmul.f32 -1.442695, %v5417_v34  ;;  %v5392_v27 = vrot.slane %v12774_v9, %v10542_v31  ;;  %v12775_v34 = vld [vmem:[#allocation31_spill] sm:$0xff] }
 0x6d3   :  { %v7296_v21 = vmul.f32 -1.442695, %v5418_v32  ;;  %v5388_v32 = vrot.slane %v12774_v9, %v10536_v23  ;;  %v5400_v42 = vrot.slane %v12774_v9, %v12775_v34 }
 0x6d4   :  { %9583 = vpow2.f32 %v7295_v48  ;;  %v5414_v23 = vsel %vm3702_vm0, %v5351_v41, %v5392_v27 }
 0x6d5   :  { %9585 = vpow2.f32 %v7296_v21  ;;  %v5396_v21 = vrot.slane %v12774_v9, %v10539_v7  ;;  %v5413_v62 = vsel %vm3702_vm0, %v5347_v40, %v5388_v32 }
 0x6d6   :  { %9587 = vtanh.f32 %v5419_v37  ;;  %v5359_v37 = vrot.slane %v12776_v57, %v12775_v34 }
 0x6de   :  { %v9584_v51 = vpop.eup %9583 }
 0x6df   :  { %v9586_v39 = vpop.eup %9585  ;;  %v5424_v45 = vadd.f32 1.0, %v9584_v51 }
 0x6e0   :  { %v5430_v43 = vadd.f32 1.0, %v9586_v39  ;;  %v9588_v47 = vpop.eup %9587 }
 0x6e1   :  { %9589 = vrcp.f32 %v5424_v45 }
 0x6e2   :  { %9591 = vrcp.f32 %v5430_v43 }
 0x6eb   :  { %v9590_v44 = vpop.eup %9589 }
 0x6ec   :  { %v9592_v26 = vpop.eup %9591  ;;  %v5441_v49 = vmul.f32 %v9590_v44, %v9588_v47 }
 0x6ed   :  { %v5440_v20 = vmul.f32 %v9592_v26, %v11199_v59  ;;  %v5355_v59 = vrot.slane %v12776_v57, %v10539_v7  ;;  %v5416_v7 = vsel %vm3702_vm0, %v5359_v37, %v5400_v42 }
 0x6ef   :  { %v11381_v10 = vadd.f32 %v5441_v49, %v5440_v20  ;;  %v5415_v51 = vsel %vm3702_vm0, %v5355_v59, %v5396_v21  ;;  %v7297_v20 = vmul.f32 -1.442695, %v5420_v46 }
 0x70f   :  { %v5145_v53 = vpop.f32.mrb[22].mxu0  ;;  %v5216_v48 = vpop.f32.mrb[22].mxu1 }
 0x710   :  { %v5445_v39 = vadd.f32 %v5413_v62, %v5145_v53  ;;  %v5447_v45 = vadd.f32 %v5415_v51, %v5216_v48  ;;  %v5147_v43 = vpop.f32.mrb[23].mxu0  ;;  %v5218_v47 = vpop.f32.mrb[23].mxu1 }
 0x711   :  { %v5446_v44 = vadd.f32 %v5414_v23, %v5147_v43  ;;  %v5448_v26 = vadd.f32 %v5416_v7, %v5218_v47  ;;  %v12778_v7 = vld [vmem:[#allocation124_spill] sm:$0xff] }
 0x712   :  { %v7298_v31 = vmul.f32 -1.442695, %v5445_v39 }
 0x713   :  { %v7299_v49 = vmul.f32 -1.442695, %v5446_v44  ;;  %v7300_v9 = vmul.f32 -1.442695, %v5448_v26  ;;  %v12779_v44 = vld [vmem:[#allocation125_spill] sm:$0xff]  ;;  %v12780_v26 = vld [vmem:[#allocation126_spill] sm:$0xff] }
 0x714   :  { %9593 = vpow2.f32 %v7298_v31  ;;  %v12781_v31 = vld [vmem:[#allocation127_spill] sm:$0xff] }
 0x715   :  { %9595 = vpow2.f32 %v7299_v49  ;;  %v12782_v49 = vld [vmem:[#allocation128_spill] sm:$0xff] }
 0x716   :  { %9597 = vpow2.f32 %v7297_v20  ;;  %v12783_v20 = vld [vmem:[#allocation129_spill] sm:$0xff] }
 0x717   :  { %9599 = vpow2.f32 %v7300_v9  ;;  %v12784_v9 = vld [vmem:[#allocation130_spill] sm:$0xff] }
 0x718   :  { %9601 = vtanh.f32 %v5447_v45 }
 0x71e   :  { %v9594_v32 = vpop.eup %9593 }
 0x71f   :  { %v9596_v34 = vpop.eup %9595  ;;  %v5452_v21 = vadd.f32 1.0, %v9594_v32  ;;  %v12785_v32 = vld [vmem:[#allocation131_spill] sm:$0xff] }
 0x720   :  { %v5458_v57 = vadd.f32 1.0, %v9596_v34  ;;  %v9598_v27 = vpop.eup %9597  ;;  %v12786_v34 = vld [vmem:[#allocation132_spill] sm:$0xff] }
 0x721   :  { %9603 = vrcp.f32 %v5452_v21  ;;  %v9600_v40 = vpop.eup %9599  ;;  %v5437_v46 = vadd.f32 1.0, %v9598_v27  ;;  %v12787_v21 = vld [vmem:[#allocation133_spill] sm:$0xff]  ;;  %v12789_v27 = vld [vmem:[#allocation135_spill] sm:$0xff] }
 0x722   :  { %9605 = vrcp.f32 %v5458_v57  ;;  %v9602_v42 = vpop.eup %9601  ;;  %v5465_v53 = vadd.f32 1.0, %v9600_v40  ;;  %v12788_v57 = vld [vmem:[#allocation134_spill] sm:$0xff]  ;;  %v12790_v40 = vld [vmem:[#allocation136_spill] sm:$0xff] }
 0x723   :  { %9607 = vtanh.f32 %v11381_v10 }
 0x724   :  { %9609 = vrcp.f32 %v5465_v53  ;;  %v12795_v53 = vld [vmem:[#allocation141_spill] sm:$0xff] }
 0x72b   :  { %v9604_v59 = vpop.eup %9603 }
 0x72c   :  { %v9606_v41 = vpop.eup %9605  ;;  %v5469_v37 = vmul.f32 %v9604_v59, %v9602_v42  ;;  %v12791_v42 = vld [vmem:[#allocation137_spill] sm:$0xff]  ;;  %v12792_v59 = vld [vmem:[#allocation138_spill] sm:$0xff] }
 0x72d   :  { %v5468_v62 = vmul.f32 %v9606_v41, %v11222_v11  ;;  %v9608_v51 = vpop.eup %9607  ;;  %v12777_v11 = vld [vmem:[#allocation123_spill] sm:$0xff] }
 0x72e   :  { %v9610_v39 = vpop.eup %9609  ;;  %v12793_v41 = vld [vmem:[#allocation139_spill] sm:$0xff] }
 0x72f   :  { %v11404_v48 = vadd.f32 %v5469_v37, %v5468_v62  ;;  %v12794_v37 = vld [vmem:[#allocation140_spill] sm:$0xff]  ;;  %v12796_v62 = vld [vmem:[#allocation142_spill] sm:$0xff] }
 0x731   :  { %9611 = vtanh.f32 %v11404_v48 }
 0x732   :  { %9613 = vrcp.f32 %v5437_v46  ;;  %v12797_v46 = vld [vmem:[#allocation143_spill] sm:$0xff] }
 0x73b   :  { %v9612_v45 = vpop.eup %9611 }
 0x73c   :  { %v9614_v43 = vpop.eup %9613  ;;  %v5472_v23 = vmul.f32 %v9612_v45, %v9610_v39  ;;  %v12799_v39 = vld [vmem:[#allocation145_spill] sm:$0xff]  ;;  %v12800_v45 = vld [vmem:[#allocation146_spill] sm:$0xff] }
 0x73d   :  { %v11408_v47 = vmul.f32 %v9614_v43, %v9608_v51  ;;  %v12798_v51 = vld [vmem:[#allocation144_spill] sm:$0xff]  ;;  %v12801_v43 = vld [vmem:[#allocation147_spill] sm:$0xff] }
 0x73e   :  { %5537 = vmatprep.mubr.f32.mxu0 %v5472_v23  ;;  %5608 = vmatprep.mubr.f32.mxu1 %v5472_v23 }
 0x73f   :  { %5538 = vmatmul.mubr.f32.vlgmr.msra.gmra.mrb[24].mxu0 %v11408_v47  ;;  %5609 = vmatmul.mubr.f32.vlgmr.msra.gmra.mrb[24].mxu1 %v11408_v47 }
 0x740   :  { %8482 = vmatpush1.bf16.msra.mxu0 %v12467_v60  ;;  %8546 = vmatpush1.bf16.msra.mxu1 %v12468_v33 }
 0x741   :  { %5679 = vmatprep.mubr.f32.mxu0 %v5472_v23  ;;  %5750 = vmatprep.mubr.f32.mxu1 %v5472_v23  ;;  %v12802_v23 = vld [vmem:[#allocation148_spill] sm:$0xff] }
 0x742   :  { %8484 = vmatprep.subr.bf16.mxu0 %v12469_v15  ;;  %8548 = vmatprep.subr.bf16.mxu1 %v12470_v63 }
 0x744   :  { %8486 = vmatpush1.bf16.msra.mxu0 %v12471_v3  ;;  %8550 = vmatpush1.bf16.msra.mxu1 %v12472_v30 }
 0x745   :  { %8488 = vmatprep.subr.bf16.mxu0 %v12473_v4  ;;  %8552 = vmatprep.subr.bf16.mxu1 %v12474_v50 }
 0x748   :  { %8490 = vmatpush1.bf16.msra.mxu0 %v12475_v18  ;;  %8554 = vmatpush1.bf16.msra.mxu1 %v12476_v61 }
 0x749   :  { %8492 = vmatprep.subr.bf16.mxu0 %v12477_v55  ;;  %8556 = vmatprep.subr.bf16.mxu1 %v12478_v6 }
 0x74c   :  { %8494 = vmatpush1.bf16.msra.mxu0 %v12479_v5  ;;  %8558 = vmatpush1.bf16.msra.mxu1 %v12570_v19 }
 0x74d   :  { %8496 = vmatprep.subr.bf16.mxu0 %v12571_v25  ;;  %8560 = vmatprep.subr.bf16.mxu1 %v12572_v1 }
 0x750   :  { %8498 = vmatpush1.bf16.msra.mxu0 %v12573_v12  ;;  %8562 = vmatpush1.bf16.msra.mxu1 %v12574_v17 }
 0x751   :  { %8500 = vmatprep.subr.bf16.mxu0 %v12575_v29  ;;  %8564 = vmatprep.subr.bf16.mxu1 %v12576_v2 }
 0x754   :  { %8502 = vmatpush1.bf16.msra.mxu0 %v12577_v22  ;;  %8566 = vmatpush1.bf16.msra.mxu1 %v12578_v52 }
 0x755   :  { %8504 = vmatprep.subr.bf16.mxu0 %v12579_v58  ;;  %8568 = vmatprep.subr.bf16.mxu1 %v12580_v24 }
 0x758   :  { %8506 = vmatpush1.bf16.msra.mxu0 %v12581_v0  ;;  %8570 = vmatpush1.bf16.msra.mxu1 %v12582_v28 }
 0x759   :  { %8508 = vmatprep.subr.bf16.mxu0 %v12583_v13  ;;  %8572 = vmatprep.subr.bf16.mxu1 %v12674_v38 }
 0x75c   :  { %8510 = vmatpush1.bf16.msra.mxu0 %v12585_v8  ;;  %8574 = vmatpush1.bf16.msra.mxu1 %v12675_v36 }
 0x75d   :  { %8512 = vmatprep.subr.bf16.mxu0 %v12587_v54  ;;  %8576 = vmatprep.subr.bf16.mxu1 %v12588_v35 }
 0x760   :  { %8514 = vmatpush1.bf16.msra.mxu0 %v12589_v16  ;;  %8578 = vmatpush1.bf16.msra.mxu1 %v12590_v56 }
 0x761   :  { %8516 = vmatprep.subr.bf16.mxu0 %v12591_v14  ;;  %8580 = vmatprep.subr.bf16.mxu1 %v12777_v11 }
 0x764   :  { %8518 = vmatpush1.bf16.msra.mxu0 %v12778_v7  ;;  %8582 = vmatpush1.bf16.msra.mxu1 %v12779_v44 }
 0x765   :  { %8520 = vmatprep.subr.bf16.mxu0 %v12780_v26  ;;  %8584 = vmatprep.subr.bf16.mxu1 %v12781_v31 }
 0x768   :  { %8522 = vmatpush1.bf16.msra.mxu0 %v12782_v49  ;;  %8586 = vmatpush1.bf16.msra.mxu1 %v12783_v20 }
 0x769   :  { %8524 = vmatprep.subr.bf16.mxu0 %v12784_v9  ;;  %8588 = vmatprep.subr.bf16.mxu1 %v12785_v32 }
 0x76c   :  { %8526 = vmatpush1.bf16.msra.mxu0 %v12786_v34  ;;  %8590 = vmatpush1.bf16.msra.mxu1 %v12787_v21 }
 0x76d   :  { %8528 = vmatprep.subr.bf16.mxu0 %v12788_v57  ;;  %8592 = vmatprep.subr.bf16.mxu1 %v12789_v27  ;;  %v12872_v27 = vld [vmem:[#allocation160_spill] sm:$0xff]  ;;  %v12873_v57 = vld [vmem:[#allocation161_spill] sm:$0xff] }
 0x770   :  { %8530 = vmatpush1.bf16.msra.mxu0 %v12790_v40  ;;  %8594 = vmatpush1.bf16.msra.mxu1 %v12791_v42  ;;  %v12871_v42 = vld [vmem:[#allocation159_spill] sm:$0xff] }
 0x771   :  { %8532 = vmatprep.subr.bf16.mxu0 %v12792_v59  ;;  %8596 = vmatprep.subr.bf16.mxu1 %v12793_v41  ;;  %v12803_v59 = vld [vmem:[#allocation149_spill] sm:$0xff] }
 0x772   :  { %v12804_v41 = vld [vmem:[#allocation17_spill] sm:$0xff] }
 0x774   :  { %8534 = vmatpush1.bf16.msra.mxu0 %v12794_v37  ;;  %8598 = vmatpush1.bf16.msra.mxu1 %v12795_v53  ;;  %v12805_v37 = vld [vmem:[#allocation18_spill] sm:$0xff] }
 0x775   :  { %8536 = vmatprep.subr.bf16.mxu0 %v12796_v62  ;;  %8600 = vmatprep.subr.bf16.mxu1 %v12797_v46  ;;  %v12806_v46 = vld [vmem:[#allocation19_spill] sm:$0xff]  ;;  %v12815_v62 = vld [vmem:[#allocation28_spill] sm:$0xff]  ;;  %v12870_v53 = vld [vmem:[#allocation158_spill] sm:$0xff] }
 0x778   :  { %8538 = vmatpush1.bf16.msra.mxu0 %v12798_v51  ;;  %8602 = vmatpush1.bf16.msra.mxu1 %v12799_v39  ;;  %v12807_v51 = vld [vmem:[#allocation20_spill] sm:$0xff]  ;;  %v12808_v39 = vld [vmem:[#allocation21_spill] sm:$0xff] }
 0x779   :  { %8540 = vmatprep.subr.bf16.mxu0 %v12800_v45  ;;  %8604 = vmatprep.subr.bf16.mxu1 %v12801_v43  ;;  %v12809_v45 = vld [vmem:[#allocation22_spill] sm:$0xff]  ;;  %v12810_v43 = vld [vmem:[#allocation23_spill] sm:$0xff] }
 0x77c   :  { %8542 = vmatpush1.bf16.msra.mxu0 %v12802_v23  ;;  %8606 = vmatpush1.bf16.msra.mxu1 %v12803_v59  ;;  %v12811_v23 = vld [vmem:[#allocation24_spill] sm:$0xff]  ;;  %v12812_v59 = vld [vmem:[#allocation25_spill] sm:$0xff] }
 0x77d   :  { %8608 = vmatprep.subr.bf16.mxu0 %v12804_v41  ;;  %8672 = vmatprep.subr.bf16.mxu1 %v12805_v37  ;;  %v12813_v41 = vld [vmem:[#allocation26_spill] sm:$0xff]  ;;  %v12814_v37 = vld [vmem:[#allocation27_spill] sm:$0xff] }
 0x77f   :  { %5680 = vmatmul.mubr.f32.vlgmr.msra.gmra.mrb[26].mxu0 %v11408_v47  ;;  %5751 = vmatmul.mubr.f32.vlgmr.msra.gmra.mrb[26].mxu1 %v11408_v47  ;;  %v12816_v47 = vld [vmem:[#allocation29_spill] sm:$0xff] }
 0x780   :  { %8610 = vmatpush1.bf16.msra.mxu0 %v12806_v46  ;;  %8674 = vmatpush1.bf16.msra.mxu1 %v12807_v51  ;;  %v12817_v46 = vld [vmem:[#allocation30_spill] sm:$0xff]  ;;  %v12818_v51 = vld [vmem:[#allocation32_spill] sm:$0xff] }
 0x781   :  { %8612 = vmatprep.subr.bf16.mxu0 %v12808_v39  ;;  %8676 = vmatprep.subr.bf16.mxu1 %v12809_v45  ;;  %v12819_v39 = vld [vmem:[#allocation33_spill] sm:$0xff]  ;;  %v12820_v45 = vld [vmem:[#allocation34_spill] sm:$0xff] }
 0x784   :  { %8614 = vmatpush1.bf16.msra.mxu0 %v12810_v43  ;;  %8678 = vmatpush1.bf16.msra.mxu1 %v12811_v23  ;;  %v12821_v43 = vld [vmem:[#allocation35_spill] sm:$0xff]  ;;  %v12822_v23 = vld [vmem:[#allocation37_spill] sm:$0xff] }
 0x785   :  { %8616 = vmatprep.subr.bf16.mxu0 %v12812_v59  ;;  %8680 = vmatprep.subr.bf16.mxu1 %v12813_v41  ;;  %v12823_v59 = vld [vmem:[#allocation40_spill] sm:$0xff]  ;;  %v12824_v41 = vld [vmem:[#allocation42_spill] sm:$0xff] }
 0x788   :  { %8618 = vmatpush1.bf16.msra.mxu0 %v12814_v37  ;;  %8682 = vmatpush1.bf16.msra.mxu1 %v12815_v62  ;;  %v12825_v37 = vld [vmem:[#allocation43_spill] sm:$0xff]  ;;  %v12826_v62 = vld [vmem:[#allocation44_spill] sm:$0xff] }
 0x789   :  { %8620 = vmatprep.subr.bf16.mxu0 %v12816_v47  ;;  %8684 = vmatprep.subr.bf16.mxu1 %v12817_v46  ;;  %v12827_v47 = vld [vmem:[#allocation45_spill] sm:$0xff]  ;;  %v12828_v46 = vld [vmem:[#allocation46_spill] sm:$0xff] }
 0x78c   :  { %8622 = vmatpush1.bf16.msra.mxu0 %v12818_v51  ;;  %8686 = vmatpush1.bf16.msra.mxu1 %v12819_v39  ;;  %v12829_v51 = vld [vmem:[#allocation47_spill] sm:$0xff]  ;;  %v12830_v39 = vld [vmem:[#allocation48_spill] sm:$0xff] }
 0x78d   :  { %8624 = vmatprep.subr.bf16.mxu0 %v12820_v45  ;;  %8688 = vmatprep.subr.bf16.mxu1 %v12821_v43  ;;  %v12831_v45 = vld [vmem:[#allocation49_spill] sm:$0xff]  ;;  %v12832_v43 = vld [vmem:[#allocation50_spill] sm:$0xff] }
 0x790   :  { %8626 = vmatpush1.bf16.msra.mxu0 %v12822_v23  ;;  %8690 = vmatpush1.bf16.msra.mxu1 %v12823_v59  ;;  %v12833_v23 = vld [vmem:[#allocation51_spill] sm:$0xff]  ;;  %v12834_v59 = vld [vmem:[#allocation52_spill] sm:$0xff] }
 0x791   :  { %8628 = vmatprep.subr.bf16.mxu0 %v12824_v41  ;;  %8692 = vmatprep.subr.bf16.mxu1 %v12825_v37  ;;  %v12835_v41 = vld [vmem:[#allocation53_spill] sm:$0xff]  ;;  %v12836_v37 = vld [vmem:[#allocation54_spill] sm:$0xff] }
 0x794   :  { %8630 = vmatpush1.bf16.msra.mxu0 %v12826_v62  ;;  %8694 = vmatpush1.bf16.msra.mxu1 %v12827_v47  ;;  %v12837_v62 = vld [vmem:[#allocation55_spill] sm:$0xff]  ;;  %v12838_v47 = vld [vmem:[#allocation56_spill] sm:$0xff] }
 0x795   :  { %8632 = vmatprep.subr.bf16.mxu0 %v12828_v46  ;;  %8696 = vmatprep.subr.bf16.mxu1 %v12829_v51  ;;  %v12839_v46 = vld [vmem:[#allocation57_spill] sm:$0xff]  ;;  %v12840_v51 = vld [vmem:[#allocation58_spill] sm:$0xff] }
 0x798   :  { %8634 = vmatpush1.bf16.msra.mxu0 %v12830_v39  ;;  %8698 = vmatpush1.bf16.msra.mxu1 %v12831_v45  ;;  %v12841_v39 = vld [vmem:[#allocation59_spill] sm:$0xff]  ;;  %v12842_v45 = vld [vmem:[#allocation60_spill] sm:$0xff] }
 0x799   :  { %8636 = vmatprep.subr.bf16.mxu0 %v12832_v43  ;;  %8700 = vmatprep.subr.bf16.mxu1 %v12833_v23  ;;  %v12843_v43 = vld [vmem:[#allocation61_spill] sm:$0xff]  ;;  %v12844_v23 = vld [vmem:[#allocation62_spill] sm:$0xff] }
 0x79c   :  { %8638 = vmatpush1.bf16.msra.mxu0 %v12834_v59  ;;  %8702 = vmatpush1.bf16.msra.mxu1 %v12835_v41  ;;  %v12845_v59 = vld [vmem:[#allocation63_spill] sm:$0xff]  ;;  %v12846_v41 = vld [vmem:[#allocation64_spill] sm:$0xff] }
 0x79d   :  { %8640 = vmatprep.subr.bf16.mxu0 %v12836_v37  ;;  %8704 = vmatprep.subr.bf16.mxu1 %v12837_v62  ;;  %v12847_v37 = vld [vmem:[#allocation65_spill] sm:$0xff]  ;;  %v12848_v62 = vld [vmem:[#allocation66_spill] sm:$0xff] }
 0x7a0   :  { %8642 = vmatpush1.bf16.msra.mxu0 %v12838_v47  ;;  %8706 = vmatpush1.bf16.msra.mxu1 %v12839_v46  ;;  %v12849_v47 = vld [vmem:[#allocation67_spill] sm:$0xff]  ;;  %v12850_v46 = vld [vmem:[#allocation68_spill] sm:$0xff] }
 0x7a1   :  { %8644 = vmatprep.subr.bf16.mxu0 %v12840_v51  ;;  %8708 = vmatprep.subr.bf16.mxu1 %v12841_v39  ;;  %v12851_v51 = vld [vmem:[#allocation69_spill] sm:$0xff]  ;;  %v12852_v39 = vld [vmem:[#allocation70_spill] sm:$0xff] }
 0x7a4   :  { %8646 = vmatpush1.bf16.msra.mxu0 %v12842_v45  ;;  %8710 = vmatpush1.bf16.msra.mxu1 %v12843_v43  ;;  %v12853_v45 = vld [vmem:[#allocation71_spill] sm:$0xff]  ;;  %v12854_v43 = vld [vmem:[#allocation72_spill] sm:$0xff] }
 0x7a5   :  { %8648 = vmatprep.subr.bf16.mxu0 %v12844_v23  ;;  %8712 = vmatprep.subr.bf16.mxu1 %v12845_v59  ;;  %v12855_v23 = vld [vmem:[#allocation73_spill] sm:$0xff]  ;;  %v12856_v59 = vld [vmem:[#allocation74_spill] sm:$0xff] }
 0x7a8   :  { %8650 = vmatpush1.bf16.msra.mxu0 %v12846_v41  ;;  %8714 = vmatpush1.bf16.msra.mxu1 %v12847_v37  ;;  %v12857_v41 = vld [vmem:[#allocation75_spill] sm:$0xff]  ;;  %v12858_v37 = vld [vmem:[#allocation76_spill] sm:$0xff] }
 0x7a9   :  { %8652 = vmatprep.subr.bf16.mxu0 %v12848_v62  ;;  %8716 = vmatprep.subr.bf16.mxu1 %v12849_v47  ;;  %v12859_v62 = vld [vmem:[#allocation77_spill] sm:$0xff]  ;;  %v12860_v47 = vld [vmem:[#allocation78_spill] sm:$0xff] }
 0x7ac   :  { %8654 = vmatpush1.bf16.msra.mxu0 %v12850_v46  ;;  %8718 = vmatpush1.bf16.msra.mxu1 %v12851_v51  ;;  %v12861_v46 = vld [vmem:[#allocation79_spill] sm:$0xff]  ;;  %v12862_v51 = vld [vmem:[#allocation80_spill] sm:$0xff] }
 0x7ad   :  { %8656 = vmatprep.subr.bf16.mxu0 %v12852_v39  ;;  %8720 = vmatprep.subr.bf16.mxu1 %v12853_v45  ;;  %v12863_v39 = vld [vmem:[#allocation81_spill] sm:$0xff]  ;;  %v12864_v45 = vld [vmem:[#allocation82_spill] sm:$0xff] }
 0x7b0   :  { %8658 = vmatpush1.bf16.msra.mxu0 %v12854_v43  ;;  %8722 = vmatpush1.bf16.msra.mxu1 %v12855_v23  ;;  %v12865_v43 = vld [vmem:[#allocation83_spill] sm:$0xff]  ;;  %v12866_v23 = vld [vmem:[#allocation84_spill] sm:$0xff] }
 0x7b1   :  { %8660 = vmatprep.subr.bf16.mxu0 %v12856_v59  ;;  %8724 = vmatprep.subr.bf16.mxu1 %v12857_v41  ;;  %v12867_v59 = vld [vmem:[#allocation85_spill] sm:$0xff]  ;;  %v12868_v41 = vld [vmem:[#allocation86_spill] sm:$0xff] }
 0x7b4   :  { %8662 = vmatpush1.bf16.msra.mxu0 %v12858_v37  ;;  %8726 = vmatpush1.bf16.msra.mxu1 %v12859_v62  ;;  %v12869_v37 = vld [vmem:[#allocation87_spill] sm:$0xff] }
 0x7b5   :  { %8664 = vmatprep.subr.bf16.mxu0 %v12860_v47  ;;  %8728 = vmatprep.subr.bf16.mxu1 %v12861_v46 }
 0x7b8   :  { %8666 = vmatpush1.bf16.msra.mxu0 %v12862_v51  ;;  %8730 = vmatpush1.bf16.msra.mxu1 %v12863_v39 }
 0x7b9   :  { %8668 = vmatprep.subr.bf16.mxu0 %v12864_v45  ;;  %8732 = vmatprep.subr.bf16.mxu1 %v12865_v43 }
 0x7bc   :  { %8670 = vmatpush1.bf16.msra.mxu0 %v12866_v23  ;;  %8734 = vmatpush1.bf16.msra.mxu1 %v12867_v59 }
 0x7bd   :  { %8736 = vmatprep.subr.bf16.mxu0 %v12868_v41  ;;  %8800 = vmatprep.subr.bf16.mxu1 %v12869_v37 }
 0x812   :  { %v5539_v62 = vpop.f32.mrb[24].mxu0  ;;  %v5610_v47 = vpop.f32.mrb[24].mxu1 }
 0x813   :  { %v5757_v46 = vadd.f32 %v5539_v62, %v12870_v53  ;;  %v5759_v51 = vadd.f32 %v5610_v47, %v12871_v42  ;;  %v5541_v40 = vpop.f32.mrb[25].mxu0  ;;  %v5612_v39 = vpop.f32.mrb[25].mxu1 }
 0x814   :  { %v5758_v45 = vadd.f32 %v5541_v40, %v12872_v27  ;;  %v5760_v43 = vadd.f32 %v5612_v39, %v12873_v57  ;;  %v12875_v39 = vld [vmem:[#allocation163_spill] sm:$0xff] }
 0x815   :  { %v7301_v21 = vmul.f32 -1.442695, %v5757_v46  ;;  %v12874_v46 = vld [vmem:[#allocation162_spill] sm:$0xff] }
 0x816   :  { %v7302_v23 = vmul.f32 -1.442695, %v5758_v45 }
 0x817   :  { %9615 = vpow2.f32 %v7301_v21 }
 0x818   :  { %9617 = vpow2.f32 %v7302_v23 }
 0x819   :  { %9619 = vtanh.f32 %v5759_v51  ;;  %v12876_v51 = vld [vmem:[#allocation164_spill] sm:$0xff] }
 0x821   :  { %v9616_v59 = vpop.eup %9615 }
 0x822   :  { %v9618_v41 = vpop.eup %9617  ;;  %v5764_v34 = vadd.f32 1.0, %v9616_v59 }
 0x823   :  { %v5770_v37 = vadd.f32 1.0, %v9618_v41  ;;  %v9620_v53 = vpop.eup %9619 }
 0x824   :  { %9621 = vrcp.f32 %v5764_v34  ;;  %v12877_v34 = vld [vmem:[#allocation165_spill] sm:$0xff] }
 0x825   :  { %9623 = vrcp.f32 %v5770_v37 }
 0x82e   :  { %v9622_v62 = vpop.eup %9621 }
 0x82f   :  { %v9624_v42 = vpop.eup %9623  ;;  %v5781_v47 = vmul.f32 %v9622_v62, %v9620_v53  ;;  %v7303_v53 = vmul.f32 -1.442695, %v5760_v43 }
 0x830   :  { %v5780_v32 = vmul.f32 %v9624_v42, %v11381_v10 }
 0x832   :  { %v11547_v27 = vadd.f32 %v5781_v47, %v5780_v32 }
 0x852   :  { %v5681_v57 = vpop.f32.mrb[26].mxu0  ;;  %v5752_v40 = vpop.f32.mrb[26].mxu1 }
 0x853   :  { %v5785_v21 = vadd.f32 %v5681_v57, %v12874_v46  ;;  %v5787_v45 = vadd.f32 %v5752_v40, %v12875_v39  ;;  %v5683_v23 = vpop.f32.mrb[27].mxu0  ;;  %v5754_v59 = vpop.f32.mrb[27].mxu1 }
 0x854   :  { %v5786_v41 = vadd.f32 %v5683_v23, %v12876_v51  ;;  %v5788_v37 = vadd.f32 %v5754_v59, %v12877_v34 }
 0x855   :  { %v7304_v9 = vmul.f32 -1.442695, %v5785_v21 }
 0x856   :  { %v7305_v20 = vmul.f32 -1.442695, %v5786_v41  ;;  %v7306_v10 = vmul.f32 -1.442695, %v5788_v37 }
 0x857   :  { %9625 = vpow2.f32 %v7304_v9 }
 0x858   :  { %9627 = vpow2.f32 %v7305_v20 }
 0x859   :  { %9629 = vpow2.f32 %v7303_v53 }
 0x85a   :  { %9631 = vpow2.f32 %v7306_v10  ;;  %v12879_v10 = vld [vmem:[#allocation130_spill] sm:$0xff] }
 0x85b   :  { %9633 = vtanh.f32 %v5787_v45 }
 0x861   :  { %v9626_v32 = vpop.eup %9625 }
 0x862   :  { %v9628_v62 = vpop.eup %9627  ;;  %v5792_v42 = vadd.f32 1.0, %v9626_v32  ;;  %v12880_v32 = vld [vmem:[#allocation131_spill] sm:$0xff] }
 0x863   :  { %v5798_v47 = vadd.f32 1.0, %v9628_v62  ;;  %v9630_v57 = vpop.eup %9629  ;;  %v12881_v62 = vld [vmem:[#allocation132_spill] sm:$0xff] }
 0x864   :  { %9635 = vrcp.f32 %v5792_v42  ;;  %v9632_v40 = vpop.eup %9631  ;;  %v5777_v9 = vadd.f32 1.0, %v9630_v57  ;;  %v12882_v42 = vld [vmem:[#allocation133_spill] sm:$0xff]  ;;  %v12884_v57 = vld [vmem:[#allocation135_spill] sm:$0xff] }
 0x865   :  { %9637 = vrcp.f32 %v5798_v47  ;;  %v9634_v46 = vpop.eup %9633  ;;  %v5805_v59 = vadd.f32 1.0, %v9632_v40  ;;  %v12883_v47 = vld [vmem:[#allocation134_spill] sm:$0xff]  ;;  %v12885_v40 = vld [vmem:[#allocation136_spill] sm:$0xff] }
 0x866   :  { %9639 = vtanh.f32 %v11547_v27 }
 0x867   :  { %9641 = vrcp.f32 %v5805_v59  ;;  %v12890_v59 = vld [vmem:[#allocation141_spill] sm:$0xff] }
 0x86e   :  { %v9636_v39 = vpop.eup %9635 }
 0x86f   :  { %v9638_v23 = vpop.eup %9637  ;;  %v5809_v21 = vmul.f32 %v9636_v39, %v9634_v46  ;;  %v12886_v46 = vld [vmem:[#allocation137_spill] sm:$0xff]  ;;  %v12887_v39 = vld [vmem:[#allocation138_spill] sm:$0xff] }
 0x870   :  { %v5808_v20 = vmul.f32 %v9638_v23, %v11404_v48  ;;  %v9640_v45 = vpop.eup %9639  ;;  %v12878_v48 = vld [vmem:[#allocation129_spill] sm:$0xff]  ;;  %v12888_v23 = vld [vmem:[#allocation139_spill] sm:$0xff] }
 0x871   :  { %v9642_v51 = vpop.eup %9641 }
 0x872   :  { %v11554_v43 = vadd.f32 %v5809_v21, %v5808_v20  ;;  %v12889_v21 = vld [vmem:[#allocation140_spill] sm:$0xff]  ;;  %v12891_v20 = vld [vmem:[#allocation142_spill] sm:$0xff] }
 0x874   :  { %9643 = vtanh.f32 %v11554_v43 }
 0x875   :  { %9645 = vrcp.f32 %v5777_v9  ;;  %v12892_v9 = vld [vmem:[#allocation143_spill] sm:$0xff] }
 0x87e   :  { %v9644_v41 = vpop.eup %9643 }
 0x87f   :  { %v9646_v34 = vpop.eup %9645  ;;  %v5812_v37 = vmul.f32 %v9644_v41, %v9642_v51  ;;  %v12894_v51 = vld [vmem:[#allocation145_spill] sm:$0xff]  ;;  %v12895_v41 = vld [vmem:[#allocation146_spill] sm:$0xff] }
 0x880   :  { %v11558_v53 = vmul.f32 %v9646_v34, %v9640_v45  ;;  %v12893_v45 = vld [vmem:[#allocation144_spill] sm:$0xff]  ;;  %v12896_v34 = vld [vmem:[#allocation147_spill] sm:$0xff] }
 0x881   :  { %5877 = vmatprep.mubr.f32.mxu0 %v5812_v37  ;;  %5948 = vmatprep.mubr.f32.mxu1 %v5812_v37 }
 0x882   :  { %5878 = vmatmul.mubr.f32.vlgmr.msra.gmra.mrb[28].mxu0 %v11558_v53  ;;  %5949 = vmatmul.mubr.f32.vlgmr.msra.gmra.mrb[28].mxu1 %v11558_v53 }
 0x883   :  { %8738 = vmatpush1.bf16.msra.mxu0 %v12467_v60  ;;  %8802 = vmatpush1.bf16.msra.mxu1 %v12468_v33 }
 0x884   :  { %6019 = vmatprep.mubr.f32.mxu0 %v5812_v37  ;;  %6090 = vmatprep.mubr.f32.mxu1 %v5812_v37  ;;  %v12897_v37 = vld [vmem:[#allocation148_spill] sm:$0xff] }
 0x885   :  { %8740 = vmatprep.subr.bf16.mxu0 %v12469_v15  ;;  %8804 = vmatprep.subr.bf16.mxu1 %v12470_v63 }
 0x887   :  { %8742 = vmatpush1.bf16.msra.mxu0 %v12471_v3  ;;  %8806 = vmatpush1.bf16.msra.mxu1 %v12472_v30 }
 0x888   :  { %8744 = vmatprep.subr.bf16.mxu0 %v12473_v4  ;;  %8808 = vmatprep.subr.bf16.mxu1 %v12474_v50 }
 0x88b   :  { %8746 = vmatpush1.bf16.msra.mxu0 %v12475_v18  ;;  %8810 = vmatpush1.bf16.msra.mxu1 %v12476_v61 }
 0x88c   :  { %8748 = vmatprep.subr.bf16.mxu0 %v12477_v55  ;;  %8812 = vmatprep.subr.bf16.mxu1 %v12478_v6 }
 0x88f   :  { %8750 = vmatpush1.bf16.msra.mxu0 %v12479_v5  ;;  %8814 = vmatpush1.bf16.msra.mxu1 %v12570_v19 }
 0x890   :  { %8752 = vmatprep.subr.bf16.mxu0 %v12571_v25  ;;  %8816 = vmatprep.subr.bf16.mxu1 %v12572_v1 }
 0x893   :  { %8754 = vmatpush1.bf16.msra.mxu0 %v12573_v12  ;;  %8818 = vmatpush1.bf16.msra.mxu1 %v12574_v17 }
 0x894   :  { %8756 = vmatprep.subr.bf16.mxu0 %v12575_v29  ;;  %8820 = vmatprep.subr.bf16.mxu1 %v12576_v2 }
 0x897   :  { %8758 = vmatpush1.bf16.msra.mxu0 %v12577_v22  ;;  %8822 = vmatpush1.bf16.msra.mxu1 %v12578_v52 }
 0x898   :  { %8760 = vmatprep.subr.bf16.mxu0 %v12579_v58  ;;  %8824 = vmatprep.subr.bf16.mxu1 %v12580_v24 }
 0x89b   :  { %8762 = vmatpush1.bf16.msra.mxu0 %v12581_v0  ;;  %8826 = vmatpush1.bf16.msra.mxu1 %v12582_v28 }
 0x89c   :  { %8764 = vmatprep.subr.bf16.mxu0 %v12583_v13  ;;  %8828 = vmatprep.subr.bf16.mxu1 %v12674_v38 }
 0x89f   :  { %8766 = vmatpush1.bf16.msra.mxu0 %v12585_v8  ;;  %8830 = vmatpush1.bf16.msra.mxu1 %v12675_v36 }
 0x8a0   :  { %8768 = vmatprep.subr.bf16.mxu0 %v12587_v54  ;;  %8832 = vmatprep.subr.bf16.mxu1 %v12588_v35 }
 0x8a3   :  { %8770 = vmatpush1.bf16.msra.mxu0 %v12589_v16  ;;  %8834 = vmatpush1.bf16.msra.mxu1 %v12590_v56 }
 0x8a4   :  { %8772 = vmatprep.subr.bf16.mxu0 %v12591_v14  ;;  %8836 = vmatprep.subr.bf16.mxu1 %v12777_v11 }
 0x8a7   :  { %8774 = vmatpush1.bf16.msra.mxu0 %v12778_v7  ;;  %8838 = vmatpush1.bf16.msra.mxu1 %v12779_v44 }
 0x8a8   :  { %8776 = vmatprep.subr.bf16.mxu0 %v12780_v26  ;;  %8840 = vmatprep.subr.bf16.mxu1 %v12781_v31 }
 0x8ab   :  { %8778 = vmatpush1.bf16.msra.mxu0 %v12782_v49  ;;  %8842 = vmatpush1.bf16.msra.mxu1 %v12878_v48 }
 0x8ac   :  { %8780 = vmatprep.subr.bf16.mxu0 %v12879_v10  ;;  %8844 = vmatprep.subr.bf16.mxu1 %v12880_v32 }
 0x8af   :  { %8782 = vmatpush1.bf16.msra.mxu0 %v12881_v62  ;;  %8846 = vmatpush1.bf16.msra.mxu1 %v12882_v42 }
 0x8b0   :  { %8784 = vmatprep.subr.bf16.mxu0 %v12883_v47  ;;  %8848 = vmatprep.subr.bf16.mxu1 %v12884_v57  ;;  %v12967_v57 = vld [vmem:[#allocation168_spill] sm:$0xff]  ;;  %v12968_v47 = vld [vmem:[#allocation169_spill] sm:$0xff] }
 0x8b3   :  { %8786 = vmatpush1.bf16.msra.mxu0 %v12885_v40  ;;  %8850 = vmatpush1.bf16.msra.mxu1 %v12886_v46  ;;  %v12966_v46 = vld [vmem:[#allocation167_spill] sm:$0xff] }
 0x8b4   :  { %8788 = vmatprep.subr.bf16.mxu0 %v12887_v39  ;;  %8852 = vmatprep.subr.bf16.mxu1 %v12888_v23  ;;  %v12898_v39 = vld [vmem:[#allocation149_spill] sm:$0xff] }
 0x8b5   :  { %v12899_v23 = vld [vmem:[#allocation17_spill] sm:$0xff] }
 0x8b7   :  { %8790 = vmatpush1.bf16.msra.mxu0 %v12889_v21  ;;  %8854 = vmatpush1.bf16.msra.mxu1 %v12890_v59  ;;  %v12900_v21 = vld [vmem:[#allocation18_spill] sm:$0xff] }
 0x8b8   :  { %8792 = vmatprep.subr.bf16.mxu0 %v12891_v20  ;;  %8856 = vmatprep.subr.bf16.mxu1 %v12892_v9  ;;  %v12901_v9 = vld [vmem:[#allocation19_spill] sm:$0xff]  ;;  %v12910_v20 = vld [vmem:[#allocation28_spill] sm:$0xff]  ;;  %v12965_v59 = vld [vmem:[#allocation166_spill] sm:$0xff] }
 0x8bb   :  { %8794 = vmatpush1.bf16.msra.mxu0 %v12893_v45  ;;  %8858 = vmatpush1.bf16.msra.mxu1 %v12894_v51  ;;  %v12902_v45 = vld [vmem:[#allocation20_spill] sm:$0xff]  ;;  %v12903_v51 = vld [vmem:[#allocation21_spill] sm:$0xff] }
 0x8bc   :  { %8796 = vmatprep.subr.bf16.mxu0 %v12895_v41  ;;  %8860 = vmatprep.subr.bf16.mxu1 %v12896_v34  ;;  %v12904_v41 = vld [vmem:[#allocation22_spill] sm:$0xff]  ;;  %v12905_v34 = vld [vmem:[#allocation23_spill] sm:$0xff] }
 0x8bf   :  { %8798 = vmatpush1.bf16.msra.mxu0 %v12897_v37  ;;  %8862 = vmatpush1.bf16.msra.mxu1 %v12898_v39  ;;  %v12906_v37 = vld [vmem:[#allocation24_spill] sm:$0xff]  ;;  %v12907_v39 = vld [vmem:[#allocation25_spill] sm:$0xff] }
 0x8c0   :  { %8864 = vmatprep.subr.bf16.mxu0 %v12899_v23  ;;  %8928 = vmatprep.subr.bf16.mxu1 %v12900_v21  ;;  %v12908_v23 = vld [vmem:[#allocation26_spill] sm:$0xff]  ;;  %v12909_v21 = vld [vmem:[#allocation27_spill] sm:$0xff] }
 0x8c2   :  { %6020 = vmatmul.mubr.f32.vlgmr.msra.gmra.mrb[30].mxu0 %v11558_v53  ;;  %6091 = vmatmul.mubr.f32.vlgmr.msra.gmra.mrb[30].mxu1 %v11558_v53  ;;  %v12911_v53 = vld [vmem:[#allocation29_spill] sm:$0xff] }
 0x8c3   :  { %8866 = vmatpush1.bf16.msra.mxu0 %v12901_v9  ;;  %8930 = vmatpush1.bf16.msra.mxu1 %v12902_v45  ;;  %v12912_v9 = vld [vmem:[#allocation30_spill] sm:$0xff]  ;;  %v12913_v45 = vld [vmem:[#allocation32_spill] sm:$0xff] }
 0x8c4   :  { %8868 = vmatprep.subr.bf16.mxu0 %v12903_v51  ;;  %8932 = vmatprep.subr.bf16.mxu1 %v12904_v41  ;;  %v12914_v51 = vld [vmem:[#allocation33_spill] sm:$0xff]  ;;  %v12915_v41 = vld [vmem:[#allocation34_spill] sm:$0xff] }
 0x8c7   :  { %8870 = vmatpush1.bf16.msra.mxu0 %v12905_v34  ;;  %8934 = vmatpush1.bf16.msra.mxu1 %v12906_v37  ;;  %v12916_v34 = vld [vmem:[#allocation35_spill] sm:$0xff]  ;;  %v12917_v37 = vld [vmem:[#allocation37_spill] sm:$0xff] }
 0x8c8   :  { %8872 = vmatprep.subr.bf16.mxu0 %v12907_v39  ;;  %8936 = vmatprep.subr.bf16.mxu1 %v12908_v23  ;;  %v12918_v39 = vld [vmem:[#allocation40_spill] sm:$0xff]  ;;  %v12919_v23 = vld [vmem:[#allocation42_spill] sm:$0xff] }
 0x8cb   :  { %8874 = vmatpush1.bf16.msra.mxu0 %v12909_v21  ;;  %8938 = vmatpush1.bf16.msra.mxu1 %v12910_v20  ;;  %v12920_v21 = vld [vmem:[#allocation43_spill] sm:$0xff]  ;;  %v12921_v20 = vld [vmem:[#allocation44_spill] sm:$0xff] }
 0x8cc   :  { %8876 = vmatprep.subr.bf16.mxu0 %v12911_v53  ;;  %8940 = vmatprep.subr.bf16.mxu1 %v12912_v9  ;;  %v12922_v53 = vld [vmem:[#allocation45_spill] sm:$0xff]  ;;  %v12923_v9 = vld [vmem:[#allocation46_spill] sm:$0xff] }
 0x8cf   :  { %8878 = vmatpush1.bf16.msra.mxu0 %v12913_v45  ;;  %8942 = vmatpush1.bf16.msra.mxu1 %v12914_v51  ;;  %v12924_v45 = vld [vmem:[#allocation47_spill] sm:$0xff]  ;;  %v12925_v51 = vld [vmem:[#allocation48_spill] sm:$0xff] }
 0x8d0   :  { %8880 = vmatprep.subr.bf16.mxu0 %v12915_v41  ;;  %8944 = vmatprep.subr.bf16.mxu1 %v12916_v34  ;;  %v12926_v41 = vld [vmem:[#allocation49_spill] sm:$0xff]  ;;  %v12927_v34 = vld [vmem:[#allocation50_spill] sm:$0xff] }
 0x8d3   :  { %8882 = vmatpush1.bf16.msra.mxu0 %v12917_v37  ;;  %8946 = vmatpush1.bf16.msra.mxu1 %v12918_v39  ;;  %v12928_v37 = vld [vmem:[#allocation51_spill] sm:$0xff]  ;;  %v12929_v39 = vld [vmem:[#allocation52_spill] sm:$0xff] }
 0x8d4   :  { %8884 = vmatprep.subr.bf16.mxu0 %v12919_v23  ;;  %8948 = vmatprep.subr.bf16.mxu1 %v12920_v21  ;;  %v12930_v23 = vld [vmem:[#allocation53_spill] sm:$0xff]  ;;  %v12931_v21 = vld [vmem:[#allocation54_spill] sm:$0xff] }
 0x8d7   :  { %8886 = vmatpush1.bf16.msra.mxu0 %v12921_v20  ;;  %8950 = vmatpush1.bf16.msra.mxu1 %v12922_v53  ;;  %v12932_v20 = vld [vmem:[#allocation55_spill] sm:$0xff]  ;;  %v12933_v53 = vld [vmem:[#allocation56_spill] sm:$0xff] }
 0x8d8   :  { %8888 = vmatprep.subr.bf16.mxu0 %v12923_v9  ;;  %8952 = vmatprep.subr.bf16.mxu1 %v12924_v45  ;;  %v12934_v9 = vld [vmem:[#allocation57_spill] sm:$0xff]  ;;  %v12935_v45 = vld [vmem:[#allocation58_spill] sm:$0xff] }
 0x8db   :  { %8890 = vmatpush1.bf16.msra.mxu0 %v12925_v51  ;;  %8954 = vmatpush1.bf16.msra.mxu1 %v12926_v41  ;;  %v12936_v51 = vld [vmem:[#allocation59_spill] sm:$0xff]  ;;  %v12937_v41 = vld [vmem:[#allocation60_spill] sm:$0xff] }
 0x8dc   :  { %8892 = vmatprep.subr.bf16.mxu0 %v12927_v34  ;;  %8956 = vmatprep.subr.bf16.mxu1 %v12928_v37  ;;  %v12938_v34 = vld [vmem:[#allocation61_spill] sm:$0xff]  ;;  %v12939_v37 = vld [vmem:[#allocation62_spill] sm:$0xff] }
 0x8df   :  { %8894 = vmatpush1.bf16.msra.mxu0 %v12929_v39  ;;  %8958 = vmatpush1.bf16.msra.mxu1 %v12930_v23  ;;  %v12940_v39 = vld [vmem:[#allocation63_spill] sm:$0xff]  ;;  %v12941_v23 = vld [vmem:[#allocation64_spill] sm:$0xff] }
 0x8e0   :  { %8896 = vmatprep.subr.bf16.mxu0 %v12931_v21  ;;  %8960 = vmatprep.subr.bf16.mxu1 %v12932_v20  ;;  %v12942_v21 = vld [vmem:[#allocation65_spill] sm:$0xff]  ;;  %v12943_v20 = vld [vmem:[#allocation66_spill] sm:$0xff] }
 0x8e3   :  { %8898 = vmatpush1.bf16.msra.mxu0 %v12933_v53  ;;  %8962 = vmatpush1.bf16.msra.mxu1 %v12934_v9  ;;  %v12944_v53 = vld [vmem:[#allocation67_spill] sm:$0xff]  ;;  %v12945_v9 = vld [vmem:[#allocation68_spill] sm:$0xff] }
 0x8e4   :  { %8900 = vmatprep.subr.bf16.mxu0 %v12935_v45  ;;  %8964 = vmatprep.subr.bf16.mxu1 %v12936_v51  ;;  %v12946_v45 = vld [vmem:[#allocation69_spill] sm:$0xff]  ;;  %v12947_v51 = vld [vmem:[#allocation70_spill] sm:$0xff] }
 0x8e7   :  { %8902 = vmatpush1.bf16.msra.mxu0 %v12937_v41  ;;  %8966 = vmatpush1.bf16.msra.mxu1 %v12938_v34  ;;  %v12948_v41 = vld [vmem:[#allocation71_spill] sm:$0xff]  ;;  %v12949_v34 = vld [vmem:[#allocation72_spill] sm:$0xff] }
 0x8e8   :  { %8904 = vmatprep.subr.bf16.mxu0 %v12939_v37  ;;  %8968 = vmatprep.subr.bf16.mxu1 %v12940_v39  ;;  %v12950_v37 = vld [vmem:[#allocation73_spill] sm:$0xff]  ;;  %v12951_v39 = vld [vmem:[#allocation74_spill] sm:$0xff] }
 0x8eb   :  { %8906 = vmatpush1.bf16.msra.mxu0 %v12941_v23  ;;  %8970 = vmatpush1.bf16.msra.mxu1 %v12942_v21  ;;  %v12952_v23 = vld [vmem:[#allocation75_spill] sm:$0xff]  ;;  %v12953_v21 = vld [vmem:[#allocation76_spill] sm:$0xff] }
 0x8ec   :  { %8908 = vmatprep.subr.bf16.mxu0 %v12943_v20  ;;  %8972 = vmatprep.subr.bf16.mxu1 %v12944_v53  ;;  %v12954_v20 = vld [vmem:[#allocation77_spill] sm:$0xff]  ;;  %v12955_v53 = vld [vmem:[#allocation78_spill] sm:$0xff] }
 0x8ef   :  { %8910 = vmatpush1.bf16.msra.mxu0 %v12945_v9  ;;  %8974 = vmatpush1.bf16.msra.mxu1 %v12946_v45  ;;  %v12956_v9 = vld [vmem:[#allocation79_spill] sm:$0xff]  ;;  %v12957_v45 = vld [vmem:[#allocation80_spill] sm:$0xff] }
 0x8f0   :  { %8912 = vmatprep.subr.bf16.mxu0 %v12947_v51  ;;  %8976 = vmatprep.subr.bf16.mxu1 %v12948_v41  ;;  %v12958_v51 = vld [vmem:[#allocation81_spill] sm:$0xff]  ;;  %v12959_v41 = vld [vmem:[#allocation82_spill] sm:$0xff] }
 0x8f3   :  { %8914 = vmatpush1.bf16.msra.mxu0 %v12949_v34  ;;  %8978 = vmatpush1.bf16.msra.mxu1 %v12950_v37  ;;  %v12960_v34 = vld [vmem:[#allocation83_spill] sm:$0xff]  ;;  %v12961_v37 = vld [vmem:[#allocation84_spill] sm:$0xff] }
 0x8f4   :  { %8916 = vmatprep.subr.bf16.mxu0 %v12951_v39  ;;  %8980 = vmatprep.subr.bf16.mxu1 %v12952_v23  ;;  %v12962_v39 = vld [vmem:[#allocation85_spill] sm:$0xff]  ;;  %v12963_v23 = vld [vmem:[#allocation86_spill] sm:$0xff] }
 0x8f7   :  { %8918 = vmatpush1.bf16.msra.mxu0 %v12953_v21  ;;  %8982 = vmatpush1.bf16.msra.mxu1 %v12954_v20  ;;  %v12964_v21 = vld [vmem:[#allocation87_spill] sm:$0xff] }
 0x8f8   :  { %8920 = vmatprep.subr.bf16.mxu0 %v12955_v53  ;;  %8984 = vmatprep.subr.bf16.mxu1 %v12956_v9 }
 0x8fb   :  { %8922 = vmatpush1.bf16.msra.mxu0 %v12957_v45  ;;  %8986 = vmatpush1.bf16.msra.mxu1 %v12958_v51 }
 0x8fc   :  { %8924 = vmatprep.subr.bf16.mxu0 %v12959_v41  ;;  %8988 = vmatprep.subr.bf16.mxu1 %v12960_v34 }
 0x8ff   :  { %8926 = vmatpush1.bf16.msra.mxu0 %v12961_v37  ;;  %8990 = vmatpush1.bf16.msra.mxu1 %v12962_v39 }
 0x900   :  { %8992 = vmatprep.subr.bf16.mxu0 %v12963_v23  ;;  %9056 = vmatprep.subr.bf16.mxu1 %v12964_v21 }
 0x955   :  { %v5879_v20 = vpop.f32.mrb[28].mxu0  ;;  %v5950_v53 = vpop.f32.mrb[28].mxu1 }
 0x956   :  { %v6097_v9 = vadd.f32 %v5879_v20, %v12965_v59  ;;  %v6099_v45 = vadd.f32 %v5950_v53, %v12966_v46  ;;  %v5881_v40 = vpop.f32.mrb[29].mxu0  ;;  %v5952_v51 = vpop.f32.mrb[29].mxu1 }
 0x957   :  { %v6098_v41 = vadd.f32 %v5881_v40, %v12967_v57  ;;  %v6100_v34 = vadd.f32 %v5952_v51, %v12968_v47  ;;  %v12970_v51 = vld [vmem:[#allocation171_spill] sm:$0xff] }
 0x958   :  { %v7307_v42 = vmul.f32 -1.442695, %v6097_v9  ;;  %v12969_v9 = vld [vmem:[#allocation170_spill] sm:$0xff] }
 0x959   :  { %v7308_v37 = vmul.f32 -1.442695, %v6098_v41 }
 0x95a   :  { %9647 = vpow2.f32 %v7307_v42 }
 0x95b   :  { %9649 = vpow2.f32 %v7308_v37 }
 0x95c   :  { %9651 = vtanh.f32 %v6099_v45  ;;  %v12971_v45 = vld [vmem:[#allocation172_spill] sm:$0xff] }
 0x964   :  { %v9648_v39 = vpop.eup %9647 }
 0x965   :  { %v9650_v23 = vpop.eup %9649  ;;  %v6104_v62 = vadd.f32 1.0, %v9648_v39 }
 0x966   :  { %v6110_v21 = vadd.f32 1.0, %v9650_v23  ;;  %v9652_v59 = vpop.eup %9651 }
 0x967   :  { %9653 = vrcp.f32 %v6104_v62  ;;  %v12972_v62 = vld [vmem:[#allocation173_spill] sm:$0xff] }
 0x968   :  { %9655 = vrcp.f32 %v6110_v21 }
 0x971   :  { %v9654_v20 = vpop.eup %9653 }
 0x972   :  { %v9656_v46 = vpop.eup %9655  ;;  %v6121_v53 = vmul.f32 %v9654_v20, %v9652_v59  ;;  %v7309_v59 = vmul.f32 -1.442695, %v6100_v34 }
 0x973   :  { %v6120_v32 = vmul.f32 %v9656_v46, %v11547_v27 }
 0x975   :  { %v11697_v57 = vadd.f32 %v6121_v53, %v6120_v32 }
 0x995   :  { %v6021_v47 = vpop.f32.mrb[30].mxu0  ;;  %v6092_v40 = vpop.f32.mrb[30].mxu1 }
 0x996   :  { %v6125_v42 = vadd.f32 %v6021_v47, %v12969_v9  ;;  %v6127_v41 = vadd.f32 %v6092_v40, %v12970_v51  ;;  %v6023_v37 = vpop.f32.mrb[31].mxu0  ;;  %v6094_v39 = vpop.f32.mrb[31].mxu1 }
 0x997   :  { %v6126_v23 = vadd.f32 %v6023_v37, %v12971_v45  ;;  %v6128_v21 = vadd.f32 %v6094_v39, %v12972_v62 }
 0x998   :  { %v7310_v10 = vmul.f32 -1.442695, %v6125_v42 }
 0x999   :  { %v7311_v48 = vmul.f32 -1.442695, %v6126_v23  ;;  %v7312_v27 = vmul.f32 -1.442695, %v6128_v21 }
 0x99a   :  { %9657 = vpow2.f32 %v7310_v10 }
 0x99b   :  { %9659 = vpow2.f32 %v7311_v48 }
 0x99c   :  { %9661 = vpow2.f32 %v7309_v59 }
 0x99d   :  { %9663 = vpow2.f32 %v7312_v27  ;;  %v12974_v27 = vld [vmem:[#allocation130_spill] sm:$0xff] }
 0x99e   :  { %9665 = vtanh.f32 %v6127_v41 }
 0x9a4   :  { %v9658_v32 = vpop.eup %9657 }
 0x9a5   :  { %v9660_v20 = vpop.eup %9659  ;;  %v6132_v46 = vadd.f32 1.0, %v9658_v32  ;;  %v12975_v32 = vld [vmem:[#allocation131_spill] sm:$0xff] }
 0x9a6   :  { %v6138_v53 = vadd.f32 1.0, %v9660_v20  ;;  %v9662_v47 = vpop.eup %9661  ;;  %v12976_v20 = vld [vmem:[#allocation132_spill] sm:$0xff] }
 0x9a7   :  { %9667 = vrcp.f32 %v6132_v46  ;;  %v9664_v40 = vpop.eup %9663  ;;  %v6117_v10 = vadd.f32 1.0, %v9662_v47  ;;  %v12977_v46 = vld [vmem:[#allocation133_spill] sm:$0xff]  ;;  %v12979_v47 = vld [vmem:[#allocation135_spill] sm:$0xff] }
 0x9a8   :  { %9669 = vrcp.f32 %v6138_v53  ;;  %v9666_v9 = vpop.eup %9665  ;;  %v6145_v39 = vadd.f32 1.0, %v9664_v40  ;;  %v12978_v53 = vld [vmem:[#allocation134_spill] sm:$0xff]  ;;  %v12980_v40 = vld [vmem:[#allocation136_spill] sm:$0xff] }
 0x9a9   :  { %9671 = vtanh.f32 %v11697_v57 }
 0x9aa   :  { %9673 = vrcp.f32 %v6145_v39  ;;  %v12985_v39 = vld [vmem:[#allocation141_spill] sm:$0xff] }
 0x9b1   :  { %v9668_v51 = vpop.eup %9667 }
 0x9b2   :  { %v9670_v37 = vpop.eup %9669  ;;  %v6149_v42 = vmul.f32 %v9668_v51, %v9666_v9  ;;  %v12981_v9 = vld [vmem:[#allocation137_spill] sm:$0xff]  ;;  %v12982_v51 = vld [vmem:[#allocation138_spill] sm:$0xff] }
 0x9b3   :  { %v6148_v48 = vmul.f32 %v9670_v37, %v11554_v43  ;;  %v9672_v41 = vpop.eup %9671  ;;  %v12973_v43 = vld [vmem:[#allocation129_spill] sm:$0xff]  ;;  %v12983_v37 = vld [vmem:[#allocation139_spill] sm:$0xff] }
 0x9b4   :  { %v9674_v45 = vpop.eup %9673 }
 0x9b5   :  { %v11704_v34 = vadd.f32 %v6149_v42, %v6148_v48  ;;  %v12984_v42 = vld [vmem:[#allocation140_spill] sm:$0xff]  ;;  %v12986_v48 = vld [vmem:[#allocation142_spill] sm:$0xff] }
 0x9b7   :  { %9675 = vtanh.f32 %v11704_v34 }
 0x9b8   :  { %9677 = vrcp.f32 %v6117_v10  ;;  %v12987_v10 = vld [vmem:[#allocation143_spill] sm:$0xff] }
 0x9c1   :  { %v9676_v23 = vpop.eup %9675 }
 0x9c2   :  { %v9678_v62 = vpop.eup %9677  ;;  %v6152_v21 = vmul.f32 %v9676_v23, %v9674_v45  ;;  %v12989_v45 = vld [vmem:[#allocation145_spill] sm:$0xff]  ;;  %v12990_v23 = vld [vmem:[#allocation146_spill] sm:$0xff] }
 0x9c3   :  { %v11708_v59 = vmul.f32 %v9678_v62, %v9672_v41  ;;  %v12988_v41 = vld [vmem:[#allocation144_spill] sm:$0xff]  ;;  %v12991_v62 = vld [vmem:[#allocation147_spill] sm:$0xff] }
 0x9c4   :  { %6217 = vmatprep.mubr.f32.mxu0 %v6152_v21  ;;  %6288 = vmatprep.mubr.f32.mxu1 %v6152_v21 }
 0x9c5   :  { %6218 = vmatmul.mubr.f32.vlgmr.msra.gmra.mrb[32].mxu0 %v11708_v59  ;;  %6289 = vmatmul.mubr.f32.vlgmr.msra.gmra.mrb[32].mxu1 %v11708_v59 }
 0x9c6   :  { %8994 = vmatpush1.bf16.msra.mxu0 %v12467_v60  ;;  %9058 = vmatpush1.bf16.msra.mxu1 %v12468_v33 }
 0x9c7   :  { %6359 = vmatprep.mubr.f32.mxu0 %v6152_v21  ;;  %6430 = vmatprep.mubr.f32.mxu1 %v6152_v21  ;;  %v12992_v21 = vld [vmem:[#allocation148_spill] sm:$0xff] }
 0x9c8   :  { %8996 = vmatprep.subr.bf16.mxu0 %v12469_v15  ;;  %9060 = vmatprep.subr.bf16.mxu1 %v12470_v63 }
 0x9ca   :  { %8998 = vmatpush1.bf16.msra.mxu0 %v12471_v3  ;;  %9062 = vmatpush1.bf16.msra.mxu1 %v12472_v30 }
 0x9cb   :  { %9000 = vmatprep.subr.bf16.mxu0 %v12473_v4  ;;  %9064 = vmatprep.subr.bf16.mxu1 %v12474_v50 }
 0x9ce   :  { %9002 = vmatpush1.bf16.msra.mxu0 %v12475_v18  ;;  %9066 = vmatpush1.bf16.msra.mxu1 %v12476_v61 }
 0x9cf   :  { %9004 = vmatprep.subr.bf16.mxu0 %v12477_v55  ;;  %9068 = vmatprep.subr.bf16.mxu1 %v12478_v6 }
 0x9d2   :  { %9006 = vmatpush1.bf16.msra.mxu0 %v12479_v5  ;;  %9070 = vmatpush1.bf16.msra.mxu1 %v12570_v19 }
 0x9d3   :  { %9008 = vmatprep.subr.bf16.mxu0 %v12571_v25  ;;  %9072 = vmatprep.subr.bf16.mxu1 %v12572_v1 }
 0x9d6   :  { %9010 = vmatpush1.bf16.msra.mxu0 %v12573_v12  ;;  %9074 = vmatpush1.bf16.msra.mxu1 %v12574_v17 }
 0x9d7   :  { %9012 = vmatprep.subr.bf16.mxu0 %v12575_v29  ;;  %9076 = vmatprep.subr.bf16.mxu1 %v12576_v2 }
 0x9da   :  { %9014 = vmatpush1.bf16.msra.mxu0 %v12577_v22  ;;  %9078 = vmatpush1.bf16.msra.mxu1 %v12578_v52 }
 0x9db   :  { %9016 = vmatprep.subr.bf16.mxu0 %v12579_v58  ;;  %9080 = vmatprep.subr.bf16.mxu1 %v12580_v24 }
 0x9de   :  { %9018 = vmatpush1.bf16.msra.mxu0 %v12581_v0  ;;  %9082 = vmatpush1.bf16.msra.mxu1 %v12582_v28 }
 0x9df   :  { %9020 = vmatprep.subr.bf16.mxu0 %v12583_v13  ;;  %9084 = vmatprep.subr.bf16.mxu1 %v12674_v38 }
 0x9e2   :  { %9022 = vmatpush1.bf16.msra.mxu0 %v12585_v8  ;;  %9086 = vmatpush1.bf16.msra.mxu1 %v12675_v36 }
 0x9e3   :  { %9024 = vmatprep.subr.bf16.mxu0 %v12587_v54  ;;  %9088 = vmatprep.subr.bf16.mxu1 %v12588_v35 }
 0x9e6   :  { %9026 = vmatpush1.bf16.msra.mxu0 %v12589_v16  ;;  %9090 = vmatpush1.bf16.msra.mxu1 %v12590_v56 }
 0x9e7   :  { %9028 = vmatprep.subr.bf16.mxu0 %v12591_v14  ;;  %9092 = vmatprep.subr.bf16.mxu1 %v12777_v11 }
 0x9ea   :  { %9030 = vmatpush1.bf16.msra.mxu0 %v12778_v7  ;;  %9094 = vmatpush1.bf16.msra.mxu1 %v12779_v44 }
 0x9eb   :  { %9032 = vmatprep.subr.bf16.mxu0 %v12780_v26  ;;  %9096 = vmatprep.subr.bf16.mxu1 %v12781_v31 }
 0x9ee   :  { %9034 = vmatpush1.bf16.msra.mxu0 %v12782_v49  ;;  %9098 = vmatpush1.bf16.msra.mxu1 %v12973_v43 }
 0x9ef   :  { %9036 = vmatprep.subr.bf16.mxu0 %v12974_v27  ;;  %9100 = vmatprep.subr.bf16.mxu1 %v12975_v32 }
 0x9f2   :  { %9038 = vmatpush1.bf16.msra.mxu0 %v12976_v20  ;;  %9102 = vmatpush1.bf16.msra.mxu1 %v12977_v46 }
 0x9f3   :  { %9040 = vmatprep.subr.bf16.mxu0 %v12978_v53  ;;  %9104 = vmatprep.subr.bf16.mxu1 %v12979_v47  ;;  %v13062_v47 = vld [vmem:[#allocation176_spill] sm:$0xff]  ;;  %v13063_v53 = vld [vmem:[#allocation177_spill] sm:$0xff] }
 0x9f6   :  { %9042 = vmatpush1.bf16.msra.mxu0 %v12980_v40  ;;  %9106 = vmatpush1.bf16.msra.mxu1 %v12981_v9  ;;  %v13061_v9 = vld [vmem:[#allocation175_spill] sm:$0xff] }
 0x9f7   :  { %9044 = vmatprep.subr.bf16.mxu0 %v12982_v51  ;;  %9108 = vmatprep.subr.bf16.mxu1 %v12983_v37  ;;  %v12993_v51 = vld [vmem:[#allocation149_spill] sm:$0xff] }
 0x9f8   :  { %v12994_v37 = vld [vmem:[#allocation17_spill] sm:$0xff] }
 0x9fa   :  { %9046 = vmatpush1.bf16.msra.mxu0 %v12984_v42  ;;  %9110 = vmatpush1.bf16.msra.mxu1 %v12985_v39  ;;  %v12995_v42 = vld [vmem:[#allocation18_spill] sm:$0xff] }
 0x9fb   :  { %9048 = vmatprep.subr.bf16.mxu0 %v12986_v48  ;;  %9112 = vmatprep.subr.bf16.mxu1 %v12987_v10  ;;  %v12996_v10 = vld [vmem:[#allocation19_spill] sm:$0xff]  ;;  %v13005_v48 = vld [vmem:[#allocation28_spill] sm:$0xff]  ;;  %v13060_v39 = vld [vmem:[#allocation174_spill] sm:$0xff] }
 0x9fe   :  { %9050 = vmatpush1.bf16.msra.mxu0 %v12988_v41  ;;  %9114 = vmatpush1.bf16.msra.mxu1 %v12989_v45  ;;  %v12997_v41 = vld [vmem:[#allocation20_spill] sm:$0xff]  ;;  %v12998_v45 = vld [vmem:[#allocation21_spill] sm:$0xff] }
 0x9ff   :  { %9052 = vmatprep.subr.bf16.mxu0 %v12990_v23  ;;  %9116 = vmatprep.subr.bf16.mxu1 %v12991_v62  ;;  %v12999_v23 = vld [vmem:[#allocation22_spill] sm:$0xff]  ;;  %v13000_v62 = vld [vmem:[#allocation23_spill] sm:$0xff] }
 0xa02   :  { %9054 = vmatpush1.bf16.msra.mxu0 %v12992_v21  ;;  %9118 = vmatpush1.bf16.msra.mxu1 %v12993_v51  ;;  %v13001_v21 = vld [vmem:[#allocation24_spill] sm:$0xff]  ;;  %v13002_v51 = vld [vmem:[#allocation25_spill] sm:$0xff] }
 0xa03   :  { %9120 = vmatprep.subr.bf16.mxu0 %v12994_v37  ;;  %9184 = vmatprep.subr.bf16.mxu1 %v12995_v42  ;;  %v13003_v37 = vld [vmem:[#allocation26_spill] sm:$0xff]  ;;  %v13004_v42 = vld [vmem:[#allocation27_spill] sm:$0xff] }
 0xa05   :  { %6360 = vmatmul.mubr.f32.vlgmr.msra.gmra.mrb[34].mxu0 %v11708_v59  ;;  %6431 = vmatmul.mubr.f32.vlgmr.msra.gmra.mrb[34].mxu1 %v11708_v59  ;;  %v13006_v59 = vld [vmem:[#allocation29_spill] sm:$0xff] }
 0xa06   :  { %9122 = vmatpush1.bf16.msra.mxu0 %v12996_v10  ;;  %9186 = vmatpush1.bf16.msra.mxu1 %v12997_v41  ;;  %v13007_v10 = vld [vmem:[#allocation30_spill] sm:$0xff]  ;;  %v13008_v41 = vld [vmem:[#allocation32_spill] sm:$0xff] }
 0xa07   :  { %9124 = vmatprep.subr.bf16.mxu0 %v12998_v45  ;;  %9188 = vmatprep.subr.bf16.mxu1 %v12999_v23  ;;  %v13009_v45 = vld [vmem:[#allocation33_spill] sm:$0xff]  ;;  %v13010_v23 = vld [vmem:[#allocation34_spill] sm:$0xff] }
 0xa0a   :  { %9126 = vmatpush1.bf16.msra.mxu0 %v13000_v62  ;;  %9190 = vmatpush1.bf16.msra.mxu1 %v13001_v21  ;;  %v13011_v62 = vld [vmem:[#allocation35_spill] sm:$0xff]  ;;  %v13012_v21 = vld [vmem:[#allocation37_spill] sm:$0xff] }
 0xa0b   :  { %9128 = vmatprep.subr.bf16.mxu0 %v13002_v51  ;;  %9192 = vmatprep.subr.bf16.mxu1 %v13003_v37  ;;  %v13013_v51 = vld [vmem:[#allocation40_spill] sm:$0xff]  ;;  %v13014_v37 = vld [vmem:[#allocation42_spill] sm:$0xff] }
 0xa0e   :  { %9130 = vmatpush1.bf16.msra.mxu0 %v13004_v42  ;;  %9194 = vmatpush1.bf16.msra.mxu1 %v13005_v48  ;;  %v13015_v42 = vld [vmem:[#allocation43_spill] sm:$0xff]  ;;  %v13016_v48 = vld [vmem:[#allocation44_spill] sm:$0xff] }
 0xa0f   :  { %9132 = vmatprep.subr.bf16.mxu0 %v13006_v59  ;;  %9196 = vmatprep.subr.bf16.mxu1 %v13007_v10  ;;  %v13017_v59 = vld [vmem:[#allocation45_spill] sm:$0xff]  ;;  %v13018_v10 = vld [vmem:[#allocation46_spill] sm:$0xff] }
 0xa12   :  { %9134 = vmatpush1.bf16.msra.mxu0 %v13008_v41  ;;  %9198 = vmatpush1.bf16.msra.mxu1 %v13009_v45  ;;  %v13019_v41 = vld [vmem:[#allocation47_spill] sm:$0xff]  ;;  %v13020_v45 = vld [vmem:[#allocation48_spill] sm:$0xff] }
 0xa13   :  { %9136 = vmatprep.subr.bf16.mxu0 %v13010_v23  ;;  %9200 = vmatprep.subr.bf16.mxu1 %v13011_v62  ;;  %v13021_v23 = vld [vmem:[#allocation49_spill] sm:$0xff]  ;;  %v13022_v62 = vld [vmem:[#allocation50_spill] sm:$0xff] }
 0xa16   :  { %9138 = vmatpush1.bf16.msra.mxu0 %v13012_v21  ;;  %9202 = vmatpush1.bf16.msra.mxu1 %v13013_v51  ;;  %v13023_v21 = vld [vmem:[#allocation51_spill] sm:$0xff]  ;;  %v13024_v51 = vld [vmem:[#allocation52_spill] sm:$0xff] }
 0xa17   :  { %9140 = vmatprep.subr.bf16.mxu0 %v13014_v37  ;;  %9204 = vmatprep.subr.bf16.mxu1 %v13015_v42  ;;  %v13025_v37 = vld [vmem:[#allocation53_spill] sm:$0xff]  ;;  %v13026_v42 = vld [vmem:[#allocation54_spill] sm:$0xff] }
 0xa1a   :  { %9142 = vmatpush1.bf16.msra.mxu0 %v13016_v48  ;;  %9206 = vmatpush1.bf16.msra.mxu1 %v13017_v59  ;;  %v13027_v48 = vld [vmem:[#allocation55_spill] sm:$0xff]  ;;  %v13028_v59 = vld [vmem:[#allocation56_spill] sm:$0xff] }
 0xa1b   :  { %9144 = vmatprep.subr.bf16.mxu0 %v13018_v10  ;;  %9208 = vmatprep.subr.bf16.mxu1 %v13019_v41  ;;  %v13029_v10 = vld [vmem:[#allocation57_spill] sm:$0xff]  ;;  %v13030_v41 = vld [vmem:[#allocation58_spill] sm:$0xff] }
 0xa1e   :  { %9146 = vmatpush1.bf16.msra.mxu0 %v13020_v45  ;;  %9210 = vmatpush1.bf16.msra.mxu1 %v13021_v23  ;;  %v13031_v45 = vld [vmem:[#allocation59_spill] sm:$0xff]  ;;  %v13032_v23 = vld [vmem:[#allocation60_spill] sm:$0xff] }
 0xa1f   :  { %9148 = vmatprep.subr.bf16.mxu0 %v13022_v62  ;;  %9212 = vmatprep.subr.bf16.mxu1 %v13023_v21  ;;  %v13033_v62 = vld [vmem:[#allocation61_spill] sm:$0xff]  ;;  %v13034_v21 = vld [vmem:[#allocation62_spill] sm:$0xff] }
 0xa22   :  { %9150 = vmatpush1.bf16.msra.mxu0 %v13024_v51  ;;  %9214 = vmatpush1.bf16.msra.mxu1 %v13025_v37  ;;  %v13035_v51 = vld [vmem:[#allocation63_spill] sm:$0xff]  ;;  %v13036_v37 = vld [vmem:[#allocation64_spill] sm:$0xff] }
 0xa23   :  { %9152 = vmatprep.subr.bf16.mxu0 %v13026_v42  ;;  %9216 = vmatprep.subr.bf16.mxu1 %v13027_v48  ;;  %v13037_v42 = vld [vmem:[#allocation65_spill] sm:$0xff]  ;;  %v13038_v48 = vld [vmem:[#allocation66_spill] sm:$0xff] }
 0xa26   :  { %9154 = vmatpush1.bf16.msra.mxu0 %v13028_v59  ;;  %9218 = vmatpush1.bf16.msra.mxu1 %v13029_v10  ;;  %v13039_v59 = vld [vmem:[#allocation67_spill] sm:$0xff]  ;;  %v13040_v10 = vld [vmem:[#allocation68_spill] sm:$0xff] }
 0xa27   :  { %9156 = vmatprep.subr.bf16.mxu0 %v13030_v41  ;;  %9220 = vmatprep.subr.bf16.mxu1 %v13031_v45  ;;  %v13041_v41 = vld [vmem:[#allocation69_spill] sm:$0xff]  ;;  %v13042_v45 = vld [vmem:[#allocation70_spill] sm:$0xff] }
 0xa2a   :  { %9158 = vmatpush1.bf16.msra.mxu0 %v13032_v23  ;;  %9222 = vmatpush1.bf16.msra.mxu1 %v13033_v62  ;;  %v13043_v23 = vld [vmem:[#allocation71_spill] sm:$0xff]  ;;  %v13044_v62 = vld [vmem:[#allocation72_spill] sm:$0xff] }
 0xa2b   :  { %9160 = vmatprep.subr.bf16.mxu0 %v13034_v21  ;;  %9224 = vmatprep.subr.bf16.mxu1 %v13035_v51  ;;  %v13045_v21 = vld [vmem:[#allocation73_spill] sm:$0xff]  ;;  %v13046_v51 = vld [vmem:[#allocation74_spill] sm:$0xff] }
 0xa2e   :  { %9162 = vmatpush1.bf16.msra.mxu0 %v13036_v37  ;;  %9226 = vmatpush1.bf16.msra.mxu1 %v13037_v42  ;;  %v13047_v37 = vld [vmem:[#allocation75_spill] sm:$0xff]  ;;  %v13048_v42 = vld [vmem:[#allocation76_spill] sm:$0xff] }
 0xa2f   :  { %9164 = vmatprep.subr.bf16.mxu0 %v13038_v48  ;;  %9228 = vmatprep.subr.bf16.mxu1 %v13039_v59  ;;  %v13049_v48 = vld [vmem:[#allocation77_spill] sm:$0xff]  ;;  %v13050_v59 = vld [vmem:[#allocation78_spill] sm:$0xff] }
 0xa32   :  { %9166 = vmatpush1.bf16.msra.mxu0 %v13040_v10  ;;  %9230 = vmatpush1.bf16.msra.mxu1 %v13041_v41  ;;  %v13051_v10 = vld [vmem:[#allocation79_spill] sm:$0xff]  ;;  %v13052_v41 = vld [vmem:[#allocation80_spill] sm:$0xff] }
 0xa33   :  { %9168 = vmatprep.subr.bf16.mxu0 %v13042_v45  ;;  %9232 = vmatprep.subr.bf16.mxu1 %v13043_v23  ;;  %v13053_v45 = vld [vmem:[#allocation81_spill] sm:$0xff]  ;;  %v13054_v23 = vld [vmem:[#allocation82_spill] sm:$0xff] }
 0xa36   :  { %9170 = vmatpush1.bf16.msra.mxu0 %v13044_v62  ;;  %9234 = vmatpush1.bf16.msra.mxu1 %v13045_v21  ;;  %v13055_v62 = vld [vmem:[#allocation83_spill] sm:$0xff]  ;;  %v13056_v21 = vld [vmem:[#allocation84_spill] sm:$0xff] }
 0xa37   :  { %9172 = vmatprep.subr.bf16.mxu0 %v13046_v51  ;;  %9236 = vmatprep.subr.bf16.mxu1 %v13047_v37  ;;  %v13057_v51 = vld [vmem:[#allocation85_spill] sm:$0xff]  ;;  %v13058_v37 = vld [vmem:[#allocation86_spill] sm:$0xff] }
 0xa3a   :  { %9174 = vmatpush1.bf16.msra.mxu0 %v13048_v42  ;;  %9238 = vmatpush1.bf16.msra.mxu1 %v13049_v48  ;;  %v13059_v42 = vld [vmem:[#allocation87_spill] sm:$0xff] }
 0xa3b   :  { %9176 = vmatprep.subr.bf16.mxu0 %v13050_v59  ;;  %9240 = vmatprep.subr.bf16.mxu1 %v13051_v10 }
 0xa3e   :  { %9178 = vmatpush1.bf16.msra.mxu0 %v13052_v41  ;;  %9242 = vmatpush1.bf16.msra.mxu1 %v13053_v45 }
 0xa3f   :  { %9180 = vmatprep.subr.bf16.mxu0 %v13054_v23  ;;  %9244 = vmatprep.subr.bf16.mxu1 %v13055_v62 }
 0xa42   :  { %9182 = vmatpush1.bf16.msra.mxu0 %v13056_v21  ;;  %9246 = vmatpush1.bf16.msra.mxu1 %v13057_v51 }
 0xa43   :  { %9248 = vmatprep.subr.bf16.mxu0 %v13058_v37  ;;  %9312 = vmatprep.subr.bf16.mxu1 %v13059_v42 }
 0xa98   :  { %v6219_v48 = vpop.f32.mrb[32].mxu0  ;;  %v6290_v59 = vpop.f32.mrb[32].mxu1 }
 0xa99   :  { %v6437_v10 = vadd.f32 %v6219_v48, %v13060_v39  ;;  %v6439_v41 = vadd.f32 %v6290_v59, %v13061_v9  ;;  %v6221_v40 = vpop.f32.mrb[33].mxu0  ;;  %v6292_v45 = vpop.f32.mrb[33].mxu1 }
 0xa9a   :  { %v6438_v23 = vadd.f32 %v6221_v40, %v13062_v47  ;;  %v6440_v62 = vadd.f32 %v6292_v45, %v13063_v53  ;;  %v13065_v45 = vld [vmem:[#allocation179_spill] sm:$0xff] }
 0xa9b   :  { %v7313_v46 = vmul.f32 -1.442695, %v6437_v10  ;;  %v13064_v10 = vld [vmem:[#allocation178_spill] sm:$0xff] }
 0xa9c   :  { %v7314_v21 = vmul.f32 -1.442695, %v6438_v23 }
 0xa9d   :  { %9679 = vpow2.f32 %v7313_v46 }
 0xa9e   :  { %9681 = vpow2.f32 %v7314_v21 }
 0xa9f   :  { %9683 = vtanh.f32 %v6439_v41  ;;  %v13066_v41 = vld [vmem:[#allocation180_spill] sm:$0xff] }
 0xaa7   :  { %v9680_v51 = vpop.eup %9679 }
 0xaa8   :  { %v9682_v37 = vpop.eup %9681  ;;  %v6444_v20 = vadd.f32 1.0, %v9680_v51 }
 0xaa9   :  { %v6450_v42 = vadd.f32 1.0, %v9682_v37  ;;  %v9684_v39 = vpop.eup %9683 }
 0xaaa   :  { %9685 = vrcp.f32 %v6444_v20  ;;  %v13067_v20 = vld [vmem:[#allocation181_spill] sm:$0xff] }
 0xaab   :  { %9687 = vrcp.f32 %v6450_v42 }
 0xab4   :  { %v9686_v48 = vpop.eup %9685 }
 0xab5   :  { %v9688_v9 = vpop.eup %9687  ;;  %v6461_v59 = vmul.f32 %v9686_v48, %v9684_v39  ;;  %v7315_v39 = vmul.f32 -1.442695, %v6440_v62 }
 0xab6   :  { %v6460_v32 = vmul.f32 %v9688_v9, %v11697_v57 }
 0xab8   :  { %v11847_v47 = vadd.f32 %v6461_v59, %v6460_v32 }
 0xad8   :  { %v6361_v53 = vpop.f32.mrb[34].mxu0  ;;  %v6432_v40 = vpop.f32.mrb[34].mxu1 }
 0xad9   :  { %v6465_v46 = vadd.f32 %v6361_v53, %v13064_v10  ;;  %v6467_v23 = vadd.f32 %v6432_v40, %v13065_v45  ;;  %v6363_v21 = vpop.f32.mrb[35].mxu0  ;;  %v6434_v51 = vpop.f32.mrb[35].mxu1 }
 0xada   :  { %v6466_v37 = vadd.f32 %v6363_v21, %v13066_v41  ;;  %v6468_v42 = vadd.f32 %v6434_v51, %v13067_v20 }
 0xadb   :  { %v7316_v27 = vmul.f32 -1.442695, %v6465_v46 }
 0xadc   :  { %v7317_v43 = vmul.f32 -1.442695, %v6466_v37  ;;  %v7318_v57 = vmul.f32 -1.442695, %v6468_v42 }
 0xadd   :  { %9689 = vpow2.f32 %v7316_v27 }
 0xade   :  { %9691 = vpow2.f32 %v7317_v43 }
 0xadf   :  { %9693 = vpow2.f32 %v7315_v39 }
 0xae0   :  { %9695 = vpow2.f32 %v7318_v57 }
 0xae1   :  { %9697 = vtanh.f32 %v6467_v23 }
 0xae7   :  { %v9690_v32 = vpop.eup %9689 }
 0xae8   :  { %v9692_v48 = vpop.eup %9691  ;;  %v6472_v9 = vadd.f32 1.0, %v9690_v32 }
 0xae9   :  { %v6478_v59 = vadd.f32 1.0, %v9692_v48  ;;  %v9694_v53 = vpop.eup %9693 }
 0xaea   :  { %9699 = vrcp.f32 %v6472_v9  ;;  %v9696_v40 = vpop.eup %9695  ;;  %v6457_v27 = vadd.f32 1.0, %v9694_v53 }
 0xaeb   :  { %9701 = vrcp.f32 %v6478_v59  ;;  %v9698_v10 = vpop.eup %9697  ;;  %v6485_v51 = vadd.f32 1.0, %v9696_v40 }
 0xaec   :  { %9703 = vtanh.f32 %v11847_v47 }
 0xaed   :  { %9705 = vrcp.f32 %v6485_v51 }
 0xaf4   :  { %v9700_v45 = vpop.eup %9699 }
 0xaf5   :  { %v9702_v21 = vpop.eup %9701  ;;  %v6489_v46 = vmul.f32 %v9700_v45, %v9698_v10 }
 0xaf6   :  { %v6488_v43 = vmul.f32 %v9702_v21, %v11704_v34  ;;  %v9704_v23 = vpop.eup %9703  ;;  %v7325_v21 = vld [vmem:[#allocation10] ss:$0 sm:$0xff] }
 0xaf7   :  { %v9706_v41 = vpop.eup %9705 }
 0xaf8   :  { %v11854_v62 = vadd.f32 %v6489_v46, %v6488_v43 }
 0xafa   :  { %9707 = vtanh.f32 %v11854_v62 }
 0xafb   :  { %9709 = vrcp.f32 %v6457_v27 }
 0xb04   :  { %v9708_v37 = vpop.eup %9707 }
 0xb05   :  { %v9710_v20 = vpop.eup %9709  ;;  %v6492_v42 = vmul.f32 %v9708_v37, %v9706_v41  ;;  %v13093_v41 = vld [vmem:[#allocation186_spill] sm:$0xff] }
 0xb06   :  { %v11858_v39 = vmul.f32 %v9710_v20, %v9704_v23  ;;  %v13094_v20 = vld [vmem:[#allocation187_spill] sm:$0xff] }
 0xb07   :  { %6557 = vmatprep.mubr.f32.mxu0 %v6492_v42  ;;  %6628 = vmatprep.mubr.f32.mxu1 %v6492_v42 }
 0xb08   :  { %6558 = vmatmul.mubr.f32.vlgmr.msra.gmra.mrb[36].mxu0 %v11858_v39  ;;  %6629 = vmatmul.mubr.f32.vlgmr.msra.gmra.mrb[36].mxu1 %v11858_v39 }
 0xb09   :  { %9250 = vmatpush1.bf16.msra.mxu0 %v12467_v60  ;;  %9314 = vmatpush1.bf16.msra.mxu1 %v12468_v33  ;;  %v13068_v60 = vld [vmem:[#allocation129_spill] sm:$0xff]  ;;  %v13069_v33 = vld [vmem:[#allocation130_spill] sm:$0xff] }
 0xb0a   :  { %6699 = vmatprep.mubr.f32.mxu0 %v6492_v42  ;;  %6770 = vmatprep.mubr.f32.mxu1 %v6492_v42 }
 0xb0b   :  { %9252 = vmatprep.subr.bf16.mxu0 %v12469_v15  ;;  %9316 = vmatprep.subr.bf16.mxu1 %v12470_v63  ;;  %v13070_v15 = vld [vmem:[#allocation131_spill] sm:$0xff]  ;;  %v13071_v63 = vld [vmem:[#allocation132_spill] sm:$0xff] }
 0xb0d   :  { %9254 = vmatpush1.bf16.msra.mxu0 %v12471_v3  ;;  %9318 = vmatpush1.bf16.msra.mxu1 %v12472_v30  ;;  %v13072_v3 = vld [vmem:[#allocation133_spill] sm:$0xff]  ;;  %v13073_v30 = vld [vmem:[#allocation134_spill] sm:$0xff] }
 0xb0e   :  { %9256 = vmatprep.subr.bf16.mxu0 %v12473_v4  ;;  %9320 = vmatprep.subr.bf16.mxu1 %v12474_v50  ;;  %v13074_v4 = vld [vmem:[#allocation135_spill] sm:$0xff]  ;;  %v13075_v50 = vld [vmem:[#allocation136_spill] sm:$0xff] }
 0xb11   :  { %9258 = vmatpush1.bf16.msra.mxu0 %v12475_v18  ;;  %9322 = vmatpush1.bf16.msra.mxu1 %v12476_v61  ;;  %v13076_v18 = vld [vmem:[#allocation137_spill] sm:$0xff]  ;;  %v13077_v61 = vld [vmem:[#allocation138_spill] sm:$0xff] }
 0xb12   :  { %9260 = vmatprep.subr.bf16.mxu0 %v12477_v55  ;;  %9324 = vmatprep.subr.bf16.mxu1 %v12478_v6  ;;  %v13078_v55 = vld [vmem:[#allocation139_spill] sm:$0xff]  ;;  %v13079_v6 = vld [vmem:[#allocation140_spill] sm:$0xff] }
 0xb15   :  { %9262 = vmatpush1.bf16.msra.mxu0 %v12479_v5  ;;  %9326 = vmatpush1.bf16.msra.mxu1 %v12570_v19  ;;  %v13080_v5 = vld [vmem:[#allocation141_spill] sm:$0xff]  ;;  %v13081_v19 = vld [vmem:[#allocation142_spill] sm:$0xff] }
 0xb16   :  { %9264 = vmatprep.subr.bf16.mxu0 %v12571_v25  ;;  %9328 = vmatprep.subr.bf16.mxu1 %v12572_v1  ;;  %v13082_v25 = vld [vmem:[#allocation143_spill] sm:$0xff]  ;;  %v13083_v1 = vld [vmem:[#allocation144_spill] sm:$0xff] }
 0xb19   :  { %9266 = vmatpush1.bf16.msra.mxu0 %v12573_v12  ;;  %9330 = vmatpush1.bf16.msra.mxu1 %v12574_v17  ;;  %v13084_v12 = vld [vmem:[#allocation145_spill] sm:$0xff]  ;;  %v13085_v17 = vld [vmem:[#allocation146_spill] sm:$0xff] }
 0xb1a   :  { %9268 = vmatprep.subr.bf16.mxu0 %v12575_v29  ;;  %9332 = vmatprep.subr.bf16.mxu1 %v12576_v2  ;;  %v13086_v29 = vld [vmem:[#allocation147_spill] sm:$0xff]  ;;  %v13087_v2 = vld [vmem:[#allocation148_spill] sm:$0xff] }
 0xb1d   :  { %9270 = vmatpush1.bf16.msra.mxu0 %v12577_v22  ;;  %9334 = vmatpush1.bf16.msra.mxu1 %v12578_v52  ;;  %v13088_v22 = vld [vmem:[#allocation149_spill] sm:$0xff]  ;;  %v11926_v52 = vld [vmem:[#allocation11] ss:$0 sm:$0xff] }
 0xb1e   :  { %9272 = vmatprep.subr.bf16.mxu0 %v12579_v58  ;;  %9336 = vmatprep.subr.bf16.mxu1 %v12580_v24 }
 0xb1f   :  { %6858 = vrot.lane.b32.xlu1 %v11926_v52, %s9897_s5 }
 0xb21   :  { %9274 = vmatpush1.bf16.msra.mxu0 %v12581_v0  ;;  %9338 = vmatpush1.bf16.msra.mxu1 %v12582_v28  ;;  %v13089_v0 = vld [vmem:[#allocation182_spill] sm:$0xff] }
 0xb22   :  { %9276 = vmatprep.subr.bf16.mxu0 %v12583_v13  ;;  %9340 = vmatprep.subr.bf16.mxu1 %v12674_v38  ;;  %v13090_v13 = vld [vmem:[#allocation183_spill] sm:$0xff] }
 0xb23   :  { %6862 = vrot.lane.b32.xlu1 %v11926_v52, %s9898_s21 }
 0xb25   :  { %9278 = vmatpush1.bf16.msra.mxu0 %v12585_v8  ;;  %9342 = vmatpush1.bf16.msra.mxu1 %v12675_v36 }
 0xb26   :  { %9280 = vmatprep.subr.bf16.mxu0 %v12587_v54  ;;  %9344 = vmatprep.subr.bf16.mxu1 %v12588_v35 }
 0xb29   :  { %9282 = vmatpush1.bf16.msra.mxu0 %v12589_v16  ;;  %9346 = vmatpush1.bf16.msra.mxu1 %v12590_v56  ;;  %v13091_v16 = vld [vmem:[#allocation184_spill] sm:$0xff] }
 0xb2a   :  { %9284 = vmatprep.subr.bf16.mxu0 %v12591_v14  ;;  %9348 = vmatprep.subr.bf16.mxu1 %v12777_v11  ;;  %v13092_v14 = vld [vmem:[#allocation185_spill] sm:$0xff] }
 0xb2d   :  { %9286 = vmatpush1.bf16.msra.mxu0 %v12778_v7  ;;  %9350 = vmatpush1.bf16.msra.mxu1 %v12779_v44 }
 0xb2e   :  { %9288 = vmatprep.subr.bf16.mxu0 %v12780_v26  ;;  %9352 = vmatprep.subr.bf16.mxu1 %v12781_v31 }
 0xb31   :  { %9290 = vmatpush1.bf16.msra.mxu0 %v12782_v49  ;;  %9354 = vmatpush1.bf16.msra.mxu1 %v13068_v60  ;;  %v13095_v60 = vld [vmem:[#allocation188_spill] sm:$0xff] }
 0xb32   :  { %9292 = vmatprep.subr.bf16.mxu0 %v13069_v33  ;;  %9356 = vmatprep.subr.bf16.mxu1 %v13070_v15  ;;  %v13096_v15 = vld [vmem:[#allocation189_spill] sm:$0xff] }
 0xb35   :  { %9294 = vmatpush1.bf16.msra.mxu0 %v13071_v63  ;;  %9358 = vmatpush1.bf16.msra.mxu1 %v13072_v3 }
 0xb36   :  { %9296 = vmatprep.subr.bf16.mxu0 %v13073_v30  ;;  %9360 = vmatprep.subr.bf16.mxu1 %v13074_v4 }
 0xb39   :  { %9298 = vmatpush1.bf16.msra.mxu0 %v13075_v50  ;;  %9362 = vmatpush1.bf16.msra.mxu1 %v13076_v18 }
 0xb3a   :  { %9300 = vmatprep.subr.bf16.mxu0 %v13077_v61  ;;  %9364 = vmatprep.subr.bf16.mxu1 %v13078_v55 }
 0xb3d   :  { %9302 = vmatpush1.bf16.msra.mxu0 %v13079_v6  ;;  %9366 = vmatpush1.bf16.msra.mxu1 %v13080_v5 }
 0xb3e   :  { %9304 = vmatprep.subr.bf16.mxu0 %v13081_v19  ;;  %9368 = vmatprep.subr.bf16.mxu1 %v13082_v25 }
 0xb41   :  { %9306 = vmatpush1.bf16.msra.mxu0 %v13083_v1  ;;  %9370 = vmatpush1.bf16.msra.mxu1 %v13084_v12 }
 0xb42   :  { %9308 = vmatprep.subr.bf16.mxu0 %v13085_v17  ;;  %9372 = vmatprep.subr.bf16.mxu1 %v13086_v29 }
 0xb45   :  { %9310 = vmatpush1.bf16.msra.mxu0 %v13087_v2  ;;  %9374 = vmatpush1.bf16.msra.mxu1 %v13088_v22 }
 0xb48   :  { %6700 = vmatmul.mubr.f32.vlgmr.msra.gmra.mrb[38].mxu0 %v11858_v39  ;;  %6771 = vmatmul.mubr.f32.vlgmr.msra.gmra.mrb[38].mxu1 %v11858_v39 }
 0xbdb   :  { %v6559_v58 = vpop.f32.mrb[36].mxu0  ;;  %v6630_v24 = vpop.f32.mrb[36].mxu1 }
 0xbdc   :  { %v6777_v28 = vadd.f32 %v6559_v58, %v13089_v0  ;;  %v6779_v8 = vadd.f32 %v6630_v24, %v13090_v13  ;;  %v6561_v54 = vpop.f32.mrb[37].mxu0  ;;  %v6632_v35 = vpop.f32.mrb[37].mxu1 }
 0xbdd   :  { %v6778_v56 = vadd.f32 %v6561_v54, %v13091_v16  ;;  %v6780_v38 = vadd.f32 %v6632_v35, %v13092_v14  ;;  %v6859_v13 = vpop.permute.xlu1 %6858 }
 0xbde   :  { %v7319_v36 = vmul.f32 -1.442695, %v6777_v28 }
 0xbdf   :  { %v7320_v11 = vmul.f32 -1.442695, %v6778_v56  ;;  %v7321_v7 = vmul.f32 -1.442695, %v6780_v38 }
 0xbe0   :  { %9711 = vpow2.f32 %v7319_v36 }
 0xbe1   :  { %9713 = vpow2.f32 %v7320_v11  ;;  %v6863_v35 = vpop.permute.xlu1 %6862 }
 0xbe2   :  { %9715 = vpow2.f32 %v7321_v7 }
 0xbe3   :  { %9717 = vtanh.f32 %v6779_v8 }
 0xbea   :  { %v9712_v44 = vpop.eup %9711 }
 0xbeb   :  { %v9714_v26 = vpop.eup %9713  ;;  %v6784_v31 = vadd.f32 1.0, %v9712_v44 }
 0xbec   :  { %v6790_v49 = vadd.f32 1.0, %v9714_v26  ;;  %v9716_v34 = vpop.eup %9715 }
 0xbed   :  { %9719 = vrcp.f32 %v6784_v31  ;;  %v9718_v57 = vpop.eup %9717  ;;  %v6797_v59 = vadd.f32 1.0, %v9716_v34 }
 0xbee   :  { %9721 = vrcp.f32 %v6790_v49 }
 0xbef   :  { %9723 = vrcp.f32 %v6797_v59 }
 0xbf7   :  { %v9720_v32 = vpop.eup %9719 }
 0xbf8   :  { %v9722_v48 = vpop.eup %9721  ;;  %v6801_v9 = vmul.f32 %v9720_v32, %v9718_v57 }
 0xbf9   :  { %v6800_v53 = vmul.f32 %v9722_v48, %v11847_v47  ;;  %v9724_v10 = vpop.eup %9723 }
 0xbfb   :  { %v6802_v40 = vadd.f32 %v6801_v9, %v6800_v53 }
 0xbfd   :  { %9725 = vtanh.f32 %v6802_v40 }
 0xc07   :  { %v9726_v45 = vpop.eup %9725 }
 0xc08   :  { %v6804_v46 = vmul.f32 %v9726_v45, %v9724_v10 }
 0xc0a   :  { %v6841_v51 = vmul.f32 %v7325_v21, %v6804_v46 }
 0xc0c   :  { %v6843_v43 = vsel %vm6842_vm1, %v6841_v51, 0.0 }
 0xc0d   :  { %6844 = vadd.xlane.f32.xlu0 %v6843_v43 }
 0xc1b   :  { %v6701_v27 = vpop.f32.mrb[38].mxu0  ;;  %v6772_v23 = vpop.f32.mrb[38].mxu1 }
 0xc1c   :  { %v6805_v37 = vadd.f32 %v6701_v27, %v13093_v41  ;;  %v6807_v42 = vadd.f32 %v6772_v23, %v13094_v20  ;;  %v6703_v39 = vpop.f32.mrb[39].mxu0  ;;  %v6774_v47 = vpop.f32.mrb[39].mxu1 }
 0xc1d   :  { %v6806_v33 = vadd.f32 %v6703_v39, %v13095_v60  ;;  %v6808_v63 = vadd.f32 %v6774_v47, %v13096_v15 }
 0xc1e   :  { %v7322_v3 = vmul.f32 -1.442695, %v6805_v37 }
 0xc1f   :  { %v7323_v30 = vmul.f32 -1.442695, %v6806_v33  ;;  %v7324_v4 = vmul.f32 -1.442695, %v6808_v63 }
 0xc20   :  { %9727 = vpow2.f32 %v7322_v3 }
 0xc21   :  { %9729 = vpow2.f32 %v7323_v30 }
 0xc22   :  { %9731 = vpow2.f32 %v7324_v4 }
 0xc23   :  { %9733 = vtanh.f32 %v6807_v42 }
 0xc2a   :  { %v9728_v50 = vpop.eup %9727 }
 0xc2b   :  { %v9730_v18 = vpop.eup %9729  ;;  %v6812_v61 = vadd.f32 1.0, %v9728_v50 }
 0xc2c   :  { %v6818_v55 = vadd.f32 1.0, %v9730_v18  ;;  %v9732_v6 = vpop.eup %9731 }
 0xc2d   :  { %9735 = vrcp.f32 %v6812_v61  ;;  %v9734_v5 = vpop.eup %9733  ;;  %v6825_v12 = vadd.f32 1.0, %v9732_v6 }
 0xc2e   :  { %9737 = vrcp.f32 %v6818_v55 }
 0xc2f   :  { %9739 = vrcp.f32 %v6825_v12 }
 0xc37   :  { %v9736_v19 = vpop.eup %9735 }
 0xc38   :  { %v9738_v25 = vpop.eup %9737  ;;  %v6829_v1 = vmul.f32 %v9736_v19, %v9734_v5 }
 0xc39   :  { %v6828_v17 = vmul.f32 %v9738_v25, %v11854_v62  ;;  %v9740_v2 = vpop.eup %9739 }
 0xc3b   :  { %v6830_v29 = vadd.f32 %v6829_v1, %v6828_v17 }
 0xc3d   :  { %9741 = vtanh.f32 %v6830_v29 }
 0xc47   :  { %v9742_v22 = vpop.eup %9741 }
 0xc48   :  { %v6832_v58 = vmul.f32 %v9742_v22, %v9740_v2 }
 0xc4a   :  { %v6853_v24 = vmul.f32 %v7325_v21, %v6832_v58 }
 0xc4c   :  { %v6854_v0 = vsel %vm6842_vm1, %v6853_v24, 0.0 }
 0xc4d   :  { %6855 = vadd.xlane.f32.xlu0 %v6854_v0 }
 0xc63   :  { %6867 = vrot.lane.b32.xlu0 %v11926_v52, %s9899_s22 }
 0xc9a   :  { %v6845_v28 = vpop.xlane.xlu0 %6844 }
 0xc9b   :  { %v6852_v8 = vadd.f32 %v11926_v52, %v6845_v28 }
 0xc9d   :  { %v6861_v16 = vmul.f32 %v6859_v13, %v6852_v8 }
 0xcda   :  { %v6856_v54 = vpop.xlane.xlu0 %6855 }
 0xcdb   :  { %v6857_v62 = vadd.f32 %v11926_v52, %v6856_v54 }
 0xcdd   :  { %v6865_v56 = vmul.f32 %v6863_v35, %v6857_v62 }
 0xcde   :  { %v6868_v14 = vpop.permute.xlu0 %6867 }
 0xcdf   :  { %v6866_v38 = vadd.f32 %v6865_v56, %v6861_v16 }
 0xce1   :  { %v6870_v36 = vadd.f32 %v6868_v14, %v6866_v38 }
 0xce3   :  { %6872 = vst.msk [vmem:[%s11954_s6] sm:$0x3] %vm6871_vm2, %v6870_v36 }
 0xce4   :  { %6877 = vsyncpa [#allocation4], 1 }
 0xce5   :  { %6878 = vsyncpa [#allocation6], 1 }
 0xce6   :  { %6879 = vsyncpa [#allocation9], 1 }
 0xce7   :  { %6880 = vsyncpa [#allocation12], 1 }

</bundles_post_ra>
